<compile_context>
chip_gen: v6e
topology: v6e:2x2x1
jax: 0.10.0
libtpu: 0.0.40
codegen_flags: <defaults>
</compile_context>

<pallas_src>
import functools

import jax
import jax.numpy as jnp
from jax.experimental import pallas as pl
from jax.experimental.pallas import tpu as pltpu

_LANE = 128
_MXU_DTYPE = jnp.bfloat16


# --------------------------------------------------------------------------- #
# Kernel
# --------------------------------------------------------------------------- #
def _bottleneck_ir_kernel(stride, identity_sc, *refs):
    """BN1 -> conv3x3 -> (BN2+PReLU) -> conv3x3(stride) -> BN3, + shortcut.

    BN2/BN3/shortcut-BN scales are pre-folded into the weights; only biases
    are added here.  Convs are 9 accumulating per-tap MXU matmuls.
    """
    if identity_sc:
        (x_ref, bn1s_ref, bn1b_ref, w1_ref, bn2b_ref, alpha_ref,
         w2_ref, outb_ref, out_ref,
         pad1_ref, pad2_ref, acc1_ref, acc2_ref) = refs
        scw_ref = None
    else:
        (x_ref, bn1s_ref, bn1b_ref, w1_ref, bn2b_ref, alpha_ref,
         w2_ref, outb_ref, scw_ref, out_ref,
         pad1_ref, pad2_ref, acc1_ref, acc2_ref) = refs

    _, H, W, Ci = x_ref.shape
    _, Ho, Wo, Co = out_ref.shape
    s = stride
    cdt = pad1_ref.dtype                       # MXU compute dtype (bf16)

    def zero_halo(pad_ref, C):
        # Interior is fully overwritten each step; only the 1-wide halo needs
        # zeroing.  Done every step (safe under megacore-parallel batch axis).
        zrow = jnp.zeros((1, W + 2, C), cdt)
        pad_ref[0:1, :, :] = zrow
        pad_ref[H + 1:H + 2, :, :] = zrow
        zcol = jnp.zeros((H, 1, C), cdt)
        pad_ref[1:H + 1, 0:1, :] = zcol
        pad_ref[1:H + 1, W + 1:W + 2, :] = zcol

    # ---- BN1 (f32 on VPU), write zero-padded plane for conv1 --------------- #
    x = x_ref[0].astype(jnp.float32)                            # (H, W, Ci)
    xb = x * bn1s_ref[...].reshape(1, 1, Ci) + bn1b_ref[...].reshape(1, 1, Ci)
    pad1_ref[1:H + 1, 1:W + 1, :] = xb.astype(cdt)
    zero_halo(pad1_ref, Ci)

    # ---- shortcut on ORIGINAL x (strided subsample == MaxPool2d(1, s)) ----- #
    if s == 1:
        xs = x
    else:
        xs = x.reshape(Ho, s, W, Ci)[:, 0]                      # rows 0, s, ...
        xs = xs.reshape(Ho, Wo, s * Ci)[:, :, :Ci]              # cols 0, s, ...
    xs = xs.reshape(Ho * Wo, Ci)

    # conv2 accumulator starts as shortcut + (bn3 bias [+ shortcut-BN bias]).
    if identity_sc:
        acc2_ref[...] = xs + outb_ref[...]                      # Ci == Co here
    else:
        sc = jnp.dot(xs.astype(cdt), scw_ref[...],
                     preferred_element_type=jnp.float32)        # 1x1 conv (folded BN scale)
        acc2_ref[...] = sc + outb_ref[...]

    # ---- conv1: 9 accumulating per-tap MXU matmuls into f32 acc1 ------------ #
    for k in range(9):
        dy, dx = divmod(k, 3)
        patch = pad1_ref[dy:dy + H, dx:dx + W, :].reshape(H * W, Ci)
        tap = jnp.dot(patch, w1_ref[k], preferred_element_type=jnp.float32)
        if k == 0:
            acc1_ref[...] = tap + bn2b_ref[...]                 # BN2 scale folded into w1
        else:
            acc1_ref[...] += tap

    # ---- PReLU (f32 on VPU), write zero-padded plane for conv2 -------------- #
    h = acc1_ref[...]
    h = jnp.where(h >= 0, h, alpha_ref[...] * h)
    pad2_ref[1:H + 1, 1:W + 1, :] = h.astype(cdt).reshape(H, W, Co)
    zero_halo(pad2_ref, Co)

    # ---- conv2 (stride s): 9 accumulating per-tap matmuls into acc2 --------- #
    # Strided selection uses only leading-dim reshapes and lane-aligned slices.
    for k in range(9):
        dy, dx = divmod(k, 3)
        if s == 1:
            patch = pad2_ref[dy:dy + Ho, dx:dx + Wo, :]
        else:
            rows = pad2_ref[dy:dy + s * Ho, :, :]               # (s*Ho, W+2, Co)
            rows = rows.reshape(Ho, s, W + 2, Co)[:, 0]         # rows dy, dy+s, ...
            cols = rows[:, dx:dx + s * Wo, :]                   # (Ho, s*Wo, Co)
            patch = cols.reshape(Ho, Wo, s * Co)[:, :, :Co]     # cols dx, dx+s, ...
        patch = patch.reshape(Ho * Wo, Co)
        acc2_ref[...] += jnp.dot(patch, w2_ref[k],
                                 preferred_element_type=jnp.float32)

    out_ref[0] = acc2_ref[...].reshape(Ho, Wo, Co).astype(out_ref.dtype)


# --------------------------------------------------------------------------- #
# Wrapper (BN-scale folding, channel padding to lane width, BlockSpecs)
# --------------------------------------------------------------------------- #
def _round_up(n, m):
    return (n + m - 1) // m * m


def _pad_axis(a, axis, n):
    if a.shape[axis] == n:
        return a
    pads = [(0, 0)] * a.ndim
    pads[axis] = (0, n - a.shape[axis])
    return jnp.pad(a, pads)


def _pad_vec(v, n):
    return _pad_axis(v, 0, n).reshape(1, n).astype(jnp.float32)


def _vmem_limit_bytes(H, W, Ho, Wo, Ci, Co, identity_sc):
    f32, b16 = 4, 2

    def nb(shape, it):
        n = 1
        for d in shape:
            n *= int(d)
        return n * it

    io = nb((1, H, W, Ci), f32) + nb((1, Ho, Wo, Co), f32)
    const = (nb((9, Ci, Co), b16) + nb((9, Co, Co), b16)
             + 3 * nb((1, Co), f32) + 2 * nb((1, Ci), f32))
    if not identity_sc:
        const += nb((Ci, Co), b16)
    scratch = (nb((H + 2, W + 2, Ci), b16) + nb((H + 2, W + 2, Co), b16)
               + nb((H * W, Co), f32) + nb((Ho * Wo, Co), f32))
    limit = 2 * (io + const) + scratch + (8 << 20)   # double buffers + headroom
    return max(32 << 20, min(limit, 100 << 20))


def bottleneck_ir_forward(x, p, stride):
    N, H, W, Cin = x.shape
    Cout = p["w1"].shape[-1]
    identity_sc = "sc_w" not in p
    if identity_sc:
        assert Cin == Cout
    assert H % stride == 0 and W % stride == 0
    Ho, Wo = H // stride, W // stride
    Ci = _round_up(Cin, _LANE)
    Co = _round_up(Cout, _LANE)

    # Lane-dense operands; padded channels / rows / columns are exactly zero.
    xp = _pad_axis(x, 3, Ci).astype(jnp.float32)    # no-op when Cin % 128 == 0

    # Fold BN2 / BN3 scales into the conv weights' output columns (then pad).
    w1 = p["w1"] * p["bn2_s"].reshape(1, 1, 1, Cout)
    w1 = _pad_axis(_pad_axis(w1, 2, Ci), 3, Co).reshape(9, Ci, Co).astype(_MXU_DTYPE)
    w2 = p["w2"] * p["bn3_s"].reshape(1, 1, 1, Cout)
    w2 = _pad_axis(_pad_axis(w2, 2, Co), 3, Co).reshape(9, Co, Co).astype(_MXU_DTYPE)

    bn1s, bn1b = _pad_vec(p["bn1_s"], Ci), _pad_vec(p["bn1_b"], Ci)
    bn2b = _pad_vec(p["bn2_b"], Co)
    alpha = _pad_vec(p["alpha"], Co)
    if identity_sc:
        outb = _pad_vec(p["bn3_b"], Co)                      # residual bias only
    else:
        outb = _pad_vec(p["bn3_b"] + p["sc_b"], Co)          # + shortcut-BN bias

    vec2 = lambda n: (0, 0)               # noqa: E731
    vec3 = lambda n: (0, 0, 0)            # noqa: E731
    bmap = lambda n: (n, 0, 0, 0)         # noqa: E731

    in_specs = [
        pl.BlockSpec((1, H, W, Ci), bmap),
        pl.BlockSpec((1, Ci), vec2), pl.BlockSpec((1, Ci), vec2),
        pl.BlockSpec((9, Ci, Co), vec3),
        pl.BlockSpec((1, Co), vec2), pl.BlockSpec((1, Co), vec2),
        pl.BlockSpec((9, Co, Co), vec3),
        pl.BlockSpec((1, Co), vec2),
    ]
    args = [xp, bn1s, bn1b, w1, bn2b, alpha, w2, outb]
    if not identity_sc:
        # shortcut 1x1 conv weight with its BN scale folded in.
        scw = p["sc_w"] * p["sc_s"].reshape(1, Cout)
        scw = _pad_axis(_pad_axis(scw, 0, Ci), 1, Co).astype(_MXU_DTYPE)
        in_specs.append(pl.BlockSpec((Ci, Co), vec2))
        args.append(scw)

    kernel = functools.partial(_bottleneck_ir_kernel, stride, identity_sc)

    out = pl.pallas_call(
        kernel,
        out_shape=jax.ShapeDtypeStruct((N, Ho, Wo, Co), jnp.float32),
        grid_spec=pltpu.PrefetchScalarGridSpec(
            num_scalar_prefetch=0,
            grid=(N,),
            in_specs=in_specs,
            out_specs=pl.BlockSpec((1, Ho, Wo, Co), bmap),
            scratch_shapes=[
                pltpu.VMEM((H + 2, W + 2, Ci), _MXU_DTYPE),   # zero-padded BN1(x)
                pltpu.VMEM((H + 2, W + 2, Co), _MXU_DTYPE),   # zero-padded PReLU(h)
                pltpu.VMEM((H * W, Co), jnp.float32),         # conv1 accumulator
                pltpu.VMEM((Ho * Wo, Co), jnp.float32),       # conv2 + shortcut acc
            ],
        ),
        compiler_params=pltpu.CompilerParams(
            dimension_semantics=("parallel",),
            vmem_limit_bytes=_vmem_limit_bytes(H, W, Ho, Wo, Ci, Co, identity_sc),
        ),
    )(*args)
    return out[..., :Cout]


# --------------------------------------------------------------------------- #
# Deterministic parameter construction (matches nn.Module shapes, eval-mode BN)
# --------------------------------------------------------------------------- #
def _fold_bn(key, c, eps=1e-5):
    k1, k2, k3, k4 = jax.random.split(key, 4)
    gamma = 1.0 + 0.1 * jax.random.normal(k1, (c,), jnp.float32)
    beta = 0.1 * jax.random.normal(k2, (c,), jnp.float32)
    mean = 0.1 * jax.random.normal(k3, (c,), jnp.float32)
    var = jnp.abs(1.0 + 0.1 * jax.random.normal(k4, (c,), jnp.float32))
    scale = gamma / jnp.sqrt(var + eps)
    bias = beta - mean * scale
    return scale, bias


def make_params(key, in_c, out_c):
    keys = jax.random.split(key, 8)
    p = {}
    p["bn1_s"], p["bn1_b"] = _fold_bn(keys[0], in_c)
    p["w1"] = 0.1 * jax.random.normal(keys[1], (3, 3, in_c, out_c), jnp.float32)
    p["bn2_s"], p["bn2_b"] = _fold_bn(keys[2], out_c)
    p["alpha"] = jnp.full((out_c,), 0.25, jnp.float32)     # nn.PReLU default
    p["w2"] = 0.1 * jax.random.normal(keys[3], (3, 3, out_c, out_c), jnp.float32)
    p["bn3_s"], p["bn3_b"] = _fold_bn(keys[4], out_c)
    if in_c != out_c:
        # shortcut = Conv2d(1x1, stride, bias=False) + BatchNorm2d
        p["sc_w"] = 0.1 * jax.random.normal(keys[5], (in_c, out_c), jnp.float32)
        p["sc_s"], p["sc_b"] = _fold_bn(keys[6], out_c)
    return p


# --------------------------------------------------------------------------- #
# Pure-JAX reference (mirrors the kernel's BN-fold and bf16 MXU casts)
# --------------------------------------------------------------------------- #
def reference_forward(x, p, stride):
    Cin = x.shape[-1]
    Cout = p["w1"].shape[-1]

    def conv3(h, w, s):
        return jax.lax.conv_general_dilated(
            h.astype(_MXU_DTYPE), w.astype(_MXU_DTYPE), (s, s),
            [(1, 1), (1, 1)], dimension_numbers=("NHWC", "HWIO", "NHWC"),
            preferred_element_type=jnp.float32)

    h = x * p["bn1_s"].reshape(1, 1, 1, Cin) + p["bn1_b"].reshape(1, 1, 1, Cin)
    w1f = p["w1"] * p["bn2_s"].reshape(1, 1, 1, Cout)
    h = conv3(h, w1f, 1) + p["bn2_b"].reshape(1, 1, 1, Cout)
    a = p["alpha"].reshape(1, 1, 1, Cout)
    h = jnp.where(h >= 0, h, a * h)
    w2f = p["w2"] * p["bn3_s"].reshape(1, 1, 1, Cout)
    res = conv3(h, w2f, stride) + p["bn3_b"].reshape(1, 1, 1, Cout)

    xs = x[:, ::stride, ::stride, :]
    if "sc_w" not in p:
        sc = xs                                               # MaxPool2d(1, s)
    else:
        scwf = p["sc_w"] * p["sc_s"].reshape(1, Cout)
        sc = jnp.einsum("nhwc,cd->nhwd", xs.astype(_MXU_DTYPE),
                        scwf.astype(_MXU_DTYPE),
                        preferred_element_type=jnp.float32)
        sc = sc + p["sc_b"].reshape(1, 1, 1, Cout)
    return sc + res


# --------------------------------------------------------------------------- #
if __name__ == "__main__":
    key = jax.random.PRNGKey(0)
    kx, kp1, kp2, kp3 = jax.random.split(key, 4)

    N, H, W = 2, 16, 16
    x = jax.random.normal(kx, (N, H, W, 4), jnp.float32)

    # case 1: in_channel != out_channel, stride 2 (1x1 conv + BN shortcut)
    p1 = make_params(kp1, 4, 8)
    o1 = jax.block_until_ready(bottleneck_ir_forward(x, p1, 2))
    r1 = reference_forward(x, p1, 2)
    assert o1.shape == (N, 8, 8, 8)
    assert jnp.allclose(o1, r1, atol=2e-3, rtol=2e-3), "mismatch (conv shortcut, s=2)"

    # case 2: in_channel == out_channel, stride 1 (MaxPool(1,1) identity shortcut)
    p2 = make_params(kp2, 4, 4)
    o2 = jax.block_until_ready(bottleneck_ir_forward(x, p2, 1))
    r2 = reference_forward(x, p2, 1)
    assert o2.shape == (N, 16, 16, 4)
    assert jnp.allclose(o2, r2, atol=2e-3, rtol=2e-3), "mismatch (identity, s=1)"

    # case 3: in_channel == out_channel, stride 2 (MaxPool(1,2) strided identity)
    p3 = make_params(kp3, 4, 4)
    o3 = jax.block_until_ready(bottleneck_ir_forward(x, p3, 2))
    r3 = reference_forward(x, p3, 2)
    assert o3.shape == (N, 8, 8, 4)
    assert jnp.allclose(o3, r3, atol=2e-3, rtol=2e-3), "mismatch (identity, s=2)"

    print("KERNEL_OK")
</pallas_src>

<mosaic_0001>
module attributes {stable_mosaic.version = 11 : i64} {
  func.func @_bottleneck_ir_kernel(%arg0: i32, %arg1: memref<1x16x16x128xf32, #tpu.memory_space<vmem>>, %arg2: memref<1x128xf32, #tpu.memory_space<vmem>>, %arg3: memref<1x128xf32, #tpu.memory_space<vmem>>, %arg4: memref<9x128x128xbf16, #tpu.memory_space<vmem>>, %arg5: memref<1x128xf32, #tpu.memory_space<vmem>>, %arg6: memref<1x128xf32, #tpu.memory_space<vmem>>, %arg7: memref<9x128x128xbf16, #tpu.memory_space<vmem>>, %arg8: memref<1x128xf32, #tpu.memory_space<vmem>>, %arg9: memref<128x128xbf16, #tpu.memory_space<vmem>>, %arg10: memref<1x8x8x128xf32, #tpu.memory_space<vmem>>, %arg11: memref<18x18x128xbf16, #tpu.memory_space<vmem>>, %arg12: memref<18x18x128xbf16, #tpu.memory_space<vmem>>, %arg13: memref<256x128xf32, #tpu.memory_space<vmem>>, %arg14: memref<64x128xf32, #tpu.memory_space<vmem>>) attributes {dimension_semantics = [#tpu.dimension_semantics<parallel>], iteration_bounds = array<i64: 2>, scalar_prefetch = 0 : i64, scratch_operands = 4 : i64, tpu.core_type = #tpu.core_type<tc>, window_params = [{transform_indices = @transform_0, window_bounds = array<i64: 1, 16, 16, 128>}, {pipeline_mode = #tpu.pipeline_mode<synchronous>, transform_indices = @transform_1, window_bounds = array<i64: 1, 128>}, {pipeline_mode = #tpu.pipeline_mode<synchronous>, transform_indices = @transform_2, window_bounds = array<i64: 1, 128>}, {pipeline_mode = #tpu.pipeline_mode<synchronous>, transform_indices = @transform_3, window_bounds = array<i64: 9, 128, 128>}, {pipeline_mode = #tpu.pipeline_mode<synchronous>, transform_indices = @transform_4, window_bounds = array<i64: 1, 128>}, {pipeline_mode = #tpu.pipeline_mode<synchronous>, transform_indices = @transform_5, window_bounds = array<i64: 1, 128>}, {pipeline_mode = #tpu.pipeline_mode<synchronous>, transform_indices = @transform_6, window_bounds = array<i64: 9, 128, 128>}, {pipeline_mode = #tpu.pipeline_mode<synchronous>, transform_indices = @transform_7, window_bounds = array<i64: 1, 128>}, {pipeline_mode = #tpu.pipeline_mode<synchronous>, transform_indices = @transform_8, window_bounds = array<i64: 128, 128>}, {transform_indices = @transform_9, window_bounds = array<i64: 1, 8, 8, 128>}]} {
    %c0 = arith.constant 0 : index
    %c0_0 = arith.constant 0 : index
    %c0_1 = arith.constant 0 : index
    %c0_2 = arith.constant 0 : index
    %0 = vector.load %arg1[%c0, %c0_0, %c0_1, %c0_2] : memref<1x16x16x128xf32, #tpu.memory_space<vmem>>, vector<1x16x16x128xf32>
    %1 = vector.shape_cast %0 : vector<1x16x16x128xf32> to vector<16x16x128xf32>
    %c0_3 = arith.constant 0 : index
    %c0_4 = arith.constant 0 : index
    %2 = vector.load %arg2[%c0_3, %c0_4] : memref<1x128xf32, #tpu.memory_space<vmem>>, vector<1x128xf32>
    %3 = vector.shape_cast %2 : vector<1x128xf32> to vector<1x1x128xf32>
    %4 = vector.broadcast %3 : vector<1x1x128xf32> to vector<16x16x128xf32>
    %5 = arith.mulf %1, %4 : vector<16x16x128xf32>
    %c0_5 = arith.constant 0 : index
    %c0_6 = arith.constant 0 : index
    %6 = vector.load %arg3[%c0_5, %c0_6] : memref<1x128xf32, #tpu.memory_space<vmem>>, vector<1x128xf32>
    %7 = vector.shape_cast %6 : vector<1x128xf32> to vector<1x1x128xf32>
    %8 = vector.broadcast %7 : vector<1x1x128xf32> to vector<16x16x128xf32>
    %9 = arith.addf %5, %8 : vector<16x16x128xf32>
    %10 = arith.truncf %9 : vector<16x16x128xf32> to vector<16x16x128xbf16>
    %c1 = arith.constant 1 : index
    %c1_7 = arith.constant 1 : index
    %c0_8 = arith.constant 0 : index
    %11 = vector.load %arg11[%c1, %c1_7, %c0_8] : memref<18x18x128xbf16, #tpu.memory_space<vmem>>, vector<16x16x128xbf16>
    tpu.vector_store %arg11[%c1, %c1_7, %c0_8], %10 {strides = array<i32>} : memref<18x18x128xbf16, #tpu.memory_space<vmem>>, vector<16x16x128xbf16>,
    %cst = arith.constant 0.000000e+00 : bf16
    %12 = vector.broadcast %cst : bf16 to vector<1x18x128xbf16>
    %c0_9 = arith.constant 0 : index
    %c0_10 = arith.constant 0 : index
    %c0_11 = arith.constant 0 : index
    %13 = vector.load %arg11[%c0_9, %c0_10, %c0_11] : memref<18x18x128xbf16, #tpu.memory_space<vmem>>, vector<1x18x128xbf16>
    tpu.vector_store %arg11[%c0_9, %c0_10, %c0_11], %12 {strides = array<i32>} : memref<18x18x128xbf16, #tpu.memory_space<vmem>>, vector<1x18x128xbf16>,
    %c17 = arith.constant 17 : index
    %c0_12 = arith.constant 0 : index
    %c0_13 = arith.constant 0 : index
    %14 = vector.load %arg11[%c17, %c0_12, %c0_13] : memref<18x18x128xbf16, #tpu.memory_space<vmem>>, vector<1x18x128xbf16>
    tpu.vector_store %arg11[%c17, %c0_12, %c0_13], %12 {strides = array<i32>} : memref<18x18x128xbf16, #tpu.memory_space<vmem>>, vector<1x18x128xbf16>,
    %cst_14 = arith.constant 0.000000e+00 : bf16
    %15 = vector.broadcast %cst_14 : bf16 to vector<16x1x128xbf16>
    %c1_15 = arith.constant 1 : index
    %c0_16 = arith.constant 0 : index
    %c0_17 = arith.constant 0 : index
    %16 = vector.load %arg11[%c1_15, %c0_16, %c0_17] : memref<18x18x128xbf16, #tpu.memory_space<vmem>>, vector<16x1x128xbf16>
    tpu.vector_store %arg11[%c1_15, %c0_16, %c0_17], %15 {strides = array<i32>} : memref<18x18x128xbf16, #tpu.memory_space<vmem>>, vector<16x1x128xbf16>,
    %c1_18 = arith.constant 1 : index
    %c17_19 = arith.constant 17 : index
    %c0_20 = arith.constant 0 : index
    %17 = vector.load %arg11[%c1_18, %c17_19, %c0_20] : memref<18x18x128xbf16, #tpu.memory_space<vmem>>, vector<16x1x128xbf16>
    tpu.vector_store %arg11[%c1_18, %c17_19, %c0_20], %15 {strides = array<i32>} : memref<18x18x128xbf16, #tpu.memory_space<vmem>>, vector<16x1x128xbf16>,
    %18 = vector.shape_cast %1 : vector<16x16x128xf32> to vector<8x2x16x128xf32>
    %19 = vector.extract_strided_slice %18 {offsets = [0, 0, 0, 0], sizes = [8, 1, 16, 128], strides = [1, 1, 1, 1]} : vector<8x2x16x128xf32> to vector<8x1x16x128xf32>
    %20 = vector.shape_cast %19 : vector<8x1x16x128xf32> to vector<8x16x128xf32>
    %21 = vector.shape_cast %20 : vector<8x16x128xf32> to vector<8x8x256xf32>
    %22 = vector.extract_strided_slice %21 {offsets = [0, 0, 0], sizes = [8, 8, 128], strides = [1, 1, 1]} : vector<8x8x256xf32> to vector<8x8x128xf32>
    %23 = vector.shape_cast %22 : vector<8x8x128xf32> to vector<64x128xf32>
    %24 = arith.truncf %23 : vector<64x128xf32> to vector<64x128xbf16>
    %c0_21 = arith.constant 0 : index
    %c0_22 = arith.constant 0 : index
    %25 = vector.load %arg9[%c0_21, %c0_22] : memref<128x128xbf16, #tpu.memory_space<vmem>>, vector<128x128xbf16>
    %cst_23 = arith.constant dense<0.000000e+00> : vector<64x128xf32>
    %26 = tpu.matmul %24, %25, %cst_23 {dimension_numbers = #tpu.dot_dimension_numbers<[1], [0], [0], [1], [0, 0, 1, 1], [], []>} : vector<64x128xbf16>, vector<128x128xbf16>, vector<64x128xf32> -> vector<64x128xf32>
    %c0_24 = arith.constant 0 : index
    %c0_25 = arith.constant 0 : index
    %27 = vector.load %arg8[%c0_24, %c0_25] : memref<1x128xf32, #tpu.memory_space<vmem>>, vector<1x128xf32>
    %28 = vector.broadcast %27 : vector<1x128xf32> to vector<64x128xf32>
    %29 = arith.addf %26, %28 : vector<64x128xf32>
    %c0_26 = arith.constant 0 : index
    %c0_27 = arith.constant 0 : index
    %30 = vector.load %arg14[%c0_26, %c0_27] : memref<64x128xf32, #tpu.memory_space<vmem>>, vector<64x128xf32>
    tpu.vector_store %arg14[%c0_26, %c0_27], %29 {strides = array<i32>} : memref<64x128xf32, #tpu.memory_space<vmem>>, vector<64x128xf32>,
    %c0_28 = arith.constant 0 : index
    %c0_29 = arith.constant 0 : index
    %c0_30 = arith.constant 0 : index
    %31 = vector.load %arg11[%c0_28, %c0_29, %c0_30] : memref<18x18x128xbf16, #tpu.memory_space<vmem>>, vector<16x16x128xbf16>
    %32 = vector.shape_cast %31 : vector<16x16x128xbf16> to vector<256x128xbf16>
    %c0_31 = arith.constant 0 : index
    %c0_32 = arith.constant 0 : index
    %c0_33 = arith.constant 0 : index
    %33 = vector.load %arg4[%c0_31, %c0_32, %c0_33] : memref<9x128x128xbf16, #tpu.memory_space<vmem>>, vector<1x128x128xbf16>
    %34 = vector.shape_cast %33 : vector<1x128x128xbf16> to vector<128x128xbf16>
    %cst_34 = arith.constant dense<0.000000e+00> : vector<256x128xf32>
    %35 = tpu.matmul %32, %34, %cst_34 {dimension_numbers = #tpu.dot_dimension_numbers<[1], [0], [0], [1], [0, 0, 1, 1], [], []>} : vector<256x128xbf16>, vector<128x128xbf16>, vector<256x128xf32> -> vector<256x128xf32>
    %c0_35 = arith.constant 0 : index
    %c0_36 = arith.constant 0 : index
    %36 = vector.load %arg5[%c0_35, %c0_36] : memref<1x128xf32, #tpu.memory_space<vmem>>, vector<1x128xf32>
    %37 = vector.broadcast %36 : vector<1x128xf32> to vector<256x128xf32>
    %38 = arith.addf %35, %37 : vector<256x128xf32>
    %c0_37 = arith.constant 0 : index
    %c0_38 = arith.constant 0 : index
    %39 = vector.load %arg13[%c0_37, %c0_38] : memref<256x128xf32, #tpu.memory_space<vmem>>, vector<256x128xf32>
    tpu.vector_store %arg13[%c0_37, %c0_38], %38 {strides = array<i32>} : memref<256x128xf32, #tpu.memory_space<vmem>>, vector<256x128xf32>,
    %c0_39 = arith.constant 0 : index
    %c1_40 = arith.constant 1 : index
    %c0_41 = arith.constant 0 : index
    %40 = vector.load %arg11[%c0_39, %c1_40, %c0_41] : memref<18x18x128xbf16, #tpu.memory_space<vmem>>, vector<16x16x128xbf16>
    %41 = vector.shape_cast %40 : vector<16x16x128xbf16> to vector<256x128xbf16>
    %c1_42 = arith.constant 1 : index
    %c0_43 = arith.constant 0 : index
    %c0_44 = arith.constant 0 : index
    %42 = vector.load %arg4[%c1_42, %c0_43, %c0_44] : memref<9x128x128xbf16, #tpu.memory_space<vmem>>, vector<1x128x128xbf16>
    %43 = vector.shape_cast %42 : vector<1x128x128xbf16> to vector<128x128xbf16>
    %cst_45 = arith.constant dense<0.000000e+00> : vector<256x128xf32>
    %44 = tpu.matmul %41, %43, %cst_45 {dimension_numbers = #tpu.dot_dimension_numbers<[1], [0], [0], [1], [0, 0, 1, 1], [], []>} : vector<256x128xbf16>, vector<128x128xbf16>, vector<256x128xf32> -> vector<256x128xf32>
    %c0_46 = arith.constant 0 : index
    %c0_47 = arith.constant 0 : index
    %45 = vector.load %arg13[%c0_46, %c0_47] : memref<256x128xf32, #tpu.memory_space<vmem>>, vector<256x128xf32>
    %46 = arith.addf %45, %44 : vector<256x128xf32>
    %c0_48 = arith.constant 0 : index
    %c0_49 = arith.constant 0 : index
    %47 = vector.load %arg13[%c0_48, %c0_49] : memref<256x128xf32, #tpu.memory_space<vmem>>, vector<256x128xf32>
    tpu.vector_store %arg13[%c0_48, %c0_49], %46 {strides = array<i32>} : memref<256x128xf32, #tpu.memory_space<vmem>>, vector<256x128xf32>,
    %c0_50 = arith.constant 0 : index
    %c2 = arith.constant 2 : index
    %c0_51 = arith.constant 0 : index
    %48 = vector.load %arg11[%c0_50, %c2, %c0_51] : memref<18x18x128xbf16, #tpu.memory_space<vmem>>, vector<16x16x128xbf16>
    %49 = vector.shape_cast %48 : vector<16x16x128xbf16> to vector<256x128xbf16>
    %c2_52 = arith.constant 2 : index
    %c0_53 = arith.constant 0 : index
    %c0_54 = arith.constant 0 : index
    %50 = vector.load %arg4[%c2_52, %c0_53, %c0_54] : memref<9x128x128xbf16, #tpu.memory_space<vmem>>, vector<1x128x128xbf16>
    %51 = vector.shape_cast %50 : vector<1x128x128xbf16> to vector<128x128xbf16>
    %cst_55 = arith.constant dense<0.000000e+00> : vector<256x128xf32>
    %52 = tpu.matmul %49, %51, %cst_55 {dimension_numbers = #tpu.dot_dimension_numbers<[1], [0], [0], [1], [0, 0, 1, 1], [], []>} : vector<256x128xbf16>, vector<128x128xbf16>, vector<256x128xf32> -> vector<256x128xf32>
    %c0_56 = arith.constant 0 : index
    %c0_57 = arith.constant 0 : index
    %53 = vector.load %arg13[%c0_56, %c0_57] : memref<256x128xf32, #tpu.memory_space<vmem>>, vector<256x128xf32>
    %54 = arith.addf %53, %52 : vector<256x128xf32>
    %c0_58 = arith.constant 0 : index
    %c0_59 = arith.constant 0 : index
    %55 = vector.load %arg13[%c0_58, %c0_59] : memref<256x128xf32, #tpu.memory_space<vmem>>, vector<256x128xf32>
    tpu.vector_store %arg13[%c0_58, %c0_59], %54 {strides = array<i32>} : memref<256x128xf32, #tpu.memory_space<vmem>>, vector<256x128xf32>,
    %c1_60 = arith.constant 1 : index
    %c0_61 = arith.constant 0 : index
    %c0_62 = arith.constant 0 : index
    %56 = vector.load %arg11[%c1_60, %c0_61, %c0_62] : memref<18x18x128xbf16, #tpu.memory_space<vmem>>, vector<16x16x128xbf16>
    %57 = vector.shape_cast %56 : vector<16x16x128xbf16> to vector<256x128xbf16>
    %c3 = arith.constant 3 : index
    %c0_63 = arith.constant 0 : index
    %c0_64 = arith.constant 0 : index
    %58 = vector.load %arg4[%c3, %c0_63, %c0_64] : memref<9x128x128xbf16, #tpu.memory_space<vmem>>, vector<1x128x128xbf16>
    %59 = vector.shape_cast %58 : vector<1x128x128xbf16> to vector<128x128xbf16>
    %cst_65 = arith.constant dense<0.000000e+00> : vector<256x128xf32>
    %60 = tpu.matmul %57, %59, %cst_65 {dimension_numbers = #tpu.dot_dimension_numbers<[1], [0], [0], [1], [0, 0, 1, 1], [], []>} : vector<256x128xbf16>, vector<128x128xbf16>, vector<256x128xf32> -> vector<256x128xf32>
    %c0_66 = arith.constant 0 : index
    %c0_67 = arith.constant 0 : index
    %61 = vector.load %arg13[%c0_66, %c0_67] : memref<256x128xf32, #tpu.memory_space<vmem>>, vector<256x128xf32>
    %62 = arith.addf %61, %60 : vector<256x128xf32>
    %c0_68 = arith.constant 0 : index
    %c0_69 = arith.constant 0 : index
    %63 = vector.load %arg13[%c0_68, %c0_69] : memref<256x128xf32, #tpu.memory_space<vmem>>, vector<256x128xf32>
    tpu.vector_store %arg13[%c0_68, %c0_69], %62 {strides = array<i32>} : memref<256x128xf32, #tpu.memory_space<vmem>>, vector<256x128xf32>,
    %c1_70 = arith.constant 1 : index
    %c1_71 = arith.constant 1 : index
    %c0_72 = arith.constant 0 : index
    %64 = vector.load %arg11[%c1_70, %c1_71, %c0_72] : memref<18x18x128xbf16, #tpu.memory_space<vmem>>, vector<16x16x128xbf16>
    %65 = vector.shape_cast %64 : vector<16x16x128xbf16> to vector<256x128xbf16>
    %c4 = arith.constant 4 : index
    %c0_73 = arith.constant 0 : index
    %c0_74 = arith.constant 0 : index
    %66 = vector.load %arg4[%c4, %c0_73, %c0_74] : memref<9x128x128xbf16, #tpu.memory_space<vmem>>, vector<1x128x128xbf16>
    %67 = vector.shape_cast %66 : vector<1x128x128xbf16> to vector<128x128xbf16>
    %cst_75 = arith.constant dense<0.000000e+00> : vector<256x128xf32>
    %68 = tpu.matmul %65, %67, %cst_75 {dimension_numbers = #tpu.dot_dimension_numbers<[1], [0], [0], [1], [0, 0, 1, 1], [], []>} : vector<256x128xbf16>, vector<128x128xbf16>, vector<256x128xf32> -> vector<256x128xf32>
    %c0_76 = arith.constant 0 : index
    %c0_77 = arith.constant 0 : index
    %69 = vector.load %arg13[%c0_76, %c0_77] : memref<256x128xf32, #tpu.memory_space<vmem>>, vector<256x128xf32>
    %70 = arith.addf %69, %68 : vector<256x128xf32>
    %c0_78 = arith.constant 0 : index
    %c0_79 = arith.constant 0 : index
    %71 = vector.load %arg13[%c0_78, %c0_79] : memref<256x128xf32, #tpu.memory_space<vmem>>, vector<256x128xf32>
    tpu.vector_store %arg13[%c0_78, %c0_79], %70 {strides = array<i32>} : memref<256x128xf32, #tpu.memory_space<vmem>>, vector<256x128xf32>,
    %c1_80 = arith.constant 1 : index
    %c2_81 = arith.constant 2 : index
    %c0_82 = arith.constant 0 : index
    %72 = vector.load %arg11[%c1_80, %c2_81, %c0_82] : memref<18x18x128xbf16, #tpu.memory_space<vmem>>, vector<16x16x128xbf16>
    %73 = vector.shape_cast %72 : vector<16x16x128xbf16> to vector<256x128xbf16>
    %c5 = arith.constant 5 : index
    %c0_83 = arith.constant 0 : index
    %c0_84 = arith.constant 0 : index
    %74 = vector.load %arg4[%c5, %c0_83, %c0_84] : memref<9x128x128xbf16, #tpu.memory_space<vmem>>, vector<1x128x128xbf16>
    %75 = vector.shape_cast %74 : vector<1x128x128xbf16> to vector<128x128xbf16>
    %cst_85 = arith.constant dense<0.000000e+00> : vector<256x128xf32>
    %76 = tpu.matmul %73, %75, %cst_85 {dimension_numbers = #tpu.dot_dimension_numbers<[1], [0], [0], [1], [0, 0, 1, 1], [], []>} : vector<256x128xbf16>, vector<128x128xbf16>, vector<256x128xf32> -> vector<256x128xf32>
    %c0_86 = arith.constant 0 : index
    %c0_87 = arith.constant 0 : index
    %77 = vector.load %arg13[%c0_86, %c0_87] : memref<256x128xf32, #tpu.memory_space<vmem>>, vector<256x128xf32>
    %78 = arith.addf %77, %76 : vector<256x128xf32>
    %c0_88 = arith.constant 0 : index
    %c0_89 = arith.constant 0 : index
    %79 = vector.load %arg13[%c0_88, %c0_89] : memref<256x128xf32, #tpu.memory_space<vmem>>, vector<256x128xf32>
    tpu.vector_store %arg13[%c0_88, %c0_89], %78 {strides = array<i32>} : memref<256x128xf32, #tpu.memory_space<vmem>>, vector<256x128xf32>,
    %c2_90 = arith.constant 2 : index
    %c0_91 = arith.constant 0 : index
    %c0_92 = arith.constant 0 : index
    %80 = vector.load %arg11[%c2_90, %c0_91, %c0_92] : memref<18x18x128xbf16, #tpu.memory_space<vmem>>, vector<16x16x128xbf16>
    %81 = vector.shape_cast %80 : vector<16x16x128xbf16> to vector<256x128xbf16>
    %c6 = arith.constant 6 : index
    %c0_93 = arith.constant 0 : index
    %c0_94 = arith.constant 0 : index
    %82 = vector.load %arg4[%c6, %c0_93, %c0_94] : memref<9x128x128xbf16, #tpu.memory_space<vmem>>, vector<1x128x128xbf16>
    %83 = vector.shape_cast %82 : vector<1x128x128xbf16> to vector<128x128xbf16>
    %cst_95 = arith.constant dense<0.000000e+00> : vector<256x128xf32>
    %84 = tpu.matmul %81, %83, %cst_95 {dimension_numbers = #tpu.dot_dimension_numbers<[1], [0], [0], [1], [0, 0, 1, 1], [], []>} : vector<256x128xbf16>, vector<128x128xbf16>, vector<256x128xf32> -> vector<256x128xf32>
    %c0_96 = arith.constant 0 : index
    %c0_97 = arith.constant 0 : index
    %85 = vector.load %arg13[%c0_96, %c0_97] : memref<256x128xf32, #tpu.memory_space<vmem>>, vector<256x128xf32>
    %86 = arith.addf %85, %84 : vector<256x128xf32>
    %c0_98 = arith.constant 0 : index
    %c0_99 = arith.constant 0 : index
    %87 = vector.load %arg13[%c0_98, %c0_99] : memref<256x128xf32, #tpu.memory_space<vmem>>, vector<256x128xf32>
    tpu.vector_store %arg13[%c0_98, %c0_99], %86 {strides = array<i32>} : memref<256x128xf32, #tpu.memory_space<vmem>>, vector<256x128xf32>,
    %c2_100 = arith.constant 2 : index
    %c1_101 = arith.constant 1 : index
    %c0_102 = arith.constant 0 : index
    %88 = vector.load %arg11[%c2_100, %c1_101, %c0_102] : memref<18x18x128xbf16, #tpu.memory_space<vmem>>, vector<16x16x128xbf16>
    %89 = vector.shape_cast %88 : vector<16x16x128xbf16> to vector<256x128xbf16>
    %c7 = arith.constant 7 : index
    %c0_103 = arith.constant 0 : index
    %c0_104 = arith.constant 0 : index
    %90 = vector.load %arg4[%c7, %c0_103, %c0_104] : memref<9x128x128xbf16, #tpu.memory_space<vmem>>, vector<1x128x128xbf16>
    %91 = vector.shape_cast %90 : vector<1x128x128xbf16> to vector<128x128xbf16>
    %cst_105 = arith.constant dense<0.000000e+00> : vector<256x128xf32>
    %92 = tpu.matmul %89, %91, %cst_105 {dimension_numbers = #tpu.dot_dimension_numbers<[1], [0], [0], [1], [0, 0, 1, 1], [], []>} : vector<256x128xbf16>, vector<128x128xbf16>, vector<256x128xf32> -> vector<256x128xf32>
    %c0_106 = arith.constant 0 : index
    %c0_107 = arith.constant 0 : index
    %93 = vector.load %arg13[%c0_106, %c0_107] : memref<256x128xf32, #tpu.memory_space<vmem>>, vector<256x128xf32>
    %94 = arith.addf %93, %92 : vector<256x128xf32>
    %c0_108 = arith.constant 0 : index
    %c0_109 = arith.constant 0 : index
    %95 = vector.load %arg13[%c0_108, %c0_109] : memref<256x128xf32, #tpu.memory_space<vmem>>, vector<256x128xf32>
    tpu.vector_store %arg13[%c0_108, %c0_109], %94 {strides = array<i32>} : memref<256x128xf32, #tpu.memory_space<vmem>>, vector<256x128xf32>,
    %c2_110 = arith.constant 2 : index
    %c2_111 = arith.constant 2 : index
    %c0_112 = arith.constant 0 : index
    %96 = vector.load %arg11[%c2_110, %c2_111, %c0_112] : memref<18x18x128xbf16, #tpu.memory_space<vmem>>, vector<16x16x128xbf16>
    %97 = vector.shape_cast %96 : vector<16x16x128xbf16> to vector<256x128xbf16>
    %c8 = arith.constant 8 : index
    %c0_113 = arith.constant 0 : index
    %c0_114 = arith.constant 0 : index
    %98 = vector.load %arg4[%c8, %c0_113, %c0_114] : memref<9x128x128xbf16, #tpu.memory_space<vmem>>, vector<1x128x128xbf16>
    %99 = vector.shape_cast %98 : vector<1x128x128xbf16> to vector<128x128xbf16>
    %cst_115 = arith.constant dense<0.000000e+00> : vector<256x128xf32>
    %100 = tpu.matmul %97, %99, %cst_115 {dimension_numbers = #tpu.dot_dimension_numbers<[1], [0], [0], [1], [0, 0, 1, 1], [], []>} : vector<256x128xbf16>, vector<128x128xbf16>, vector<256x128xf32> -> vector<256x128xf32>
    %c0_116 = arith.constant 0 : index
    %c0_117 = arith.constant 0 : index
    %101 = vector.load %arg13[%c0_116, %c0_117] : memref<256x128xf32, #tpu.memory_space<vmem>>, vector<256x128xf32>
    %102 = arith.addf %101, %100 : vector<256x128xf32>
    %c0_118 = arith.constant 0 : index
    %c0_119 = arith.constant 0 : index
    %103 = vector.load %arg13[%c0_118, %c0_119] : memref<256x128xf32, #tpu.memory_space<vmem>>, vector<256x128xf32>
    tpu.vector_store %arg13[%c0_118, %c0_119], %102 {strides = array<i32>} : memref<256x128xf32, #tpu.memory_space<vmem>>, vector<256x128xf32>,
    %c0_120 = arith.constant 0 : index
    %c0_121 = arith.constant 0 : index
    %104 = vector.load %arg13[%c0_120, %c0_121] : memref<256x128xf32, #tpu.memory_space<vmem>>, vector<256x128xf32>
    %cst_122 = arith.constant 0.000000e+00 : f32
    %105 = vector.broadcast %cst_122 : f32 to vector<256x128xf32>
    %106 = arith.cmpf oge, %104, %105 : vector<256x128xf32>
    %c0_123 = arith.constant 0 : index
    %c0_124 = arith.constant 0 : index
    %107 = vector.load %arg6[%c0_123, %c0_124] : memref<1x128xf32, #tpu.memory_space<vmem>>, vector<1x128xf32>
    %108 = vector.broadcast %107 : vector<1x128xf32> to vector<256x128xf32>
    %109 = arith.mulf %108, %104 : vector<256x128xf32>
    %110 = arith.select %106, %104, %109 : vector<256x128xi1>, vector<256x128xf32>
    %111 = arith.truncf %110 : vector<256x128xf32> to vector<256x128xbf16>
    %112 = vector.shape_cast %111 : vector<256x128xbf16> to vector<16x16x128xbf16>
    %c1_125 = arith.constant 1 : index
    %c1_126 = arith.constant 1 : index
    %c0_127 = arith.constant 0 : index
    %113 = vector.load %arg12[%c1_125, %c1_126, %c0_127] : memref<18x18x128xbf16, #tpu.memory_space<vmem>>, vector<16x16x128xbf16>
    tpu.vector_store %arg12[%c1_125, %c1_126, %c0_127], %112 {strides = array<i32>} : memref<18x18x128xbf16, #tpu.memory_space<vmem>>, vector<16x16x128xbf16>,
    %cst_128 = arith.constant 0.000000e+00 : bf16
    %114 = vector.broadcast %cst_128 : bf16 to vector<1x18x128xbf16>
    %c0_129 = arith.constant 0 : index
    %c0_130 = arith.constant 0 : index
    %c0_131 = arith.constant 0 : index
    %115 = vector.load %arg12[%c0_129, %c0_130, %c0_131] : memref<18x18x128xbf16, #tpu.memory_space<vmem>>, vector<1x18x128xbf16>
    tpu.vector_store %arg12[%c0_129, %c0_130, %c0_131], %114 {strides = array<i32>} : memref<18x18x128xbf16, #tpu.memory_space<vmem>>, vector<1x18x128xbf16>,
    %c17_132 = arith.constant 17 : index
    %c0_133 = arith.constant 0 : index
    %c0_134 = arith.constant 0 : index
    %116 = vector.load %arg12[%c17_132, %c0_133, %c0_134] : memref<18x18x128xbf16, #tpu.memory_space<vmem>>, vector<1x18x128xbf16>
    tpu.vector_store %arg12[%c17_132, %c0_133, %c0_134], %114 {strides = array<i32>} : memref<18x18x128xbf16, #tpu.memory_space<vmem>>, vector<1x18x128xbf16>,
    %cst_135 = arith.constant 0.000000e+00 : bf16
    %117 = vector.broadcast %cst_135 : bf16 to vector<16x1x128xbf16>
    %c1_136 = arith.constant 1 : index
    %c0_137 = arith.constant 0 : index
    %c0_138 = arith.constant 0 : index
    %118 = vector.load %arg12[%c1_136, %c0_137, %c0_138] : memref<18x18x128xbf16, #tpu.memory_space<vmem>>, vector<16x1x128xbf16>
    tpu.vector_store %arg12[%c1_136, %c0_137, %c0_138], %117 {strides = array<i32>} : memref<18x18x128xbf16, #tpu.memory_space<vmem>>, vector<16x1x128xbf16>,
    %c1_139 = arith.constant 1 : index
    %c17_140 = arith.constant 17 : index
    %c0_141 = arith.constant 0 : index
    %119 = vector.load %arg12[%c1_139, %c17_140, %c0_141] : memref<18x18x128xbf16, #tpu.memory_space<vmem>>, vector<16x1x128xbf16>
    tpu.vector_store %arg12[%c1_139, %c17_140, %c0_141], %117 {strides = array<i32>} : memref<18x18x128xbf16, #tpu.memory_space<vmem>>, vector<16x1x128xbf16>,
    %c0_142 = arith.constant 0 : index
    %c0_143 = arith.constant 0 : index
    %c0_144 = arith.constant 0 : index
    %120 = vector.load %arg12[%c0_142, %c0_143, %c0_144] : memref<18x18x128xbf16, #tpu.memory_space<vmem>>, vector<16x18x128xbf16>
    %121 = vector.shape_cast %120 : vector<16x18x128xbf16> to vector<8x2x18x128xbf16>
    %122 = vector.extract_strided_slice %121 {offsets = [0, 0, 0, 0], sizes = [8, 1, 18, 128], strides = [1, 1, 1, 1]} : vector<8x2x18x128xbf16> to vector<8x1x18x128xbf16>
    %123 = vector.shape_cast %122 : vector<8x1x18x128xbf16> to vector<8x18x128xbf16>
    %124 = vector.extract_strided_slice %123 {offsets = [0, 0, 0], sizes = [8, 16, 128], strides = [1, 1, 1]} : vector<8x18x128xbf16> to vector<8x16x128xbf16>
    %125 = vector.shape_cast %124 : vector<8x16x128xbf16> to vector<8x8x256xbf16>
    %126 = vector.extract_strided_slice %125 {offsets = [0, 0, 0], sizes = [8, 8, 128], strides = [1, 1, 1]} : vector<8x8x256xbf16> to vector<8x8x128xbf16>
    %127 = vector.shape_cast %126 : vector<8x8x128xbf16> to vector<64x128xbf16>
    %c0_145 = arith.constant 0 : index
    %c0_146 = arith.constant 0 : index
    %128 = vector.load %arg14[%c0_145, %c0_146] : memref<64x128xf32, #tpu.memory_space<vmem>>, vector<64x128xf32>
    %c0_147 = arith.constant 0 : index
    %c0_148 = arith.constant 0 : index
    %c0_149 = arith.constant 0 : index
    %129 = vector.load %arg7[%c0_147, %c0_148, %c0_149] : memref<9x128x128xbf16, #tpu.memory_space<vmem>>, vector<1x128x128xbf16>
    %130 = vector.shape_cast %129 : vector<1x128x128xbf16> to vector<128x128xbf16>
    %cst_150 = arith.constant dense<0.000000e+00> : vector<64x128xf32>
    %131 = tpu.matmul %127, %130, %cst_150 {dimension_numbers = #tpu.dot_dimension_numbers<[1], [0], [0], [1], [0, 0, 1, 1], [], []>} : vector<64x128xbf16>, vector<128x128xbf16>, vector<64x128xf32> -> vector<64x128xf32>
    %132 = arith.addf %128, %131 : vector<64x128xf32>
    %c0_151 = arith.constant 0 : index
    %c0_152 = arith.constant 0 : index
    %133 = vector.load %arg14[%c0_151, %c0_152] : memref<64x128xf32, #tpu.memory_space<vmem>>, vector<64x128xf32>
    tpu.vector_store %arg14[%c0_151, %c0_152], %132 {strides = array<i32>} : memref<64x128xf32, #tpu.memory_space<vmem>>, vector<64x128xf32>,
    %c0_153 = arith.constant 0 : index
    %c0_154 = arith.constant 0 : index
    %c0_155 = arith.constant 0 : index
    %134 = vector.load %arg12[%c0_153, %c0_154, %c0_155] : memref<18x18x128xbf16, #tpu.memory_space<vmem>>, vector<16x18x128xbf16>
    %135 = vector.shape_cast %134 : vector<16x18x128xbf16> to vector<8x2x18x128xbf16>
    %136 = vector.extract_strided_slice %135 {offsets = [0, 0, 0, 0], sizes = [8, 1, 18, 128], strides = [1, 1, 1, 1]} : vector<8x2x18x128xbf16> to vector<8x1x18x128xbf16>
    %137 = vector.shape_cast %136 : vector<8x1x18x128xbf16> to vector<8x18x128xbf16>
    %138 = vector.extract_strided_slice %137 {offsets = [0, 1, 0], sizes = [8, 16, 128], strides = [1, 1, 1]} : vector<8x18x128xbf16> to vector<8x16x128xbf16>
    %139 = vector.shape_cast %138 : vector<8x16x128xbf16> to vector<8x8x256xbf16>
    %140 = vector.extract_strided_slice %139 {offsets = [0, 0, 0], sizes = [8, 8, 128], strides = [1, 1, 1]} : vector<8x8x256xbf16> to vector<8x8x128xbf16>
    %141 = vector.shape_cast %140 : vector<8x8x128xbf16> to vector<64x128xbf16>
    %c0_156 = arith.constant 0 : index
    %c0_157 = arith.constant 0 : index
    %142 = vector.load %arg14[%c0_156, %c0_157] : memref<64x128xf32, #tpu.memory_space<vmem>>, vector<64x128xf32>
    %c1_158 = arith.constant 1 : index
    %c0_159 = arith.constant 0 : index
    %c0_160 = arith.constant 0 : index
    %143 = vector.load %arg7[%c1_158, %c0_159, %c0_160] : memref<9x128x128xbf16, #tpu.memory_space<vmem>>, vector<1x128x128xbf16>
    %144 = vector.shape_cast %143 : vector<1x128x128xbf16> to vector<128x128xbf16>
    %cst_161 = arith.constant dense<0.000000e+00> : vector<64x128xf32>
    %145 = tpu.matmul %141, %144, %cst_161 {dimension_numbers = #tpu.dot_dimension_numbers<[1], [0], [0], [1], [0, 0, 1, 1], [], []>} : vector<64x128xbf16>, vector<128x128xbf16>, vector<64x128xf32> -> vector<64x128xf32>
    %146 = arith.addf %142, %145 : vector<64x128xf32>
    %c0_162 = arith.constant 0 : index
    %c0_163 = arith.constant 0 : index
    %147 = vector.load %arg14[%c0_162, %c0_163] : memref<64x128xf32, #tpu.memory_space<vmem>>, vector<64x128xf32>
    tpu.vector_store %arg14[%c0_162, %c0_163], %146 {strides = array<i32>} : memref<64x128xf32, #tpu.memory_space<vmem>>, vector<64x128xf32>,
    %c0_164 = arith.constant 0 : index
    %c0_165 = arith.constant 0 : index
    %c0_166 = arith.constant 0 : index
    %148 = vector.load %arg12[%c0_164, %c0_165, %c0_166] : memref<18x18x128xbf16, #tpu.memory_space<vmem>>, vector<16x18x128xbf16>
    %149 = vector.shape_cast %148 : vector<16x18x128xbf16> to vector<8x2x18x128xbf16>
    %150 = vector.extract_strided_slice %149 {offsets = [0, 0, 0, 0], sizes = [8, 1, 18, 128], strides = [1, 1, 1, 1]} : vector<8x2x18x128xbf16> to vector<8x1x18x128xbf16>
    %151 = vector.shape_cast %150 : vector<8x1x18x128xbf16> to vector<8x18x128xbf16>
    %152 = vector.extract_strided_slice %151 {offsets = [0, 2, 0], sizes = [8, 16, 128], strides = [1, 1, 1]} : vector<8x18x128xbf16> to vector<8x16x128xbf16>
    %153 = vector.shape_cast %152 : vector<8x16x128xbf16> to vector<8x8x256xbf16>
    %154 = vector.extract_strided_slice %153 {offsets = [0, 0, 0], sizes = [8, 8, 128], strides = [1, 1, 1]} : vector<8x8x256xbf16> to vector<8x8x128xbf16>
    %155 = vector.shape_cast %154 : vector<8x8x128xbf16> to vector<64x128xbf16>
    %c0_167 = arith.constant 0 : index
    %c0_168 = arith.constant 0 : index
    %156 = vector.load %arg14[%c0_167, %c0_168] : memref<64x128xf32, #tpu.memory_space<vmem>>, vector<64x128xf32>
    %c2_169 = arith.constant 2 : index
    %c0_170 = arith.constant 0 : index
    %c0_171 = arith.constant 0 : index
    %157 = vector.load %arg7[%c2_169, %c0_170, %c0_171] : memref<9x128x128xbf16, #tpu.memory_space<vmem>>, vector<1x128x128xbf16>
    %158 = vector.shape_cast %157 : vector<1x128x128xbf16> to vector<128x128xbf16>
    %cst_172 = arith.constant dense<0.000000e+00> : vector<64x128xf32>
    %159 = tpu.matmul %155, %158, %cst_172 {dimension_numbers = #tpu.dot_dimension_numbers<[1], [0], [0], [1], [0, 0, 1, 1], [], []>} : vector<64x128xbf16>, vector<128x128xbf16>, vector<64x128xf32> -> vector<64x128xf32>
    %160 = arith.addf %156, %159 : vector<64x128xf32>
    %c0_173 = arith.constant 0 : index
    %c0_174 = arith.constant 0 : index
    %161 = vector.load %arg14[%c0_173, %c0_174] : memref<64x128xf32, #tpu.memory_space<vmem>>, vector<64x128xf32>
    tpu.vector_store %arg14[%c0_173, %c0_174], %160 {strides = array<i32>} : memref<64x128xf32, #tpu.memory_space<vmem>>, vector<64x128xf32>,
    %c1_175 = arith.constant 1 : index
    %c0_176 = arith.constant 0 : index
    %c0_177 = arith.constant 0 : index
    %162 = vector.load %arg12[%c1_175, %c0_176, %c0_177] : memref<18x18x128xbf16, #tpu.memory_space<vmem>>, vector<16x18x128xbf16>
    %163 = vector.shape_cast %162 : vector<16x18x128xbf16> to vector<8x2x18x128xbf16>
    %164 = vector.extract_strided_slice %163 {offsets = [0, 0, 0, 0], sizes = [8, 1, 18, 128], strides = [1, 1, 1, 1]} : vector<8x2x18x128xbf16> to vector<8x1x18x128xbf16>
    %165 = vector.shape_cast %164 : vector<8x1x18x128xbf16> to vector<8x18x128xbf16>
    %166 = vector.extract_strided_slice %165 {offsets = [0, 0, 0], sizes = [8, 16, 128], strides = [1, 1, 1]} : vector<8x18x128xbf16> to vector<8x16x128xbf16>
    %167 = vector.shape_cast %166 : vector<8x16x128xbf16> to vector<8x8x256xbf16>
    %168 = vector.extract_strided_slice %167 {offsets = [0, 0, 0], sizes = [8, 8, 128], strides = [1, 1, 1]} : vector<8x8x256xbf16> to vector<8x8x128xbf16>
    %169 = vector.shape_cast %168 : vector<8x8x128xbf16> to vector<64x128xbf16>
    %c0_178 = arith.constant 0 : index
    %c0_179 = arith.constant 0 : index
    %170 = vector.load %arg14[%c0_178, %c0_179] : memref<64x128xf32, #tpu.memory_space<vmem>>, vector<64x128xf32>
    %c3_180 = arith.constant 3 : index
    %c0_181 = arith.constant 0 : index
    %c0_182 = arith.constant 0 : index
    %171 = vector.load %arg7[%c3_180, %c0_181, %c0_182] : memref<9x128x128xbf16, #tpu.memory_space<vmem>>, vector<1x128x128xbf16>
    %172 = vector.shape_cast %171 : vector<1x128x128xbf16> to vector<128x128xbf16>
    %cst_183 = arith.constant dense<0.000000e+00> : vector<64x128xf32>
    %173 = tpu.matmul %169, %172, %cst_183 {dimension_numbers = #tpu.dot_dimension_numbers<[1], [0], [0], [1], [0, 0, 1, 1], [], []>} : vector<64x128xbf16>, vector<128x128xbf16>, vector<64x128xf32> -> vector<64x128xf32>
    %174 = arith.addf %170, %173 : vector<64x128xf32>
    %c0_184 = arith.constant 0 : index
    %c0_185 = arith.constant 0 : index
    %175 = vector.load %arg14[%c0_184, %c0_185] : memref<64x128xf32, #tpu.memory_space<vmem>>, vector<64x128xf32>
    tpu.vector_store %arg14[%c0_184, %c0_185], %174 {strides = array<i32>} : memref<64x128xf32, #tpu.memory_space<vmem>>, vector<64x128xf32>,
    %c1_186 = arith.constant 1 : index
    %c0_187 = arith.constant 0 : index
    %c0_188 = arith.constant 0 : index
    %176 = vector.load %arg12[%c1_186, %c0_187, %c0_188] : memref<18x18x128xbf16, #tpu.memory_space<vmem>>, vector<16x18x128xbf16>
    %177 = vector.shape_cast %176 : vector<16x18x128xbf16> to vector<8x2x18x128xbf16>
    %178 = vector.extract_strided_slice %177 {offsets = [0, 0, 0, 0], sizes = [8, 1, 18, 128], strides = [1, 1, 1, 1]} : vector<8x2x18x128xbf16> to vector<8x1x18x128xbf16>
    %179 = vector.shape_cast %178 : vector<8x1x18x128xbf16> to vector<8x18x128xbf16>
    %180 = vector.extract_strided_slice %179 {offsets = [0, 1, 0], sizes = [8, 16, 128], strides = [1, 1, 1]} : vector<8x18x128xbf16> to vector<8x16x128xbf16>
    %181 = vector.shape_cast %180 : vector<8x16x128xbf16> to vector<8x8x256xbf16>
    %182 = vector.extract_strided_slice %181 {offsets = [0, 0, 0], sizes = [8, 8, 128], strides = [1, 1, 1]} : vector<8x8x256xbf16> to vector<8x8x128xbf16>
    %183 = vector.shape_cast %182 : vector<8x8x128xbf16> to vector<64x128xbf16>
    %c0_189 = arith.constant 0 : index
    %c0_190 = arith.constant 0 : index
    %184 = vector.load %arg14[%c0_189, %c0_190] : memref<64x128xf32, #tpu.memory_space<vmem>>, vector<64x128xf32>
    %c4_191 = arith.constant 4 : index
    %c0_192 = arith.constant 0 : index
    %c0_193 = arith.constant 0 : index
    %185 = vector.load %arg7[%c4_191, %c0_192, %c0_193] : memref<9x128x128xbf16, #tpu.memory_space<vmem>>, vector<1x128x128xbf16>
    %186 = vector.shape_cast %185 : vector<1x128x128xbf16> to vector<128x128xbf16>
    %cst_194 = arith.constant dense<0.000000e+00> : vector<64x128xf32>
    %187 = tpu.matmul %183, %186, %cst_194 {dimension_numbers = #tpu.dot_dimension_numbers<[1], [0], [0], [1], [0, 0, 1, 1], [], []>} : vector<64x128xbf16>, vector<128x128xbf16>, vector<64x128xf32> -> vector<64x128xf32>
    %188 = arith.addf %184, %187 : vector<64x128xf32>
    %c0_195 = arith.constant 0 : index
    %c0_196 = arith.constant 0 : index
    %189 = vector.load %arg14[%c0_195, %c0_196] : memref<64x128xf32, #tpu.memory_space<vmem>>, vector<64x128xf32>
    tpu.vector_store %arg14[%c0_195, %c0_196], %188 {strides = array<i32>} : memref<64x128xf32, #tpu.memory_space<vmem>>, vector<64x128xf32>,
    %c1_197 = arith.constant 1 : index
    %c0_198 = arith.constant 0 : index
    %c0_199 = arith.constant 0 : index
    %190 = vector.load %arg12[%c1_197, %c0_198, %c0_199] : memref<18x18x128xbf16, #tpu.memory_space<vmem>>, vector<16x18x128xbf16>
    %191 = vector.shape_cast %190 : vector<16x18x128xbf16> to vector<8x2x18x128xbf16>
    %192 = vector.extract_strided_slice %191 {offsets = [0, 0, 0, 0], sizes = [8, 1, 18, 128], strides = [1, 1, 1, 1]} : vector<8x2x18x128xbf16> to vector<8x1x18x128xbf16>
    %193 = vector.shape_cast %192 : vector<8x1x18x128xbf16> to vector<8x18x128xbf16>
    %194 = vector.extract_strided_slice %193 {offsets = [0, 2, 0], sizes = [8, 16, 128], strides = [1, 1, 1]} : vector<8x18x128xbf16> to vector<8x16x128xbf16>
    %195 = vector.shape_cast %194 : vector<8x16x128xbf16> to vector<8x8x256xbf16>
    %196 = vector.extract_strided_slice %195 {offsets = [0, 0, 0], sizes = [8, 8, 128], strides = [1, 1, 1]} : vector<8x8x256xbf16> to vector<8x8x128xbf16>
    %197 = vector.shape_cast %196 : vector<8x8x128xbf16> to vector<64x128xbf16>
    %c0_200 = arith.constant 0 : index
    %c0_201 = arith.constant 0 : index
    %198 = vector.load %arg14[%c0_200, %c0_201] : memref<64x128xf32, #tpu.memory_space<vmem>>, vector<64x128xf32>
    %c5_202 = arith.constant 5 : index
    %c0_203 = arith.constant 0 : index
    %c0_204 = arith.constant 0 : index
    %199 = vector.load %arg7[%c5_202, %c0_203, %c0_204] : memref<9x128x128xbf16, #tpu.memory_space<vmem>>, vector<1x128x128xbf16>
    %200 = vector.shape_cast %199 : vector<1x128x128xbf16> to vector<128x128xbf16>
    %cst_205 = arith.constant dense<0.000000e+00> : vector<64x128xf32>
    %201 = tpu.matmul %197, %200, %cst_205 {dimension_numbers = #tpu.dot_dimension_numbers<[1], [0], [0], [1], [0, 0, 1, 1], [], []>} : vector<64x128xbf16>, vector<128x128xbf16>, vector<64x128xf32> -> vector<64x128xf32>
    %202 = arith.addf %198, %201 : vector<64x128xf32>
    %c0_206 = arith.constant 0 : index
    %c0_207 = arith.constant 0 : index
    %203 = vector.load %arg14[%c0_206, %c0_207] : memref<64x128xf32, #tpu.memory_space<vmem>>, vector<64x128xf32>
    tpu.vector_store %arg14[%c0_206, %c0_207], %202 {strides = array<i32>} : memref<64x128xf32, #tpu.memory_space<vmem>>, vector<64x128xf32>,
    %c2_208 = arith.constant 2 : index
    %c0_209 = arith.constant 0 : index
    %c0_210 = arith.constant 0 : index
    %204 = vector.load %arg12[%c2_208, %c0_209, %c0_210] : memref<18x18x128xbf16, #tpu.memory_space<vmem>>, vector<16x18x128xbf16>
    %205 = vector.shape_cast %204 : vector<16x18x128xbf16> to vector<8x2x18x128xbf16>
    %206 = vector.extract_strided_slice %205 {offsets = [0, 0, 0, 0], sizes = [8, 1, 18, 128], strides = [1, 1, 1, 1]} : vector<8x2x18x128xbf16> to vector<8x1x18x128xbf16>
    %207 = vector.shape_cast %206 : vector<8x1x18x128xbf16> to vector<8x18x128xbf16>
    %208 = vector.extract_strided_slice %207 {offsets = [0, 0, 0], sizes = [8, 16, 128], strides = [1, 1, 1]} : vector<8x18x128xbf16> to vector<8x16x128xbf16>
    %209 = vector.shape_cast %208 : vector<8x16x128xbf16> to vector<8x8x256xbf16>
    %210 = vector.extract_strided_slice %209 {offsets = [0, 0, 0], sizes = [8, 8, 128], strides = [1, 1, 1]} : vector<8x8x256xbf16> to vector<8x8x128xbf16>
    %211 = vector.shape_cast %210 : vector<8x8x128xbf16> to vector<64x128xbf16>
    %c0_211 = arith.constant 0 : index
    %c0_212 = arith.constant 0 : index
    %212 = vector.load %arg14[%c0_211, %c0_212] : memref<64x128xf32, #tpu.memory_space<vmem>>, vector<64x128xf32>
    %c6_213 = arith.constant 6 : index
    %c0_214 = arith.constant 0 : index
    %c0_215 = arith.constant 0 : index
    %213 = vector.load %arg7[%c6_213, %c0_214, %c0_215] : memref<9x128x128xbf16, #tpu.memory_space<vmem>>, vector<1x128x128xbf16>
    %214 = vector.shape_cast %213 : vector<1x128x128xbf16> to vector<128x128xbf16>
    %cst_216 = arith.constant dense<0.000000e+00> : vector<64x128xf32>
    %215 = tpu.matmul %211, %214, %cst_216 {dimension_numbers = #tpu.dot_dimension_numbers<[1], [0], [0], [1], [0, 0, 1, 1], [], []>} : vector<64x128xbf16>, vector<128x128xbf16>, vector<64x128xf32> -> vector<64x128xf32>
    %216 = arith.addf %212, %215 : vector<64x128xf32>
    %c0_217 = arith.constant 0 : index
    %c0_218 = arith.constant 0 : index
    %217 = vector.load %arg14[%c0_217, %c0_218] : memref<64x128xf32, #tpu.memory_space<vmem>>, vector<64x128xf32>
    tpu.vector_store %arg14[%c0_217, %c0_218], %216 {strides = array<i32>} : memref<64x128xf32, #tpu.memory_space<vmem>>, vector<64x128xf32>,
    %c2_219 = arith.constant 2 : index
    %c0_220 = arith.constant 0 : index
    %c0_221 = arith.constant 0 : index
    %218 = vector.load %arg12[%c2_219, %c0_220, %c0_221] : memref<18x18x128xbf16, #tpu.memory_space<vmem>>, vector<16x18x128xbf16>
    %219 = vector.shape_cast %218 : vector<16x18x128xbf16> to vector<8x2x18x128xbf16>
    %220 = vector.extract_strided_slice %219 {offsets = [0, 0, 0, 0], sizes = [8, 1, 18, 128], strides = [1, 1, 1, 1]} : vector<8x2x18x128xbf16> to vector<8x1x18x128xbf16>
    %221 = vector.shape_cast %220 : vector<8x1x18x128xbf16> to vector<8x18x128xbf16>
    %222 = vector.extract_strided_slice %221 {offsets = [0, 1, 0], sizes = [8, 16, 128], strides = [1, 1, 1]} : vector<8x18x128xbf16> to vector<8x16x128xbf16>
    %223 = vector.shape_cast %222 : vector<8x16x128xbf16> to vector<8x8x256xbf16>
    %224 = vector.extract_strided_slice %223 {offsets = [0, 0, 0], sizes = [8, 8, 128], strides = [1, 1, 1]} : vector<8x8x256xbf16> to vector<8x8x128xbf16>
    %225 = vector.shape_cast %224 : vector<8x8x128xbf16> to vector<64x128xbf16>
    %c0_222 = arith.constant 0 : index
    %c0_223 = arith.constant 0 : index
    %226 = vector.load %arg14[%c0_222, %c0_223] : memref<64x128xf32, #tpu.memory_space<vmem>>, vector<64x128xf32>
    %c7_224 = arith.constant 7 : index
    %c0_225 = arith.constant 0 : index
    %c0_226 = arith.constant 0 : index
    %227 = vector.load %arg7[%c7_224, %c0_225, %c0_226] : memref<9x128x128xbf16, #tpu.memory_space<vmem>>, vector<1x128x128xbf16>
    %228 = vector.shape_cast %227 : vector<1x128x128xbf16> to vector<128x128xbf16>
    %cst_227 = arith.constant dense<0.000000e+00> : vector<64x128xf32>
    %229 = tpu.matmul %225, %228, %cst_227 {dimension_numbers = #tpu.dot_dimension_numbers<[1], [0], [0], [1], [0, 0, 1, 1], [], []>} : vector<64x128xbf16>, vector<128x128xbf16>, vector<64x128xf32> -> vector<64x128xf32>
    %230 = arith.addf %226, %229 : vector<64x128xf32>
    %c0_228 = arith.constant 0 : index
    %c0_229 = arith.constant 0 : index
    %231 = vector.load %arg14[%c0_228, %c0_229] : memref<64x128xf32, #tpu.memory_space<vmem>>, vector<64x128xf32>
    tpu.vector_store %arg14[%c0_228, %c0_229], %230 {strides = array<i32>} : memref<64x128xf32, #tpu.memory_space<vmem>>, vector<64x128xf32>,
    %c2_230 = arith.constant 2 : index
    %c0_231 = arith.constant 0 : index
    %c0_232 = arith.constant 0 : index
    %232 = vector.load %arg12[%c2_230, %c0_231, %c0_232] : memref<18x18x128xbf16, #tpu.memory_space<vmem>>, vector<16x18x128xbf16>
    %233 = vector.shape_cast %232 : vector<16x18x128xbf16> to vector<8x2x18x128xbf16>
    %234 = vector.extract_strided_slice %233 {offsets = [0, 0, 0, 0], sizes = [8, 1, 18, 128], strides = [1, 1, 1, 1]} : vector<8x2x18x128xbf16> to vector<8x1x18x128xbf16>
    %235 = vector.shape_cast %234 : vector<8x1x18x128xbf16> to vector<8x18x128xbf16>
    %236 = vector.extract_strided_slice %235 {offsets = [0, 2, 0], sizes = [8, 16, 128], strides = [1, 1, 1]} : vector<8x18x128xbf16> to vector<8x16x128xbf16>
    %237 = vector.shape_cast %236 : vector<8x16x128xbf16> to vector<8x8x256xbf16>
    %238 = vector.extract_strided_slice %237 {offsets = [0, 0, 0], sizes = [8, 8, 128], strides = [1, 1, 1]} : vector<8x8x256xbf16> to vector<8x8x128xbf16>
    %239 = vector.shape_cast %238 : vector<8x8x128xbf16> to vector<64x128xbf16>
    %c0_233 = arith.constant 0 : index
    %c0_234 = arith.constant 0 : index
    %240 = vector.load %arg14[%c0_233, %c0_234] : memref<64x128xf32, #tpu.memory_space<vmem>>, vector<64x128xf32>
    %c8_235 = arith.constant 8 : index
    %c0_236 = arith.constant 0 : index
    %c0_237 = arith.constant 0 : index
    %241 = vector.load %arg7[%c8_235, %c0_236, %c0_237] : memref<9x128x128xbf16, #tpu.memory_space<vmem>>, vector<1x128x128xbf16>
    %242 = vector.shape_cast %241 : vector<1x128x128xbf16> to vector<128x128xbf16>
    %cst_238 = arith.constant dense<0.000000e+00> : vector<64x128xf32>
    %243 = tpu.matmul %239, %242, %cst_238 {dimension_numbers = #tpu.dot_dimension_numbers<[1], [0], [0], [1], [0, 0, 1, 1], [], []>} : vector<64x128xbf16>, vector<128x128xbf16>, vector<64x128xf32> -> vector<64x128xf32>
    %244 = arith.addf %240, %243 : vector<64x128xf32>
    %c0_239 = arith.constant 0 : index
    %c0_240 = arith.constant 0 : index
    %245 = vector.load %arg14[%c0_239, %c0_240] : memref<64x128xf32, #tpu.memory_space<vmem>>, vector<64x128xf32>
    tpu.vector_store %arg14[%c0_239, %c0_240], %244 {strides = array<i32>} : memref<64x128xf32, #tpu.memory_space<vmem>>, vector<64x128xf32>,
    %c0_241 = arith.constant 0 : index
    %c0_242 = arith.constant 0 : index
    %246 = vector.load %arg14[%c0_241, %c0_242] : memref<64x128xf32, #tpu.memory_space<vmem>>, vector<64x128xf32>
    %247 = vector.shape_cast %246 : vector<64x128xf32> to vector<8x8x128xf32>
    %c0_243 = arith.constant 0 : index
    %c0_244 = arith.constant 0 : index
    %c0_245 = arith.constant 0 : index
    %c0_246 = arith.constant 0 : index
    %248 = vector.load %arg10[%c0_243, %c0_244, %c0_245, %c0_246] : memref<1x8x8x128xf32, #tpu.memory_space<vmem>>, vector<1x8x8x128xf32>
    %249 = vector.shape_cast %248 : vector<1x8x8x128xf32> to vector<8x8x128xf32>
    %250 = vector.shape_cast %247 : vector<8x8x128xf32> to vector<1x8x8x128xf32>
    tpu.vector_store %arg10[%c0_243, %c0_244, %c0_245, %c0_246], %250 {strides = array<i32>} : memref<1x8x8x128xf32, #tpu.memory_space<vmem>>, vector<1x8x8x128xf32>,
    return
  }
  func.func @transform_0(%arg0: i32) -> (i32, i32, i32, i32) {
    %c0_i32 = arith.constant 0 : i32
    %c0_i32_0 = arith.constant 0 : i32
    %c0_i32_1 = arith.constant 0 : i32
    %c0_i32_2 = arith.constant 0 : i32
    return %arg0, %c0_i32, %c0_i32_0, %c0_i32_1 : i32, i32, i32, i32
  }
  func.func @transform_1(%arg0: i32) -> (i32, i32) {
    %c0_i32 = arith.constant 0 : i32
    %c0_i32_0 = arith.constant 0 : i32
    %c0_i32_1 = arith.constant 0 : i32
    return %c0_i32, %c0_i32_0 : i32, i32
  }
  func.func @transform_2(%arg0: i32) -> (i32, i32) {
    %c0_i32 = arith.constant 0 : i32
    %c0_i32_0 = arith.constant 0 : i32
    %c0_i32_1 = arith.constant 0 : i32
    return %c0_i32, %c0_i32_0 : i32, i32
  }
  func.func @transform_3(%arg0: i32) -> (i32, i32, i32) {
    %c0_i32 = arith.constant 0 : i32
    %c0_i32_0 = arith.constant 0 : i32
    %c0_i32_1 = arith.constant 0 : i32
    %c0_i32_2 = arith.constant 0 : i32
    return %c0_i32, %c0_i32_0, %c0_i32_1 : i32, i32, i32
  }
  func.func @transform_4(%arg0: i32) -> (i32, i32) {
    %c0_i32 = arith.constant 0 : i32
    %c0_i32_0 = arith.constant 0 : i32
    %c0_i32_1 = arith.constant 0 : i32
    return %c0_i32, %c0_i32_0 : i32, i32
  }
  func.func @transform_5(%arg0: i32) -> (i32, i32) {
    %c0_i32 = arith.constant 0 : i32
    %c0_i32_0 = arith.constant 0 : i32
    %c0_i32_1 = arith.constant 0 : i32
    return %c0_i32, %c0_i32_0 : i32, i32
  }
  func.func @transform_6(%arg0: i32) -> (i32, i32, i32) {
    %c0_i32 = arith.constant 0 : i32
    %c0_i32_0 = arith.constant 0 : i32
    %c0_i32_1 = arith.constant 0 : i32
    %c0_i32_2 = arith.constant 0 : i32
    return %c0_i32, %c0_i32_0, %c0_i32_1 : i32, i32, i32
  }
  func.func @transform_7(%arg0: i32) -> (i32, i32) {
    %c0_i32 = arith.constant 0 : i32
    %c0_i32_0 = arith.constant 0 : i32
    %c0_i32_1 = arith.constant 0 : i32
    return %c0_i32, %c0_i32_0 : i32, i32
  }
  func.func @transform_8(%arg0: i32) -> (i32, i32) {
    %c0_i32 = arith.constant 0 : i32
    %c0_i32_0 = arith.constant 0 : i32
    %c0_i32_1 = arith.constant 0 : i32
    return %c0_i32, %c0_i32_0 : i32, i32
  }
  func.func @transform_9(%arg0: i32) -> (i32, i32, i32, i32) {
    %c0_i32 = arith.constant 0 : i32
    %c0_i32_0 = arith.constant 0 : i32
    %c0_i32_1 = arith.constant 0 : i32
    %c0_i32_2 = arith.constant 0 : i32
    return %arg0, %c0_i32, %c0_i32_0, %c0_i32_1 : i32, i32, i32, i32
  }
}

</mosaic_0001>

<bundles_post_ra>
// kernel: tpu_custom_call.1
= control target key start
LH: loop header
LB: loop body
LE: loop exit
PB: predicated region body
PF: predicated region fallthrough
CT: control target
= control target key end

     0   :  { %s15574_s0 = inlined_call_operand.hbm [shape: f32[2,16,16,128], index: 0, kind: input, shape index: {}]   ;;  %s15575_s1 = inlined_call_operand.vmem [shape: f32[1,128], index: 1, kind: input, shape index: {}]   ;;  %s15576_s2 = inlined_call_operand.vmem [shape: f32[1,128], index: 2, kind: input, shape index: {}]   ;;  %s15577_s3 = inlined_call_operand.hbm [shape: bf16[9,128,128], index: 3, kind: input, shape index: {}]   ;;  %s15578_s4 = inlined_call_operand.vmem [shape: f32[1,128], index: 4, kind: input, shape index: {}]   ;;  %s15579_s5 = inlined_call_operand.vmem [shape: f32[1,128], index: 5, kind: input, shape index: {}]   ;;  %s15580_s6 = inlined_call_operand.hbm [shape: bf16[9,128,128], index: 6, kind: input, shape index: {}]   ;;  %s15581_s7 = inlined_call_operand.vmem [shape: f32[1,128], index: 7, kind: input, shape index: {}]   ;;  %s15582_s8 = inlined_call_operand.hbm [shape: bf16[128,128], index: 8, kind: input, shape index: {}]   ;;  %s15583_s9 = inlined_call_operand.hbm [shape: f32[2,8,8,128], index: 9, kind: output, shape index: {}]  }
   0x1   :  { %15596 = sst [smem:[#allocation51_spill]] %s15577_s3 }
   0x2   :  { %15597 = sst [smem:[#allocation52_spill]] %s15580_s6 }
   0x3   :  { %15598 = sst [smem:[#allocation53_spill]] %s15582_s8 }
   0x4   :  { %14 = vsyncpa [#allocation7], 0 }
   0x5   :  { %16 = vsyncpa [#allocation7 + $0x1], 0 }
   0x6   :  { %17 = vsyncpa [#allocation10], 0 }
   0x7   :  { %18 = vsyncpa [#allocation13], 0 }
   0x8   :  { %19 = vsyncpa [#allocation8], 0 }
   0x9   :  { %21 = vsyncpa [#allocation8 + $0x1], 0  ;;  %s12780_s30 = smov 0   ;;  %s12782_s10 = smov 0  }
   0xa   :  { %s12784_s11 = smov 0   ;;  %s12786_s12 = smov 0  }
   0xb LB: > { %s12801_s13 = sadd.s32 4294967295, %s12715_s12   ;;  %s10461_s14 = sadd.s32 4294967294, %s12715_s12   ;;  %s12715_s12 = sphi %s12786_s12, %s15735_s12   ;;  %s12711_s11 = sphi %s12784_s11, %s15734_s11   ;;  %s12707_s10 = sphi %s12782_s10, %s15733_s10   ;;  %s12703_s30 = sphi %s12780_s30, %s15732_s30  }
   0xc   : > { %p47_p0 = scmp.ne.s32.totalorder %s12707_s10, %s12703_s30  ;;  %p15584_p1 = scmp.eq.s32.totalorder %s12801_s13, 0 }
   0xd   : > { %p245_p3 = scmp.eq.s32.totalorder %s10461_s14, 1  ;;  %p10462_p5 = scmp.ge.s32.totalorder %s12715_s12, 1 }
   0xe   : > { %p12810_p4 = por %p15584_p1, %p47_p0  ;;  %p252_p7 = scmp.lt.s32.totalorder %s12715_s12, 3 }
   0xf   : > { %p12815_p6 = por %p245_p3, %p47_p0  ;;  %s12717_s18 = smov [#allocation9]  }
  0x10   : > { %s15599_s15 = scalar_select %p12810_p4, 1, 0 }
  0x11   : > { %s15600_s16 = scalar_select %p12815_p6, 1, 0 }
  0x12   : > { %p12820_p8 = pnand %p10462_p5, %p252_p7  ;;  %s270_s19 = sshll.u32 %s12717_s18, 4  ;;  %s271_s19 = int_to_ptr.vmem [resolvable:$true] %s270_s19 }
  0x13   : > { %s12718_s21 = smov [#allocation11]   ;;  %s12719_s23 = smov [#allocation12]  }
  0x14   : > { %s15601_s17 = scalar_select %p12820_p8, 1, 0 }
  0x15   : > { %p12140_p9 = pneg %p12820_p8  ;;  %s289_s22 = sshll.u32 %s12718_s21, 4  ;;  %s290_s22 = int_to_ptr.vmem [resolvable:$true] %s289_s22 }
  0x16   : > { %s305_s24 = sshll.u32 %s12719_s23, 4  ;;  %s12548_s25 = scalar_lea.vmem %s271_s19, 9216  ;;  %s306_s24 = int_to_ptr.vmem [resolvable:$true] %s305_s24 }
  0x17   : > { %p12829_p11 = pnand %p12140_p9, %p15584_p1  ;;  %p12549_p13 = scmp.ne.s32.totalorder %s271_s19, %s12548_s25 }
  0x18   : > { %p12556_p5 = scmp.lt.s32.totalorder %s271_s19, %s271_s19  ;;  %p12557_p7 = scmp.lt.s32.totalorder %s12548_s25, %s12548_s25 }
  0x19   : > { %p12539_p12 = pneg %p12829_p11 }
  0x1a   : > { %p12558_p9 = por %p12557_p7, %p12556_p5 }
  0x1b   : > { %p12551_p0 = pnand %p12549_p13, %p12539_p12 }
  0x1d   : > { %p12552_p3 = pneg %p12551_p0 }
  0x1f   : > { %p12559_p10 = pnand %p12558_p9, %p12552_p3 }
  0x21   : > { %12562 = shalt.err (!%p12559_p10)
}
  0x22   : > { %s12720_s26 = smov 64   ;;  %s12721_s27 = smov 4  }
  0x23   : > { %s15603_s3 = sld [smem:[#allocation51_spill]]  ;;  %s12574_s14 = scalar_lea.vmem %s290_s22, 9216 }
  0x24   : > { %p12575_p1 = scmp.ne.s32.totalorder %s290_s22, %s12574_s14  ;;  %p12582_p2 = scmp.lt.s32.totalorder %s290_s22, %s290_s22 }
  0x25   : > { %p12583_p6 = scmp.lt.s32.totalorder %s12574_s14, %s12574_s14 }
  0x26   : > { %p12577_p13 = pnand %p12575_p1, %p12539_p12 }
  0x27   : > { %p12584_p5 = por %p12583_p6, %p12582_p2 }
  0x28   : > { %p12578_p0 = pneg %p12577_p13 }
  0x29   : > { %12143 = dma.hbm_to_vmem [thread:$0]  (!%p12829_p11), %s15603_s3, 9216, %s271_s19, [#allocation10], %s12720_s26, %s12720_s26, %s12721_s27  }
  0x2a   : > { %p12585_p3 = pnand %p12584_p5, %p12578_p0 }
  0x2c   : > { %12588 = shalt.err (!%p12585_p3)
}
  0x2d   : > { %s15604_s6 = sld [smem:[#allocation52_spill]]  ;;  %s12600_s19 = scalar_lea.vmem %s306_s24, 1024 }
  0x2e   : > { %p12601_p10 = scmp.ne.s32.totalorder %s306_s24, %s12600_s19  ;;  %p12608_p9 = scmp.lt.s32.totalorder %s306_s24, %s306_s24 }
  0x2f   : > { %p12609_p13 = scmp.lt.s32.totalorder %s12600_s19, %s12600_s19 }
  0x30   : > { %p12603_p7 = pnand %p12601_p10, %p12539_p12 }
  0x31   : > { %p12610_p4 = por %p12609_p13, %p12608_p9 }
  0x32   : > { %p12604_p1 = pneg %p12603_p7 }
  0x33   : > { %12146 = dma.hbm_to_vmem [thread:$0]  (!%p12829_p11), %s15604_s6, 9216, %s290_s22, [#allocation10], %s12720_s26, %s12720_s26, %s12721_s27  }
  0x34   : > { %p12611_p2 = pnand %p12610_p4, %p12604_p1 }
  0x36   : > { %12614 = shalt.err (!%p12611_p2)
}
  0x37   : > { %s15605_s8 = sld [smem:[#allocation53_spill]]  ;;  %s12860_s22 = sadd.s32 1, %s12715_s12  }
  0x38   : > { %s31_s28 = ssub.s32 %s12715_s12, %s12860_s22  ;;  %s34_s20 = sadd.s32 1, %s12711_s11 }
  0x39   : > { %p32_p4 = scmp.eq.s32.totalorder %s31_s28, 0  ;;  %p41_p6 = scmp.ne.s32.totalorder %s12711_s11, %s12707_s10 }
  0x3a   : > { %p42_p12 = scmp.eq.s32.totalorder %s12715_s12, 0  ;;  %p12161_p0 = scmp.lt.s32.totalorder %s12715_s12, 2 }
  0x3b   : > { %s12870_s29 = scalar_select %p32_p4, %s12711_s11, %s34_s20  }
  0x3c   : > { %p43_p5 = por %p42_p12, %p41_p6  ;;  %p15606_p3 = scmp.eq.s32.totalorder %s12801_s13, 1 }
  0x3d   : > { %12149 = dma.hbm_to_vmem [thread:$0]  (!%p12829_p11), %s15605_s8, 1024, %s306_s24, [#allocation13], %s12720_s26, %s12720_s26, %s12721_s27  }
  0x3e   : > { %p12874_p10 = por %p15606_p3, %p41_p6  ;;  %s319_s18 = sand.u32 1, %s12711_s11  }
  0x3f   : > { %s11050_s21 = sshll.u32 %s12715_s12, 12  ;;  %s10467_s24 = sshll.u32 %s319_s18, 8 }
  0x40   : > { %s15607_s14 = scalar_select %p12874_p10, 1, 0 }
  0x41   : > { %s12883_s19 = scalar_lea.hbm %s15574_s0, %s11050_s21  ;;  %s323_s23 = scalar_lea.vmem [#allocation6], %s10467_s24 }
  0x42   : > { %s330_s25 = sshll.u32 %s323_s23, 4  ;;  %p12885_p11 = pnand %p12161_p0, %p43_p5  ;;  %s12889_s25 = int_to_ptr.vmem [resolvable:$true] %s330_s25 }
  0x43   : > { %s12891_s20 = scalar_lea.sflag [#allocation7], %s319_s18  ;;  %s12615_s3 = scalar_lea.hbm %s12883_s19, 4096 }
  0x44   : > { %p12616_p7 = scmp.ne.s32.totalorder %s12883_s19, %s12615_s3  ;;  %p12617_p1 = pneg %p12885_p11 }
  0x45   : > { %s12620_s24 = scalar_lea.hbm %s15574_s0, 8192  ;;  %p12621_p2 = scmp.lt.s32.totalorder %s12883_s19, %s15574_s0 }
  0x46   : > { %p12618_p9 = pnand %p12617_p1, %p12616_p7  ;;  %p12622_p4 = scmp.lt.s32.totalorder %s12620_s24, %s12615_s3 }
  0x48   : > { %p12619_p13 = pneg %p12618_p9  ;;  %p12623_p6 = por %p12622_p4, %p12621_p2 }
  0x4a   : > { %p12624_p12 = pnand %p12623_p6, %p12619_p13 }
  0x4c   : > { %12627 = shalt.err (!%p12624_p12)
}
  0x4d   : > { %s12628_s18 = scalar_lea.vmem %s12889_s25, 4096  ;;  %s12722_s6 = smov [#allocation6]  }
  0x4e   : > { %p12629_p0 = scmp.ne.s32.totalorder %s12889_s25, %s12628_s18  ;;  %s12633_s8 = sshll.u32 %s12722_s6, 4  ;;  %s12634_s8 = int_to_ptr.vmem [resolvable:$false] %s12633_s8 }
  0x4f   : > { %s12635_s21 = scalar_lea.vmem %s12634_s8, 8192  ;;  %p12636_p7 = scmp.lt.s32.totalorder %s12889_s25, %s12634_s8 }
  0x50   : > { %p12631_p5 = pnand %p12629_p0, %p12617_p1  ;;  %p12637_p9 = scmp.lt.s32.totalorder %s12635_s21, %s12628_s18 }
  0x52   : > { %p12632_p3 = pneg %p12631_p5  ;;  %p12638_p10 = por %p12637_p9, %p12636_p7 }
  0x54   : > { %p12639_p8 = pnand %p12638_p10, %p12632_p3 }
  0x56   : > { %12642 = shalt.err (!%p12639_p8)
}
  0x57   : > { %s12723_s3 = smov 128   ;;  %s12724_s26 = smov 8  }
  0x58   : > { %12153 = dma.hbm_to_vmem [thread:$0]  (!%p12885_p11), %s12883_s19, 4096, %s12889_s25, %s12891_s20, %s12723_s3, %s12723_s3, %s12724_s26  }
  0x59   : > { %p15609_p1 = scmp.ne.s32.totalorder %s15601_s17, 0 }
  0x5b   : > { %342 = sbr.rel (%p15609_p1) target bundleno = 1124 (0x464), region = 56 }
  0x60   : > { %s12915_s6 = sand.u32 1, %s12707_s10   ;;  %p15610_p8 = scmp.ne.s32.totalorder %s15599_s15, 0 }
  0x61   : > { %s10471_s8 = sshll.u32 %s12915_s6, 8  ;;  %s345_s24 = scalar_lea.sflag [#allocation7], %s12915_s6 }
  0x62   : > { %s12919_s27 = scalar_lea.vmem [#allocation6], %s10471_s8 }
  0x63   : > { %12686 = dma.done.wait (%p15610_p8), %s345_s24, 4096  }
  0x64   : > { %12688 = vsyncadd (%p15610_p8), %s345_s24, 4294963200  ;;  %p15611_p10 = scmp.eq.s32.totalorder %s12801_s13, 0 }
  0x66   : > { %12690 = dma.done.wait (%p15611_p10), [#allocation10], 18432   ;;  %p15612_p11 = pmov %p15611_p10 }
  0x67   : > { %p15613_p13 = pmov %p15611_p10 }
  0x68   : > { %12692 = vsyncadd (%p15612_p11), [#allocation10], 4294948864 }
  0x69   : > { %12694 = dma.done.wait (%p15613_p13), [#allocation13], 1024   ;;  %p15614_p2 = pmov %p15611_p10 }
  0x6a   : > { %v12725_v0 = vmov 0   ;;  %v12209_v1 = vld [vmem:[#allocation12 + $0x38] sm:$0xff]   ;;  %v12211_v3 = vld [vmem:[#allocation12 + $0x30] sm:$0xff]   ;;  %v12213_v5 = vld [vmem:[#allocation12 + $0x28] sm:$0xff]   ;;  %v12726_v7 = vmov 1966171168   ;;  %v1150_v9 = vlaneseq }
  0x6b   : > { %12696 = vsyncadd (%p15614_p2), [#allocation13], 4294966272  ;;  %1043 = vst [vmem:[#allocation2] sm:$0xf] %v12725_v0  ;;  %v12210_v2 = vld [vmem:[#allocation9 + $0x38] sm:$0xff]   ;;  %11452 = vmatprep.subr.bf16.mxu0 %v12209_v1  ;;  %v12212_v4 = vld [vmem:[#allocation9 + $0x30] sm:$0xff]   ;;  %v1148_v8 = vunpack.c.l.s4 %v12726_v7 }
  0x6c   : > { %1044 = vst [vmem:[#allocation2 + $0x4] sm:$0xf] %v12725_v0  ;;  %1045 = vst [vmem:[#allocation2 + $0x8] sm:$0x1] %v12725_v0  ;;  %11476 = vmatprep.subr.bf16.mxu1 %v12210_v2  ;;  %11453 = vmatpush3.bf16.msra.mxu0 %v12209_v1  ;;  %v12214_v6 = vld [vmem:[#allocation9 + $0x28] sm:$0xff]   ;;  %v12215_v10 = vld [vmem:[#allocation12 + $0x20] sm:$0xff]  }
  0x6d   : > { %1047 = vst [vmem:[#allocation2 + $0xcc] sm:$0xf] %v12725_v0  ;;  %1048 = vst [vmem:[#allocation2 + $0xd0] sm:$0xf] %v12725_v0  ;;  %11477 = vmatpush3.bf16.msra.mxu1 %v12210_v2  ;;  %11454 = vmatprep.subr.bf16.mxu0 %v12211_v3  ;;  %v12216_v11 = vld [vmem:[#allocation9 + $0x20] sm:$0xff]   ;;  %v1149_v12 = vunpack.c.0.s8 %v1148_v8  ;;  %v1151_v13 = vshrl.u32 %v1150_v9, 7 }
  0x6e   : > { %1049 = vst [vmem:[#allocation2 + $0xd4] sm:$0x1] %v12725_v0  ;;  %7638 = vst [vmem:[#allocation3] sm:$0xf] %v12725_v0  ;;  %11478 = vmatprep.subr.bf16.mxu1 %v12212_v4  ;;  %v12217_v14 = vld [vmem:[#allocation12 + $0x18] sm:$0xff]   ;;  %v12219_v16 = vld [vmem:[#allocation12 + $0x10] sm:$0xff]  }
  0x6f   : > { %7639 = vst [vmem:[#allocation3 + $0x4] sm:$0xf] %v12725_v0  ;;  %7640 = vst [vmem:[#allocation3 + $0x8] sm:$0x1] %v12725_v0  ;;  %v12218_v15 = vld [vmem:[#allocation9 + $0x18] sm:$0xff]   ;;  %v12933_v17 = vsub.s32 %v1149_v12, %v1151_v13  ;;  %v12220_v18 = vld [vmem:[#allocation9 + $0x10] sm:$0xff]  }
  0x70   : > { %11455 = vmatpush3.bf16.msra.mxu0 %v12211_v3  ;;  %v396_v20 = vld [vmem:[%s12919_s27] sm:$0xff]  ;;  %v397_v21 = vld [vmem:[%s12919_s27 + $0x8] sm:$0xff]  ;;  %vm602_vm0 = vsmask.f32 256  ;;  %v12942_v24 = vld [vmem:[%s15575_s1] ss:$0 sm:$0xff] }
  0x71   : > { %11479 = vmatpush3.bf16.msra.mxu1 %v12212_v4  ;;  %11456 = vmatprep.subr.bf16.mxu0 %v12213_v5  ;;  %v400_v22 = vld [vmem:[%s12919_s27 + $0x20] sm:$0xff]  ;;  %v401_v23 = vld [vmem:[%s12919_s27 + $0x28] sm:$0xff]  ;;  %v12947_v25 = vld [vmem:[%s15576_s2] ss:$0 sm:$0xff]  ;;  %v1153_v26 = vrot.slane %v396_v20, %v12933_v17  ;;  %v1160_v27 = vrot.slane %v397_v21, %v12933_v17  ;;  %v435_v29 = vmul.f32 %v12942_v24, %v396_v20  ;;  %vm926_vm1 = vcmask 1043456   ;;  %s10475_s21 = sshll.u32 %s12915_s6, 6 }
  0x72   : > { %11480 = vmatprep.subr.bf16.mxu1 %v12214_v6  ;;  %v1167_v28 = vrot.slane %v400_v22, %v12933_v17  ;;  %v436_v30 = vmul.f32 %v12942_v24, %v397_v21  ;;  %v439_v31 = vmul.f32 %v12942_v24, %v400_v22  ;;  %v440_v32 = vmul.f32 %v12942_v24, %v401_v23  ;;  %v12221_v33 = vld [vmem:[#allocation12 + $0x8] sm:$0xff]   ;;  %v12962_v42 = vld [vmem:[%s12919_s27 + $0x40] sm:$0xff]  ;;  %v929_v63 = vld [vmem:[#allocation2 + $0xc] sm:$0xf]  ;;  %s15508_s3 = scalar_lea.vmem [#allocation14], %s10475_s21  ;;  %s11115_s8 = sshll.u32 %s12801_s13, 10 }
  0x73   : > { %v12225_v19 = vld [vmem:[#allocation2] sm:$0xff]   ;;  %v1174_v34 = vrot.slane %v401_v23, %v12933_v17  ;;  %v1275_v35 = vcombine.low %v1153_v26, %v1160_v27  ;;  %v12222_v36 = vld [vmem:[#allocation9 + $0x8] sm:$0xff]   ;;  %v474_v37 = vadd.f32 %v12947_v25, %v435_v29  ;;  %vm603_vm2 = vsmask.f32 4368  ;;  %v12223_v44 = vld [vmem:[#allocation12] sm:$0xff]   ;;  %s10359_s26 = sshll.u32 %s15508_s3, 4  ;;  %s15529_s15 = scalar_lea.hbm %s15583_s9, %s11115_s8  ;;  %s15523_s26 = int_to_ptr.vmem [resolvable:$true] %s10359_s26 }
  0x74   : > { %11457 = vmatpush3.bf16.msra.mxu0 %v12213_v5  ;;  %11492 = vmatprep.mubr.bf16.mxu1 %v12225_v19  ;;  %v475_v38 = vadd.f32 %v12947_v25, %v436_v30  ;;  %v478_v39 = vadd.f32 %v12947_v25, %v439_v31  ;;  %v479_v40 = vadd.f32 %v12947_v25, %v440_v32  ;;  %vm927_vm3 = vsmask.f32 7938  ;;  %v12965_v43 = vld [vmem:[%s12919_s27 + $0x48] sm:$0xff]  ;;  %v12224_v49 = vld [vmem:[#allocation9] sm:$0xff]   ;;  %vm12979_vm5 = vmor %vm602_vm0, %vm603_vm2  ;;  %s10346_s17 = scalar_lea.sflag [#allocation8], %s12915_s6  ;;  %s12643_s13 = scalar_lea.vmem %s15523_s26, 1024 }
  0x75   : > { %11481 = vmatpush3.bf16.msra.mxu1 %v12214_v6  ;;  %11458 = vmatprep.subr.bf16.mxu0 %v12215_v10  ;;  %v1276_v41 = vcombine.low %v1167_v28, %v1174_v34  ;;  %v11051_v45 = vpack.c.bf16 %v474_v37, %v474_v37  ;;  %vm933_vm4 = vcmask 1040384   ;;  %v12968_v51 = vld [vmem:[%s12919_s27 + $0x60] sm:$0xff]  ;;  %v12971_v52 = vld [vmem:[%s12919_s27 + $0x68] sm:$0xff]  ;;  %v443_v53 = vmul.f32 %v12942_v24, %v12962_v42  ;;  %v945_v4 = vld [vmem:[#allocation2 + $0x24] sm:$0xf]  ;;  %p12644_p4 = scmp.ne.s32.totalorder %s15523_s26, %s12643_s13  ;;  %p15729_p6 = scmp.ne.s32.totalorder %s15607_s14, 0 }
  0x76   : > { %11482 = vmatprep.subr.bf16.mxu1 %v12216_v11  ;;  %v11052_v46 = vpack.c.bf16 %v475_v38, %v475_v38  ;;  %v11055_v47 = vpack.c.bf16 %v478_v39, %v478_v39  ;;  %v11056_v48 = vpack.c.bf16 %v479_v40, %v479_v40  ;;  %v444_v54 = vmul.f32 %v12942_v24, %v12965_v43  ;;  %v935_v0 = vld [vmem:[#allocation2 + $0x14] sm:$0x1]  ;;  %v949_v5 = vld [vmem:[#allocation2 + $0x2c] sm:$0x1]  ;;  %vm12989_vm6 = vmand %vm926_vm1, %vm927_vm3  ;;  %s12727_s19 = smov [#allocation14]  }
  0x77   : > { %v1291_v50 = vpack.c.bf16 %v1276_v41, %v1275_v35  ;;  %v606_v55 = vshrl.u32 %v11051_v45, 16  ;;  %v609_v56 = vshll.u32 %v11051_v45, 16  ;;  %v15615_v1 = vmov 0  ;;  %v12997_v19 = vld [vmem:[#allocation9 + $0xb8] sm:$0xff]   ;;  %vm13001_vm7 = vmand %vm933_vm4, %vm602_vm0  ;;  %v398_v38 = vld [vmem:[%s12919_s27 + $0x10] sm:$0xff]  ;;  %p12645_p12 = pnand %p12644_p4, %p15729_p6  ;;  %s12647_s25 = sshll.u32 %s12727_s19, 4  ;;  %s12648_s25 = int_to_ptr.vmem [resolvable:$false] %s12647_s25 }
  0x78   : > { %11459 = vmatpush3.bf16.msra.mxu0 %v12215_v10  ;;  %v614_v57 = vshrl.u32 %v11052_v46, 16  ;;  %v617_v58 = vshll.u32 %v11052_v46, 16  ;;  %v640_v59 = vshrl.u32 %v11055_v47, 16  ;;  %v643_v60 = vshll.u32 %v11055_v47, 16  ;;  %v399_v45 = vld [vmem:[%s12919_s27 + $0x18] sm:$0xff]  ;;  %vm13035_vm8 = vmand %vm933_vm4, %vm927_vm3  ;;  %s12649_s28 = scalar_lea.vmem %s12648_s25, 2048  ;;  %p12650_p5 = scmp.lt.s32.totalorder %s15523_s26, %s12648_s25 }
  0x79   : > { %11483 = vmatpush3.bf16.msra.mxu1 %v12216_v11  ;;  %11460 = vmatprep.subr.bf16.mxu0 %v12217_v14  ;;  %v648_v61 = vshrl.u32 %v11056_v48, 16  ;;  %v651_v62 = vshll.u32 %v11056_v48, 16  ;;  %v15616_v1 = vsel %vm12979_vm5, 4294967295, %v15615_v1  ;;  %v608_v2 = vrot.slane %v606_v55, 7  ;;  %v12993_v11 = vld [vmem:[#allocation9 + $0x78] sm:$0xff]   ;;  %p12646_p0 = pneg %p12645_p12  ;;  %p12651_p3 = scmp.lt.s32.totalorder %s12649_s28, %s12643_s13 }
  0x7a   : > { %11484 = vmatprep.subr.bf16.mxu1 %v12218_v15  ;;  %11468 = vmatprep.mubr.bf16.mxu0 %v1291_v50  ;;  %15617 = vst [vmem:[#allocation19_spill] sm:$0xff] %v15616_v1  ;;  %v616_v3 = vrot.slane %v614_v57, 7  ;;  %v447_v6 = vmul.f32 %v12942_v24, %v12968_v51  ;;  %v448_v7 = vmul.f32 %v12942_v24, %v12971_v52  ;;  %v642_v8 = vrot.slane %v640_v59, 7  ;;  %v402_v50 = vld [vmem:[%s12919_s27 + $0x30] sm:$0xff]  ;;  %v959_v59 = vld [vmem:[#allocation2 + $0x3c] sm:$0xf] }
  0x7b   : > { %v650_v9 = vrot.slane %v648_v61, 7  ;;  %v15618_v10 = vmov 0  ;;  %v482_v12 = vadd.f32 %v12947_v25, %v443_v53  ;;  %v483_v13 = vadd.f32 %v12947_v25, %v444_v54  ;;  %v963_v61 = vld [vmem:[#allocation2 + $0x44] sm:$0x1]  ;;  %p12652_p7 = por %p12651_p3, %p12650_p5 }
  0x7c   : > { %11461 = vmatpush3.bf16.msra.mxu0 %v12217_v14  ;;  %v15619_v10 = vsel %vm12989_vm6, 4294967295, %v15618_v10  ;;  %v611_v14 = vor.u32 %v609_v56, %v608_v2  ;;  %v645_v20 = vor.u32 %v643_v60, %v642_v8  ;;  %v646_v21 = vrot.slane %v642_v8, 4 }
  0x7d   : > { %11485 = vmatpush3.bf16.msra.mxu1 %v12218_v15  ;;  %11462 = vmatprep.subr.bf16.mxu0 %v12219_v16  ;;  %15620 = vst [vmem:[#allocation20_spill] sm:$0xff] %v15619_v10  ;;  %v612_v15 = vrot.slane %v608_v2, 4  ;;  %v653_v22 = vor.u32 %v651_v62, %v650_v9  ;;  %v655_v23 = vrot.slane %v650_v9, 4  ;;  %v15621_v26 = vmov 0  ;;  %v973_v62 = vld [vmem:[#allocation2 + $0x54] sm:$0xf]  ;;  %p12653_p9 = pnand %p12652_p7, %p12646_p0 }
  0x7e   : > { %11486 = vmatprep.subr.bf16.mxu1 %v12220_v18  ;;  %v15622_v26 = vsel %vm13001_vm7, 4294967295, %v15621_v26  ;;  %v930_v28 = vsel %vm12989_vm6, %v611_v14, %v929_v63  ;;  %v486_v30 = vadd.f32 %v12947_v25, %v447_v6  ;;  %v946_v32 = vsel %vm12989_vm6, %v645_v20, %v945_v4  ;;  %v12336_v10 = vld [vmem:[#allocation9 + $0x200] sm:$0xff]  }
  0x7f   : > { %15623 = vst [vmem:[#allocation21_spill] sm:$0xff] %v15622_v26  ;;  %v654_v31 = vsel %vm12979_vm5, %v646_v21, %v653_v22  ;;  %931 = vst [vmem:[#allocation2 + $0xc] sm:$0xf] %v930_v28  ;;  %v487_v34 = vadd.f32 %v12947_v25, %v448_v7  ;;  %v11059_v35 = vpack.c.bf16 %v482_v12, %v482_v12  ;;  %vm1879_vm9 = vsmask.f32 3328 }
  0x80   : > { %11463 = vmatpush3.bf16.msra.mxu0 %v12219_v16  ;;  %v619_v16 = vor.u32 %v617_v58, %v616_v3  ;;  %947 = vst [vmem:[#allocation2 + $0x24] sm:$0xf] %v946_v32  ;;  %948 = vst [vmem:[#allocation2 + $0x28] sm:$0xf] %v654_v31  ;;  %v11063_v37 = vpack.c.bf16 %v486_v30, %v486_v30  ;;  %v1181_v39 = vrot.slane %v12962_v42, %v12933_v17  ;;  %v403_v42 = vld [vmem:[%s12919_s27 + $0x38] sm:$0xff]  ;;  %v13056_v31 = vld [vmem:[%s12919_s27 + $0x80] sm:$0xff] }
  0x81   : > { %11487 = vmatpush3.bf16.msra.mxu1 %v12220_v18  ;;  %11464 = vmatprep.subr.bf16.mxu0 %v12221_v33  ;;  %v621_v18 = vrot.slane %v616_v3, 4  ;;  %v1188_v40 = vrot.slane %v12965_v43, %v12933_v17  ;;  %v1195_v41 = vrot.slane %v12968_v51, %v12933_v17  ;;  %v11064_v46 = vpack.c.bf16 %v487_v34, %v487_v34  ;;  %v13059_v32 = vld [vmem:[%s12919_s27 + $0x88] sm:$0xff] }
  0x82   : > { %11488 = vmatprep.subr.bf16.mxu1 %v12222_v36  ;;  %v620_v27 = vsel %vm12979_vm5, %v612_v15, %v619_v16  ;;  %v674_v47 = vshrl.u32 %v11059_v35, 16  ;;  %v677_v48 = vshll.u32 %v11059_v35, 16  ;;  %v708_v54 = vshrl.u32 %v11063_v37, 16  ;;  %v977_v35 = vld [vmem:[#allocation2 + $0x5c] sm:$0x1] }
  0x83   : > { %v936_v29 = vsel %vm13001_vm7, %v621_v18, %v935_v0  ;;  %932 = vst [vmem:[#allocation2 + $0x10] sm:$0xf] %v620_v27  ;;  %v711_v55 = vshll.u32 %v11063_v37, 16  ;;  %v1277_v56 = vcombine.low %v1181_v39, %v1188_v40  ;;  %v15624_v43 = vmov 0  ;;  %v12229_v0 = vld [vmem:[#allocation9 + $0x70] sm:$0xff]   ;;  %v12232_v40 = vld [vmem:[#allocation9 + $0x68] sm:$0xff]  }
  0x84   : > { %11465 = vmatpush3.bf16.msra.mxu0 %v12221_v33  ;;  %937 = vst [vmem:[#allocation2 + $0x14] sm:$0x1] %v936_v29  ;;  %v950_v33 = vsel %vm13001_vm7, %v655_v23, %v949_v5  ;;  %v15625_v43 = vsel %vm13035_vm8, 4294967295, %v15624_v43  ;;  %v676_v51 = vrot.slane %v674_v47, 7  ;;  %v719_v58 = vshll.u32 %v11064_v46, 16  ;;  %v13071_v47 = vld [vmem:[%s12919_s27 + $0xa0] sm:$0xff] }
  0x85   : > { %11489 = vmatpush3.bf16.msra.mxu1 %v12222_v36  ;;  %11466 = vmatprep.subr.bf16.mxu0 %v12223_v44  ;;  %951 = vst [vmem:[#allocation2 + $0x2c] sm:$0x1] %v950_v33  ;;  %v11060_v36 = vpack.c.bf16 %v483_v13, %v483_v13  ;;  %15626 = vst [vmem:[#allocation22_spill] sm:$0xff] %v15625_v43  ;;  %v710_v60 = vrot.slane %v708_v54, 7  ;;  %v437_v2 = vmul.f32 %v12942_v24, %v398_v38  ;;  %v12234_v54 = vld [vmem:[#allocation9 + $0x60] sm:$0xff]   ;;  %vm2748_vm12 = vcmask 1042432  }
  0x86   : > { %11490 = vmatprep.subr.bf16.mxu1 %v12224_v49  ;;  %v438_v3 = vmul.f32 %v12942_v24, %v399_v45  ;;  %v1050_v4 = vld [vmem:[#allocation2 + $0xc] sm:$0x1]  ;;  %v679_v6 = vor.u32 %v677_v48, %v676_v51  ;;  %v441_v8 = vmul.f32 %v12942_v24, %v402_v50  ;;  %v442_v9 = vmul.f32 %v12942_v24, %v403_v42  ;;  %v13082_v42 = vld [vmem:[%s12919_s27 + $0xa8] sm:$0xff] }
  0x87   : > { %v685_v53 = vshll.u32 %v11060_v36, 16  ;;  %v1051_v12 = vsel %vm13001_vm7, 0, %v1050_v4  ;;  %v1056_v13 = vld [vmem:[#allocation2 + $0x24] sm:$0x1]  ;;  %v713_v16 = vor.u32 %v711_v55, %v710_v60  ;;  %v680_v22 = vrot.slane %v676_v51, 4 }
  0x88   : > { %11467 = vmatpush3.bf16.msra.mxu0 %v12223_v44  ;;  %v1202_v44 = vrot.slane %v12971_v52, %v12933_v17  ;;  %v716_v52 = vshrl.u32 %v11064_v46, 16  ;;  %1052 = vst [vmem:[#allocation2 + $0xc] sm:$0x1] %v1051_v12  ;;  %v1057_v20 = vsel %vm13001_vm7, 0, %v1056_v13  ;;  %v714_v27 = vrot.slane %v710_v60, 4 }
  0x89   : > { %11491 = vmatpush3.bf16.msra.mxu1 %v12224_v49  ;;  %11524 = vmatprep.subr.bf16.mxu0 %v12993_v11  ;;  %v682_v49 = vshrl.u32 %v11060_v36, 16  ;;  %1058 = vst [vmem:[#allocation2 + $0x24] sm:$0x1] %v1057_v20  ;;  %v960_v29 = vsel %vm12989_vm6, %v679_v6, %v959_v59  ;;  %v974_v30 = vsel %vm12989_vm6, %v713_v16, %v973_v62  ;;  %v938_v60 = vld [vmem:[#allocation2 + $0x18] sm:$0xf]  ;;  %vm2749_vm13 = vcmask 1046532  }
  0x8a   : > { %11572 = vmatprep.subr.bf16.mxu1 %v12997_v19  ;;  %v1278_v63 = vcombine.low %v1195_v41, %v1202_v44  ;;  %v718_v28 = vrot.slane %v716_v52, 7  ;;  %961 = vst [vmem:[#allocation2 + $0x3c] sm:$0xf] %v960_v29  ;;  %975 = vst [vmem:[#allocation2 + $0x54] sm:$0xf] %v974_v30  ;;  %v476_v36 = vadd.f32 %v12947_v25, %v437_v2  ;;  %v12238_v29 = vld [vmem:[#allocation9 + $0xa8] sm:$0xff]  }
  0x8b   : > { %v684_v57 = vrot.slane %v682_v49, 7  ;;  %v1099_v5 = vld [vmem:[#allocation2 + $0x14] sm:$0x1]  ;;  %v477_v37 = vadd.f32 %v12947_v25, %v438_v3  ;;  %v480_v41 = vadd.f32 %v12947_v25, %v441_v8  ;;  %v481_v44 = vadd.f32 %v12947_v25, %v442_v9  ;;  %v952_v6 = vld [vmem:[#allocation2 + $0x30] sm:$0xf]  ;;  %vm13407_vm14 = vmor %vm2748_vm12, %vm2749_vm13 }
  0x8c   : > { %v1100_v14 = vsel %vm13035_vm8, 0, %v1099_v5  ;;  %v1105_v15 = vld [vmem:[#allocation2 + $0x2c] sm:$0x1]  ;;  %v1292_v18 = vpack.c.bf16 %v1278_v63, %v1277_v56  ;;  %v721_v38 = vor.u32 %v719_v58, %v718_v28  ;;  %v723_v39 = vrot.slane %v718_v28, 4 }
  0x8d   : > { %v687_v7 = vor.u32 %v685_v53, %v684_v57  ;;  %1101 = vst [vmem:[#allocation2 + $0x14] sm:$0x1] %v1100_v14  ;;  %v1106_v21 = vsel %vm13035_vm8, 0, %v1105_v15  ;;  %v689_v23 = vrot.slane %v684_v57, 4  ;;  %v11053_v45 = vpack.c.bf16 %v476_v36, %v476_v36  ;;  %v12233_v53 = vld [vmem:[#allocation9 + $0xb0] sm:$0xff]  }
  0x8e   : > { %1107 = vst [vmem:[#allocation2 + $0x2c] sm:$0x1] %v1106_v21  ;;  %11469 = vmatmul.mubr.bf16.vlgmr.msra.gmra.mxu0 %v1292_v18  ;;  %v11054_v46 = vpack.c.bf16 %v477_v37, %v477_v37  ;;  %v452_v48 = vmul.f32 %v12942_v24, %v13059_v32  ;;  %v722_v49 = vsel %vm12979_vm5, %v714_v27, %v721_v38  ;;  %vm1880_vm10 = vsmask.f32 7440 }
  0x8f   : > { %v688_v33 = vsel %vm12979_vm5, %v680_v22, %v687_v7  ;;  %v964_v34 = vsel %vm13001_vm7, %v689_v23, %v963_v61  ;;  %11525 = vmatpush3.bf16.msra.mxu0 %v12993_v11  ;;  %v451_v11 = vmul.f32 %v12942_v24, %v13056_v31  ;;  %v978_v50 = vsel %vm13001_vm7, %v723_v39, %v977_v35  ;;  %v12226_v59 = vld [vmem:[#allocation2 + $0xc] sm:$0xff]   ;;  %vm13235_vm11 = vmor %vm1879_vm9, %vm1880_vm10 }
  0x90   : > { %962 = vst [vmem:[#allocation2 + $0x40] sm:$0xf] %v688_v33  ;;  %965 = vst [vmem:[#allocation2 + $0x44] sm:$0x1] %v964_v34  ;;  %11526 = vmatprep.subr.bf16.mxu0 %v12229_v0  ;;  %v11057_v55 = vpack.c.bf16 %v480_v41, %v480_v41  ;;  %v11058_v56 = vpack.c.bf16 %v481_v44, %v481_v44  ;;  %v623_v51 = vshrl.u32 %v11053_v45, 16  ;;  %v626_v57 = vshll.u32 %v11053_v45, 16 }
  0x91   : > { %976 = vst [vmem:[#allocation2 + $0x58] sm:$0xf] %v722_v49  ;;  %979 = vst [vmem:[#allocation2 + $0x5c] sm:$0x1] %v978_v50  ;;  %v631_v52 = vshrl.u32 %v11054_v46, 16  ;;  %v634_v58 = vshll.u32 %v11054_v46, 16  ;;  %v455_v2 = vmul.f32 %v12942_v24, %v13071_v47  ;;  %11493 = vmatmul.mubr.bf16.vlgmr.msra.gmra.mxu1 %v12226_v59  ;;  %v490_v13 = vadd.f32 %v12947_v25, %v451_v11 }
  0x92   : > { %v657_v61 = vshrl.u32 %v11057_v55, 16  ;;  %v660_v62 = vshll.u32 %v11057_v55, 16  ;;  %v665_v63 = vshrl.u32 %v11058_v56, 16  ;;  %v625_v3 = vrot.slane %v623_v51, 7  ;;  %v1062_v7 = vld [vmem:[#allocation2 + $0x3c] sm:$0x1]  ;;  %11573 = vmatpush3.bf16.msra.mxu1 %v12997_v19 }
  0x93   : > { %11527 = vmatpush3.bf16.msra.mxu0 %v12229_v0  ;;  %v13086_v4 = vrot.slane %v631_v52, 7  ;;  %v668_v5 = vshll.u32 %v11058_v56, 16  ;;  %v456_v0 = vmul.f32 %v12942_v24, %v13082_v42  ;;  %v1068_v8 = vld [vmem:[#allocation2 + $0x54] sm:$0x1]  ;;  %v491_v14 = vadd.f32 %v12947_v25, %v452_v48  ;;  %v12237_v22 = vld [vmem:[#allocation9 + $0x58] sm:$0xff]   ;;  %11574 = vmatprep.subr.bf16.mxu1 %v12233_v53  ;;  %v12239_v46 = vld [vmem:[#allocation9 + $0x50] sm:$0xff]  }
  0x94   : > { %11528 = vmatprep.subr.bf16.mxu0 %v12232_v40  ;;  %v659_v9 = vrot.slane %v657_v61, 7  ;;  %v13090_v12 = vrot.slane %v665_v63, 7  ;;  %v1063_v15 = vsel %vm13001_vm7, 0, %v1062_v7  ;;  %v1069_v16 = vsel %vm13001_vm7, 0, %v1068_v8  ;;  %v12243_v50 = vld [vmem:[#allocation9 + $0xa0] sm:$0xff]   ;;  %v406_v51 = vld [vmem:[%s12919_s27 + $0x50] sm:$0xff] }
  0x95   : > { %v628_v20 = vor.u32 %v626_v57, %v625_v3  ;;  %v629_v21 = vrot.slane %v625_v3, 4  ;;  %1064 = vst [vmem:[#allocation2 + $0x3c] sm:$0x1] %v1063_v15  ;;  %1070 = vst [vmem:[#allocation2 + $0x54] sm:$0x1] %v1069_v16  ;;  %v636_v27 = vor.u32 %v634_v58, %v13086_v4  ;;  %v494_v37 = vadd.f32 %v12947_v25, %v455_v2 }
  0x96   : > { %v662_v28 = vor.u32 %v660_v62, %v659_v9  ;;  %v663_v19 = vrot.slane %v659_v9, 4  ;;  %v670_v33 = vor.u32 %v668_v5, %v13090_v12  ;;  %v495_v38 = vadd.f32 %v12947_v25, %v456_v0  ;;  %11575 = vmatpush3.bf16.msra.mxu1 %v12233_v53  ;;  %v991_v63 = vld [vmem:[#allocation2 + $0x74] sm:$0x1]  ;;  %v1001_v2 = vld [vmem:[#allocation2 + $0x84] sm:$0xf]  ;;  %v12242_v9 = vld [vmem:[#allocation9 + $0x48] sm:$0xff]  }
  0x97   : > { %v1111_v18 = vld [vmem:[#allocation2 + $0x44] sm:$0x1]  ;;  %11529 = vmatpush3.bf16.msra.mxu0 %v12232_v40  ;;  %v939_v30 = vsel %vm12989_vm6, %v628_v20, %v938_v60  ;;  %v637_v35 = vsel %vm12979_vm5, %v629_v21, %v636_v27  ;;  %v11067_v41 = vpack.c.bf16 %v490_v13, %v490_v13  ;;  %v11068_v44 = vpack.c.bf16 %v491_v14, %v491_v14  ;;  %v987_v60 = vld [vmem:[#allocation2 + $0x6c] sm:$0xf]  ;;  %v13128_v20 = vld [vmem:[%s12919_s27 + $0xc0] sm:$0xff] }
  0x98   : > { %v1112_v23 = vsel %vm13035_vm8, 0, %v1111_v18  ;;  %11530 = vmatprep.subr.bf16.mxu0 %v12234_v54  ;;  %v1117_v34 = vld [vmem:[#allocation2 + $0x5c] sm:$0x1]  ;;  %940 = vst [vmem:[#allocation2 + $0x18] sm:$0xf] %v939_v30  ;;  %v953_v36 = vsel %vm12989_vm6, %v662_v28, %v952_v6  ;;  %v671_v40 = vsel %vm12979_vm5, %v663_v19, %v670_v33  ;;  %v638_v45 = vrot.slane %v13086_v4, 4  ;;  %11576 = vmatprep.subr.bf16.mxu1 %v12238_v29 }
  0x99   : > { %1113 = vst [vmem:[#allocation2 + $0x44] sm:$0x1] %v1112_v23  ;;  %v1118_v39 = vsel %vm13035_vm8, 0, %v1117_v34  ;;  %941 = vst [vmem:[#allocation2 + $0x1c] sm:$0xf] %v637_v35  ;;  %v11071_v11 = vpack.c.bf16 %v494_v37, %v494_v37  ;;  %v11072_v48 = vpack.c.bf16 %v495_v38, %v495_v38  ;;  %v1209_v49 = vrot.slane %v13056_v31, %v12933_v17  ;;  %v407_v18 = vld [vmem:[%s12919_s27 + $0x58] sm:$0xff] }
  0x9a   : > { %954 = vst [vmem:[#allocation2 + $0x30] sm:$0xf] %v953_v36  ;;  %1119 = vst [vmem:[#allocation2 + $0x5c] sm:$0x1] %v1118_v39  ;;  %v742_v53 = vshrl.u32 %v11067_v41, 16  ;;  %v750_v55 = vshrl.u32 %v11068_v44, 16  ;;  %11577 = vmatpush3.bf16.msra.mxu1 %v12238_v29  ;;  %v1216_v31 = vrot.slane %v13059_v32, %v12933_v17  ;;  %v1223_v3 = vrot.slane %v13071_v47, %v12933_v17 }
  0x9b   : > { %11531 = vmatpush3.bf16.msra.mxu0 %v12234_v54  ;;  %955 = vst [vmem:[#allocation2 + $0x34] sm:$0xf] %v671_v40  ;;  %v745_v54 = vshll.u32 %v11067_v41, 16  ;;  %v753_v56 = vshll.u32 %v11068_v44, 16  ;;  %v776_v57 = vshrl.u32 %v11071_v11, 16  ;;  %v779_v52 = vshll.u32 %v11071_v11, 16  ;;  %11578 = vmatprep.subr.bf16.mxu1 %v12243_v50 }
  0x9c   : > { %11532 = vmatprep.subr.bf16.mxu0 %v12237_v22  ;;  %v784_v58 = vshrl.u32 %v11072_v48, 16  ;;  %v787_v59 = vshll.u32 %v11072_v48, 16  ;;  %v744_v61 = vrot.slane %v742_v53, 7  ;;  %v752_v62 = vrot.slane %v750_v55, 7  ;;  %v1005_v0 = vld [vmem:[#allocation2 + $0x8c] sm:$0x1] }
  0x9d   : > { %v778_v5 = vrot.slane %v776_v57, 7  ;;  %v1230_v7 = vrot.slane %v13082_v42, %v12933_v17  ;;  %v445_v8 = vmul.f32 %v12942_v24, %v406_v51  ;;  %v1279_v35 = vcombine.low %v1209_v49, %v1216_v31  ;;  %v12244_v36 = vld [vmem:[#allocation9 + $0x40] sm:$0xff]   ;;  %v12247_v37 = vld [vmem:[#allocation9 + $0x98] sm:$0xff]   ;;  %v421_v44 = vld [vmem:[%s12919_s27 + $0xc8] sm:$0xff] }
  0x9e   : > { %v786_v6 = vrot.slane %v784_v58, 7  ;;  %v747_v14 = vor.u32 %v745_v54, %v744_v61  ;;  %v748_v15 = vrot.slane %v744_v61, 4  ;;  %v755_v16 = vor.u32 %v753_v56, %v752_v62  ;;  %11579 = vmatpush3.bf16.msra.mxu1 %v12243_v50  ;;  %v13153_v11 = vld [vmem:[%s12919_s27 + $0xe8] sm:$0xff]  ;;  %v12231_v61 = vld [vmem:[#allocation2 + $0x24] sm:$0xff]  }
  0x9f   : > { %11533 = vmatpush3.bf16.msra.mxu0 %v12237_v22  ;;  %v1053_v13 = vld [vmem:[#allocation2 + $0x18] sm:$0x1]  ;;  %v757_v32 = vrot.slane %v752_v62, 4  ;;  %v781_v22 = vor.u32 %v779_v52, %v778_v5  ;;  %v782_v23 = vrot.slane %v778_v5, 4  ;;  %v1280_v39 = vcombine.low %v1223_v3, %v1230_v7  ;;  %11580 = vmatprep.subr.bf16.mxu1 %v12247_v37  ;;  %v410_v3 = vld [vmem:[%s12919_s27 + $0x70] sm:$0xff] }
  0xa0   : > { %11534 = vmatprep.subr.bf16.mxu0 %v12239_v46  ;;  %v1054_v47 = vsel %vm13001_vm7, 0, %v1053_v13  ;;  %v789_v27 = vor.u32 %v787_v59, %v786_v6  ;;  %v756_v28 = vsel %vm12979_vm5, %v748_v15, %v755_v16  ;;  %v791_v29 = vrot.slane %v786_v6, 4  ;;  %v5578_v1 = vld [vmem:[#allocation2 + $0x58] sm:$0xf] }
  0xa1   : > { %v1059_v21 = vld [vmem:[#allocation2 + $0x30] sm:$0x1]  ;;  %1055 = vst [vmem:[#allocation2 + $0x18] sm:$0x1] %v1054_v47  ;;  %v988_v30 = vsel %vm12989_vm6, %v747_v14, %v987_v60  ;;  %990 = vst [vmem:[#allocation2 + $0x70] sm:$0xf] %v756_v28  ;;  %v992_v33 = vsel %vm13001_vm7, %v757_v32, %v991_v63  ;;  %v1002_v34 = vsel %vm12989_vm6, %v781_v22, %v1001_v2 }
  0xa2   : > { %v1060_v42 = vsel %vm13001_vm7, 0, %v1059_v21  ;;  %v790_v19 = vsel %vm12979_vm5, %v782_v23, %v789_v27  ;;  %989 = vst [vmem:[#allocation2 + $0x6c] sm:$0xf] %v988_v30  ;;  %993 = vst [vmem:[#allocation2 + $0x74] sm:$0x1] %v992_v33  ;;  %v1006_v38 = vsel %vm13001_vm7, %v791_v29, %v1005_v0  ;;  %v446_v40 = vmul.f32 %v12942_v24, %v407_v18  ;;  %v12250_v60 = vld [vmem:[#allocation9 + $0x90] sm:$0xff]  }
  0xa3   : > { %11535 = vmatpush3.bf16.msra.mxu0 %v12239_v46  ;;  %1061 = vst [vmem:[#allocation2 + $0x30] sm:$0x1] %v1060_v42  ;;  %1003 = vst [vmem:[#allocation2 + $0x84] sm:$0xf] %v1002_v34  ;;  %v484_v41 = vadd.f32 %v12947_v25, %v445_v8  ;;  %v13150_v46 = vld [vmem:[%s12919_s27 + $0xe0] sm:$0xff]  ;;  %v459_v48 = vmul.f32 %v12942_v24, %v13128_v20  ;;  %v460_v49 = vmul.f32 %v12942_v24, %v421_v44  ;;  %v12253_v33 = vld [vmem:[#allocation9 + $0x88] sm:$0xff]  }
  0xa4   : > { %11536 = vmatprep.subr.bf16.mxu0 %v12242_v9  ;;  %1004 = vst [vmem:[#allocation2 + $0x88] sm:$0xf] %v790_v19  ;;  %1007 = vst [vmem:[#allocation2 + $0x8c] sm:$0x1] %v1006_v38  ;;  %v463_v50 = vmul.f32 %v12942_v24, %v13150_v46  ;;  %v464_v53 = vmul.f32 %v12942_v24, %v13153_v11  ;;  %v1293_v54 = vpack.c.bf16 %v1280_v39, %v1279_v35  ;;  %v966_v0 = vld [vmem:[#allocation2 + $0x48] sm:$0xf] }
  0xa5   : > { %v485_v55 = vadd.f32 %v12947_v25, %v446_v40  ;;  %v11061_v56 = vpack.c.bf16 %v484_v41, %v484_v41  ;;  %v1237_v51 = vrot.slane %v13128_v20, %v12933_v17  ;;  %v498_v57 = vadd.f32 %v12947_v25, %v459_v48  ;;  %11581 = vmatpush3.bf16.msra.mxu1 %v12247_v37  ;;  %v411_v20 = vld [vmem:[%s12919_s27 + $0x78] sm:$0xff]  ;;  %v1015_v48 = vld [vmem:[#allocation2 + $0x9c] sm:$0xf] }
  0xa6   : > { %v499_v52 = vadd.f32 %v12947_v25, %v460_v49  ;;  %v502_v58 = vadd.f32 %v12947_v25, %v463_v50  ;;  %v503_v59 = vadd.f32 %v12947_v25, %v464_v53  ;;  %11472 = vmatprep.mubr.bf16.mxu0 %v1293_v54  ;;  %v1244_v31 = vrot.slane %v421_v44, %v12933_v17  ;;  %v1019_v49 = vld [vmem:[#allocation2 + $0xa4] sm:$0x1]  ;;  %v12236_v53 = vld [vmem:[#allocation2 + $0x3c] sm:$0xff]  }
  0xa7   : > { %11537 = vmatpush3.bf16.msra.mxu0 %v12242_v9  ;;  %v11062_v62 = vpack.c.bf16 %v485_v55, %v485_v55  ;;  %v691_v63 = vshrl.u32 %v11061_v56, 16  ;;  %v694_v2 = vshll.u32 %v11061_v56, 16  ;;  %v672_v6 = vrot.slane %v13090_v12, 4  ;;  %11582 = vmatprep.subr.bf16.mxu1 %v12250_v60 }
  0xa8   : > { %11538 = vmatprep.subr.bf16.mxu0 %v12244_v36  ;;  %v12230_v5 = vld [vmem:[#allocation2 + $0x18] sm:$0xff]   ;;  %v11075_v7 = vpack.c.bf16 %v498_v57, %v498_v57  ;;  %v13172_v8 = vpack.c.bf16 %v499_v52, %v499_v52  ;;  %v13174_v9 = vpack.c.bf16 %v502_v58, %v502_v58  ;;  %v13176_v16 = vpack.c.bf16 %v503_v59, %v503_v59 }
  0xa9   : > { %v1074_v14 = vld [vmem:[#allocation2 + $0x6c] sm:$0x1]  ;;  %v693_v15 = vrot.slane %v691_v63, 7  ;;  %v1251_v32 = vrot.slane %v13150_v46, %v12933_v17  ;;  %v1258_v18 = vrot.slane %v13153_v11, %v12933_v17  ;;  %11496 = vmatprep.mubr.bf16.mxu1 %v12230_v5  ;;  %v1123_v22 = vld [vmem:[#allocation2 + $0x74] sm:$0x1]  ;;  %v699_v23 = vshrl.u32 %v11062_v62, 16  ;;  %11583 = vmatpush3.bf16.msra.mxu1 %v12250_v60 }
  0xaa   : > { %v12235_v13 = vld [vmem:[#allocation2 + $0x30] sm:$0xff]   ;;  %v1075_v47 = vsel %vm13001_vm7, 0, %v1074_v14  ;;  %v1080_v21 = vld [vmem:[#allocation2 + $0x84] sm:$0x1]  ;;  %v13185_v27 = vcombine.low %v1237_v51, %v1244_v31  ;;  %v449_v42 = vmul.f32 %v12942_v24, %v410_v3  ;;  %11497 = vmatmul.mubr.bf16.gmra.mxu1 %v12231_v61  ;;  %v1124_v17 = vsel %vm13035_vm8, 0, %v1123_v22  ;;  %11584 = vmatprep.subr.bf16.mxu1 %v12253_v33 }
  0xab   : > { %11539 = vmatpush3.bf16.msra.mxu0 %v12244_v36  ;;  %1076 = vst [vmem:[#allocation2 + $0x6c] sm:$0x1] %v1075_v47  ;;  %v1081_v28 = vsel %vm13001_vm7, 0, %v1080_v21  ;;  %v1129_v29 = vld [vmem:[#allocation2 + $0x8c] sm:$0x1]  ;;  %v696_v30 = vor.u32 %v694_v2, %v693_v15  ;;  %v697_v19 = vrot.slane %v693_v15, 4  ;;  %11500 = vmatprep.mubr.bf16.mxu1 %v12235_v13  ;;  %v450_v50 = vmul.f32 %v12942_v24, %v411_v20 }
  0xac   : > { %1082 = vst [vmem:[#allocation2 + $0x84] sm:$0x1] %v1081_v28  ;;  %1125 = vst [vmem:[#allocation2 + $0x74] sm:$0x1] %v1124_v17  ;;  %v1130_v34 = vsel %vm13035_vm8, 0, %v1129_v29  ;;  %v13194_v35 = vrot.slane %v699_v23, 7  ;;  %v1282_v2 = vcombine.low %v1251_v32, %v1258_v18 }
  0xad   : > { %v702_v36 = vshll.u32 %v11062_v62, 16  ;;  %v810_v37 = vshrl.u32 %v11075_v7, 16  ;;  %1131 = vst [vmem:[#allocation2 + $0x8c] sm:$0x1] %v1130_v34  ;;  %v967_v38 = vsel %vm12989_vm6, %v696_v30, %v966_v0  ;;  %v813_v39 = vshll.u32 %v11075_v7, 16  ;;  %11585 = vmatpush3.bf16.msra.mxu1 %v12253_v33 }
  0xae   : > { %v818_v40 = vshrl.u32 %v13172_v8, 16  ;;  %v821_v41 = vshll.u32 %v13172_v8, 16  ;;  %968 = vst [vmem:[#allocation2 + $0x48] sm:$0xf] %v967_v38  ;;  %v844_v11 = vshrl.u32 %v13174_v9, 16  ;;  %v847_v55 = vshll.u32 %v13174_v9, 16 }
  0xaf   : > { %v704_v44 = vor.u32 %v702_v36, %v13194_v35  ;;  %v812_v46 = vrot.slane %v810_v37, 7  ;;  %v852_v56 = vshrl.u32 %v13176_v16, 16  ;;  %v855_v51 = vshll.u32 %v13176_v16, 16  ;;  %v1029_v60 = vld [vmem:[#allocation2 + $0xb4] sm:$0xf] }
  0xb0   : > { %v820_v54 = vrot.slane %v818_v40, 7  ;;  %v846_v59 = vrot.slane %v844_v11, 7  ;;  %v1033_v61 = vld [vmem:[#allocation2 + $0xbc] sm:$0x1]  ;;  %v1831_v31 = vld [vmem:[#allocation2] sm:$0xf]  ;;  %v488_v7 = vadd.f32 %v12947_v25, %v449_v42  ;;  %v1294_v16 = vpack.c.bf16 %v1282_v2, %v13185_v27 }
  0xb1   : > { %v705_v57 = vsel %vm12979_vm5, %v697_v19, %v704_v44  ;;  %v815_v52 = vor.u32 %v813_v39, %v812_v46  ;;  %v816_v58 = vrot.slane %v812_v46, 4  ;;  %v854_v63 = vrot.slane %v852_v56, 7  ;;  %v1832_v20 = vld [vmem:[#allocation2 + $0x4] sm:$0xf]  ;;  %v1833_v47 = vld [vmem:[#allocation2 + $0x8] sm:$0x1] }
  0xb2   : > { %969 = vst [vmem:[#allocation2 + $0x4c] sm:$0xf] %v705_v57  ;;  %v823_v24 = vor.u32 %v821_v41, %v820_v54  ;;  %v825_v62 = vrot.slane %v820_v54, 4  ;;  %v849_v3 = vor.u32 %v847_v55, %v846_v59  ;;  %v850_v5 = vrot.slane %v846_v59, 4  ;;  %11501 = vmatmul.mubr.bf16.gmra.mxu1 %v12236_v53  ;;  %v13223_v17 = vld [vmem:[#allocation2 + $0xc] sm:$0xf]  ;;  %11473 = vmatmul.mubr.bf16.gmra.mxu0 %v1294_v16 }
  0xb3   : > { %v1016_v0 = vsel %vm12989_vm6, %v815_v52, %v1015_v48  ;;  %v857_v9 = vor.u32 %v855_v51, %v854_v63  ;;  %v859_v13 = vrot.slane %v854_v63, 4  ;;  %v489_v32 = vadd.f32 %v12947_v25, %v450_v50  ;;  %v12256_v19 = vld [vmem:[#allocation9 + $0x80] sm:$0xff]   ;;  %v980_v33 = vld [vmem:[#allocation2 + $0x60] sm:$0xf]  ;;  %v13228_v53 = vld [vmem:[#allocation9 + $0xf8] sm:$0xff]  }
  0xb4   : > { %v824_v8 = vsel %vm12979_vm5, %v816_v58, %v823_v24  ;;  %1017 = vst [vmem:[#allocation2 + $0x9c] sm:$0xf] %v1016_v0  ;;  %v1020_v14 = vsel %vm13001_vm7, %v825_v62, %v1019_v49  ;;  %v1030_v15 = vsel %vm12989_vm6, %v849_v3, %v1029_v60  ;;  %v11065_v18 = vpack.c.bf16 %v488_v7, %v488_v7  ;;  %v1835_v49 = vld [vmem:[#allocation2 + $0x10] sm:$0xf]  ;;  %v1836_v58 = vld [vmem:[#allocation2 + $0x14] sm:$0x1] }
  0xb5   : > { %1018 = vst [vmem:[#allocation2 + $0xa0] sm:$0xf] %v824_v8  ;;  %1021 = vst [vmem:[#allocation2 + $0xa4] sm:$0x1] %v1020_v14  ;;  %v1065_v21 = vld [vmem:[#allocation2 + $0x48] sm:$0x1]  ;;  %v858_v22 = vsel %vm12979_vm5, %v850_v5, %v857_v9  ;;  %v1034_v23 = vsel %vm13001_vm7, %v859_v13, %v1033_v61  ;;  %v11066_v25 = vpack.c.bf16 %v489_v32, %v489_v32  ;;  %11586 = vmatprep.subr.bf16.mxu1 %v12256_v19 }
  0xb6   : > { %1031 = vst [vmem:[#allocation2 + $0xb4] sm:$0xf] %v1030_v15  ;;  %v1883_v42 = vshrl.u32 %v1831_v31, 16  ;;  %v1886_v28 = vshll.u32 %v1831_v31, 16  ;;  %v1066_v27 = vsel %vm13001_vm7, 0, %v1065_v21  ;;  %v725_v29 = vshrl.u32 %v11065_v18, 16  ;;  %11587 = vmatpush3.bf16.msra.mxu1 %v12256_v19  ;;  %11620 = vmatprep.subr.bf16.mxu0 %v13228_v53 }
  0xb7   : > { %1032 = vst [vmem:[#allocation2 + $0xb8] sm:$0xf] %v858_v22  ;;  %1035 = vst [vmem:[#allocation2 + $0xbc] sm:$0x1] %v1034_v23  ;;  %v728_v30 = vshll.u32 %v11065_v18, 16  ;;  %v1892_v37 = vshll.u32 %v1832_v20, 16 }
  0xb8   : > { %1067 = vst [vmem:[#allocation2 + $0x48] sm:$0x1] %v1066_v27  ;;  %v1885_v34 = vrot.slane %v1883_v42, 4  ;;  %v1888_v36 = vrot.slane %v1886_v28, 5  ;;  %v1896_v38 = vshrl.u32 %v1832_v20, 16  ;;  %v727_v39 = vrot.slane %v725_v29, 7 }
  0xb9   : > { %v733_v40 = vshrl.u32 %v11066_v25, 16  ;;  %v736_v41 = vshll.u32 %v11066_v25, 16  ;;  %v1902_v44 = vshll.u32 %v1833_v47, 16  ;;  %v1894_v11 = vrot.slane %v1892_v37, 5  ;;  %v13239_v59 = vld [vmem:[#allocation9 + $0x138] sm:$0xff]   ;;  %v12241_v24 = vld [vmem:[#allocation2 + $0x54] sm:$0xff]  }
  0xba   : > { %v1889_v46 = vor.u32 %v1888_v36, %v1885_v34  ;;  %v1898_v48 = vrot.slane %v1896_v38, 4  ;;  %v1907_v50 = vshrl.u32 %v13223_v17, 16  ;;  %v706_v54 = vrot.slane %v13194_v35, 4  ;;  %v414_v31 = vld [vmem:[%s12919_s27 + $0x90] sm:$0xff]  ;;  %11668 = vmatprep.subr.bf16.mxu1 %v13239_v59  ;;  %v415_v18 = vld [vmem:[%s12919_s27 + $0x98] sm:$0xff] }
  0xbb   : > { %v1086_v55 = vld [vmem:[#allocation2 + $0x9c] sm:$0x1]  ;;  %v730_v56 = vor.u32 %v728_v30, %v727_v39  ;;  %v731_v51 = vrot.slane %v727_v39, 4  ;;  %v13231_v57 = vrot.slane %v733_v40, 7  ;;  %v1904_v2 = vrot.slane %v1902_v44, 5 }
  0xbc   : > { %v1087_v60 = vsel %vm13001_vm7, 0, %v1086_v55  ;;  %v1135_v61 = vld [vmem:[#allocation2 + $0xa4] sm:$0x1]  ;;  %v1890_v62 = vrot.slane %v1889_v46, 4  ;;  %v1899_v63 = vor.u32 %v1898_v48, %v1894_v11  ;;  %v1909_v8 = vrot.slane %v1907_v50, 4 }
  0xbd   : > { %1088 = vst [vmem:[#allocation2 + $0x9c] sm:$0x1] %v1087_v60  ;;  %v1092_v3 = vld [vmem:[#allocation2 + $0xb4] sm:$0x1]  ;;  %v1136_v5 = vsel %vm13035_vm8, 0, %v1135_v61  ;;  %v738_v0 = vor.u32 %v736_v41, %v13231_v57  ;;  %v981_v7 = vsel %vm12989_vm6, %v730_v56, %v980_v33  ;;  %v1910_v32 = vshll.u32 %v13223_v17, 16 }
  0xbe   : > { %v942_v9 = vld [vmem:[#allocation2 + $0x20] sm:$0x1]  ;;  %v1093_v13 = vsel %vm13001_vm7, 0, %v1092_v3  ;;  %1137 = vst [vmem:[#allocation2 + $0xa4] sm:$0x1] %v1136_v5  ;;  %v1895_v15 = vsel %vm13235_vm11, %v1890_v62, %v1894_v11  ;;  %v1900_v16 = vrot.slane %v1899_v63, 4 }
  0xbf   : > { %v1141_v14 = vld [vmem:[#allocation2 + $0xbc] sm:$0x1]  ;;  %982 = vst [vmem:[#allocation2 + $0x60] sm:$0xf] %v981_v7  ;;  %v12240_v20 = vld [vmem:[#allocation2 + $0x48] sm:$0xff]   ;;  %v739_v21 = vsel %vm12979_vm5, %v731_v51, %v738_v0  ;;  %v1916_v22 = vshll.u32 %v1835_v49, 16  ;;  %v943_v41 = vsel %vm13001_vm7, %v638_v45, %v942_v9 }
  0xc0   : > { %1094 = vst [vmem:[#allocation2 + $0xb4] sm:$0x1] %v1093_v13  ;;  %v1142_v47 = vsel %vm13035_vm8, 0, %v1141_v14  ;;  %v1920_v23 = vshrl.u32 %v1835_v49, 16  ;;  %v1838_v42 = vld [vmem:[#allocation2 + $0x1c] sm:$0xf]  ;;  %v1905_v28 = vsel %vm13235_vm11, %v1900_v16, %v1904_v2  ;;  %11504 = vmatprep.mubr.bf16.mxu1 %v12240_v20 }
  0xc1   : > { %1143 = vst [vmem:[#allocation2 + $0xbc] sm:$0x1] %v1142_v47  ;;  %983 = vst [vmem:[#allocation2 + $0x64] sm:$0xf] %v739_v21  ;;  %v1912_v27 = vrot.slane %v1910_v32, 5  ;;  %v1926_v25 = vshll.u32 %v1836_v58, 16  ;;  %v10544_v19 = vcombine.low %v1895_v15, %v1905_v28  ;;  %11505 = vmatmul.mubr.bf16.gmra.mxu1 %v12241_v24 }
  0xc2   : > { %v13266_v17 = vld [vmem:[%s15575_s1] ss:$0 sm:$0xff]  ;;  %v1837_v30 = vld [vmem:[#allocation2 + $0x18] sm:$0xf]  ;;  %v1918_v33 = vrot.slane %v1916_v22, 5  ;;  %v1922_v34 = vrot.slane %v1920_v23, 4 }
  0xc3   : > { %v453_v29 = vmul.f32 %v13266_v17, %v414_v31  ;;  %v454_v36 = vmul.f32 %v13266_v17, %v415_v18  ;;  %v1913_v37 = vor.u32 %v1912_v27, %v1909_v8  ;;  %v1928_v38 = vrot.slane %v1926_v25, 5  ;;  %v13273_v39 = vld [vmem:[%s15576_s2] ss:$0 sm:$0xff]  ;;  %11540 = vmatprep.mubr.bf16.mxu0 %v10544_v19  ;;  %944 = vst [vmem:[#allocation2 + $0x20] sm:$0x1] %v943_v41 }
  0xc4   : > { %v1923_v44 = vor.u32 %v1922_v34, %v1918_v33  ;;  %v1931_v11 = vshrl.u32 %v1837_v30, 16  ;;  %v1934_v48 = vshll.u32 %v1837_v30, 16  ;;  %v1940_v55 = vshll.u32 %v1838_v42, 16  ;;  %v1840_v51 = vld [vmem:[#allocation2 + $0x24] sm:$0xf] }
  0xc5   : > { %v492_v40 = vadd.f32 %v13273_v39, %v453_v29  ;;  %v493_v46 = vadd.f32 %v13273_v39, %v454_v36  ;;  %v1914_v49 = vrot.slane %v1913_v37, 4  ;;  %v1944_v56 = vshrl.u32 %v1838_v42, 16  ;;  %v994_v0 = vld [vmem:[#allocation2 + $0x78] sm:$0xf]  ;;  %v1841_v8 = vld [vmem:[#allocation2 + $0x28] sm:$0xf] }
  0xc6   : > { %v1071_v58 = vld [vmem:[#allocation2 + $0x60] sm:$0x1]  ;;  %v1924_v60 = vrot.slane %v1923_v44, 4  ;;  %v1933_v24 = vrot.slane %v1931_v11, 4  ;;  %v1936_v4 = vrot.slane %v1934_v48, 5  ;;  %v13287_v14 = vrot.slane %v1940_v55, 5 }
  0xc7   : > { %v11069_v50 = vpack.c.bf16 %v492_v40, %v492_v40  ;;  %v11070_v61 = vpack.c.bf16 %v493_v46, %v493_v46  ;;  %v1072_v45 = vsel %vm13001_vm7, 0, %v1071_v58  ;;  %v1919_v62 = vsel %vm13235_vm11, %v1914_v49, %v1918_v33  ;;  %v1842_v16 = vld [vmem:[#allocation2 + $0x2c] sm:$0x1]  ;;  %v12259_v32 = vld [vmem:[#allocation9 + $0xf0] sm:$0xff]   ;;  %v956_v29 = vld [vmem:[#allocation2 + $0x38] sm:$0x1] }
  0xc8   : > { %1073 = vst [vmem:[#allocation2 + $0x60] sm:$0x1] %v1072_v45  ;;  %v1929_v31 = vsel %vm13235_vm11, %v1924_v60, %v1928_v38  ;;  %v1937_v7 = vor.u32 %v1936_v4, %v1933_v24  ;;  %v1946_v15 = vrot.slane %v1944_v56, 4  ;;  %v740_v18 = vrot.slane %v13231_v57, 4  ;;  %v418_v22 = vld [vmem:[%s12919_s27 + $0xb0] sm:$0xff]  ;;  %v419_v36 = vld [vmem:[%s12919_s27 + $0xb8] sm:$0xff] }
  0xc9   : > { %v759_v63 = vshrl.u32 %v11069_v50, 16  ;;  %v762_v2 = vshll.u32 %v11069_v50, 16  ;;  %v767_v3 = vshrl.u32 %v11070_v61, 16  ;;  %v770_v5 = vshll.u32 %v11070_v61, 16  ;;  %v1843_v37 = vld [vmem:[#allocation2 + $0x30] sm:$0xf] }
  0xca   : > { %v10545_v9 = vcombine.low %v1919_v62, %v1929_v31  ;;  %v1955_v47 = vshrl.u32 %v1840_v51, 16  ;;  %v1958_v21 = vshll.u32 %v1840_v51, 16  ;;  %v1102_v28 = vld [vmem:[#allocation2 + $0x20] sm:$0x1]  ;;  %v1947_v27 = vor.u32 %v1946_v15, %v13287_v14  ;;  %v1844_v46 = vld [vmem:[#allocation2 + $0x34] sm:$0xf] }
  0xcb   : > { %v761_v13 = vrot.slane %v759_v63, 7  ;;  %v13290_v20 = vrot.slane %v767_v3, 7  ;;  %v1964_v25 = vshll.u32 %v1841_v8, 16  ;;  %v1103_v33 = vsel %vm13035_vm8, 0, %v1102_v28  ;;  %v12260_v11 = vld [vmem:[#allocation9 + $0xe8] sm:$0xff]   ;;  %v12246_v48 = vld [vmem:[#allocation2 + $0x6c] sm:$0xff]  }
  0xcc   : > { %11541 = vmatmul.mubr.bf16.vlgmr.msra.gmra.mxu0 %v10545_v9  ;;  %v13298_v34 = vrot.slane %v1937_v7, 4  ;;  %1104 = vst [vmem:[#allocation2 + $0x20] sm:$0x1] %v1103_v33  ;;  %v13304_v40 = vrot.slane %v1947_v27, 4  ;;  %v1957_v41 = vrot.slane %v1955_v47, 4  ;;  %v1960_v44 = vrot.slane %v1958_v21, 5 }
  0xcd   : > { %v764_v23 = vor.u32 %v762_v2, %v761_v13  ;;  %v765_v42 = vrot.slane %v761_v13, 4  ;;  %v772_v30 = vor.u32 %v770_v5, %v13290_v20  ;;  %v774_v19 = vrot.slane %v13290_v20, 4  ;;  %11621 = vmatpush3.bf16.msra.mxu0 %v13228_v53  ;;  %v13314_v24 = vld [vmem:[#allocation2 + $0x3c] sm:$0xf]  ;;  %v12262_v4 = vld [vmem:[#allocation9 + $0xe0] sm:$0xff]  }
  0xce   : > { %11622 = vmatprep.subr.bf16.mxu0 %v12259_v32  ;;  %v1966_v50 = vrot.slane %v1964_v25, 5  ;;  %v1968_v55 = vshrl.u32 %v1841_v8, 16  ;;  %v1974_v56 = vshll.u32 %v1842_v16, 16  ;;  %v1961_v51 = vor.u32 %v1960_v44, %v1957_v41 }
  0xcf   : > { %v995_v38 = vsel %vm12989_vm6, %v764_v23, %v994_v0  ;;  %v773_v49 = vsel %vm12979_vm5, %v765_v42, %v772_v30  ;;  %v12245_v53 = vld [vmem:[#allocation2 + $0x60] sm:$0xff]   ;;  %v457_v58 = vmul.f32 %v13266_v17, %v418_v22  ;;  %v458_v60 = vmul.f32 %v13266_v17, %v419_v36  ;;  %v12263_v42 = vld [vmem:[#allocation9 + $0xd8] sm:$0xff]  }
  0xd0   : > { %996 = vst [vmem:[#allocation2 + $0x78] sm:$0xf] %v995_v38  ;;  %997 = vst [vmem:[#allocation2 + $0x7c] sm:$0xf] %v773_v49  ;;  %v957_v61 = vsel %vm13001_vm7, %v672_v6, %v956_v29  ;;  %v1970_v45 = vrot.slane %v1968_v55, 4  ;;  %v1976_v62 = vrot.slane %v1974_v56, 5  ;;  %11508 = vmatprep.mubr.bf16.mxu1 %v12245_v53  ;;  %v1943_v44 = vsel %vm13235_vm11, %v13298_v34, %v13287_v14 }
  0xd1   : > { %958 = vst [vmem:[#allocation2 + $0x38] sm:$0x1] %v957_v61  ;;  %v1979_v63 = vshrl.u32 %v1843_v37, 16  ;;  %v1982_v2 = vshll.u32 %v1843_v37, 16  ;;  %11623 = vmatpush3.bf16.msra.mxu0 %v12259_v32  ;;  %v1962_v31 = vrot.slane %v1961_v51, 4  ;;  %v496_v3 = vadd.f32 %v13273_v39, %v457_v58  ;;  %11509 = vmatmul.mubr.bf16.gmra.mxu1 %v12246_v48  ;;  %v422_v58 = vld [vmem:[%s12919_s27 + $0xd0] sm:$0xff] }
  0xd2   : > { %v497_v5 = vadd.f32 %v13273_v39, %v458_v60  ;;  %v1988_v0 = vshll.u32 %v1844_v46, 16  ;;  %11624 = vmatprep.subr.bf16.mxu0 %v12260_v11  ;;  %v1971_v12 = vor.u32 %v1970_v45, %v1966_v50  ;;  %v1992_v8 = vshrl.u32 %v1844_v46, 16  ;;  %v1008_v38 = vld [vmem:[#allocation2 + $0x90] sm:$0xf]  ;;  %v1847_v51 = vld [vmem:[#allocation2 + $0x40] sm:$0xf] }
  0xd3   : > { %v1981_v6 = vrot.slane %v1979_v63, 4  ;;  %v1984_v7 = vrot.slane %v1982_v2, 5  ;;  %v1967_v9 = vsel %vm13235_vm11, %v1962_v31, %v1966_v50  ;;  %v11073_v13 = vpack.c.bf16 %v496_v3, %v496_v3  ;;  %v1839_v32 = vld [vmem:[#allocation2 + $0x20] sm:$0x1]  ;;  %v423_v60 = vld [vmem:[%s12919_s27 + $0xd8] sm:$0xff] }
  0xd4   : > { %v11074_v15 = vpack.c.bf16 %v497_v5, %v497_v5  ;;  %v13320_v16 = vrot.slane %v1988_v0, 5  ;;  %v1972_v47 = vrot.slane %v1971_v12, 4  ;;  %v1994_v22 = vrot.slane %v1992_v8, 4  ;;  %v970_v63 = vld [vmem:[#allocation2 + $0x50] sm:$0x1]  ;;  %v12265_v2 = vld [vmem:[#allocation9 + $0xd0] sm:$0xff]  }
  0xd5   : > { %v1985_v21 = vor.u32 %v1984_v7, %v1981_v6  ;;  %v2003_v23 = vshrl.u32 %v13314_v24, 16  ;;  %11625 = vmatpush3.bf16.msra.mxu0 %v12260_v11  ;;  %v1950_v27 = vshll.u32 %v1839_v32, 16  ;;  %v793_v25 = vshrl.u32 %v11073_v13, 16  ;;  %v12249_v12 = vld [vmem:[#allocation2 + $0x84] sm:$0xff]  }
  0xd6   : > { %v796_v29 = vshll.u32 %v11073_v13, 16  ;;  %v801_v30 = vshrl.u32 %v11074_v15, 16  ;;  %11626 = vmatprep.subr.bf16.mxu0 %v12262_v4  ;;  %v1977_v36 = vsel %vm13235_vm11, %v1972_v47, %v1976_v62  ;;  %v804_v37 = vshll.u32 %v11074_v15, 16  ;;  %v1848_v62 = vld [vmem:[#allocation2 + $0x44] sm:$0x1] }
  0xd7   : > { %v1077_v28 = vld [vmem:[#allocation2 + $0x78] sm:$0x1]  ;;  %v13327_v41 = vrot.slane %v1985_v21, 4  ;;  %v1952_v46 = vrot.slane %v1950_v27, 5  ;;  %v795_v11 = vrot.slane %v793_v25, 7  ;;  %v10547_v50 = vcombine.low %v1967_v9, %v1977_v36 }
  0xd8   : > { %v1078_v33 = vsel %vm13001_vm7, 0, %v1077_v28  ;;  %v13333_v48 = vrot.slane %v801_v30, 7  ;;  %v1108_v49 = vld [vmem:[#allocation2 + $0x38] sm:$0x1]  ;;  %v1995_v53 = vor.u32 %v1994_v22, %v13320_v16  ;;  %v2005_v5 = vrot.slane %v2003_v23, 4 }
  0xd9   : > { %1079 = vst [vmem:[#allocation2 + $0x78] sm:$0x1] %v1078_v33  ;;  %v1109_v55 = vsel %vm13035_vm8, 0, %v1108_v49  ;;  %v1991_v56 = vsel %vm13235_vm11, %v13327_v41, %v13320_v16  ;;  %11627 = vmatpush3.bf16.msra.mxu0 %v12262_v4  ;;  %v1953_v14 = vsel %vm13235_vm11, %v13304_v40, %v1952_v46  ;;  %v798_v34 = vor.u32 %v796_v29, %v795_v11  ;;  %v1849_v4 = vld [vmem:[#allocation2 + $0x48] sm:$0xf]  ;;  %v12266_v28 = vld [vmem:[#allocation9 + $0xc8] sm:$0xff]  }
  0xda   : > { %v799_v61 = vrot.slane %v795_v11, 4  ;;  %v806_v45 = vor.u32 %v804_v37, %v13333_v48  ;;  %1110 = vst [vmem:[#allocation2 + $0x38] sm:$0x1] %v1109_v55  ;;  %11628 = vmatprep.subr.bf16.mxu0 %v12263_v42  ;;  %v10546_v31 = vcombine.low %v1943_v44, %v1953_v14  ;;  %v13348_v3 = vrot.slane %v1995_v53, 4  ;;  %v1852_v49 = vld [vmem:[#allocation2 + $0x54] sm:$0xf] }
  0xdb   : > { %v2006_v0 = vshll.u32 %v13314_v24, 16  ;;  %v1009_v6 = vsel %vm12989_vm6, %v798_v34, %v1008_v38  ;;  %v2012_v7 = vshll.u32 %v1847_v51, 16  ;;  %v2016_v8 = vshrl.u32 %v1847_v51, 16  ;;  %v1850_v24 = vld [vmem:[#allocation2 + $0x4c] sm:$0xf]  ;;  %v12268_v38 = vld [vmem:[#allocation9 + $0xc0] sm:$0xff]  }
  0xdc   : > { %v807_v40 = vsel %vm12979_vm5, %v799_v61, %v806_v45  ;;  %11544 = vmatprep.mubr.bf16.mxu0 %v10546_v31  ;;  %1010 = vst [vmem:[#allocation2 + $0x90] sm:$0xf] %v1009_v6  ;;  %v2022_v13 = vshll.u32 %v1848_v62, 16  ;;  %v461_v15 = vmul.f32 %v13266_v17, %v422_v58  ;;  %v462_v32 = vmul.f32 %v13266_v17, %v423_v60 }
  0xdd   : > { %1011 = vst [vmem:[#allocation2 + $0x94] sm:$0xf] %v807_v40  ;;  %v2008_v9 = vrot.slane %v2006_v0, 5  ;;  %11629 = vmatpush3.bf16.msra.mxu0 %v12263_v42  ;;  %v2014_v47 = vrot.slane %v2012_v7, 5  ;;  %v2018_v21 = vrot.slane %v2016_v8, 4  ;;  %v971_v22 = vsel %vm13001_vm7, %v706_v54, %v970_v63 }
  0xde   : > { %11545 = vmatmul.mubr.bf16.gmra.mxu0 %v10547_v50  ;;  %v2027_v23 = vshrl.u32 %v1849_v4, 16  ;;  %11630 = vmatprep.subr.bf16.mxu0 %v12265_v2  ;;  %v2024_v29 = vrot.slane %v2022_v13, 5  ;;  %v500_v30 = vadd.f32 %v13273_v39, %v461_v15  ;;  %v501_v17 = vadd.f32 %v13273_v39, %v462_v32  ;;  %972 = vst [vmem:[#allocation2 + $0x50] sm:$0x1] %v971_v22  ;;  %v1853_v8 = vld [vmem:[#allocation2 + $0x58] sm:$0xf] }
  0xdf   : > { %v2009_v25 = vor.u32 %v2008_v9, %v2005_v5  ;;  %v2019_v42 = vor.u32 %v2018_v21, %v2014_v47  ;;  %v2030_v36 = vshll.u32 %v1849_v4, 16  ;;  %v2036_v37 = vshll.u32 %v1850_v24, 16  ;;  %v1022_v4 = vld [vmem:[#allocation2 + $0xa8] sm:$0xf] }
  0xe0   : > { %v12248_v27 = vld [vmem:[#allocation2 + $0x78] sm:$0xff]   ;;  %v2029_v33 = vrot.slane %v2027_v23, 4  ;;  %v11077_v54 = vpack.c.bf16 %v500_v30, %v500_v30  ;;  %v11078_v46 = vpack.c.bf16 %v501_v17, %v501_v17  ;;  %v2040_v11 = vshrl.u32 %v1850_v24, 16  ;;  %v984_v21 = vld [vmem:[#allocation2 + $0x68] sm:$0x1] }
  0xe1   : > { %11512 = vmatprep.mubr.bf16.mxu1 %v12248_v27  ;;  %v1845_v35 = vld [vmem:[#allocation2 + $0x38] sm:$0x1]  ;;  %v2010_v44 = vrot.slane %v2009_v25, 4  ;;  %11631 = vmatpush3.bf16.msra.mxu0 %v12265_v2  ;;  %v2020_v55 = vrot.slane %v2019_v42, 4  ;;  %v2032_v53 = vrot.slane %v2030_v36, 5  ;;  %v13363_v51 = vrot.slane %v2036_v37, 5 }
  0xe2   : > { %11513 = vmatmul.mubr.bf16.gmra.mxu1 %v12249_v12  ;;  %v1998_v50 = vshll.u32 %v1845_v35, 16  ;;  %11632 = vmatprep.subr.bf16.mxu0 %v12266_v28  ;;  %v827_v58 = vshrl.u32 %v11077_v54, 16  ;;  %v830_v60 = vshll.u32 %v11077_v54, 16  ;;  %v835_v14 = vshrl.u32 %v11078_v46, 16  ;;  %v1855_v27 = vld [vmem:[#allocation2 + $0x60] sm:$0xf] }
  0xe3   : > { %v2015_v39 = vsel %vm13235_vm11, %v2010_v44, %v2014_v47  ;;  %v1083_v34 = vld [vmem:[#allocation2 + $0x90] sm:$0x1]  ;;  %v2025_v45 = vsel %vm13235_vm11, %v2020_v55, %v2024_v29  ;;  %v838_v62 = vshll.u32 %v11078_v46, 16  ;;  %v2033_v63 = vor.u32 %v2032_v53, %v2029_v33  ;;  %v1854_v47 = vld [vmem:[#allocation2 + $0x5c] sm:$0x1] }
  0xe4   : > { %v2000_v61 = vrot.slane %v1998_v50, 5  ;;  %v808_v2 = vrot.slane %v13333_v48, 4  ;;  %v1084_v31 = vsel %vm13001_vm7, 0, %v1083_v34  ;;  %v829_v5 = vrot.slane %v827_v58, 7  ;;  %v1856_v29 = vld [vmem:[#allocation2 + $0x64] sm:$0xf] }
  0xe5   : > { %v13372_v0 = vrot.slane %v835_v14, 7  ;;  %11633 = vmatpush3.bf16.msra.mxu0 %v12266_v28  ;;  %1085 = vst [vmem:[#allocation2 + $0x90] sm:$0x1] %v1084_v31  ;;  %v10549_v40 = vcombine.low %v2015_v39, %v2025_v45  ;;  %v1114_v6 = vld [vmem:[#allocation2 + $0x50] sm:$0x1]  ;;  %v2042_v7 = vrot.slane %v2040_v11, 4  ;;  %v985_v54 = vsel %vm13001_vm7, %v740_v18, %v984_v21 }
  0xe6   : > { %v2001_v12 = vsel %vm13235_vm11, %v13348_v3, %v2000_v61  ;;  %v2051_v9 = vshrl.u32 %v1852_v49, 16  ;;  %11634 = vmatprep.subr.bf16.mxu0 %v12268_v38  ;;  %v832_v15 = vor.u32 %v830_v60, %v829_v5  ;;  %v833_v32 = vrot.slane %v829_v5, 4  ;;  %v13393_v30 = vld [vmem:[#allocation2] sm:$0xe]  ;;  %v2653_v37 = vld [vmem:[#allocation2 + $0x4] sm:$0xf] }
  0xe7   : > { %v10548_v13 = vcombine.low %v1991_v56, %v2001_v12  ;;  %v840_v24 = vor.u32 %v838_v62, %v13372_v0  ;;  %v842_v3 = vrot.slane %v13372_v0, 4  ;;  %v1115_v22 = vsel %vm13035_vm8, 0, %v1114_v6  ;;  %v12252_v35 = vld [vmem:[#allocation2 + $0x9c] sm:$0xff]   ;;  %986 = vst [vmem:[#allocation2 + $0x68] sm:$0x1] %v985_v54 }
  0xe8   : > { %v13386_v23 = vrot.slane %v2033_v63, 4  ;;  %v2043_v28 = vor.u32 %v2042_v7, %v13363_v51  ;;  %v1023_v41 = vsel %vm12989_vm6, %v832_v15, %v1022_v4  ;;  %1116 = vst [vmem:[#allocation2 + $0x50] sm:$0x1] %v1115_v22  ;;  %v2053_v56 = vrot.slane %v2051_v9, 4  ;;  %v1858_v39 = vld [vmem:[#allocation2 + $0x6c] sm:$0xf] }
  0xe9   : > { %11548 = vmatprep.mubr.bf16.mxu0 %v10548_v13  ;;  %v841_v16 = vsel %vm12979_vm5, %v833_v32, %v840_v24  ;;  %v2054_v25 = vshll.u32 %v1852_v49, 16  ;;  %11635 = vmatpush3.bf16.msra.mxu0 %v12268_v38  ;;  %1024 = vst [vmem:[#allocation2 + $0xa8] sm:$0xf] %v1023_v41  ;;  %v2060_v42 = vshll.u32 %v1853_v8, 16  ;;  %v2064_v33 = vshrl.u32 %v1853_v8, 16  ;;  %v13404_v4 = vld [vmem:[#allocation9 + $0x178] sm:$0xff]  }
  0xea   : > { %11549 = vmatmul.mubr.bf16.gmra.mxu0 %v10549_v40  ;;  %1025 = vst [vmem:[#allocation2 + $0xac] sm:$0xf] %v841_v16  ;;  %v13395_v17 = vrot.slane %v2043_v28, 4  ;;  %v2070_v36 = vshll.u32 %v1854_v47, 16  ;;  %v2075_v46 = vshrl.u32 %v1855_v27, 16  ;;  %v2078_v11 = vshll.u32 %v1855_v27, 16  ;;  %11716 = vmatprep.subr.bf16.mxu0 %v13404_v4 }
  0xeb   : > { %v2056_v44 = vrot.slane %v2054_v25, 5  ;;  %v2654_v49 = vld [vmem:[#allocation2 + $0x8] sm:$0x1]  ;;  %v2062_v38 = vrot.slane %v2060_v42, 5  ;;  %v2066_v50 = vrot.slane %v2064_v33, 4  ;;  %v2084_v53 = vshll.u32 %v1856_v29, 16 }
  0xec   : > { %v2072_v55 = vrot.slane %v2070_v36, 5  ;;  %v12251_v58 = vld [vmem:[#allocation2 + $0x90] sm:$0xff]   ;;  %v2077_v14 = vrot.slane %v2075_v46, 4  ;;  %v2080_v34 = vrot.slane %v2078_v11, 5  ;;  %v2088_v61 = vshrl.u32 %v1856_v29, 16 }
  0xed   : > { %v2057_v60 = vor.u32 %v2056_v44, %v2053_v56  ;;  %v2067_v45 = vor.u32 %v2066_v50, %v2062_v38  ;;  %v13401_v62 = vrot.slane %v2084_v53, 5  ;;  %v10568_v57 = vrot.slane %v13393_v30, 9  ;;  %11516 = vmatprep.mubr.bf16.mxu1 %v12251_v58  ;;  %v1859_v8 = vld [vmem:[#allocation2 + $0x70] sm:$0xf]  ;;  %v1860_v22 = vld [vmem:[#allocation2 + $0x74] sm:$0x1] }
  0xee   : > { %v2081_v63 = vor.u32 %v2080_v34, %v2077_v14  ;;  %v2090_v31 = vrot.slane %v2088_v61, 4  ;;  %v2753_v5 = vrot.slane %v2653_v37, 5  ;;  %11517 = vmatmul.mubr.bf16.gmra.mxu1 %v12252_v35  ;;  %v2756_v7 = vrot.slane %v2654_v49, 5  ;;  %v2655_v28 = vld [vmem:[#allocation2 + $0xc] sm:$0xe] }
  0xef   : > { %v2058_v18 = vrot.slane %v2057_v60, 4  ;;  %v1851_v12 = vld [vmem:[#allocation2 + $0x50] sm:$0x1]  ;;  %v2068_v40 = vrot.slane %v2067_v45, 4  ;;  %v2099_v9 = vshrl.u32 %v1858_v39, 16  ;;  %v2102_v13 = vshll.u32 %v1858_v39, 16 }
  0xf0   : > { %v1089_v15 = vld [vmem:[#allocation2 + $0xa8] sm:$0x1]  ;;  %v2046_v32 = vshll.u32 %v1851_v12, 16  ;;  %v13413_v47 = vrot.slane %v2081_v63, 4  ;;  %v2091_v21 = vor.u32 %v2090_v31, %v13401_v62  ;;  %v2039_v16 = vsel %vm13235_vm11, %v13386_v23, %v13363_v51  ;;  %v2656_v25 = vld [vmem:[#allocation2 + $0x10] sm:$0xf] }
  0xf1   : > { %v2063_v24 = vsel %vm13235_vm11, %v2058_v18, %v2062_v38  ;;  %v1090_v27 = vsel %vm13001_vm7, 0, %v1089_v15  ;;  %v2073_v41 = vsel %vm13235_vm11, %v2068_v40, %v2072_v55  ;;  %v2755_v56 = vrot.slane %v2753_v5, 4  ;;  %v2657_v29 = vld [vmem:[#allocation2 + $0x14] sm:$0x1]  ;;  %v1120_v33 = vld [vmem:[#allocation2 + $0x68] sm:$0x1] }
  0xf2   : > { %1091 = vst [vmem:[#allocation2 + $0xa8] sm:$0x1] %v1090_v27  ;;  %v2048_v30 = vrot.slane %v2046_v32, 5  ;;  %v10551_v42 = vcombine.low %v2063_v24, %v2073_v41  ;;  %v2087_v36 = vsel %vm13235_vm11, %v13413_v47, %v13401_v62  ;;  %v2754_v37 = vsel %vm13407_vm14, %v10568_v57, %v2753_v5  ;;  %v998_v35 = vld [vmem:[#allocation2 + $0x80] sm:$0x1]  ;;  %v12255_v12 = vld [vmem:[#allocation2 + $0xb4] sm:$0xff]  }
  0xf3   : > { %v1861_v51 = vld [vmem:[#allocation2 + $0x78] sm:$0xf]  ;;  %v1121_v23 = vsel %vm13035_vm8, 0, %v1120_v33  ;;  %v13433_v44 = vrot.slane %v2091_v21, 4  ;;  %v2101_v54 = vrot.slane %v2099_v9, 4  ;;  %v2104_v46 = vrot.slane %v2102_v13, 5 }
  0xf4   : > { %v2049_v11 = vsel %vm13235_vm11, %v13395_v17, %v2048_v30  ;;  %1122 = vst [vmem:[#allocation2 + $0x68] sm:$0x1] %v1121_v23  ;;  %v2757_v49 = vsel %vm13407_vm14, %v2755_v56, %v2756_v7  ;;  %v2108_v38 = vshll.u32 %v1859_v8, 16  ;;  %v2112_v50 = vshrl.u32 %v1859_v8, 16  ;;  %v1862_v45 = vld [vmem:[#allocation2 + $0x7c] sm:$0xf] }
  0xf5   : > { %v10550_v55 = vcombine.low %v2039_v16, %v2049_v11  ;;  %v2105_v53 = vor.u32 %v2104_v46, %v2101_v54  ;;  %v2118_v39 = vshll.u32 %v1860_v22, 16  ;;  %v10569_v58 = vrot.slane %v2655_v28, 9  ;;  %v2658_v31 = vld [vmem:[#allocation2 + $0x18] sm:$0xe]  ;;  %v2659_v5 = vld [vmem:[#allocation2 + $0x1c] sm:$0xf] }
  0xf6   : > { %v2110_v60 = vrot.slane %v2108_v38, 5  ;;  %v2114_v14 = vrot.slane %v2112_v50, 4  ;;  %v2760_v34 = vrot.slane %v2656_v25, 5  ;;  %v2763_v61 = vrot.slane %v2657_v29, 5  ;;  %v2660_v13 = vld [vmem:[#allocation2 + $0x20] sm:$0x1] }
  0xf7   : > { %11552 = vmatprep.mubr.bf16.mxu0 %v10550_v55  ;;  %v10584_v57 = vcombine.low %v2754_v37, %v2757_v49  ;;  %v2106_v18 = vrot.slane %v2105_v53, 4  ;;  %v999_v17 = vsel %vm13001_vm7, %v774_v19, %v998_v35  ;;  %v2123_v63 = vshrl.u32 %v1861_v51, 16  ;;  %v1864_v16 = vld [vmem:[#allocation2 + $0x84] sm:$0xf]  ;;  %v1866_v49 = vld [vmem:[#allocation2 + $0x8c] sm:$0x1] }
  0xf8   : > { %11553 = vmatmul.mubr.bf16.gmra.mxu0 %v10551_v42  ;;  %v2115_v40 = vor.u32 %v2114_v14, %v2110_v60  ;;  %v2120_v7 = vrot.slane %v2118_v39, 5  ;;  %v2762_v8 = vrot.slane %v2760_v34, 4  ;;  %1000 = vst [vmem:[#allocation2 + $0x80] sm:$0x1] %v999_v17  ;;  %v2126_v9 = vshll.u32 %v1861_v51, 16 }
  0xf9   : > { %v12254_v15 = vld [vmem:[#allocation2 + $0xa8] sm:$0xff]   ;;  %v13446_v32 = vsel %vm13407_vm14, %v10569_v58, %v2760_v34  ;;  %v2125_v20 = vrot.slane %v2123_v63, 4  ;;  %v2132_v24 = vshll.u32 %v1862_v45, 16  ;;  %v2136_v21 = vshrl.u32 %v1862_v45, 16  ;;  %v2661_v38 = vld [vmem:[#allocation2 + $0x24] sm:$0xe] }
  0xfa   : > { %v2116_v19 = vrot.slane %v2115_v40, 4  ;;  %v2764_v22 = vsel %vm13407_vm14, %v2762_v8, %v2763_v61  ;;  %v2128_v28 = vrot.slane %v2126_v9, 5  ;;  %v10570_v27 = vrot.slane %v2658_v31, 9  ;;  %11520 = vmatprep.mubr.bf16.mxu1 %v12254_v15  ;;  %v1865_v51 = vld [vmem:[#allocation2 + $0x88] sm:$0xf]  ;;  %v12261_v15 = vld [vmem:[#allocation9 + $0x130] sm:$0xff]  }
  0xfb   : > { %v1857_v41 = vld [vmem:[#allocation2 + $0x68] sm:$0x1]  ;;  %v2111_v56 = vsel %vm13235_vm11, %v2106_v18, %v2110_v60  ;;  %v13452_v25 = vrot.slane %v2132_v24, 5  ;;  %v2138_v29 = vrot.slane %v2136_v21, 4  ;;  %v2767_v30 = vrot.slane %v2659_v5, 5  ;;  %11521 = vmatmul.mubr.bf16.gmra.mxu1 %v12255_v12 }
  0xfc   : > { %v2094_v42 = vshll.u32 %v1857_v41, 16  ;;  %v2121_v33 = vsel %vm13235_vm11, %v2116_v19, %v2120_v7  ;;  %v2129_v37 = vor.u32 %v2128_v28, %v2125_v20  ;;  %v2770_v35 = vrot.slane %v2660_v13, 5  ;;  %11588 = vmatprep.mubr.bf16.mxu1 %v10584_v57  ;;  %v2662_v50 = vld [vmem:[#allocation2 + $0x28] sm:$0xf]  ;;  %v2663_v60 = vld [vmem:[#allocation2 + $0x2c] sm:$0x1] }
  0xfd   : > { %v10585_v23 = vcombine.low %v13446_v32, %v2764_v22  ;;  %v2139_v54 = vor.u32 %v2138_v29, %v13452_v25  ;;  %v2768_v46 = vsel %vm13407_vm14, %v10570_v27, %v2767_v30  ;;  %v2769_v11 = vrot.slane %v2767_v30, 4  ;;  %v1012_v14 = vld [vmem:[#allocation2 + $0x98] sm:$0x1]  ;;  %v1867_v34 = vld [vmem:[#allocation2 + $0x90] sm:$0xf] }
  0xfe   : > { %v2096_v55 = vrot.slane %v2094_v42, 5  ;;  %v10553_v53 = vcombine.low %v2111_v56, %v2121_v33  ;;  %v2147_v39 = vshrl.u32 %v1864_v16, 16  ;;  %v2150_v58 = vshll.u32 %v1864_v16, 16  ;;  %v1868_v40 = vld [vmem:[#allocation2 + $0x94] sm:$0xf] }
  0xff   : > { %v1126_v61 = vld [vmem:[#allocation2 + $0x80] sm:$0x1]  ;;  %v13460_v45 = vrot.slane %v2129_v37, 4  ;;  %v2771_v57 = vsel %vm13407_vm14, %v2769_v11, %v2770_v35  ;;  %v2156_v18 = vshll.u32 %v1865_v51, 16  ;;  %v2160_v17 = vshrl.u32 %v1865_v51, 16 }
 0x100   : > { %v2097_v63 = vsel %vm13235_vm11, %v13433_v44, %v2096_v55  ;;  %v1127_v31 = vsel %vm13035_vm8, 0, %v1126_v61  ;;  %v13469_v5 = vrot.slane %v2139_v54, 4  ;;  %v10586_v12 = vcombine.low %v2768_v46, %v2771_v57  ;;  %v2664_v32 = vld [vmem:[#allocation2 + $0x30] sm:$0xe]  ;;  %v2665_v41 = vld [vmem:[#allocation2 + $0x34] sm:$0xf] }
 0x101   : > { %v10552_v7 = vcombine.low %v2087_v36, %v2097_v63  ;;  %1128 = vst [vmem:[#allocation2 + $0x80] sm:$0x1] %v1127_v31  ;;  %v2149_v8 = vrot.slane %v2147_v39, 4  ;;  %v2152_v9 = vrot.slane %v2150_v58, 5  ;;  %v2158_v13 = vrot.slane %v2156_v18, 5  ;;  %v12267_v57 = vld [vmem:[#allocation9 + $0x120] sm:$0xff]  }
 0x102   : > { %v2162_v44 = vrot.slane %v2160_v17, 4  ;;  %v2166_v20 = vshll.u32 %v1866_v49, 16  ;;  %v10571_v24 = vrot.slane %v2661_v38, 9  ;;  %v2774_v21 = vrot.slane %v2662_v50, 5  ;;  %v2666_v56 = vld [vmem:[#allocation2 + $0x38] sm:$0x1] }
 0x103   : > { %11556 = vmatprep.mubr.bf16.mxu0 %v10552_v7  ;;  %v2153_v19 = vor.u32 %v2152_v9, %v2149_v8  ;;  %v2777_v22 = vrot.slane %v2663_v60, 5  ;;  %v1013_v28 = vsel %vm13001_vm7, %v808_v2, %v1012_v14  ;;  %v2171_v62 = vshrl.u32 %v1867_v34, 16  ;;  %11589 = vmatmul.mubr.bf16.vlgmr.msra.gmra.mxu1 %v10585_v23  ;;  %v1870_v2 = vld [vmem:[#allocation2 + $0x9c] sm:$0xf]  ;;  %v1871_v49 = vld [vmem:[#allocation2 + $0xa0] sm:$0xf] }
 0x104   : > { %11557 = vmatmul.mubr.bf16.gmra.mxu0 %v10553_v53  ;;  %v2163_v47 = vor.u32 %v2162_v44, %v2158_v13  ;;  %v2168_v36 = vrot.slane %v2166_v20, 5  ;;  %v2775_v27 = vsel %vm13407_vm14, %v10571_v24, %v2774_v21  ;;  %v2776_v16 = vrot.slane %v2774_v21, 4  ;;  %1014 = vst [vmem:[#allocation2 + $0x98] sm:$0x1] %v1013_v28  ;;  %11669 = vmatpush3.bf16.msra.mxu1 %v13239_v59  ;;  %v12264_v23 = vld [vmem:[#allocation9 + $0x128] sm:$0xff]   ;;  %v12271_v21 = vld [vmem:[#allocation9 + $0x118] sm:$0xff]  }
 0x105   : > { %11592 = vmatprep.mubr.bf16.mxu1 %v10586_v12  ;;  %v2154_v29 = vrot.slane %v2153_v19, 4  ;;  %v2173_v48 = vrot.slane %v2171_v62, 4  ;;  %v2174_v30 = vshll.u32 %v1867_v34, 16  ;;  %v2180_v42 = vshll.u32 %v1868_v40, 16  ;;  %11670 = vmatprep.subr.bf16.mxu1 %v12261_v15  ;;  %v1872_v34 = vld [vmem:[#allocation2 + $0xa4] sm:$0x1] }
 0x106   : > { %v2164_v33 = vrot.slane %v2163_v47, 4  ;;  %v2778_v37 = vsel %vm13407_vm14, %v2776_v16, %v2777_v22  ;;  %v2184_v35 = vshrl.u32 %v1868_v40, 16  ;;  %v10572_v51 = vrot.slane %v2664_v32, 9  ;;  %v2667_v12 = vld [vmem:[#allocation2 + $0x3c] sm:$0xe] }
 0x107   : > { %v2159_v54 = vsel %vm13235_vm11, %v2154_v29, %v2158_v13  ;;  %v10587_v46 = vcombine.low %v2775_v27, %v2778_v37  ;;  %v2176_v11 = vrot.slane %v2174_v30, 5  ;;  %v13487_v59 = vrot.slane %v2180_v42, 5  ;;  %v2668_v40 = vld [vmem:[#allocation2 + $0x40] sm:$0xf]  ;;  %v2669_v7 = vld [vmem:[#allocation2 + $0x44] sm:$0x1] }
 0x108   : > { %v1863_v38 = vld [vmem:[#allocation2 + $0x80] sm:$0x1]  ;;  %v2169_v50 = vsel %vm13235_vm11, %v2164_v33, %v2168_v36  ;;  %v2186_v55 = vrot.slane %v2184_v35, 4  ;;  %v2781_v53 = vrot.slane %v2665_v41, 5  ;;  %v2784_v39 = vrot.slane %v2666_v56, 5  ;;  %11671 = vmatpush3.bf16.msra.mxu1 %v12261_v15 }
 0x109   : > { %v2135_v58 = vsel %vm13235_vm11, %v13460_v45, %v13452_v25  ;;  %v2142_v60 = vshll.u32 %v1863_v38, 16  ;;  %v2177_v14 = vor.u32 %v2176_v11, %v2173_v48  ;;  %v2195_v61 = vshrl.u32 %v1870_v2, 16  ;;  %11672 = vmatprep.subr.bf16.mxu1 %v12264_v23  ;;  %v1026_v8 = vld [vmem:[#allocation2 + $0xb0] sm:$0x1]  ;;  %v1873_v47 = vld [vmem:[#allocation2 + $0xa8] sm:$0xf] }
 0x10a   : > { %v2187_v18 = vor.u32 %v2186_v55, %v13487_v59  ;;  %v2782_v17 = vsel %vm13407_vm14, %v10572_v51, %v2781_v53  ;;  %v2783_v63 = vrot.slane %v2781_v53, 4  ;;  %v2198_v31 = vshll.u32 %v1870_v2, 16  ;;  %v1874_v56 = vld [vmem:[#allocation2 + $0xac] sm:$0xf]  ;;  %v2670_v29 = vld [vmem:[#allocation2 + $0x48] sm:$0xe] }
 0x10b   : > { %v2144_v9 = vrot.slane %v2142_v60, 5  ;;  %v10555_v25 = vcombine.low %v2159_v54, %v2169_v50  ;;  %v1132_v45 = vld [vmem:[#allocation2 + $0x98] sm:$0x1]  ;;  %v2197_v13 = vrot.slane %v2195_v61, 4  ;;  %v2204_v15 = vshll.u32 %v1871_v49, 16  ;;  %11593 = vmatmul.mubr.bf16.gmra.mxu1 %v10587_v46 }
 0x10c   : > { %v1133_v32 = vsel %vm13035_vm8, 0, %v1132_v45  ;;  %v13500_v44 = vrot.slane %v2177_v14, 4  ;;  %v2785_v20 = vsel %vm13407_vm14, %v2783_v63, %v2784_v39  ;;  %v2200_v24 = vrot.slane %v2198_v31, 5  ;;  %11673 = vmatpush3.bf16.msra.mxu1 %v12264_v23  ;;  %v2671_v11 = vld [vmem:[#allocation2 + $0x4c] sm:$0xf] }
 0x10d   : > { %v2145_v19 = vsel %vm13235_vm11, %v13469_v5, %v2144_v9  ;;  %1134 = vst [vmem:[#allocation2 + $0x98] sm:$0x1] %v1133_v32  ;;  %v13507_v22 = vrot.slane %v2187_v18, 4  ;;  %v10588_v28 = vcombine.low %v2782_v17, %v2785_v20  ;;  %v13509_v62 = vrot.slane %v2204_v15, 5  ;;  %11674 = vmatprep.subr.bf16.mxu1 %v12267_v57  ;;  %v2672_v55 = vld [vmem:[#allocation2 + $0x50] sm:$0x1] }
 0x10e   : > { %v10554_v36 = vcombine.low %v2135_v58, %v2145_v19  ;;  %v2201_v27 = vor.u32 %v2200_v24, %v2197_v13  ;;  %v2208_v16 = vshrl.u32 %v1871_v49, 16  ;;  %v2214_v41 = vshll.u32 %v1872_v34, 16  ;;  %v12274_v49 = vld [vmem:[#allocation9 + $0x110] sm:$0xff]   ;;  %v1876_v53 = vld [vmem:[#allocation2 + $0xb4] sm:$0xf]  ;;  %v12277_v24 = vld [vmem:[#allocation9 + $0x108] sm:$0xff]  }
 0x10f   : > { %11596 = vmatprep.mubr.bf16.mxu1 %v10588_v28  ;;  %v10573_v48 = vrot.slane %v2667_v12, 9  ;;  %v2788_v30 = vrot.slane %v2668_v40, 5  ;;  %v2791_v42 = vrot.slane %v2669_v7, 5  ;;  %v1027_v5 = vsel %vm13001_vm7, %v842_v3, %v1026_v8  ;;  %v1877_v63 = vld [vmem:[#allocation2 + $0xb8] sm:$0xf] }
 0x110   : > { %11560 = vmatprep.mubr.bf16.mxu0 %v10554_v36  ;;  %v2202_v2 = vrot.slane %v2201_v27, 4  ;;  %v2210_v33 = vrot.slane %v2208_v16, 4  ;;  %v2216_v37 = vrot.slane %v2214_v41, 5  ;;  %1028 = vst [vmem:[#allocation2 + $0xb0] sm:$0x1] %v1027_v5  ;;  %v2219_v35 = vshrl.u32 %v1873_v47, 16  ;;  %11675 = vmatpush3.bf16.msra.mxu1 %v12267_v57 }
 0x111   : > { %11561 = vmatmul.mubr.bf16.gmra.mxu0 %v10555_v25  ;;  %v2789_v51 = vsel %vm13407_vm14, %v10573_v48, %v2788_v30  ;;  %v2790_v23 = vrot.slane %v2788_v30, 4  ;;  %v2222_v54 = vshll.u32 %v1873_v47, 16  ;;  %v2228_v46 = vshll.u32 %v1874_v56, 16  ;;  %11676 = vmatprep.subr.bf16.mxu1 %v12271_v21  ;;  %v1878_v7 = vld [vmem:[#allocation2 + $0xbc] sm:$0x1] }
 0x112   : > { %v2207_v0 = vsel %vm13235_vm11, %v2202_v2, %v13509_v62  ;;  %v2211_v3 = vor.u32 %v2210_v33, %v13509_v62  ;;  %v2221_v38 = vrot.slane %v2219_v35, 4  ;;  %v2232_v50 = vshrl.u32 %v1874_v56, 16  ;;  %v2673_v15 = vld [vmem:[#allocation2 + $0x54] sm:$0xe]  ;;  %v2674_v32 = vld [vmem:[#allocation2 + $0x58] sm:$0xf] }
 0x113   : > { %v2792_v39 = vsel %vm13407_vm14, %v2790_v23, %v2791_v42  ;;  %v2224_v58 = vrot.slane %v2222_v54, 5  ;;  %v13523_v60 = vrot.slane %v2228_v46, 5  ;;  %v10574_v14 = vrot.slane %v2670_v29, 9  ;;  %v2675_v20 = vld [vmem:[#allocation2 + $0x5c] sm:$0x1]  ;;  %v12280_v54 = vld [vmem:[#allocation9 + $0x100] sm:$0xff]  }
 0x114   : > { %v1869_v34 = vld [vmem:[#allocation2 + $0x98] sm:$0x1]  ;;  %v2212_v61 = vrot.slane %v2211_v3, 4  ;;  %v10589_v57 = vcombine.low %v2789_v51, %v2792_v39  ;;  %v2234_v18 = vrot.slane %v2232_v50, 4  ;;  %v2795_v17 = vrot.slane %v2671_v11, 5  ;;  %11677 = vmatpush3.bf16.msra.mxu1 %v12271_v21 }
 0x115   : > { %v2190_v31 = vshll.u32 %v1869_v34, 16  ;;  %v2225_v12 = vor.u32 %v2224_v58, %v2221_v38  ;;  %v2798_v40 = vrot.slane %v2672_v55, 5  ;;  %v2243_v8 = vshrl.u32 %v1876_v53, 16  ;;  %11678 = vmatprep.subr.bf16.mxu1 %v12274_v49  ;;  %v2676_v36 = vld [vmem:[#allocation2 + $0x60] sm:$0xe] }
 0x116   : > { %v2217_v9 = vsel %vm13235_vm11, %v2212_v61, %v2216_v37  ;;  %11597 = vmatmul.mubr.bf16.gmra.mxu1 %v10589_v57  ;;  %v2235_v25 = vor.u32 %v2234_v18, %v13523_v60  ;;  %v2796_v45 = vsel %vm13407_vm14, %v10574_v14, %v2795_v17  ;;  %v2797_v13 = vrot.slane %v2795_v17, 4  ;;  %v2677_v29 = vld [vmem:[#allocation2 + $0x64] sm:$0xf]  ;;  %v2678_v48 = vld [vmem:[#allocation2 + $0x68] sm:$0x1] }
 0x117   : > { %v2183_v21 = vsel %vm13235_vm11, %v13500_v44, %v13487_v59  ;;  %v2192_v19 = vrot.slane %v2190_v31, 5  ;;  %v10557_v28 = vcombine.low %v2207_v0, %v2217_v9  ;;  %v1138_v62 = vld [vmem:[#allocation2 + $0xb0] sm:$0x1]  ;;  %v13534_v47 = vrot.slane %v2225_v12, 4  ;;  %v2679_v5 = vld [vmem:[#allocation2 + $0x6c] sm:$0xe] }
 0x118   : > { %v1139_v27 = vsel %vm13035_vm8, 0, %v1138_v62  ;;  %v2799_v16 = vsel %vm13407_vm14, %v2797_v13, %v2798_v40  ;;  %v2245_v41 = vrot.slane %v2243_v8, 4  ;;  %v2246_v56 = vshll.u32 %v1876_v53, 16  ;;  %v2680_v2 = vld [vmem:[#allocation2 + $0x70] sm:$0xf]  ;;  %11679 = vmatpush3.bf16.msra.mxu1 %v12274_v49  ;;  %v13547_v31 = vld [vmem:[#allocation9 + $0x1b8] sm:$0xff]  }
 0x119   : > { %v2193_v59 = vsel %vm13235_vm11, %v13507_v22, %v2192_v19  ;;  %1140 = vst [vmem:[#allocation2 + $0xb0] sm:$0x1] %v1139_v27  ;;  %v13543_v44 = vrot.slane %v2235_v25, 4  ;;  %v10590_v30 = vcombine.low %v2796_v45, %v2799_v16  ;;  %v2252_v42 = vshll.u32 %v1877_v63, 16  ;;  %v2681_v23 = vld [vmem:[#allocation2 + $0x74] sm:$0x1]  ;;  %11680 = vmatprep.subr.bf16.mxu1 %v12277_v24 }
 0x11a   : > { %v10556_v33 = vcombine.low %v2183_v21, %v2193_v59  ;;  %v2248_v37 = vrot.slane %v2246_v56, 5  ;;  %v2256_v35 = vshrl.u32 %v1877_v63, 16  ;;  %v2262_v51 = vshll.u32 %v1878_v7, 16  ;;  %v2682_v53 = vld [vmem:[#allocation2 + $0x78] sm:$0xe] }
 0x11b   : > { %11600 = vmatprep.mubr.bf16.mxu1 %v10590_v30  ;;  %v2254_v46 = vrot.slane %v2252_v42, 5  ;;  %v10575_v11 = vrot.slane %v2673_v15, 9  ;;  %v2802_v0 = vrot.slane %v2674_v32, 5  ;;  %v2805_v22 = vrot.slane %v2675_v20, 5  ;;  %v2683_v34 = vld [vmem:[#allocation2 + $0x7c] sm:$0xf] }
 0x11c   : > { %11564 = vmatprep.mubr.bf16.mxu0 %v10556_v33  ;;  %v2249_v3 = vor.u32 %v2248_v37, %v2245_v41  ;;  %v2258_v38 = vrot.slane %v2256_v35, 4  ;;  %v2264_v50 = vrot.slane %v2262_v51, 5  ;;  %v10576_v55 = vrot.slane %v2676_v36, 9  ;;  %11681 = vmatpush3.bf16.msra.mxu1 %v12277_v24  ;;  %v2684_v63 = vld [vmem:[#allocation2 + $0x80] sm:$0x1]  ;;  %v12269_v35 = vld [vmem:[#allocation2 + $0xc] sm:$0xff]  }
 0x11d   : > { %11565 = vmatmul.mubr.bf16.gmra.mxu0 %v10557_v28  ;;  %v2803_v49 = vsel %vm13407_vm14, %v10575_v11, %v2802_v0  ;;  %v2804_v39 = vrot.slane %v2802_v0, 4  ;;  %v2809_v58 = vrot.slane %v2677_v29, 5  ;;  %v2812_v14 = vrot.slane %v2678_v48, 5  ;;  %11682 = vmatprep.subr.bf16.mxu1 %v12280_v54  ;;  %v2685_v9 = vld [vmem:[#allocation2 + $0x84] sm:$0xe] }
 0x11e   : > { %v2250_v61 = vrot.slane %v2249_v3, 4  ;;  %v2259_v57 = vor.u32 %v2258_v38, %v2254_v46  ;;  %v10577_v18 = vrot.slane %v2679_v5, 9  ;;  %v2816_v17 = vrot.slane %v2680_v2, 5  ;;  %v2686_v25 = vld [vmem:[#allocation2 + $0x88] sm:$0xf] }
 0x11f   : > { %v2806_v12 = vsel %vm13407_vm14, %v2804_v39, %v2805_v22  ;;  %v2810_v40 = vsel %vm13407_vm14, %v10576_v55, %v2809_v58  ;;  %v2811_v7 = vrot.slane %v2809_v58, 4  ;;  %v2819_v8 = vrot.slane %v2681_v23, 5  ;;  %v2687_v24 = vld [vmem:[#allocation2 + $0x8c] sm:$0x1]  ;;  %v2688_v36 = vld [vmem:[#allocation2 + $0x90] sm:$0xe] }
 0x120   : > { %v1875_v45 = vld [vmem:[#allocation2 + $0xb0] sm:$0x1]  ;;  %v2255_v13 = vsel %vm13235_vm11, %v2250_v61, %v2254_v46  ;;  %v2260_v15 = vrot.slane %v2259_v57, 4  ;;  %v10591_v32 = vcombine.low %v2803_v49, %v2806_v12  ;;  %v2817_v20 = vsel %vm13407_vm14, %v10577_v18, %v2816_v17  ;;  %11683 = vmatpush3.bf16.msra.mxu1 %v12280_v54  ;;  %v2689_v29 = vld [vmem:[#allocation2 + $0x94] sm:$0xf] }
 0x121   : > { %v2238_v21 = vshll.u32 %v1875_v45, 16  ;;  %v2813_v19 = vsel %vm13407_vm14, %v2811_v7, %v2812_v14  ;;  %v2818_v28 = vrot.slane %v2816_v17, 4  ;;  %v10578_v62 = vrot.slane %v2682_v53, 9  ;;  %v2690_v48 = vld [vmem:[#allocation2 + $0x98] sm:$0x1]  ;;  %11764 = vmatprep.subr.bf16.mxu1 %v13547_v31 }
 0x122   : > { %v2265_v27 = vsel %vm13235_vm11, %v2260_v15, %v2264_v50  ;;  %11601 = vmatmul.mubr.bf16.gmra.mxu1 %v10591_v32  ;;  %v10592_v16 = vcombine.low %v2810_v40, %v2813_v19  ;;  %v2823_v41 = vrot.slane %v2683_v34, 5  ;;  %v2826_v56 = vrot.slane %v2684_v63, 5  ;;  %v2691_v2 = vld [vmem:[#allocation2 + $0x9c] sm:$0xe]  ;;  %v2692_v33 = vld [vmem:[#allocation2 + $0xa0] sm:$0xf] }
 0x123   : > { %v2231_v59 = vsel %vm13235_vm11, %v13534_v47, %v13523_v60  ;;  %v2240_v30 = vrot.slane %v2238_v21, 5  ;;  %v10559_v42 = vcombine.low %v2255_v13, %v2265_v27  ;;  %v2820_v5 = vsel %vm13407_vm14, %v2818_v28, %v2819_v8  ;;  %v2693_v37 = vld [vmem:[#allocation2 + $0xa4] sm:$0x1]  ;;  %v2694_v22 = vld [vmem:[#allocation2 + $0xa8] sm:$0xe] }
 0x124   : > { %11604 = vmatprep.mubr.bf16.mxu1 %v10592_v16  ;;  %v2824_v51 = vsel %vm13407_vm14, %v10578_v62, %v2823_v41  ;;  %v2825_v23 = vrot.slane %v2823_v41, 4  ;;  %v10579_v54 = vrot.slane %v2685_v9, 9  ;;  %v2830_v46 = vrot.slane %v2686_v25, 5  ;;  %v2695_v3 = vld [vmem:[#allocation2 + $0xac] sm:$0xf]  ;;  %v12270_v25 = vld [vmem:[#allocation2 + $0x18] sm:$0xff]  }
 0x125   : > { %v2241_v60 = vsel %vm13235_vm11, %v13543_v44, %v2240_v30  ;;  %v10593_v47 = vcombine.low %v2817_v20, %v2820_v5  ;;  %v2833_v11 = vrot.slane %v2687_v24, 5  ;;  %v2837_v0 = vrot.slane %v2689_v29, 5  ;;  %v2696_v49 = vld [vmem:[#allocation2 + $0xb0] sm:$0x1]  ;;  %v13575_v34 = vld [vmem:[#allocation2 + $0xb4] sm:$0xe] }
 0x126   : > { %v10558_v38 = vcombine.low %v2231_v59, %v2241_v60  ;;  %v2827_v50 = vsel %vm13407_vm14, %v2825_v23, %v2826_v56  ;;  %v2832_v55 = vrot.slane %v2830_v46, 4  ;;  %v10580_v53 = vrot.slane %v2688_v36, 9  ;;  %v13577_v61 = vld [vmem:[#allocation2 + $0xb8] sm:$0xf]  ;;  %v2699_v32 = vld [vmem:[#allocation2 + $0xbc] sm:$0x1] }
 0x127   : > { %v10594_v39 = vcombine.low %v2824_v51, %v2827_v50  ;;  %v2839_v58 = vrot.slane %v2837_v0, 4  ;;  %v2840_v14 = vrot.slane %v2690_v48, 5  ;;  %v10581_v44 = vrot.slane %v2691_v2, 9  ;;  %v3699_v20 = vld [vmem:[#allocation2 + $0xc] sm:$0xf]  ;;  %v12272_v24 = vld [vmem:[#allocation2 + $0x24] sm:$0xff]  }
 0x128   : > { %11568 = vmatprep.mubr.bf16.mxu0 %v10558_v38  ;;  %v2844_v57 = vrot.slane %v2692_v33, 5  ;;  %v2847_v18 = vrot.slane %v2693_v37, 5  ;;  %v2831_v17 = vsel %vm13407_vm14, %v10579_v54, %v2830_v46  ;;  %v10582_v63 = vrot.slane %v2694_v22, 9  ;;  %v3700_v62 = vld [vmem:[#allocation2 + $0x10] sm:$0xf]  ;;  %v426_v27 = vld [vmem:[%s12919_s27 + $0xf0] sm:$0xff] }
 0x129   : > { %11569 = vmatmul.mubr.bf16.gmra.mxu0 %v10559_v42  ;;  %v2851_v12 = vrot.slane %v2695_v3, 5  ;;  %v2834_v40 = vsel %vm13407_vm14, %v2832_v55, %v2833_v11  ;;  %v2838_v7 = vsel %vm13407_vm14, %v10580_v53, %v2837_v0  ;;  %v2841_v8 = vsel %vm13407_vm14, %v2839_v58, %v2840_v14  ;;  %v3701_v29 = vld [vmem:[#allocation2 + $0x14] sm:$0x1]  ;;  %v3702_v5 = vld [vmem:[#allocation2 + $0x18] sm:$0xf]  ;;  %v12285_v23 = vld [vmem:[#allocation9 + $0x170] sm:$0xff]  }
 0x12a   : > { %11636 = vmatprep.mubr.bf16.mxu0 %v12269_v35  ;;  %11605 = vmatmul.mubr.bf16.gmra.mxu1 %v10593_v47  ;;  %v2846_v9 = vrot.slane %v2844_v57, 4  ;;  %v13589_v45 = vsel %vm13407_vm14, %v10581_v44, %v2844_v57  ;;  %v2854_v15 = vrot.slane %v2696_v49, 5  ;;  %v10583_v19 = vrot.slane %v13575_v34, 9  ;;  %v3703_v35 = vld [vmem:[#allocation2 + $0x1c] sm:$0xf]  ;;  %v427_v58 = vld [vmem:[%s12919_s27 + $0xf8] sm:$0xff] }
 0x12b   : > { %11608 = vmatprep.mubr.bf16.mxu1 %v10594_v39  ;;  %v2853_v13 = vrot.slane %v2851_v12, 4  ;;  %v2858_v28 = vrot.slane %v13577_v61, 5  ;;  %v3748_v36 = vshrl.u32 %v3699_v20, 16  ;;  %v10595_v16 = vcombine.low %v2831_v17, %v2834_v40  ;;  %v3704_v51 = vld [vmem:[#allocation2 + $0x20] sm:$0x1]  ;;  %v12273_v14 = vld [vmem:[#allocation2 + $0x30] sm:$0xff]  }
 0x12c   : > { %v13593_v21 = vsel %vm13407_vm14, %v2846_v9, %v2847_v18  ;;  %v10596_v41 = vcombine.low %v2838_v7, %v2841_v8  ;;  %v13600_v56 = vsel %vm13407_vm14, %v10582_v63, %v2851_v12  ;;  %v2861_v48 = vrot.slane %v2699_v32, 5  ;;  %v12531_v54 = vld [vmem:[%s15575_s1] ss:$0 sm:$0xff]  ;;  %v12288_v40 = vld [vmem:[#allocation9 + $0x168] sm:$0xff]   ;;  %v3706_v32 = vld [vmem:[#allocation2 + $0x28] sm:$0xf] }
 0x12d   : > { %v3750_v59 = vrot.slane %v3748_v36, 4  ;;  %v3751_v30 = vshll.u32 %v3699_v20, 16  ;;  %v3757_v42 = vshll.u32 %v3700_v62, 16  ;;  %v10597_v2 = vcombine.low %v13589_v45, %v13593_v21  ;;  %v12275_v18 = vld [vmem:[#allocation2 + $0x3c] sm:$0xff]  }
 0x12e   : > { %v13606_v33 = vsel %vm13407_vm14, %v2853_v13, %v2854_v15  ;;  %v3761_v37 = vshrl.u32 %v3700_v62, 16  ;;  %v465_v46 = vmul.f32 %v12531_v54, %v426_v27  ;;  %v2860_v60 = vrot.slane %v2858_v28, 4  ;;  %v12532_v7 = vld [vmem:[%s15576_s2] ss:$0 sm:$0xff]  ;;  %v3705_v15 = vld [vmem:[#allocation2 + $0x24] sm:$0xf] }
 0x12f   : > { %v3753_v47 = vrot.slane %v3751_v30, 5  ;;  %v13611_v11 = vrot.slane %v3757_v42, 5  ;;  %v3772_v0 = vshrl.u32 %v3702_v5, 16  ;;  %v3767_v3 = vshll.u32 %v3701_v29, 16  ;;  %v12290_v30 = vld [vmem:[#allocation9 + $0x160] sm:$0xff]  }
 0x130   : > { %v3763_v22 = vrot.slane %v3761_v37, 4  ;;  %v3775_v38 = vshll.u32 %v3702_v5, 16  ;;  %v3781_v50 = vshll.u32 %v3703_v35, 16  ;;  %v3785_v49 = vshrl.u32 %v3703_v35, 16 }
 0x131   : > { %11637 = vmatmul.mubr.bf16.vlgmr.msra.gmra.mxu0 %v12270_v25  ;;  %v3754_v55 = vor.u32 %v3753_v47, %v3750_v59  ;;  %v3774_v53 = vrot.slane %v3772_v0, 4  ;;  %v3791_v39 = vshll.u32 %v3704_v51, 16  ;;  %v13616_v34 = vsel %vm13407_vm14, %v10583_v19, %v2858_v28  ;;  %v3708_v59 = vld [vmem:[#allocation2 + $0x30] sm:$0xf]  ;;  %v3709_v51 = vld [vmem:[#allocation2 + $0x34] sm:$0xf] }
 0x132   : > { %11640 = vmatprep.mubr.bf16.mxu0 %v12272_v24  ;;  %11609 = vmatmul.mubr.bf16.gmra.mxu1 %v10595_v16  ;;  %v3764_v61 = vor.u32 %v3763_v22, %v13611_v11  ;;  %v3777_v44 = vrot.slane %v3775_v38, 5  ;;  %v13620_v57 = vrot.slane %v3781_v50, 5  ;;  %v10598_v17 = vcombine.low %v13600_v56, %v13606_v33  ;;  %v3707_v24 = vld [vmem:[#allocation2 + $0x2c] sm:$0x1] }
 0x133   : > { %11612 = vmatprep.mubr.bf16.mxu1 %v10596_v41  ;;  %11717 = vmatpush3.bf16.msra.mxu0 %v13404_v4  ;;  %v3755_v63 = vrot.slane %v3754_v55, 4  ;;  %v3787_v12 = vrot.slane %v3785_v49, 4  ;;  %v504_v8 = vadd.f32 %v12532_v7, %v465_v46  ;;  %v13629_v9 = vsel %vm13407_vm14, %v2860_v60, %v2861_v48  ;;  %v3710_v46 = vld [vmem:[#allocation2 + $0x38] sm:$0x1]  ;;  %v12276_v55 = vld [vmem:[#allocation2 + $0x48] sm:$0xff]  }
 0x134   : > { %11718 = vmatprep.subr.bf16.mxu0 %v12285_v23  ;;  %v3765_v4 = vrot.slane %v3764_v61, 4  ;;  %v3769_v25 = vrot.slane %v3767_v3, 5  ;;  %v3778_v13 = vor.u32 %v3777_v44, %v3774_v53  ;;  %v3796_v19 = vshrl.u32 %v3705_v15, 16 }
 0x135   : > { %v3788_v20 = vor.u32 %v3787_v12, %v13620_v57  ;;  %v3799_v28 = vshll.u32 %v3705_v15, 16  ;;  %v466_v62 = vmul.f32 %v12531_v54, %v427_v58  ;;  %v3793_v27 = vrot.slane %v3791_v39, 5 }
 0x136   : > { %v3779_v36 = vrot.slane %v3778_v13, 4  ;;  %v3805_v16 = vshll.u32 %v3706_v32, 16  ;;  %v3809_v41 = vshrl.u32 %v3706_v32, 16  ;;  %v3760_v56 = vsel %vm13235_vm11, %v3755_v63, %v13611_v11  ;;  %v12293_v11 = vld [vmem:[#allocation9 + $0x158] sm:$0xff]  }
 0x137   : > { %11719 = vmatpush3.bf16.msra.mxu0 %v12285_v23  ;;  %v3798_v29 = vrot.slane %v3796_v19, 4  ;;  %v3801_v48 = vrot.slane %v3799_v28, 5  ;;  %v13635_v42 = vpack.c.bf16 %v504_v8, %v504_v8  ;;  %v3789_v5 = vrot.slane %v3788_v20, 4  ;;  %v12295_v8 = vld [vmem:[#allocation9 + $0x150] sm:$0xff]  }
 0x138   : > { %11720 = vmatprep.subr.bf16.mxu0 %v12288_v40  ;;  %v3807_v33 = vrot.slane %v3805_v16, 5  ;;  %v3811_v37 = vrot.slane %v3809_v41, 4  ;;  %v3815_v35 = vshll.u32 %v3707_v24, 16  ;;  %v3770_v23 = vsel %vm13235_vm11, %v3765_v4, %v3769_v25  ;;  %v13662_v41 = vld [vmem:[#allocation9 + $0x148] sm:$0xff]  }
 0x139   : > { %11641 = vmatmul.mubr.bf16.gmra.mxu0 %v12273_v14  ;;  %v3802_v54 = vor.u32 %v3801_v48, %v3798_v29  ;;  %v3820_v60 = vshrl.u32 %v3708_v59, 16  ;;  %v3823_v47 = vshll.u32 %v3708_v59, 16  ;;  %v3784_v0 = vsel %vm13235_vm11, %v3779_v36, %v13620_v57  ;;  %v12278_v14 = vld [vmem:[#allocation2 + $0x54] sm:$0xff]   ;;  %v3714_v36 = vld [vmem:[#allocation2 + $0x48] sm:$0xf] }
 0x13a   : > { %11644 = vmatprep.mubr.bf16.mxu0 %v12275_v18  ;;  %11613 = vmatmul.mubr.bf16.gmra.mxu1 %v10597_v2  ;;  %v3812_v22 = vor.u32 %v3811_v37, %v3807_v33  ;;  %v3817_v3 = vrot.slane %v3815_v35, 5  ;;  %v3829_v38 = vshll.u32 %v3709_v51, 16  ;;  %v3833_v2 = vshrl.u32 %v3709_v51, 16  ;;  %v3716_v35 = vld [vmem:[#allocation2 + $0x50] sm:$0x1] }
 0x13b   : > { %11616 = vmatprep.mubr.bf16.mxu1 %v10598_v17  ;;  %11721 = vmatpush3.bf16.msra.mxu0 %v12288_v40  ;;  %v3803_v50 = vrot.slane %v3802_v54, 4  ;;  %v3822_v45 = vrot.slane %v3820_v60, 4  ;;  %v3825_v21 = vrot.slane %v3823_v47, 5  ;;  %v3794_v53 = vsel %vm13235_vm11, %v3789_v5, %v3793_v27  ;;  %v3711_v40 = vld [vmem:[#allocation2 + $0x3c] sm:$0xf] }
 0x13c   : > { %11722 = vmatprep.subr.bf16.mxu0 %v12290_v30  ;;  %v3813_v49 = vrot.slane %v3812_v22, 4  ;;  %v13647_v39 = vrot.slane %v3829_v38, 5  ;;  %v3839_v58 = vshll.u32 %v3710_v46, 16  ;;  %v10599_v61 = vcombine.low %v13616_v34, %v13629_v9  ;;  %v3712_v34 = vld [vmem:[#allocation2 + $0x40] sm:$0xf] }
 0x13d   : > { %v10632_v44 = vcombine.low %v3760_v56, %v3770_v23  ;;  %v3835_v57 = vrot.slane %v3833_v2, 4  ;;  %v505_v18 = vadd.f32 %v12532_v7, %v466_v62  ;;  %v3808_v17 = vsel %vm13235_vm11, %v3803_v50, %v3807_v33  ;;  %v3713_v9 = vld [vmem:[#allocation2 + $0x44] sm:$0x1]  ;;  %v3715_v5 = vld [vmem:[#allocation2 + $0x4c] sm:$0xf] }
 0x13e   : > { %v3818_v63 = vsel %vm13235_vm11, %v3813_v49, %v3817_v3  ;;  %v3826_v12 = vor.u32 %v3825_v21, %v3822_v45  ;;  %v861_v4 = vshrl.u32 %v13635_v42, 16  ;;  %v10633_v25 = vcombine.low %v3784_v0, %v3794_v53  ;;  %v12279_v56 = vld [vmem:[#allocation2 + $0x60] sm:$0xff]   ;;  %v12282_v33 = vld [vmem:[#allocation2 + $0x6c] sm:$0xff]  }
 0x13f   : > { %11723 = vmatpush3.bf16.msra.mxu0 %v12290_v30  ;;  %v3836_v13 = vor.u32 %v3835_v57, %v13647_v39  ;;  %v13657_v15 = vrot.slane %v3839_v58, 5  ;;  %v3844_v7 = vshrl.u32 %v3711_v40, 16  ;;  %v3847_v32 = vshll.u32 %v3711_v40, 16  ;;  %v12289_v0 = vld [vmem:[#allocation9 + $0x1b0] sm:$0xff]  }
 0x140   : > { %11724 = vmatprep.subr.bf16.mxu0 %v12293_v11  ;;  %v3853_v20 = vshll.u32 %v3712_v34, 16  ;;  %v3857_v24 = vshrl.u32 %v3712_v34, 16  ;;  %v3863_v19 = vshll.u32 %v3713_v9, 16  ;;  %v10634_v28 = vcombine.low %v3808_v17, %v3818_v63  ;;  %v3718_v63 = vld [vmem:[#allocation2 + $0x58] sm:$0xf] }
 0x141   : > { %11645 = vmatmul.mubr.bf16.gmra.mxu0 %v12276_v55  ;;  %v3846_v62 = vrot.slane %v3844_v7, 4  ;;  %v13659_v27 = vpack.c.bf16 %v505_v18, %v505_v18  ;;  %v864_v16 = vshll.u32 %v13635_v42, 16  ;;  %v3827_v29 = vrot.slane %v3826_v12, 4  ;;  %v12300_v55 = vld [vmem:[#allocation9 + $0x140] sm:$0xff]   ;;  %v3719_v12 = vld [vmem:[#allocation2 + $0x5c] sm:$0x1] }
 0x142   : > { %11648 = vmatprep.mubr.bf16.mxu0 %v12278_v14  ;;  %11617 = vmatmul.mubr.bf16.gmra.mxu1 %v10599_v61  ;;  %v3849_v48 = vrot.slane %v3847_v32, 5  ;;  %v3855_v59 = vrot.slane %v3853_v20, 5  ;;  %v3859_v30 = vrot.slane %v3857_v24, 4  ;;  %v3837_v37 = vrot.slane %v3836_v13, 4  ;;  %v3717_v18 = vld [vmem:[#allocation2 + $0x54] sm:$0xf] }
 0x143   : > { %11684 = vmatprep.mubr.bf16.mxu1 %v10632_v44  ;;  %11725 = vmatpush3.bf16.msra.mxu0 %v12293_v11  ;;  %v3868_v51 = vshrl.u32 %v3714_v36, 16  ;;  %v3871_v23 = vshll.u32 %v3714_v36, 16  ;;  %v3877_v54 = vshll.u32 %v3715_v5, 16  ;;  %v3865_v42 = vrot.slane %v3863_v19, 5  ;;  %v12286_v32 = vld [vmem:[#allocation2 + $0x84] sm:$0xff]  }
 0x144   : > { %11726 = vmatprep.subr.bf16.mxu0 %v12295_v8  ;;  %v3850_v46 = vor.u32 %v3849_v48, %v3846_v62  ;;  %v3860_v60 = vor.u32 %v3859_v30, %v3855_v59  ;;  %v3881_v47 = vshrl.u32 %v3715_v5, 16  ;;  %v3887_v50 = vshll.u32 %v3716_v35, 16  ;;  %v1036_v62 = vld [vmem:[#allocation2 + $0xc0] sm:$0xf]  ;;  %v13692_v48 = vld [vmem:[#allocation9 + $0x1f8] sm:$0xff]  }
 0x145   : > { %v3870_v22 = vrot.slane %v3868_v51, 4  ;;  %v3873_v3 = vrot.slane %v3871_v23, 5  ;;  %v13664_v38 = vrot.slane %v3877_v54, 5  ;;  %v13666_v2 = vrot.slane %v861_v4, 7  ;;  %v12283_v4 = vld [vmem:[#allocation2 + $0x78] sm:$0xff]  }
 0x146   : > { %v3851_v45 = vrot.slane %v3850_v46, 4  ;;  %v3861_v21 = vrot.slane %v3860_v60, 4  ;;  %v3883_v11 = vrot.slane %v3881_v47, 4  ;;  %v3832_v53 = vsel %vm13235_vm11, %v3827_v29, %v13647_v39  ;;  %v3720_v36 = vld [vmem:[#allocation2 + $0x60] sm:$0xf]  ;;  %v12299_v47 = vld [vmem:[#allocation9 + $0x1a0] sm:$0xff]  }
 0x147   : > { %11727 = vmatpush3.bf16.msra.mxu0 %v12295_v8  ;;  %v3874_v49 = vor.u32 %v3873_v3, %v3870_v22  ;;  %v13671_v58 = vrot.slane %v3887_v50, 5  ;;  %v869_v14 = vshrl.u32 %v13659_v27, 16  ;;  %v3842_v61 = vsel %vm13235_vm11, %v3837_v37, %v13657_v15  ;;  %v12294_v15 = vld [vmem:[#allocation9 + $0x1a8] sm:$0xff]   ;;  %v3721_v29 = vld [vmem:[#allocation2 + $0x64] sm:$0xf] }
 0x148   : > { %11728 = vmatprep.subr.bf16.mxu0 %v13662_v41  ;;  %v3856_v44 = vsel %vm13235_vm11, %v3851_v45, %v3855_v59  ;;  %v3866_v57 = vsel %vm13235_vm11, %v3861_v21, %v3865_v42  ;;  %v3884_v39 = vor.u32 %v3883_v11, %v13664_v38  ;;  %v3892_v40 = vshrl.u32 %v3717_v18, 16  ;;  %v12287_v11 = vld [vmem:[#allocation2 + $0x90] sm:$0xff]  }
 0x149   : > { %11649 = vmatmul.mubr.bf16.gmra.mxu0 %v12279_v56  ;;  %v13683_v17 = vrot.slane %v3874_v49, 4  ;;  %v866_v8 = vor.u32 %v864_v16, %v13666_v2  ;;  %v3895_v34 = vshll.u32 %v3717_v18, 16  ;;  %v3901_v9 = vshll.u32 %v3718_v63, 16  ;;  %v3723_v49 = vld [vmem:[#allocation2 + $0x6c] sm:$0xf] }
 0x14a   : > { %11652 = vmatprep.mubr.bf16.mxu0 %v12282_v33  ;;  %11685 = vmatmul.mubr.bf16.vlgmr.msra.gmra.mxu1 %v10633_v25  ;;  %v3885_v13 = vrot.slane %v3884_v39, 4  ;;  %v3905_v7 = vshrl.u32 %v3718_v63, 16  ;;  %v10635_v20 = vcombine.low %v3832_v53, %v3842_v61  ;;  %v10636_v25 = vcombine.low %v3856_v44, %v3866_v57  ;;  %v3724_v44 = vld [vmem:[#allocation2 + $0x70] sm:$0xf]  ;;  %v3725_v57 = vld [vmem:[#allocation2 + $0x74] sm:$0x1] }
 0x14b   : > { %11765 = vmatpush3.bf16.msra.mxu1 %v13547_v31  ;;  %11688 = vmatprep.mubr.bf16.mxu1 %v10634_v28  ;;  %v3894_v24 = vrot.slane %v3892_v40, 4  ;;  %v3911_v19 = vshll.u32 %v3719_v12, 16  ;;  %v3880_v31 = vsel %vm13235_vm11, %v13683_v17, %v13664_v38  ;;  %v3897_v28 = vrot.slane %v3895_v34, 5  ;;  %v12301_v18 = vld [vmem:[#allocation9 + $0x198] sm:$0xff]   ;;  %v12291_v17 = vld [vmem:[#allocation2 + $0x9c] sm:$0xff]  }
 0x14c   : > { %11766 = vmatprep.subr.bf16.mxu1 %v12289_v0  ;;  %11729 = vmatpush3.bf16.msra.mxu0 %v13662_v41  ;;  %v3903_v16 = vrot.slane %v3901_v9, 5  ;;  %v3907_v56 = vrot.slane %v3905_v7, 4  ;;  %v867_v30 = vrot.slane %v13666_v2, 4  ;;  %v13695_v5 = vrot.slane %v869_v14, 7  ;;  %v3722_v41 = vld [vmem:[#allocation2 + $0x68] sm:$0x1] }
 0x14d   : > { %11730 = vmatprep.subr.bf16.mxu0 %v12300_v55  ;;  %v3913_v59 = vrot.slane %v3911_v19, 5  ;;  %v872_v33 = vshll.u32 %v13659_v27, 16  ;;  %v3898_v37 = vor.u32 %v3897_v28, %v3894_v24  ;;  %v1037_v51 = vsel %vm12989_vm6, %v866_v8, %v1036_v62  ;;  %v4518_v7 = vld [vmem:[#allocation2 + $0x10] sm:$0xf]  ;;  %v4519_v28 = vld [vmem:[#allocation2 + $0x14] sm:$0x1] }
 0x14e   : > { %v3908_v35 = vor.u32 %v3907_v56, %v3903_v16  ;;  %v3916_v23 = vshrl.u32 %v3720_v36, 16  ;;  %v3890_v54 = vsel %vm13235_vm11, %v3885_v13, %v13671_v58  ;;  %1038 = vst [vmem:[#allocation2 + $0xc0] sm:$0xf] %v1037_v51  ;;  %v3919_v60 = vshll.u32 %v3720_v36, 16 }
 0x14f   : > { %11767 = vmatpush3.bf16.msra.mxu1 %v12289_v0  ;;  %v874_v46 = vor.u32 %v872_v33, %v13695_v5  ;;  %v3925_v42 = vshll.u32 %v3721_v29, 16  ;;  %v3899_v27 = vrot.slane %v3898_v37, 4  ;;  %v3929_v3 = vshrl.u32 %v3721_v29, 16  ;;  %v3727_v37 = vld [vmem:[#allocation2 + $0x7c] sm:$0xf] }
 0x150   : > { %11768 = vmatprep.subr.bf16.mxu1 %v12294_v15  ;;  %11731 = vmatpush3.bf16.msra.mxu0 %v12300_v55  ;;  %v3909_v0 = vrot.slane %v3908_v35, 4  ;;  %v3918_v22 = vrot.slane %v3916_v23, 4  ;;  %v3921_v50 = vrot.slane %v3919_v60, 5  ;;  %v3935_v21 = vshll.u32 %v3722_v41, 16  ;;  %v3726_v41 = vld [vmem:[#allocation2 + $0x78] sm:$0xf] }
 0x151   : > { %11653 = vmatmul.mubr.bf16.gmra.mxu0 %v12283_v4  ;;  %11812 = vmatprep.subr.bf16.mxu0 %v13692_v48  ;;  %v875_v38 = vsel %vm12979_vm5, %v867_v30, %v874_v46  ;;  %v13707_v45 = vrot.slane %v3925_v42, 5  ;;  %v3904_v2 = vsel %vm13235_vm11, %v3899_v27, %v3903_v16  ;;  %v3931_v53 = vrot.slane %v3929_v3, 4  ;;  %v4517_v4 = vld [vmem:[#allocation2 + $0xc] sm:$0xe] }
 0x152   : > { %11656 = vmatprep.mubr.bf16.mxu0 %v12286_v32  ;;  %11689 = vmatmul.mubr.bf16.gmra.mxu1 %v10635_v20  ;;  %v3914_v55 = vsel %vm13235_vm11, %v3909_v0, %v3913_v59  ;;  %1039 = vst [vmem:[#allocation2 + $0xc4] sm:$0xf] %v875_v38  ;;  %v10637_v58 = vcombine.low %v3880_v31, %v3890_v54  ;;  %v3940_v39 = vshrl.u32 %v3723_v49, 16  ;;  %v3943_v12 = vshll.u32 %v3723_v49, 16  ;;  %v12302_v32 = vld [vmem:[#allocation9 + $0x190] sm:$0xff]  }
 0x153   : > { %11692 = vmatprep.mubr.bf16.mxu1 %v10636_v25  ;;  %11769 = vmatpush3.bf16.msra.mxu1 %v12294_v15  ;;  %v10638_v14 = vcombine.low %v3904_v2, %v3914_v55  ;;  %v3922_v61 = vor.u32 %v3921_v50, %v3918_v22  ;;  %v3932_v63 = vor.u32 %v3931_v53, %v13707_v45  ;;  %v3949_v40 = vshll.u32 %v3724_v44, 16  ;;  %v3728_v54 = vld [vmem:[#allocation2 + $0x80] sm:$0x1]  ;;  %v4520_v0 = vld [vmem:[#allocation2 + $0x18] sm:$0xe] }
 0x154   : > { %11770 = vmatprep.subr.bf16.mxu1 %v12299_v47  ;;  %v3953_v8 = vshrl.u32 %v3724_v44, 16  ;;  %v3937_v15 = vrot.slane %v3935_v21, 5  ;;  %v3942_v34 = vrot.slane %v3940_v39, 4  ;;  %v3959_v9 = vshll.u32 %v3725_v57, 16  ;;  %v12303_v21 = vld [vmem:[#allocation9 + $0x188] sm:$0xff]  }
 0x155   : > { %v3923_v13 = vrot.slane %v3922_v61, 4  ;;  %v1095_v20 = vld [vmem:[#allocation2 + $0xc0] sm:$0x1]  ;;  %v3933_v25 = vrot.slane %v3932_v63, 4  ;;  %v3945_v24 = vrot.slane %v3943_v12, 5  ;;  %v3951_v19 = vrot.slane %v3949_v40, 5 }
 0x156   : > { %v3955_v62 = vrot.slane %v3953_v8, 4  ;;  %v876_v36 = vrot.slane %v13695_v5, 4  ;;  %v1096_v31 = vsel %vm13001_vm7, 0, %v1095_v20  ;;  %v10656_v16 = vrot.slane %v4517_v4, 9  ;;  %v12296_v61 = vld [vmem:[#allocation2 + $0xb4] sm:$0xff]  }
 0x157   : > { %11771 = vmatpush3.bf16.msra.mxu1 %v12299_v47  ;;  %v4615_v56 = vrot.slane %v4518_v7, 5  ;;  %1097 = vst [vmem:[#allocation2 + $0xc0] sm:$0x1] %v1096_v31  ;;  %v3946_v29 = vor.u32 %v3945_v24, %v3942_v34  ;;  %v3961_v30 = vrot.slane %v3959_v9, 5  ;;  %v4618_v33 = vrot.slane %v4519_v28, 5  ;;  %v12304_v4 = vld [vmem:[#allocation9 + $0x180] sm:$0xff]  }
 0x158   : > { %11772 = vmatprep.subr.bf16.mxu1 %v12301_v18  ;;  %v3956_v59 = vor.u32 %v3955_v62, %v3951_v19  ;;  %v3928_v35 = vsel %vm13235_vm11, %v3923_v13, %v13707_v45  ;;  %v3938_v51 = vsel %vm13235_vm11, %v3933_v25, %v3937_v15  ;;  %v3964_v46 = vshrl.u32 %v3726_v41, 16  ;;  %v4521_v45 = vld [vmem:[#allocation2 + $0x1c] sm:$0xf]  ;;  %v3729_v8 = vld [vmem:[#allocation2 + $0x84] sm:$0xf] }
 0x159   : > { %11657 = vmatmul.mubr.bf16.gmra.mxu0 %v12287_v11  ;;  %v4617_v23 = vrot.slane %v4615_v56, 4  ;;  %v3947_v60 = vrot.slane %v3946_v29, 4  ;;  %v3967_v47 = vshll.u32 %v3726_v41, 16  ;;  %v3973_v27 = vshll.u32 %v3727_v37, 16  ;;  %v12292_v11 = vld [vmem:[#allocation2 + $0xa8] sm:$0xff]  }
 0x15a   : > { %11660 = vmatprep.mubr.bf16.mxu0 %v12291_v17  ;;  %11693 = vmatmul.mubr.bf16.gmra.mxu1 %v10637_v58  ;;  %v3957_v42 = vrot.slane %v3956_v59, 4  ;;  %v13724_v22 = vsel %vm13407_vm14, %v10656_v16, %v4615_v56  ;;  %v3966_v3 = vrot.slane %v3964_v46, 4  ;;  %v3977_v38 = vshrl.u32 %v3727_v37, 16  ;;  %v4522_v58 = vld [vmem:[#allocation2 + $0x20] sm:$0x1]  ;;  %v13744_v59 = vld [vmem:[#allocation9 + $0x238] sm:$0xff]  }
 0x15b   : > { %11696 = vmatprep.mubr.bf16.mxu1 %v10638_v14  ;;  %11773 = vmatpush3.bf16.msra.mxu1 %v12301_v18  ;;  %v3983_v50 = vshll.u32 %v3728_v54, 16  ;;  %v3952_v2 = vsel %vm13235_vm11, %v3947_v60, %v3951_v19  ;;  %v13732_v53 = vsel %vm13407_vm14, %v4617_v23, %v4618_v33  ;;  %v3969_v49 = vrot.slane %v3967_v47, 5  ;;  %v13734_v14 = vpop.f32.mrf.mxu1  ;;  %v3730_v9 = vld [vmem:[#allocation2 + $0x88] sm:$0xf]  ;;  %v3731_v19 = vld [vmem:[#allocation2 + $0x8c] sm:$0x1] }
 0x15c   : > { %11774 = vmatprep.subr.bf16.mxu1 %v12302_v32  ;;  %v3962_v55 = vsel %vm13235_vm11, %v3957_v42, %v3961_v30  ;;  %v10639_v44 = vcombine.low %v3928_v35, %v3938_v51  ;;  %v3975_v39 = vrot.slane %v3973_v27, 5  ;;  %v3979_v18 = vrot.slane %v3977_v38, 4  ;;  %v4523_v29 = vld [vmem:[#allocation2 + $0x24] sm:$0xe]  ;;  %v4524_v35 = vld [vmem:[#allocation2 + $0x28] sm:$0xf] }
 0x15d   : > { %v10640_v57 = vcombine.low %v3952_v2, %v3962_v55  ;;  %v3970_v17 = vor.u32 %v3969_v49, %v3966_v3  ;;  %v10657_v63 = vrot.slane %v4520_v0, 9  ;;  %v4622_v12 = vrot.slane %v4521_v45, 5  ;;  %v13742_v31 = vpop.f32.mrf.mxu1  ;;  %v4525_v51 = vld [vmem:[#allocation2 + $0x2c] sm:$0x1]  ;;  %v3732_v42 = vld [vmem:[#allocation2 + $0x90] sm:$0xf] }
 0x15e   : > { %v4625_v40 = vrot.slane %v4522_v58, 5  ;;  %v10672_v13 = vcombine.low %v13724_v22, %v13732_v53  ;;  %v3980_v15 = vor.u32 %v3979_v18, %v3975_v39  ;;  %v3985_v34 = vrot.slane %v3983_v50, 5  ;;  %v3733_v47 = vld [vmem:[#allocation2 + $0x94] sm:$0xf]  ;;  %v12297_v27 = vld [vmem:[#allocation2 + $0xc0] sm:$0xff]  }
 0x15f   : > { %11775 = vmatpush3.bf16.msra.mxu1 %v12302_v32  ;;  %v3988_v7 = vshrl.u32 %v3729_v8, 16  ;;  %v3971_v20 = vrot.slane %v3970_v17, 4  ;;  %v13740_v25 = vsel %vm13407_vm14, %v10657_v63, %v4622_v12  ;;  %v4624_v24 = vrot.slane %v4622_v12, 4  ;;  %v3734_v45 = vld [vmem:[#allocation2 + $0x98] sm:$0x1] }
 0x160   : > { %11776 = vmatprep.subr.bf16.mxu1 %v12303_v21  ;;  %v3991_v62 = vshll.u32 %v3729_v8, 16  ;;  %v3981_v32 = vrot.slane %v3980_v15, 4  ;;  %v3997_v16 = vshll.u32 %v3730_v9, 16  ;;  %v4001_v56 = vshrl.u32 %v3730_v9, 16  ;;  %v4526_v58 = vld [vmem:[#allocation2 + $0x30] sm:$0xe] }
 0x161   : > { %11661 = vmatmul.mubr.bf16.gmra.mxu0 %v12292_v11  ;;  %v3990_v28 = vrot.slane %v3988_v7, 4  ;;  %v3976_v30 = vsel %vm13235_vm11, %v3971_v20, %v3975_v39  ;;  %v13750_v33 = vsel %vm13407_vm14, %v4624_v24, %v4625_v40  ;;  %v4007_v37 = vshll.u32 %v3731_v19, 16  ;;  %v13756_v11 = vpop.f32.mrf.mxu1  ;;  %v4527_v18 = vld [vmem:[#allocation2 + $0x34] sm:$0xf]  ;;  %v4528_v17 = vld [vmem:[#allocation2 + $0x38] sm:$0x1] }
 0x162   : > { %11664 = vmatprep.mubr.bf16.mxu0 %v12296_v61  ;;  %11697 = vmatmul.mubr.bf16.gmra.mxu1 %v10639_v44  ;;  %v3993_v41 = vrot.slane %v3991_v62, 5  ;;  %v3986_v23 = vsel %vm13235_vm11, %v3981_v32, %v3985_v34  ;;  %v10673_v54 = vcombine.low %v13740_v25, %v13750_v33  ;;  %v3999_v46 = vrot.slane %v3997_v16, 5  ;;  %v3735_v32 = vld [vmem:[#allocation2 + $0x9c] sm:$0xf]  ;;  %v3737_v22 = vld [vmem:[#allocation2 + $0xa4] sm:$0x1] }
 0x163   : > { %11700 = vmatprep.mubr.bf16.mxu1 %v10640_v57  ;;  %11777 = vmatpush3.bf16.msra.mxu1 %v12303_v21  ;;  %v4003_v60 = vrot.slane %v4001_v56, 4  ;;  %v10641_v0 = vcombine.low %v3976_v30, %v3986_v23  ;;  %v4009_v38 = vrot.slane %v4007_v37, 5  ;;  %v10658_v50 = vrot.slane %v4523_v29, 9  ;;  %v13763_v20 = vpop.f32.mrf.mxu1 }
 0x164   : > { %11778 = vmatprep.subr.bf16.mxu1 %v12304_v4  ;;  %v3994_v3 = vor.u32 %v3993_v41, %v3990_v28  ;;  %v4629_v2 = vrot.slane %v4524_v35, 5  ;;  %v4632_v55 = vrot.slane %v4525_v51, 5  ;;  %v4012_v49 = vshrl.u32 %v3732_v42, 16  ;;  %v3736_v28 = vld [vmem:[#allocation2 + $0xa0] sm:$0xf] }
 0x165   : > { %v4004_v21 = vor.u32 %v4003_v60, %v3999_v46  ;;  %v4015_v44 = vshll.u32 %v3732_v42, 16  ;;  %v4021_v57 = vshll.u32 %v3733_v47, 16  ;;  %v4025_v39 = vshrl.u32 %v3733_v47, 16  ;;  %v4529_v60 = vld [vmem:[#allocation2 + $0x3c] sm:$0xe]  ;;  %v13774_v47 = vpop.f32.mrf.mxu0 }
 0x166   : > { %v3995_v61 = vrot.slane %v3994_v3, 4  ;;  %v4630_v12 = vsel %vm13407_vm14, %v10658_v50, %v4629_v2  ;;  %v4631_v40 = vrot.slane %v4629_v2, 4  ;;  %v4014_v8 = vrot.slane %v4012_v49, 4  ;;  %15631 = vst [vmem:[#allocation23_spill] sm:$0xff] %v13774_v47  ;;  %v4530_v50 = vld [vmem:[#allocation2 + $0x40] sm:$0xf] }
 0x167   : > { %11779 = vmatpush3.bf16.msra.mxu1 %v12304_v4  ;;  %v4005_v63 = vrot.slane %v4004_v21, 4  ;;  %v4017_v34 = vrot.slane %v4015_v44, 5  ;;  %v4023_v9 = vrot.slane %v4021_v57, 5  ;;  %v4027_v7 = vrot.slane %v4025_v39, 4  ;;  %v4531_v49 = vld [vmem:[#allocation2 + $0x44] sm:$0x1] }
 0x168   : > { %11860 = vmatprep.subr.bf16.mxu1 %v13744_v59  ;;  %v4000_v15 = vsel %vm13235_vm11, %v3995_v61, %v3999_v46  ;;  %v4633_v24 = vsel %vm13407_vm14, %v4631_v40, %v4632_v55  ;;  %v4031_v19 = vshll.u32 %v3734_v45, 16  ;;  %v10659_v62 = vrot.slane %v4526_v58, 9  ;;  %v3738_v58 = vld [vmem:[#allocation2 + $0xa8] sm:$0xf] }
 0x169   : > { %11665 = vmatmul.mubr.bf16.gmra.mxu0 %v12297_v27  ;;  %v4010_v4 = vsel %vm13235_vm11, %v4005_v63, %v4009_v38  ;;  %v10674_v56 = vcombine.low %v4630_v12, %v4633_v24  ;;  %v4018_v29 = vor.u32 %v4017_v34, %v4014_v8  ;;  %v4028_v30 = vor.u32 %v4027_v7, %v4023_v9  ;;  %v12309_v63 = vld [vmem:[#allocation9 + $0x1f0] sm:$0xff]  }
 0x16a   : > { %11732 = vmatprep.mubr.bf16.mxu0 %v10672_v13  ;;  %11701 = vmatmul.mubr.bf16.gmra.mxu1 %v10641_v0  ;;  %v10642_v16 = vcombine.low %v4000_v15, %v4010_v4  ;;  %v4033_v41 = vrot.slane %v4031_v19, 5  ;;  %v4636_v37 = vrot.slane %v4527_v18, 5  ;;  %v4639_v35 = vrot.slane %v4528_v17, 5  ;;  %v13772_v42 = vpop.f32.mrf.mxu1  ;;  %v3739_v17 = vld [vmem:[#allocation2 + $0xac] sm:$0xf] }
 0x16b   : > { %v4036_v53 = vshrl.u32 %v3735_v32, 16  ;;  %v4019_v13 = vrot.slane %v4018_v29, 4  ;;  %v4029_v51 = vrot.slane %v4028_v30, 4  ;;  %v4039_v23 = vshll.u32 %v3735_v32, 16  ;;  %v3740_v19 = vld [vmem:[#allocation2 + $0xb0] sm:$0x1] }
 0x16c   : > { %11704 = vmatprep.mubr.bf16.mxu1 %v10642_v16  ;;  %v4045_v46 = vshll.u32 %v3736_v28, 16  ;;  %v13778_v27 = vsel %vm13407_vm14, %v10659_v62, %v4636_v37  ;;  %v4638_v0 = vrot.slane %v4636_v37, 4  ;;  %v4049_v38 = vshrl.u32 %v3736_v28, 16  ;;  %v13784_v61 = vpop.f32.mrf.mxu1  ;;  %v4532_v28 = vld [vmem:[#allocation2 + $0x48] sm:$0xe]  ;;  %v12312_v16 = vld [vmem:[#allocation9 + $0x1e8] sm:$0xff]  }
 0x16d   : > { %v4038_v3 = vrot.slane %v4036_v53, 4  ;;  %v4024_v45 = vsel %vm13235_vm11, %v4019_v13, %v4023_v9  ;;  %v4034_v21 = vsel %vm13235_vm11, %v4029_v51, %v4033_v41  ;;  %v4041_v2 = vrot.slane %v4039_v23, 5  ;;  %v13794_v9 = vpop.f32.mrf.mxu0  ;;  %v4534_v23 = vld [vmem:[#allocation2 + $0x50] sm:$0x1] }
 0x16e   : > { %v4047_v55 = vrot.slane %v4045_v46, 5  ;;  %v10643_v44 = vcombine.low %v4024_v45, %v4034_v21  ;;  %v4640_v57 = vsel %vm13407_vm14, %v4638_v0, %v4639_v35  ;;  %v4051_v39 = vrot.slane %v4049_v38, 4  ;;  %v13792_v34 = vpop.f32.mrf.mxu1  ;;  %15632 = vst [vmem:[#allocation24_spill] sm:$0xff] %v13794_v9  ;;  %v4533_v35 = vld [vmem:[#allocation2 + $0x4c] sm:$0xf] }
 0x16f   : > { %v4055_v18 = vshll.u32 %v3737_v22, 16  ;;  %v10675_v12 = vcombine.low %v13778_v27, %v4640_v57  ;;  %v4042_v40 = vor.u32 %v4041_v2, %v4038_v3  ;;  %v10660_v8 = vrot.slane %v4529_v60, 9  ;;  %v3741_v46 = vld [vmem:[#allocation2 + $0xb4] sm:$0xf]  ;;  %v13807_v60 = vpop.f32.mrf.mxu0 }
 0x170   : > { %v4643_v15 = vrot.slane %v4530_v50, 5  ;;  %v4052_v7 = vor.u32 %v4051_v39, %v4047_v55  ;;  %v4646_v24 = vrot.slane %v4531_v49, 5  ;;  %v4060_v62 = vshrl.u32 %v3738_v58, 16  ;;  %v13799_v29 = vpop.f32.mrf.mxu1  ;;  %15633 = vst [vmem:[#allocation25_spill] sm:$0xff] %v13807_v60  ;;  %v3742_v50 = vld [vmem:[#allocation2 + $0xb8] sm:$0xf] }
 0x171   : > { %11733 = vmatmul.mubr.bf16.vlgmr.msra.gmra.mxu0 %v10673_v54  ;;  %v4057_v4 = vrot.slane %v4055_v18, 5  ;;  %v4043_v32 = vrot.slane %v4042_v40, 4  ;;  %v4063_v54 = vshll.u32 %v3738_v58, 16  ;;  %v4069_v41 = vshll.u32 %v3739_v17, 16  ;;  %v3743_v49 = vld [vmem:[#allocation2 + $0xbc] sm:$0x1] }
 0x172   : > { %11736 = vmatprep.mubr.bf16.mxu0 %v10674_v56  ;;  %11705 = vmatmul.mubr.bf16.gmra.mxu1 %v10643_v44  ;;  %v4644_v25 = vsel %vm13407_vm14, %v10660_v8, %v4643_v15  ;;  %v4645_v33 = vrot.slane %v4643_v15, 4  ;;  %v4053_v30 = vrot.slane %v4052_v7, 4  ;;  %v4062_v56 = vrot.slane %v4060_v62, 4  ;;  %v12314_v40 = vld [vmem:[#allocation9 + $0x1e0] sm:$0xff]   ;;  %v1040_v62 = vld [vmem:[#allocation2 + $0xc8] sm:$0x1] }
 0x173   : > { %11813 = vmatpush3.bf16.msra.mxu0 %v13692_v48  ;;  %v4073_v37 = vshrl.u32 %v3739_v17, 16  ;;  %v4048_v22 = vsel %vm13235_vm11, %v4043_v32, %v4047_v55  ;;  %v4065_v13 = vrot.slane %v4063_v54, 5  ;;  %v4079_v51 = vshll.u32 %v3740_v19, 16  ;;  %v13805_v48 = vpop.f32.mrf.mxu1  ;;  %v4535_v17 = vld [vmem:[#allocation2 + $0x54] sm:$0xe]  ;;  %v13813_v32 = vpop.f32.mrf.mxu0 }
 0x174   : > { %11814 = vmatprep.subr.bf16.mxu0 %v12309_v63  ;;  %v4647_v53 = vsel %vm13407_vm14, %v4645_v33, %v4646_v24  ;;  %v4058_v27 = vsel %vm13235_vm11, %v4053_v30, %v4057_v4  ;;  %v4071_v3 = vrot.slane %v4069_v41, 5  ;;  %v10661_v55 = vrot.slane %v4532_v28, 9  ;;  %v4536_v24 = vld [vmem:[#allocation2 + $0x58] sm:$0xf]  ;;  %v4537_v19 = vld [vmem:[#allocation2 + $0x5c] sm:$0x1] }
 0x175   : > { %v10676_v0 = vcombine.low %v4644_v25, %v4647_v53  ;;  %v4075_v38 = vrot.slane %v4073_v37, 4  ;;  %v10644_v45 = vcombine.low %v4048_v22, %v4058_v27  ;;  %v4066_v21 = vor.u32 %v4065_v13, %v4062_v56  ;;  %v13811_v58 = vpop.f32.mrf.mxu1  ;;  %15634 = vst [vmem:[#allocation26_spill] sm:$0xff] %v13813_v32  ;;  %v3744_v28 = vld [vmem:[#allocation2 + $0xc0] sm:$0xf]  ;;  %v12317_v37 = vld [vmem:[#allocation9 + $0x1d8] sm:$0xff]  }
 0x176   : > { %v4081_v2 = vrot.slane %v4079_v51, 5  ;;  %v4650_v57 = vrot.slane %v4533_v35, 5  ;;  %v4653_v39 = vrot.slane %v4534_v23, 5  ;;  %v4084_v18 = vshrl.u32 %v3741_v46, 16 }
 0x177   : > { %11815 = vmatpush3.bf16.msra.mxu0 %v12309_v63  ;;  %v4076_v44 = vor.u32 %v4075_v38, %v4071_v3  ;;  %11708 = vmatprep.mubr.bf16.mxu1 %v10644_v45  ;;  %v4067_v8 = vrot.slane %v4066_v21, 4  ;;  %v4087_v15 = vshll.u32 %v3741_v46, 16  ;;  %v4093_v7 = vshll.u32 %v3742_v50, 16  ;;  %v13819_v35 = vpop.f32.mrf.mxu1  ;;  %v13825_v38 = vpop.f32.mrf.mxu0 }
 0x178   : > { %11816 = vmatprep.subr.bf16.mxu0 %v12312_v16  ;;  %v4097_v4 = vshrl.u32 %v3742_v50, 16  ;;  %v4651_v25 = vsel %vm13407_vm14, %v10661_v55, %v4650_v57  ;;  %v4652_v33 = vrot.slane %v4650_v57, 4  ;;  %v4086_v54 = vrot.slane %v4084_v18, 4  ;;  %15635 = vst [vmem:[#allocation27_spill] sm:$0xff] %v13825_v38  ;;  %v4539_v55 = vld [vmem:[#allocation2 + $0x64] sm:$0xf] }
 0x179   : > { %11737 = vmatmul.mubr.bf16.gmra.mxu0 %v10675_v12  ;;  %v4077_v63 = vrot.slane %v4076_v44, 4  ;;  %v4072_v12 = vsel %vm13235_vm11, %v4067_v8, %v4071_v3  ;;  %v4089_v30 = vrot.slane %v4087_v15, 5  ;;  %v4095_v56 = vrot.slane %v4093_v7, 5  ;;  %v3745_v3 = vld [vmem:[#allocation2 + $0xc4] sm:$0xf] }
 0x17a   : > { %11740 = vmatprep.mubr.bf16.mxu0 %v10676_v0  ;;  %v4099_v41 = vrot.slane %v4097_v4, 4  ;;  %v4654_v53 = vsel %vm13407_vm14, %v4652_v33, %v4653_v39  ;;  %v4103_v13 = vshll.u32 %v3743_v49, 16  ;;  %v10662_v51 = vrot.slane %v4535_v17, 9  ;;  %v4540_v18 = vld [vmem:[#allocation2 + $0x68] sm:$0x1]  ;;  %v13831_v17 = vpop.f32.mrf.mxu1 }
 0x17b   : > { %11817 = vmatpush3.bf16.msra.mxu0 %v12312_v16  ;;  %v4082_v22 = vsel %vm13235_vm11, %v4077_v63, %v4081_v2  ;;  %v10677_v46 = vcombine.low %v4651_v25, %v4654_v53  ;;  %v4090_v27 = vor.u32 %v4089_v30, %v4086_v54  ;;  %v4657_v50 = vrot.slane %v4536_v24, 5  ;;  %v4538_v2 = vld [vmem:[#allocation2 + $0x60] sm:$0xe]  ;;  %v4542_v63 = vld [vmem:[#allocation2 + $0x70] sm:$0xf]  ;;  %v13839_v25 = vpop.f32.mrf.mxu0 }
 0x17c   : > { %11818 = vmatprep.subr.bf16.mxu0 %v12314_v40  ;;  %v10645_v23 = vcombine.low %v4072_v12, %v4082_v22  ;;  %v4100_v0 = vor.u32 %v4099_v41, %v4095_v56  ;;  %v4105_v16 = vrot.slane %v4103_v13, 5  ;;  %v4660_v45 = vrot.slane %v4537_v19, 5  ;;  %15636 = vst [vmem:[#allocation28_spill] sm:$0xff] %v13839_v25  ;;  %v4543_v30 = vld [vmem:[#allocation2 + $0x74] sm:$0x1] }
 0x17d   : > { %v1041_v21 = vsel %vm13001_vm7, %v876_v36, %v1040_v62  ;;  %v4091_v49 = vrot.slane %v4090_v27, 4  ;;  %v4108_v57 = vshrl.u32 %v3744_v28, 16  ;;  %v4111_v39 = vshll.u32 %v3744_v28, 16  ;;  %v12319_v36 = vld [vmem:[#allocation9 + $0x1d0] sm:$0xff]   ;;  %v4544_v41 = vld [vmem:[#allocation2 + $0x78] sm:$0xe] }
 0x17e   : > { %11709 = vmatmul.mubr.bf16.gmra.mxu1 %v10645_v23  ;;  %v4101_v44 = vrot.slane %v4100_v0, 4  ;;  %1042 = vst [vmem:[#allocation2 + $0xc8] sm:$0x1] %v1041_v21  ;;  %v4658_v8 = vsel %vm13407_vm14, %v10662_v51, %v4657_v50  ;;  %v4659_v15 = vrot.slane %v4657_v50, 4  ;;  %v4117_v5 = vshll.u32 %v3745_v3, 16  ;;  %v12322_v0 = vld [vmem:[#allocation9 + $0x1c8] sm:$0xff]   ;;  %v13849_v21 = vpop.f32.mrf.mxu0 }
 0x17f   : > { %11819 = vmatpush3.bf16.msra.mxu0 %v12314_v40  ;;  %v4121_v7 = vshrl.u32 %v3745_v3, 16  ;;  %v4096_v4 = vsel %vm13235_vm11, %v4091_v49, %v4095_v56  ;;  %v4110_v19 = vrot.slane %v4108_v57, 4  ;;  %v4113_v62 = vrot.slane %v4111_v39, 5  ;;  %v4541_v40 = vld [vmem:[#allocation2 + $0x6c] sm:$0xe]  ;;  %15637 = vst [vmem:[#allocation29_spill] sm:$0xff] %v13849_v21 }
 0x180   : > { %11820 = vmatprep.subr.bf16.mxu0 %v12317_v37  ;;  %v4106_v24 = vsel %vm13235_vm11, %v4101_v44, %v4105_v16  ;;  %v4661_v54 = vsel %vm13407_vm14, %v4659_v15, %v4660_v45  ;;  %v13843_v28 = vrot.slane %v4117_v5, 5  ;;  %v10663_v56 = vrot.slane %v4538_v2, 9  ;;  %v4545_v13 = vld [vmem:[#allocation2 + $0x7c] sm:$0xf]  ;;  %v4546_v45 = vld [vmem:[#allocation2 + $0x80] sm:$0x1] }
 0x181   : > { %11741 = vmatmul.mubr.bf16.gmra.mxu0 %v10677_v46  ;;  %v10646_v33 = vcombine.low %v4096_v4, %v4106_v24  ;;  %v4123_v12 = vrot.slane %v4121_v7, 4  ;;  %v10678_v22 = vcombine.low %v4658_v8, %v4661_v54  ;;  %v4664_v53 = vrot.slane %v4539_v55, 5  ;;  %v13845_v51 = vpop.f32.mrf.mxu1  ;;  %v12324_v57 = vld [vmem:[#allocation9 + $0x1c0] sm:$0xff]   ;;  %v4547_v5 = vld [vmem:[#allocation2 + $0x84] sm:$0xe]  ;;  %v13862_v54 = vpop.f32.mrf.mxu0 }
 0x182   : > { %v4667_v23 = vrot.slane %v4540_v18, 5  ;;  %v10664_v46 = vrot.slane %v4541_v40, 9  ;;  %v4671_v27 = vrot.slane %v4542_v63, 5  ;;  %v4674_v50 = vrot.slane %v4543_v30, 5  ;;  %v4549_v40 = vld [vmem:[#allocation2 + $0x8c] sm:$0x1] }
 0x183   : > { %11821 = vmatpush3.bf16.msra.mxu0 %v12317_v37  ;;  %11712 = vmatprep.mubr.bf16.mxu1 %v10646_v33  ;;  %v4665_v3 = vsel %vm13407_vm14, %v10663_v56, %v4664_v53  ;;  %v4666_v16 = vrot.slane %v4664_v53, 4  ;;  %v4114_v55 = vor.u32 %v4113_v62, %v4110_v19  ;;  %v13853_v44 = vpop.f32.mrf.mxu1  ;;  %v4124_v18 = vor.u32 %v4123_v12, %v13843_v28  ;;  %v4548_v62 = vld [vmem:[#allocation2 + $0x88] sm:$0xf]  ;;  %v4550_v33 = vld [vmem:[#allocation2 + $0x90] sm:$0xe] }
 0x184   : > { %11822 = vmatprep.subr.bf16.mxu0 %v12319_v36  ;;  %11744 = vmatprep.mubr.bf16.mxu0 %v10678_v22  ;;  %v4672_v37 = vsel %vm13407_vm14, %v10664_v46, %v4671_v27  ;;  %v4673_v49 = vrot.slane %v4671_v27, 4  ;;  %v10665_v15 = vrot.slane %v4544_v41, 9  ;;  %v4678_v24 = vrot.slane %v4545_v13, 5  ;;  %15638 = vst [vmem:[#allocation30_spill] sm:$0xff] %v13862_v54  ;;  %v13869_v13 = vld [vmem:[%s15578_s4] ss:$0 sm:$0xff] }
 0x185   : > { %v1144_v2 = vld [vmem:[#allocation2 + $0xc8] sm:$0x1]  ;;  %v4668_v8 = vsel %vm13407_vm14, %v4666_v16, %v4667_v23  ;;  %v4681_v19 = vrot.slane %v4546_v45, 5  ;;  %v4115_v12 = vrot.slane %v4114_v55, 4  ;;  %v10666_v41 = vrot.slane %v4547_v5, 9  ;;  %v13864_v56 = vpop.f32.mrf.mxu1 }
 0x186   : > { %v1145_v39 = vsel %vm13035_vm8, 0, %v1144_v2  ;;  %v10679_v7 = vcombine.low %v4665_v3, %v4668_v8  ;;  %v4675_v4 = vsel %vm13407_vm14, %v4673_v49, %v4674_v50  ;;  %v4680_v30 = vrot.slane %v4678_v24, 4  ;;  %v4552_v27 = vld [vmem:[#allocation2 + $0x98] sm:$0x1]  ;;  %v4553_v5 = vld [vmem:[#allocation2 + $0x9c] sm:$0xe] }
 0x187   : > { %11823 = vmatpush3.bf16.msra.mxu0 %v12319_v36  ;;  %1146 = vst [vmem:[#allocation2 + $0xc8] sm:$0x1] %v1145_v39  ;;  %v10680_v63 = vcombine.low %v4672_v37, %v4675_v4  ;;  %v4685_v22 = vrot.slane %v4548_v62, 5  ;;  %v4551_v36 = vld [vmem:[#allocation2 + $0x94] sm:$0xf]  ;;  %v4125_v53 = vrot.slane %v4124_v18, 4  ;;  %v4679_v23 = vsel %vm13407_vm14, %v10665_v15, %v4678_v24  ;;  %v13879_v8 = vpop.f32.mrf.mxu1 }
 0x188   : > { %11824 = vmatprep.subr.bf16.mxu0 %v12322_v0  ;;  %v4688_v46 = vrot.slane %v4549_v40, 5  ;;  %v4692_v3 = vrot.slane %v4551_v36, 5  ;;  %v4682_v16 = vsel %vm13407_vm14, %v4680_v30, %v4681_v19  ;;  %v10667_v2 = vrot.slane %v4550_v33, 9  ;;  %v4554_v24 = vld [vmem:[#allocation2 + $0xa0] sm:$0xf] }
 0x189   : > { %11745 = vmatmul.mubr.bf16.gmra.mxu0 %v10679_v7  ;;  %v4686_v50 = vsel %vm13407_vm14, %v10666_v41, %v4685_v22  ;;  %v4687_v45 = vrot.slane %v4685_v22, 4  ;;  %v4695_v37 = vrot.slane %v4552_v27, 5  ;;  %v10681_v39 = vcombine.low %v4679_v23, %v4682_v16  ;;  %v4555_v19 = vld [vmem:[#allocation2 + $0xa4] sm:$0x1]  ;;  %v4556_v22 = vld [vmem:[#allocation2 + $0xa8] sm:$0xe] }
 0x18a   : > { %11748 = vmatprep.mubr.bf16.mxu0 %v10680_v63  ;;  %v4694_v55 = vrot.slane %v4692_v3, 4  ;;  %v1681_v4 = vadd.f32 %v13734_v14, %v13869_v13  ;;  %v10668_v62 = vrot.slane %v4553_v5, 9  ;;  %v4699_v40 = vrot.slane %v4554_v24, 5  ;;  %v12306_v23 = vld [vmem:[#allocation2 + $0x18] sm:$0xff]   ;;  %v4557_v16 = vld [vmem:[#allocation2 + $0xac] sm:$0xf] }
 0x18b   : > { %11825 = vmatpush3.bf16.msra.mxu0 %v12322_v0  ;;  %v4689_v18 = vsel %vm13407_vm14, %v4687_v45, %v4688_v46  ;;  %v4702_v63 = vrot.slane %v4555_v19, 5  ;;  %v4120_v30 = vsel %vm13235_vm11, %v4115_v12, %v13843_v28  ;;  %v4693_v14 = vsel %vm13407_vm14, %v10667_v2, %v4692_v3  ;;  %v5567_v54 = vld [vmem:[#allocation2 + $0x2c] sm:$0x1] }
 0x18c   : > { %11826 = vmatprep.subr.bf16.mxu0 %v12324_v57  ;;  %v11542_v49 = vpop.f32.mrf.mxu0  ;;  %v10682_v0 = vcombine.low %v4686_v50, %v4689_v18  ;;  %v4696_v46 = vsel %vm13407_vm14, %v4694_v55, %v4695_v37  ;;  %v4701_v27 = vrot.slane %v4699_v40, 4  ;;  %v4558_v50 = vld [vmem:[#allocation2 + $0xb0] sm:$0x1]  ;;  %v4700_v12 = vsel %vm13407_vm14, %v10668_v62, %v4699_v40  ;;  %v4561_v62 = vld [vmem:[#allocation2 + $0xbc] sm:$0x1] }
 0x18d   : > { %v10669_v45 = vrot.slane %v4556_v22, 9  ;;  %v10683_v2 = vcombine.low %v4693_v14, %v4696_v46  ;;  %v4709_v37 = vrot.slane %v4558_v50, 5  ;;  %v13908_v24 = vadd.f32 %v13869_v13, %v13763_v20  ;;  %v4562_v22 = vld [vmem:[#allocation2 + $0xc0] sm:$0xe] }
 0x18e   : > { %v3746_v15 = vld [vmem:[#allocation2 + $0xc8] sm:$0x1]  ;;  %v2429_v33 = vpop.f32.mrf.mxu0  ;;  %v4703_v18 = vsel %vm13407_vm14, %v4701_v27, %v4702_v63  ;;  %v1697_v19 = vadd.f32 %v13772_v42, %v13869_v13  ;;  %v12310_v42 = vld [vmem:[#allocation2 + $0x30] sm:$0xff]   ;;  %v13926_v46 = vadd.f32 %v13869_v13, %v13799_v29  ;;  %v10671_v50 = vrot.slane %v4562_v22, 9 }
 0x18f   : > { %11827 = vmatpush3.bf16.msra.mxu0 %v12324_v57  ;;  %v4127_v7 = vshll.u32 %v3746_v15, 16  ;;  %v13888_v57 = vadd.f32 %v11542_v49, %v1681_v4  ;;  %v4706_v49 = vrot.slane %v4557_v16, 5  ;;  %v10684_v5 = vcombine.low %v4700_v12, %v4703_v18  ;;  %v4560_v4 = vld [vmem:[#allocation2 + $0xb8] sm:$0xf]  ;;  %v4564_v16 = vld [vmem:[#allocation2 + $0xc8] sm:$0x1] }
 0x190   : > { %v11543_v3 = vpop.f32.mrf.mxu0  ;;  %v4713_v63 = vrot.slane %v4560_v4, 5  ;;  %v13936_v18 = vadd.f32 %v13805_v48, %v13869_v13  ;;  %v13940_v29 = vadd.f32 %v13869_v13, %v13811_v58  ;;  %v13956_v48 = vadd.f32 %v13845_v51, %v13869_v13 }
 0x191   : > { %v4129_v41 = vrot.slane %v4127_v7, 5  ;;  %11749 = vmatmul.mubr.bf16.gmra.mxu0 %v10681_v39  ;;  %v13886_v36 = vpop.f32.mrf.mxu1  ;;  %v4708_v55 = vrot.slane %v4706_v49, 4  ;;  %v4559_v7 = vld [vmem:[#allocation2 + $0xb4] sm:$0xe]  ;;  %v13976_v4 = vadd.f32 %v13864_v56, %v13869_v13  ;;  %v12311_v56 = vld [vmem:[#allocation2 + $0x3c] sm:$0xff]   ;;  %v5654_v25 = vshll.u32 %v5567_v54, 16 }
 0x192   : > { %11752 = vmatprep.mubr.bf16.mxu0 %v10682_v0  ;;  %v1673_v0 = vadd.f32 %v13869_v13, %v13742_v31  ;;  %v10670_v40 = vrot.slane %v4559_v7, 9  ;;  %v1689_v31 = vadd.f32 %v13869_v13, %v13784_v61  ;;  %v13922_v14 = vpop.f32.mrf.mxu0  ;;  %v4715_v27 = vrot.slane %v4713_v63, 4  ;;  %v4563_v61 = vld [vmem:[#allocation2 + $0xc4] sm:$0xf]  ;;  %v5568_v54 = vld [vmem:[#allocation2 + $0x30] sm:$0xf] }
 0x193   : > { %v4130_v28 = vsel %vm13235_vm11, %v4125_v53, %v4129_v41  ;;  %v13900_v15 = vpop.f32.mrf.mxu1  ;;  %v1684_v53 = vadd.f32 %v13756_v11, %v13869_v13  ;;  %v13916_v11 = vadd.f32 %v13792_v34, %v13869_v13  ;;  %v4716_v41 = vrot.slane %v4561_v62, 5 }
 0x194   : > { %v10647_v39 = vcombine.low %v4120_v30, %v4130_v28  ;;  %v12307_v30 = vld [vmem:[#allocation2 + $0x24] sm:$0xff]   ;;  %v4710_v28 = vsel %vm13407_vm14, %v4708_v55, %v4709_v37  ;;  %v4720_v12 = vrot.slane %v4563_v61, 5  ;;  %v13952_v55 = vadd.f32 %v13869_v13, %v13831_v17 }
 0x195   : > { %v13920_v20 = vpop.f32.mrf.mxu1  ;;  %v13928_v34 = vadd.f32 %v11543_v3, %v1684_v53  ;;  %v4714_v3 = vsel %vm13407_vm14, %v10670_v40, %v4713_v63  ;;  %v13980_v62 = vadd.f32 %v13869_v13, %v13879_v8  ;;  %v5562_v40 = vld [vmem:[#allocation2 + $0x18] sm:$0xf]  ;;  %v5563_v63 = vld [vmem:[#allocation2 + $0x1c] sm:$0xf]  ;;  %v13985_v61 = vadd.f32 %v13886_v36, %v13869_v13 }
 0x196   : > { %11713 = vmatmul.mubr.bf16.gmra.mxu1 %v10647_v39  ;;  %v4723_v39 = vrot.slane %v4564_v16, 5  ;;  %v4722_v58 = vrot.slane %v4720_v12, 4  ;;  %v5614_v22 = vshll.u32 %v5562_v40, 16  ;;  %v5624_v16 = vshrl.u32 %v5563_v63, 16 }
 0x197   : > { %11780 = vmatprep.mubr.bf16.mxu1 %v12306_v23  ;;  %v13918_v23 = vadd.f32 %v2429_v33, %v1673_v0  ;;  %v4707_v33 = vsel %vm13407_vm14, %v10669_v45, %v4706_v49  ;;  %v12313_v45 = vld [vmem:[#allocation9 + $0x230] sm:$0xff]   ;;  %v13948_v49 = vadd.f32 %v13819_v35, %v13869_v13  ;;  %v13958_v37 = vpop.f32.mrf.mxu1  ;;  %v13966_v35 = vadd.f32 %v13869_v13, %v13853_v44 }
 0x198   : > { %15639 = vst [vmem:[#allocation31_spill] sm:$0xff] %v13958_v37  ;;  %v10685_v53 = vcombine.low %v4707_v33, %v4710_v28  ;;  %v13972_v51 = vsel %vm13407_vm14, %v4722_v58, %v4723_v39  ;;  %v5564_v44 = vld [vmem:[#allocation2 + $0x20] sm:$0x1]  ;;  %v5565_v33 = vld [vmem:[#allocation2 + $0x24] sm:$0xf]  ;;  %v5656_v38 = vrot.slane %v5654_v25, 5 }
 0x199   : > { %11753 = vmatmul.mubr.bf16.gmra.mxu0 %v10683_v2  ;;  %v4717_v2 = vsel %vm13407_vm14, %v4715_v27, %v4716_v41  ;;  %v5620_v27 = vshll.u32 %v5563_v63, 16  ;;  %v5566_v58 = vld [vmem:[#allocation2 + $0x28] sm:$0xf]  ;;  %v5635_v36 = vshrl.u32 %v5565_v33, 16  ;;  %v5638_v21 = vshll.u32 %v5565_v33, 16  ;;  %v12323_v63 = vld [vmem:[#allocation9 + $0x220] sm:$0xff]  }
 0x19a   : > { %11756 = vmatprep.mubr.bf16.mxu0 %v10684_v5  ;;  %v13962_v5 = vsel %vm13407_vm14, %v10671_v50, %v4720_v12  ;;  %v10686_v17 = vcombine.low %v4714_v3, %v4717_v2  ;;  %v5630_v50 = vshll.u32 %v5564_v44, 16  ;;  %v5616_v3 = vrot.slane %v5614_v22, 5 }
 0x19b   : > { %v10687_v8 = vcombine.low %v13962_v5, %v13972_v51  ;;  %v5622_v2 = vrot.slane %v5620_v27, 5  ;;  %v5644_v5 = vshll.u32 %v5566_v58, 16  ;;  %vm8409_vm15 = vcmask 1046528  }
 0x19d   : > { %v5646_v22 = vrot.slane %v5644_v5, 5  ;;  %v5659_v5 = vshrl.u32 %v5568_v54, 16 }
 0x19e   : > { %v11546_v0 = vpop.f32.mrf.mxu0  ;;  %11781 = vmatmul.mubr.bf16.vlgmr.msra.gmra.mxu1 %v12307_v30  ;;  %v5611_v30 = vshrl.u32 %v5562_v40, 16  ;;  %v5632_v40 = vrot.slane %v5630_v50, 5 }
 0x19f   : > { %v13968_v7 = vadd.f32 %v11546_v0, %v1697_v19  ;;  %11861 = vmatpush3.bf16.msra.mxu1 %v13744_v59  ;;  %11784 = vmatprep.mubr.bf16.mxu1 %v12310_v42  ;;  %v12318_v19 = vld [vmem:[#allocation9 + $0x228] sm:$0xff]   ;;  %v12315_v42 = vld [vmem:[#allocation2 + $0x48] sm:$0xff]   ;;  %v5626_v0 = vrot.slane %v5624_v16, 4 }
 0x1a0   : > { %v2445_v41 = vpop.f32.mrf.mxu0  ;;  %11862 = vmatprep.subr.bf16.mxu1 %v12313_v45  ;;  %v5613_v39 = vrot.slane %v5611_v30, 4  ;;  %v5640_v30 = vrot.slane %v5638_v21, 5 }
 0x1a1   : > { %v13989_v12 = vadd.f32 %v2445_v41, %v1689_v31  ;;  %11757 = vmatmul.mubr.bf16.gmra.mxu0 %v10685_v53  ;;  %v5637_v31 = vrot.slane %v5635_v36, 4  ;;  %v5648_v41 = vshrl.u32 %v5566_v58, 16  ;;  %v5627_v53 = vor.u32 %v5626_v0, %v5622_v2  ;;  %v5569_v58 = vld [vmem:[#allocation2 + $0x34] sm:$0xf]  ;;  %v5570_v0 = vld [vmem:[#allocation2 + $0x38] sm:$0x1] }
 0x1a2   : > { %v11514_v28 = vpop.f32.mrf.mxu1  ;;  %v11547_v59 = vpop.f32.mrf.mxu0  ;;  %11760 = vmatprep.mubr.bf16.mxu0 %v10686_v17  ;;  %v5617_v44 = vor.u32 %v5616_v3, %v5613_v39  ;;  %v5678_v60 = vshll.u32 %v5570_v0, 16 }
 0x1a3   : > { %11863 = vmatpush3.bf16.msra.mxu1 %v12313_v45  ;;  %v13992_v27 = vadd.f32 %v11514_v28, %v13869_v13  ;;  %v5650_v33 = vrot.slane %v5648_v41, 4  ;;  %v5628_v39 = vrot.slane %v5627_v53, 4  ;;  %v5641_v3 = vor.u32 %v5640_v30, %v5637_v31  ;;  %v12327_v41 = vld [vmem:[#allocation9 + $0x218] sm:$0xff]  }
 0x1a4   : > { %v1752_v51 = vpop.f32.mrf.mxu1  ;;  %11864 = vmatprep.subr.bf16.mxu1 %v12318_v19  ;;  %v13994_v16 = vpop.f32.mrf.mxu0  ;;  %v5618_v50 = vrot.slane %v5617_v44, 4  ;;  %v14003_v28 = vadd.f32 %v11547_v59, %v13916_v11  ;;  %v5668_v53 = vshll.u32 %v5569_v58, 16  ;;  %v5672_v30 = vshrl.u32 %v5569_v58, 16  ;;  %v12320_v59 = vld [vmem:[#allocation2 + $0x60] sm:$0xff]  }
 0x1a5   : > { %v13997_v45 = vadd.f32 %v13869_v13, %v1752_v51  ;;  %v5651_v25 = vor.u32 %v5650_v33, %v5646_v22  ;;  %v5662_v51 = vshll.u32 %v5568_v54, 16  ;;  %v5633_v44 = vsel %vm13235_vm11, %v5628_v39, %v5632_v40  ;;  %v5572_v40 = vld [vmem:[#allocation2 + $0x40] sm:$0xf] }
 0x1a6   : > { %v11515_v17 = vpop.f32.mrf.mxu1  ;;  %11785 = vmatmul.mubr.bf16.gmra.mxu1 %v12311_v56  ;;  %v5623_v36 = vsel %vm13235_vm11, %v5618_v50, %v5622_v2  ;;  %v12316_v56 = vld [vmem:[#allocation2 + $0x54] sm:$0xff]   ;;  %v5642_v31 = vrot.slane %v5641_v3, 4  ;;  %v5661_v2 = vrot.slane %v5659_v5, 4  ;;  %v5571_v50 = vld [vmem:[#allocation2 + $0x3c] sm:$0xf]  ;;  %v5670_v54 = vrot.slane %v5668_v53, 5 }
 0x1a7   : > { %v14000_v21 = vadd.f32 %v11515_v17, %v13869_v13  ;;  %11788 = vmatprep.mubr.bf16.mxu1 %v12315_v42  ;;  %11865 = vmatpush3.bf16.msra.mxu1 %v12318_v19  ;;  %v10720_v19 = vcombine.low %v5623_v36, %v5633_v44  ;;  %v5652_v42 = vrot.slane %v5651_v25, 4  ;;  %v5664_v17 = vrot.slane %v5662_v51, 5  ;;  %v12330_v39 = vld [vmem:[#allocation9 + $0x210] sm:$0xff]  }
 0x1a8   : > { %11866 = vmatprep.subr.bf16.mxu1 %v12323_v63  ;;  %v5647_v33 = vsel %vm13235_vm11, %v5642_v31, %v5646_v22  ;;  %v5674_v32 = vrot.slane %v5672_v30, 4  ;;  %v1755_v3 = vpop.f32.mrf.mxu1  ;;  %v5573_v36 = vld [vmem:[#allocation2 + $0x44] sm:$0x1]  ;;  %v5683_v25 = vshrl.u32 %v5571_v50, 16  ;;  %v5686_v5 = vshll.u32 %v5571_v50, 16 }
 0x1a9   : > { %11761 = vmatmul.mubr.bf16.gmra.mxu0 %v10687_v8  ;;  %v5657_v58 = vsel %vm13235_vm11, %v5652_v42, %v5656_v38  ;;  %v5665_v8 = vor.u32 %v5664_v17, %v5661_v2  ;;  %v5680_v31 = vrot.slane %v5678_v60, 5  ;;  %v5692_v53 = vshll.u32 %v5572_v40, 16  ;;  %v5574_v42 = vld [vmem:[#allocation2 + $0x48] sm:$0xf] }
 0x1aa   : > { %v14009_v11 = vpop.f32.mrf.mxu0  ;;  %11828 = vmatprep.mubr.bf16.mxu0 %v10720_v19  ;;  %v10721_v44 = vcombine.low %v5647_v33, %v5657_v58  ;;  %v5675_v22 = vor.u32 %v5674_v32, %v5670_v54  ;;  %v5685_v30 = vrot.slane %v5683_v25, 4  ;;  %v5688_v9 = vrot.slane %v5686_v5, 5  ;;  %v5576_v33 = vld [vmem:[#allocation2 + $0x50] sm:$0x1]  ;;  %v12325_v25 = vld [vmem:[#allocation2 + $0x78] sm:$0xff]  }
 0x1ab   : > { %11867 = vmatpush3.bf16.msra.mxu1 %v12323_v63  ;;  %v5666_v0 = vrot.slane %v5665_v8, 4  ;;  %v5696_v47 = vshrl.u32 %v5572_v40, 16  ;;  %v5694_v19 = vrot.slane %v5692_v53, 5  ;;  %v5702_v43 = vshll.u32 %v5573_v36, 16  ;;  %v12321_v58 = vld [vmem:[#allocation2 + $0x6c] sm:$0xff]   ;;  %v12333_v36 = vld [vmem:[#allocation9 + $0x208] sm:$0xff]  }
 0x1ac   : > { %v14015_v51 = vpop.f32.mrf.mxu0  ;;  %11868 = vmatprep.subr.bf16.mxu1 %v12327_v41  ;;  %v5676_v63 = vrot.slane %v5675_v22, 4  ;;  %v14018_v38 = vadd.f32 %v13869_v13, %v1755_v3  ;;  %v14022_v32 = vadd.f32 %v13869_v13, %v13900_v15  ;;  %v5689_v17 = vor.u32 %v5688_v9, %v5685_v30  ;;  %v5577_v22 = vld [vmem:[#allocation2 + $0x54] sm:$0xf] }
 0x1ad   : > { %v5671_v60 = vsel %vm13235_vm11, %v5666_v0, %v5670_v54  ;;  %v5698_v50 = vrot.slane %v5696_v47, 4  ;;  %v5704_v8 = vrot.slane %v5702_v43, 5  ;;  %v5726_v26 = vshll.u32 %v5576_v33, 16 }
 0x1ae   : > { %11789 = vmatmul.mubr.bf16.gmra.mxu1 %v12316_v56  ;;  %15640 = vst [vmem:[#allocation32_spill] sm:$0xff] %v14018_v38  ;;  %v11518_v2 = vpop.f32.mrf.mxu1  ;;  %v5575_v56 = vld [vmem:[#allocation2 + $0x4c] sm:$0xf]  ;;  %v14026_v40 = vpop.f32.mrf.mxu0  ;;  %v5681_v3 = vsel %vm13235_vm11, %v5676_v63, %v5680_v31  ;;  %v5690_v54 = vrot.slane %v5689_v17, 4  ;;  %v14039_v33 = vadd.f32 %v14009_v11, %v13936_v18  ;;  %v5580_v11 = vld [vmem:[#allocation2 + $0x60] sm:$0xf] }
 0x1af   : > { %11792 = vmatprep.mubr.bf16.mxu1 %v12320_v59  ;;  %11869 = vmatpush3.bf16.msra.mxu1 %v12327_v41  ;;  %v5707_v41 = vshrl.u32 %v5574_v42, 16  ;;  %v5710_v59 = vshll.u32 %v5574_v42, 16  ;;  %v10722_v5 = vcombine.low %v5671_v60, %v5681_v3  ;;  %v5699_v9 = vor.u32 %v5698_v50, %v5694_v19  ;;  %v5579_v42 = vld [vmem:[#allocation2 + $0x5c] sm:$0x1] }
 0x1b0   : > { %11870 = vmatprep.subr.bf16.mxu1 %v12330_v39  ;;  %v1768_v15 = vpop.f32.mrf.mxu1  ;;  %v5716_v47 = vshll.u32 %v5575_v56, 16  ;;  %v5720_v30 = vshrl.u32 %v5575_v56, 16  ;;  %v5695_v43 = vsel %vm13235_vm11, %v5690_v54, %v5694_v19  ;;  %v14035_v17 = vpop.f32.mrf.mxu0  ;;  %v5728_v56 = vrot.slane %v5726_v26, 5 }
 0x1b1   : > { %11829 = vmatmul.mubr.bf16.vlgmr.msra.gmra.mxu0 %v10721_v44  ;;  %v5709_v53 = vrot.slane %v5707_v41, 4  ;;  %v5712_v0 = vrot.slane %v5710_v59, 5  ;;  %v5700_v31 = vrot.slane %v5699_v9, 4  ;;  %v14033_v44 = vadd.f32 %v11518_v2, %v13869_v13 }
 0x1b2   : > { %11832 = vmatprep.mubr.bf16.mxu0 %v10722_v5  ;;  %v5718_v63 = vrot.slane %v5716_v47, 5  ;;  %v11519_v60 = vpop.f32.mrf.mxu1  ;;  %v5722_v3 = vrot.slane %v5720_v30, 4  ;;  %v5734_v41 = vshll.u32 %v5577_v22, 16  ;;  %v5740_v59 = vshll.u32 %v5578_v1, 16 }
 0x1b3   : > { %11871 = vmatpush3.bf16.msra.mxu1 %v12330_v39  ;;  %v5713_v50 = vor.u32 %v5712_v0, %v5709_v53  ;;  %v5705_v19 = vsel %vm13235_vm11, %v5700_v31, %v5704_v8  ;;  %v5731_v39 = vshrl.u32 %v5577_v22, 16  ;;  %v5744_v9 = vshrl.u32 %v5578_v1, 16 }
 0x1b4   : > { %11872 = vmatprep.subr.bf16.mxu1 %v12333_v36  ;;  %v10723_v2 = vcombine.low %v5695_v43, %v5705_v19  ;;  %v5723_v54 = vor.u32 %v5722_v3, %v5718_v63  ;;  %v5736_v53 = vrot.slane %v5734_v41, 5  ;;  %v5742_v26 = vrot.slane %v5740_v59, 5  ;;  %v1771_v18 = vpop.f32.mrf.mxu1  ;;  %v12326_v43 = vld [vmem:[#allocation2 + $0x84] sm:$0xff]  }
 0x1b5   : > { %v5714_v5 = vrot.slane %v5713_v50, 4  ;;  %v5733_v47 = vrot.slane %v5731_v39, 4  ;;  %v5750_v0 = vshll.u32 %v5579_v42, 16  ;;  %v5746_v22 = vrot.slane %v5744_v9, 4  ;;  %v5581_v50 = vld [vmem:[#allocation2 + $0x64] sm:$0xf] }
 0x1b6   : > { %11793 = vmatmul.mubr.bf16.gmra.mxu1 %v12321_v58  ;;  %v5724_v31 = vrot.slane %v5723_v54, 4  ;;  %v14046_v58 = vadd.f32 %v13869_v13, %v1768_v15  ;;  %v14050_v42 = vadd.f32 %v14015_v51, %v13940_v29  ;;  %v14059_v15 = vadd.f32 %v14026_v40, %v13948_v49  ;;  %v5582_v41 = vld [vmem:[#allocation2 + $0x68] sm:$0x1]  ;;  %v12328_v51 = vld [vmem:[#allocation2 + $0x90] sm:$0xff]   ;;  %v5583_v40 = vld [vmem:[#allocation2 + $0x6c] sm:$0xf] }
 0x1b7   : > { %11796 = vmatprep.mubr.bf16.mxu1 %v12325_v25  ;;  %11873 = vmatpush3.bf16.msra.mxu1 %v12333_v36  ;;  %v5719_v8 = vsel %vm13235_vm11, %v5714_v5, %v5718_v63  ;;  %v5737_v1 = vor.u32 %v5736_v53, %v5733_v47  ;;  %v5752_v25 = vrot.slane %v5750_v0, 5  ;;  %v14053_v36 = vadd.f32 %v11519_v60, %v13869_v13 }
 0x1b8   : > { %v11554_v30 = vpop.f32.mrf.mxu0  ;;  %11874 = vmatprep.subr.bf16.mxu1 %v12336_v10  ;;  %v5729_v63 = vsel %vm13235_vm11, %v5724_v31, %v5728_v56  ;;  %v5747_v19 = vor.u32 %v5746_v22, %v5742_v26  ;;  %v14062_v39 = vadd.f32 %v13869_v13, %v1771_v18  ;;  %v14066_v29 = vadd.f32 %v13920_v20, %v13869_v13 }
 0x1b9   : > { %11833 = vmatmul.mubr.bf16.gmra.mxu0 %v10723_v2  ;;  %v10724_v60 = vcombine.low %v5719_v8, %v5729_v63  ;;  %v5738_v59 = vrot.slane %v5737_v1, 4  ;;  %v5755_v2 = vshrl.u32 %v5580_v11, 16  ;;  %v5758_v9 = vshll.u32 %v5580_v11, 16  ;;  %v5584_v8 = vld [vmem:[#allocation2 + $0x70] sm:$0xf] }
 0x1ba   : > { %v2477_v3 = vpop.f32.mrf.mxu0  ;;  %15641 = vst [vmem:[#allocation33_spill] sm:$0xff] %v14062_v39  ;;  %v5748_v54 = vrot.slane %v5747_v19, 4  ;;  %v5764_v47 = vshll.u32 %v5581_v50, 16  ;;  %v5768_v49 = vshrl.u32 %v5581_v50, 16  ;;  %v5774_v18 = vshll.u32 %v5582_v41, 16 }
 0x1bb   : > { %v11522_v5 = vpop.f32.mrf.mxu1  ;;  %11875 = vmatpush3.bf16.msra.mxu1 %v12336_v10  ;;  %11836 = vmatprep.mubr.bf16.mxu0 %v10724_v60  ;;  %v5743_v53 = vsel %vm13235_vm11, %v5738_v59, %v5742_v26  ;;  %v5757_v0 = vrot.slane %v5755_v2, 4  ;;  %v5760_v22 = vrot.slane %v5758_v9, 5  ;;  %v5585_v50 = vld [vmem:[#allocation2 + $0x74] sm:$0x1]  ;;  %v14076_v26 = vadd.f32 %v11554_v30, %v13956_v48 }
 0x1bc   : > { %v11555_v56 = vpop.f32.mrf.mxu0  ;;  %v14071_v20 = vadd.f32 %v11522_v5, %v13869_v13  ;;  %v5753_v10 = vsel %vm13235_vm11, %v5748_v54, %v5752_v25  ;;  %v5766_v11 = vrot.slane %v5764_v47, 5  ;;  %v5770_v1 = vrot.slane %v5768_v49, 4  ;;  %v12329_v49 = vld [vmem:[#allocation2 + $0x9c] sm:$0xff]  }
 0x1bd   : > { %v1784_v31 = vpop.f32.mrf.mxu1  ;;  %v10725_v63 = vcombine.low %v5743_v53, %v5753_v10  ;;  %v5776_v19 = vrot.slane %v5774_v18, 5  ;;  %v5779_v41 = vshrl.u32 %v5583_v40, 16  ;;  %v5761_v2 = vor.u32 %v5760_v22, %v5757_v0  ;;  %v12331_v0 = vld [vmem:[#allocation2 + $0xa8] sm:$0xff]  }
 0x1be   : > { %11797 = vmatmul.mubr.bf16.gmra.mxu1 %v12326_v43  ;;  %v14078_v59 = vpop.f32.mrf.mxu0  ;;  %v5771_v5 = vor.u32 %v5770_v1, %v5766_v11  ;;  %v5782_v43 = vshll.u32 %v5583_v40, 16  ;;  %v5788_v37 = vshll.u32 %v5584_v8, 16  ;;  %v5792_v54 = vshrl.u32 %v5584_v8, 16  ;;  %v5587_v1 = vld [vmem:[#allocation2 + $0x7c] sm:$0xf] }
 0x1bf   : > { %11800 = vmatprep.mubr.bf16.mxu1 %v12328_v51  ;;  %v11523_v60 = vpop.f32.mrf.mxu1  ;;  %v5781_v25 = vrot.slane %v5779_v41, 4  ;;  %v5798_v9 = vshll.u32 %v5585_v50, 16  ;;  %v14081_v47 = vadd.f32 %v13869_v13, %v1784_v31  ;;  %v5762_v53 = vrot.slane %v5761_v2, 4  ;;  %v5586_v31 = vld [vmem:[#allocation2 + $0x78] sm:$0xf] }
 0x1c0   : > { %v5772_v48 = vrot.slane %v5771_v5, 4  ;;  %v5784_v30 = vrot.slane %v5782_v43, 5  ;;  %v5790_v18 = vrot.slane %v5788_v37, 5  ;;  %v14085_v10 = vadd.f32 %v13922_v14, %v13908_v24  ;;  %v5588_v2 = vld [vmem:[#allocation2 + $0x80] sm:$0x1] }
 0x1c1   : > { %11837 = vmatmul.mubr.bf16.gmra.mxu0 %v10725_v63  ;;  %v1787_v51 = vpop.f32.mrf.mxu1  ;;  %v5794_v40 = vrot.slane %v5792_v54, 4  ;;  %v14088_v22 = vadd.f32 %v2477_v3, %v13966_v35  ;;  %v14091_v8 = vadd.f32 %v11523_v60, %v13869_v13  ;;  %v5767_v41 = vsel %vm13235_vm11, %v5762_v53, %v5766_v11  ;;  %v6380_v43 = vld [vmem:[#allocation2 + $0x18] sm:$0xe] }
 0x1c2   : > { %v5777_v37 = vsel %vm13235_vm11, %v5772_v48, %v5776_v19  ;;  %v5785_v24 = vor.u32 %v5784_v30, %v5781_v25  ;;  %v14098_v14 = vadd.f32 %v11555_v56, %v13976_v4  ;;  %v5800_v5 = vrot.slane %v5798_v9, 5  ;;  %v6381_v48 = vld [vmem:[#allocation2 + $0x1c] sm:$0xf] }
 0x1c3   : > { %15642 = vst [vmem:[#allocation34_spill] sm:$0xff] %v14088_v22  ;;  %15643 = vst [vmem:[#allocation35_spill] sm:$0xff] %v14091_v8  ;;  %v11590_v63 = vpop.f32.mrf.mxu1  ;;  %v10726_v35 = vcombine.low %v5767_v41, %v5777_v37  ;;  %v5795_v3 = vor.u32 %v5794_v40, %v5790_v18  ;;  %v14101_v60 = vadd.f32 %v13869_v13, %v1787_v51  ;;  %v5803_v53 = vshrl.u32 %v5586_v31, 16  ;;  %v6382_v51 = vld [vmem:[#allocation2 + $0x20] sm:$0x1] }
 0x1c4   : > { %v11558_v50 = vpop.f32.mrf.mxu0  ;;  %15644 = vst [vmem:[#allocation36_spill] sm:$0xff] %v14098_v14  ;;  %v5786_v11 = vrot.slane %v5785_v24, 4  ;;  %v5806_v19 = vshll.u32 %v5586_v31, 16  ;;  %v5812_v25 = vshll.u32 %v5587_v1, 16  ;;  %v14109_v4 = vadd.f32 %v13994_v16, %v13926_v46  ;;  %v5589_v37 = vld [vmem:[#allocation2 + $0x84] sm:$0xf] }
 0x1c5   : > { %15645 = vst [vmem:[#allocation37_spill] sm:$0xff] %v14101_v60  ;;  %v14105_v38 = vpop.f32.mrf.mxu1  ;;  %11840 = vmatprep.mubr.bf16.mxu0 %v10726_v35  ;;  %v5796_v56 = vrot.slane %v5795_v3, 4  ;;  %v5816_v13 = vshrl.u32 %v5587_v1, 16  ;;  %v5822_v9 = vshll.u32 %v5588_v2, 16  ;;  %v5805_v40 = vrot.slane %v5803_v53, 4  ;;  %v12332_v2 = vld [vmem:[#allocation2 + $0xb4] sm:$0xff]  }
 0x1c6   : > { %v14103_v54 = vpop.f32.mrf.mxu0  ;;  %11801 = vmatmul.mubr.bf16.gmra.mxu1 %v12329_v49  ;;  %v5791_v49 = vsel %vm13235_vm11, %v5786_v11, %v5790_v18  ;;  %v5808_v41 = vrot.slane %v5806_v19, 5  ;;  %v5814_v31 = vrot.slane %v5812_v25, 5  ;;  %v6478_v35 = vrot.slane %v6381_v48, 5  ;;  %v5590_v3 = vld [vmem:[#allocation2 + $0x88] sm:$0xf]  ;;  %v12334_v11 = vld [vmem:[#allocation2 + $0xc0] sm:$0xff]  }
 0x1c7   : > { %11804 = vmatprep.mubr.bf16.mxu1 %v12331_v0  ;;  %v14111_v30 = vpop.f32.mrf.mxu1  ;;  %v5801_v46 = vsel %vm13235_vm11, %v5796_v56, %v5800_v5  ;;  %v5818_v16 = vrot.slane %v5816_v13, 4  ;;  %v10744_v0 = vrot.slane %v6380_v43, 9  ;;  %v6481_v14 = vrot.slane %v6382_v51, 5  ;;  %v5591_v18 = vld [vmem:[#allocation2 + $0x8c] sm:$0x1] }
 0x1c8   : > { %v11559_v24 = vpop.f32.mrf.mxu0  ;;  %v10727_v60 = vcombine.low %v5791_v49, %v5801_v46  ;;  %v5809_v39 = vor.u32 %v5808_v41, %v5805_v40  ;;  %v14118_v8 = vadd.f32 %v11558_v50, %v13985_v61  ;;  %v5824_v19 = vrot.slane %v5822_v9, 5  ;;  %v6383_v49 = vld [vmem:[#allocation2 + $0x24] sm:$0xe]  ;;  %v6384_v41 = vld [vmem:[#allocation2 + $0x28] sm:$0xf] }
 0x1c9   : > { %v3029_v1 = vpop.f32.mrf.mxu1  ;;  %v5819_v53 = vor.u32 %v5818_v16, %v5814_v31  ;;  %v6480_v25 = vrot.slane %v6478_v35, 4  ;;  %v14121_v22 = vadd.f32 %v11590_v63, %v13888_v57  ;;  %v5827_v48 = vshrl.u32 %v5589_v37, 16 }
 0x1ca   : > { %15646 = vst [vmem:[#allocation38_spill] sm:$0xff] %v14118_v8  ;;  %11841 = vmatmul.mubr.bf16.gmra.mxu0 %v10727_v60  ;;  %v5810_v43 = vrot.slane %v5809_v39, 4  ;;  %v5830_v56 = vshll.u32 %v5589_v37, 16  ;;  %v5836_v13 = vshll.u32 %v5590_v3, 16  ;;  %v14125_v51 = vpop.f32.mrf.mxu0  ;;  %v6479_v50 = vsel %vm13407_vm14, %v10744_v0, %v6478_v35  ;;  %v6385_v37 = vld [vmem:[#allocation2 + $0x2c] sm:$0x1] }
 0x1cb   : > { %15647 = vst [vmem:[#allocation39_spill] sm:$0xff] %v14121_v22  ;;  %v14123_v5 = vpop.f32.mrf.mxu1  ;;  %15648 = vst [vmem:[#allocation40_spill] sm:$0xff] %v14125_v51  ;;  %v5820_v61 = vrot.slane %v5819_v53, 4  ;;  %v5840_v40 = vshrl.u32 %v5590_v3, 16  ;;  %v5846_v9 = vshll.u32 %v5591_v18, 16  ;;  %v6482_v39 = vsel %vm13407_vm14, %v6480_v25, %v6481_v14 }
 0x1cc   : > { %v5815_v57 = vsel %vm13235_vm11, %v5810_v43, %v5814_v31  ;;  %v5829_v63 = vrot.slane %v5827_v48, 4  ;;  %v5832_v60 = vrot.slane %v5830_v56, 5  ;;  %v5838_v0 = vrot.slane %v5836_v13, 5  ;;  %v12335_v48 = vld [vmem:[#allocation2 + $0xcc] sm:$0xff]  }
 0x1cd   : > { %v14129_v46 = vpop.f32.mrf.mxu1  ;;  %v5825_v16 = vsel %vm13235_vm11, %v5820_v61, %v5824_v19  ;;  %v5842_v35 = vrot.slane %v5840_v40, 4  ;;  %v5848_v3 = vrot.slane %v5846_v9, 5  ;;  %v10745_v51 = vrot.slane %v6383_v49, 9  ;;  %v5592_v19 = vld [vmem:[#allocation2 + $0x90] sm:$0xf] }
 0x1ce   : > { %11805 = vmatmul.mubr.bf16.gmra.mxu1 %v12332_v2  ;;  %v10728_v53 = vcombine.low %v5815_v57, %v5825_v16  ;;  %v5833_v2 = vor.u32 %v5832_v60, %v5829_v63  ;;  %v6485_v22 = vrot.slane %v6384_v41, 5  ;;  %v6488_v8 = vrot.slane %v6385_v37, 5  ;;  %v5594_v41 = vld [vmem:[#allocation2 + $0x98] sm:$0x1]  ;;  %v6386_v57 = vld [vmem:[#allocation2 + $0x30] sm:$0xe] }
 0x1cf   : > { %11808 = vmatprep.mubr.bf16.mxu1 %v12334_v11  ;;  %v14137_v18 = vpop.f32.mrf.mxu1  ;;  %v5843_v43 = vor.u32 %v5842_v35, %v5838_v0  ;;  %v14141_v14 = vadd.f32 %v14103_v54, %v14022_v32  ;;  %v14145_v11 = vadd.f32 %v14105_v38, %v13918_v23  ;;  %v14154_v61 = vadd.f32 %v11559_v24, %v14066_v29  ;;  %v5593_v32 = vld [vmem:[#allocation2 + $0x94] sm:$0xf]  ;;  %v5595_v35 = vld [vmem:[#allocation2 + $0x9c] sm:$0xf] }
 0x1d0   : > { %11844 = vmatprep.mubr.bf16.mxu0 %v10728_v53  ;;  %v5834_v56 = vrot.slane %v5833_v2, 4  ;;  %v14151_v13 = vsel %vm13407_vm14, %v10745_v51, %v6485_v22  ;;  %v6487_v49 = vrot.slane %v6485_v22, 4  ;;  %v10760_v40 = vcombine.low %v6479_v50, %v6482_v39  ;;  %v6387_v63 = vld [vmem:[#allocation2 + $0x34] sm:$0xf]  ;;  %v6388_v39 = vld [vmem:[#allocation2 + $0x38] sm:$0x1] }
 0x1d1   : > { %v11562_v31 = vpop.f32.mrf.mxu0  ;;  %v14147_v25 = vpop.f32.mrf.mxu1  ;;  %v5844_v23 = vrot.slane %v5843_v43, 4  ;;  %v14160_v38 = vadd.f32 %v14111_v30, %v13928_v34  ;;  %v14163_v9 = vadd.f32 %v3029_v1, %v14085_v10  ;;  %v5851_v22 = vshrl.u32 %v5592_v19, 16 }
 0x1d2   : > { %v5839_v51 = vsel %vm13235_vm11, %v5834_v56, %v5838_v0  ;;  %v6489_v29 = vsel %vm13407_vm14, %v6487_v49, %v6488_v8  ;;  %v5854_v24 = vshll.u32 %v5592_v19, 16  ;;  %v5860_v10 = vshll.u32 %v5593_v32, 16  ;;  %v5596_v56 = vld [vmem:[#allocation2 + $0xa0] sm:$0xf] }
 0x1d3   : > { %v14156_v54 = vpop.f32.mrf.mxu0  ;;  %15649 = vst [vmem:[#allocation41_spill] sm:$0xff] %v14163_v9  ;;  %v5849_v34 = vsel %vm13235_vm11, %v5844_v23, %v5848_v3  ;;  %v10761_v30 = vcombine.low %v14151_v13, %v6489_v29  ;;  %v5864_v1 = vshrl.u32 %v5593_v32, 16  ;;  %v5853_v16 = vrot.slane %v5851_v22, 4 }
 0x1d4   : > { %v10729_v37 = vcombine.low %v5839_v51, %v5849_v34  ;;  %v5856_v8 = vrot.slane %v5854_v24, 5  ;;  %v5870_v0 = vshll.u32 %v5594_v41, 16  ;;  %v5862_v53 = vrot.slane %v5860_v10, 5 }
 0x1d5   : > { %v14169_v50 = vpop.f32.mrf.mxu0  ;;  %v5866_v2 = vrot.slane %v5864_v1, 4  ;;  %v10746_v43 = vrot.slane %v6386_v57, 9  ;;  %v6492_v19 = vrot.slane %v6387_v63, 5  ;;  %v6495_v32 = vrot.slane %v6388_v39, 5 }
 0x1d6   : > { %v14174_v60 = vpop.f32.mrf.mxu1  ;;  %11809 = vmatmul.mubr.bf16.gmra.mxu1 %v12335_v48  ;;  %11845 = vmatmul.mubr.bf16.gmra.mxu0 %v10729_v37  ;;  %v5857_v13 = vor.u32 %v5856_v8, %v5853_v16  ;;  %v5872_v49 = vrot.slane %v5870_v0, 5  ;;  %v14179_v23 = vadd.f32 %v11562_v31, %v13992_v27  ;;  %v5597_v48 = vld [vmem:[#allocation2 + $0xa4] sm:$0x1]  ;;  %v14187_v22 = vadd.f32 %v14123_v5, %v13968_v7  ;;  %v6389_v27 = vld [vmem:[#allocation2 + $0x3c] sm:$0xe] }
 0x1d7   : > { %11876 = vmatprep.mubr.bf16.mxu1 %v10760_v40  ;;  %v14181_v51 = vpop.f32.mrf.mxu0  ;;  %v5867_v41 = vor.u32 %v5866_v2, %v5862_v53  ;;  %v6493_v40 = vsel %vm13407_vm14, %v10746_v43, %v6492_v19  ;;  %v6494_v29 = vrot.slane %v6492_v19, 4  ;;  %v5875_v63 = vshrl.u32 %v5595_v35, 16  ;;  %v6390_v16 = vld [vmem:[#allocation2 + $0x40] sm:$0xf]  ;;  %v6391_v2 = vld [vmem:[#allocation2 + $0x44] sm:$0x1] }
 0x1d8   : > { %v14176_v3 = vpop.f32.mrf.mxu1  ;;  %15650 = vst [vmem:[#allocation42_spill] sm:$0xff] %v14181_v51  ;;  %v5858_v57 = vrot.slane %v5857_v13, 4  ;;  %v5878_v34 = vshll.u32 %v5595_v35, 16  ;;  %v5884_v10 = vshll.u32 %v5596_v56, 16  ;;  %v5888_v39 = vshrl.u32 %v5596_v56, 16 }
 0x1d9   : > { %v5868_v31 = vrot.slane %v5867_v41, 4  ;;  %v6496_v1 = vsel %vm13407_vm14, %v6494_v29, %v6495_v32  ;;  %v5894_v37 = vshll.u32 %v5597_v48, 16  ;;  %v5877_v7 = vrot.slane %v5875_v63, 4  ;;  %v5598_v63 = vld [vmem:[#allocation2 + $0xa8] sm:$0xf] }
 0x1da   : > { %v14189_v24 = vpop.f32.mrf.mxu1  ;;  %v5863_v8 = vsel %vm13235_vm11, %v5858_v57, %v5862_v53  ;;  %v10762_v0 = vcombine.low %v6493_v40, %v6496_v1  ;;  %v5880_v5 = vrot.slane %v5878_v34, 5  ;;  %v5886_v19 = vrot.slane %v5884_v10, 5 }
 0x1db   : > { %v5873_v35 = vsel %vm13235_vm11, %v5868_v31, %v5872_v49  ;;  %v5890_v13 = vrot.slane %v5888_v39, 4  ;;  %v5896_v41 = vrot.slane %v5894_v37, 5  ;;  %v10747_v48 = vrot.slane %v6389_v27, 9  ;;  %v5599_v31 = vld [vmem:[#allocation2 + $0xac] sm:$0xf] }
 0x1dc   : > { %v14197_v9 = vpop.f32.mrf.mxu1  ;;  %v10730_v56 = vcombine.low %v5863_v8, %v5873_v35  ;;  %v5881_v32 = vor.u32 %v5880_v5, %v5877_v7  ;;  %v6499_v29 = vrot.slane %v6390_v16, 5  ;;  %v6502_v40 = vrot.slane %v6391_v2, 5  ;;  %v5600_v39 = vld [vmem:[#allocation2 + $0xb0] sm:$0x1]  ;;  %v6392_v16 = vld [vmem:[#allocation2 + $0x48] sm:$0xe] }
 0x1dd   : > { %v11566_v43 = vpop.f32.mrf.mxu0  ;;  %v5891_v53 = vor.u32 %v5890_v13, %v5886_v19  ;;  %v14203_v57 = vadd.f32 %v14156_v54, %v13997_v45  ;;  %v14207_v49 = vadd.f32 %v14129_v46, %v13989_v12  ;;  %v14213_v27 = vadd.f32 %v14169_v50, %v14000_v21  ;;  %v6393_v8 = vld [vmem:[#allocation2 + $0x4c] sm:$0xf]  ;;  %v5601_v13 = vld [vmem:[#allocation2 + $0xb4] sm:$0xf] }
 0x1de   : > { %11877 = vmatmul.mubr.bf16.vlgmr.msra.gmra.mxu1 %v10761_v30  ;;  %11848 = vmatprep.mubr.bf16.mxu0 %v10730_v56  ;;  %v5882_v30 = vrot.slane %v5881_v32, 4  ;;  %v6500_v34 = vsel %vm13407_vm14, %v10747_v48, %v6499_v29  ;;  %v6501_v10 = vrot.slane %v6499_v29, 4  ;;  %v14219_v45 = vadd.f32 %v14035_v17, %v13952_v55 }
 0x1df   : > { %v14199_v51 = vpop.f32.mrf.mxu0  ;;  %11880 = vmatprep.mubr.bf16.mxu1 %v10762_v0  ;;  %v5892_v12 = vrot.slane %v5891_v53, 4  ;;  %v14223_v46 = vadd.f32 %v14137_v18, %v14003_v28  ;;  %v14227_v54 = vadd.f32 %v14147_v25, %v14109_v4  ;;  %v5899_v55 = vshrl.u32 %v5598_v63, 16  ;;  %v6394_v25 = vld [vmem:[#allocation2 + $0x50] sm:$0x1] }
 0x1e0   : > { %v5887_v21 = vsel %vm13235_vm11, %v5882_v30, %v5886_v19  ;;  %v6503_v50 = vsel %vm13407_vm14, %v6501_v10, %v6502_v40  ;;  %v5902_v17 = vshll.u32 %v5598_v63, 16  ;;  %v5908_v0 = vshll.u32 %v5599_v31, 16  ;;  %v5602_v40 = vld [vmem:[#allocation2 + $0xb8] sm:$0xf] }
 0x1e1   : > { %v14215_v1 = vpop.f32.mrf.mxu0  ;;  %15651 = vst [vmem:[#allocation43_spill] sm:$0xff] %v14227_v54  ;;  %v5897_v28 = vsel %vm13235_vm11, %v5892_v12, %v5896_v41  ;;  %v10763_v18 = vcombine.low %v6500_v34, %v6503_v50  ;;  %v5912_v4 = vshrl.u32 %v5599_v31, 16  ;;  %v5901_v2 = vrot.slane %v5899_v55, 4  ;;  %v5603_v31 = vld [vmem:[#allocation2 + $0xbc] sm:$0x1] }
 0x1e2   : > { %v14229_v37 = vpop.f32.mrf.mxu1  ;;  %v10731_v5 = vcombine.low %v5887_v21, %v5897_v28  ;;  %v5904_v35 = vrot.slane %v5902_v17, 5  ;;  %v5918_v19 = vshll.u32 %v5600_v39, 16  ;;  %v5910_v32 = vrot.slane %v5908_v0, 5  ;;  %v6395_v55 = vld [vmem:[#allocation2 + $0x54] sm:$0xe] }
 0x1e3   : > { %v14239_v56 = vpop.f32.mrf.mxu0  ;;  %v5914_v48 = vrot.slane %v5912_v4, 4  ;;  %v10748_v29 = vrot.slane %v6392_v16, 9  ;;  %v6506_v53 = vrot.slane %v6393_v8, 5  ;;  %v6509_v34 = vrot.slane %v6394_v25, 5  ;;  %v6396_v17 = vld [vmem:[#allocation2 + $0x58] sm:$0xf] }
 0x1e4   : > { %v14237_v7 = vpop.f32.mrf.mxu1  ;;  %15652 = vst [vmem:[#allocation44_spill] sm:$0xff] %v14239_v56  ;;  %11849 = vmatmul.mubr.bf16.gmra.mxu0 %v10731_v5  ;;  %v5905_v41 = vor.u32 %v5904_v35, %v5901_v2  ;;  %v5920_v30 = vrot.slane %v5918_v19, 5  ;;  %v14244_v10 = vadd.f32 %v11566_v43, %v14033_v44  ;;  %v14250_v50 = vadd.f32 %v14174_v60, %v14039_v33  ;;  %v6397_v44 = vld [vmem:[#allocation2 + $0x5c] sm:$0x1]  ;;  %v5604_v54 = vld [vmem:[#allocation2 + $0xc0] sm:$0xf] }
 0x1e5   : > { %v5915_v12 = vor.u32 %v5914_v48, %v5910_v32  ;;  %v6507_v39 = vsel %vm13407_vm14, %v10748_v29, %v6506_v53  ;;  %v6508_v21 = vrot.slane %v6506_v53, 4  ;;  %v5923_v28 = vshrl.u32 %v5601_v13, 16 }
 0x1e6   : > { %v14241_v63 = vpop.f32.mrf.mxu1  ;;  %11881 = vmatmul.mubr.bf16.gmra.mxu1 %v10763_v18  ;;  %v5906_v8 = vrot.slane %v5905_v41, 4  ;;  %v5926_v18 = vshll.u32 %v5601_v13, 16  ;;  %v5932_v0 = vshll.u32 %v5602_v40, 16  ;;  %v5936_v5 = vshrl.u32 %v5602_v40, 16 }
 0x1e7   : > { %v5916_v4 = vrot.slane %v5915_v12, 4  ;;  %v6510_v25 = vsel %vm13407_vm14, %v6508_v21, %v6509_v34  ;;  %v5942_v2 = vshll.u32 %v5603_v31, 16  ;;  %v5925_v19 = vrot.slane %v5923_v28, 4 }
 0x1e8   : > { %v14252_v16 = vpop.f32.mrf.mxu1  ;;  %v5911_v33 = vsel %vm13235_vm11, %v5906_v8, %v5910_v32  ;;  %v10764_v60 = vcombine.low %v6507_v39, %v6510_v25  ;;  %v5928_v48 = vrot.slane %v5926_v18, 5  ;;  %v5934_v53 = vrot.slane %v5932_v0, 5  ;;  %v5605_v32 = vld [vmem:[#allocation2 + $0xc4] sm:$0xf]  ;;  %v5606_v0 = vld [vmem:[#allocation2 + $0xc8] sm:$0x1] }
 0x1e9   : > { %v14254_v43 = vpop.f32.mrf.mxu0  ;;  %v5921_v13 = vsel %vm13235_vm11, %v5916_v4, %v5920_v30  ;;  %v5938_v41 = vrot.slane %v5936_v5, 4  ;;  %v5944_v12 = vrot.slane %v5942_v2, 5  ;;  %v10749_v21 = vrot.slane %v6395_v55, 9  ;;  %v6398_v5 = vld [vmem:[#allocation2 + $0x60] sm:$0xe] }
 0x1ea   : > { %v14258_v35 = vpop.f32.mrf.mxu1  ;;  %v10732_v40 = vcombine.low %v5911_v33, %v5921_v13  ;;  %11884 = vmatprep.mubr.bf16.mxu1 %v10764_v60  ;;  %v5929_v31 = vor.u32 %v5928_v48, %v5925_v19  ;;  %v6513_v56 = vrot.slane %v6396_v17, 5  ;;  %v6516_v28 = vrot.slane %v6397_v44, 5  ;;  %v6400_v33 = vld [vmem:[#allocation2 + $0x68] sm:$0x1]  ;;  %v5608_v13 = vld [vmem:[#allocation2 + $0xd0] sm:$0xf] }
 0x1eb   : > { %v14262_v29 = vpop.f32.mrf.mxu0  ;;  %v5939_v8 = vor.u32 %v5938_v41, %v5934_v53  ;;  %v14272_v18 = vadd.f32 %v14199_v51, %v14046_v58  ;;  %v14276_v30 = vadd.f32 %v14176_v3, %v14050_v42  ;;  %v14284_v44 = vadd.f32 %v14215_v1, %v14053_v36  ;;  %v6399_v58 = vld [vmem:[#allocation2 + $0x64] sm:$0xf] }
 0x1ec   : > { %v14266_v34 = vpop.f32.mrf.mxu1  ;;  %11852 = vmatprep.mubr.bf16.mxu0 %v10732_v40  ;;  %v5930_v25 = vrot.slane %v5929_v31, 4  ;;  %v6514_v55 = vsel %vm13407_vm14, %v10749_v21, %v6513_v56  ;;  %v6515_v17 = vrot.slane %v6513_v56, 4  ;;  %v14290_v42 = vadd.f32 %v14078_v59, %v13980_v62 }
 0x1ed   : > { %v14268_v39 = vpop.f32.mrf.mxu0  ;;  %v5940_v3 = vrot.slane %v5939_v8, 4  ;;  %v14294_v2 = vadd.f32 %v14189_v24, %v14059_v15  ;;  %v14298_v56 = vadd.f32 %v14197_v9, %v14219_v45  ;;  %v5947_v62 = vshrl.u32 %v5604_v54, 16  ;;  %v5607_v45 = vld [vmem:[#allocation2 + $0xcc] sm:$0xf]  ;;  %v5609_v8 = vld [vmem:[#allocation2 + $0xd4] sm:$0x1] }
 0x1ee   : > { %v14278_v4 = vpop.f32.mrf.mxu1  ;;  %v5935_v1 = vsel %vm13235_vm11, %v5930_v25, %v5934_v53  ;;  %v6517_v60 = vsel %vm13407_vm14, %v6515_v17, %v6516_v28  ;;  %v5950_v59 = vshll.u32 %v5604_v54, 16  ;;  %v5956_v48 = vshll.u32 %v5605_v32, 16 }
 0x1ef   : > { %v14286_v51 = vpop.f32.mrf.mxu0  ;;  %15654 = vst [vmem:[#allocation46_spill] sm:$0xff] %v14298_v56  ;;  %v5945_v15 = vsel %vm13235_vm11, %v5940_v3, %v5944_v12  ;;  %v10765_v24 = vcombine.low %v6514_v55, %v6517_v60  ;;  %v5960_v9 = vshrl.u32 %v5605_v32, 16  ;;  %v5949_v31 = vrot.slane %v5947_v62, 4 }
 0x1f0   : > { %15653 = vst [vmem:[#allocation45_spill] sm:$0xff] %v14286_v51  ;;  %v14300_v36 = vpop.f32.mrf.mxu1  ;;  %v10733_v40 = vcombine.low %v5935_v1, %v5945_v15  ;;  %v5952_v53 = vrot.slane %v5950_v59, 5  ;;  %v5966_v21 = vshll.u32 %v5606_v0, 16  ;;  %v5958_v54 = vrot.slane %v5956_v48, 5  ;;  %v6402_v15 = vld [vmem:[#allocation2 + $0x70] sm:$0xf] }
 0x1f1   : > { %15655 = vst [vmem:[#allocation47_spill] sm:$0xff] %v14300_v36  ;;  %v14306_v19 = vpop.f32.mrf.mxu0  ;;  %11885 = vmatmul.mubr.bf16.gmra.mxu1 %v10765_v24  ;;  %v5962_v25 = vrot.slane %v5960_v9, 4  ;;  %v10750_v17 = vrot.slane %v6398_v5, 9  ;;  %v6520_v36 = vrot.slane %v6399_v58, 5  ;;  %v6523_v3 = vrot.slane %v6400_v33, 5 }
 0x1f2   : > { %v14310_v41 = vpop.f32.mrf.mxu1  ;;  %11853 = vmatmul.mubr.bf16.gmra.mxu0 %v10733_v40  ;;  %v5953_v32 = vor.u32 %v5952_v53, %v5949_v31  ;;  %v5968_v55 = vrot.slane %v5966_v21, 5  ;;  %v14318_v1 = vadd.f32 %v14254_v43, %v14071_v20  ;;  %v14326_v5 = vadd.f32 %v14229_v37, %v14076_v26  ;;  %v6401_v58 = vld [vmem:[#allocation2 + $0x6c] sm:$0xe]  ;;  %v6403_v43 = vld [vmem:[#allocation2 + $0x74] sm:$0x1] }
 0x1f3   : > { %v14312_v28 = vpop.f32.mrf.mxu0  ;;  %v5963_v0 = vor.u32 %v5962_v25, %v5958_v54  ;;  %v6521_v62 = vsel %vm13407_vm14, %v10750_v17, %v6520_v36  ;;  %v6522_v59 = vrot.slane %v6520_v36, 4  ;;  %v5971_v48 = vshrl.u32 %v5607_v45, 16 }
 0x1f4   : > { %v14314_v12 = vpop.f32.mrf.mxu1  ;;  %15656 = vst [vmem:[#allocation48_spill] sm:$0xff] %v14326_v5  ;;  %v5954_v33 = vrot.slane %v5953_v32, 4  ;;  %v5974_v9 = vshll.u32 %v5607_v45, 16  ;;  %v5980_v20 = vshll.u32 %v5608_v13, 16  ;;  %v5984_v36 = vshrl.u32 %v5608_v13, 16 }
 0x1f5   : > { %v14320_v60 = vpop.f32.mrf.mxu0  ;;  %v5964_v31 = vrot.slane %v5963_v0, 4  ;;  %v6524_v53 = vsel %vm13407_vm14, %v6522_v59, %v6523_v3  ;;  %v5990_v21 = vshll.u32 %v5609_v8, 16  ;;  %v5973_v17 = vrot.slane %v5971_v48, 4  ;;  %v6404_v5 = vld [vmem:[#allocation2 + $0x78] sm:$0xe] }
 0x1f6   : > { %v14328_v24 = vpop.f32.mrf.mxu1  ;;  %v5959_v26 = vsel %vm13235_vm11, %v5954_v33, %v5958_v54  ;;  %v10766_v37 = vcombine.low %v6521_v62, %v6524_v53  ;;  %v5976_v32 = vrot.slane %v5974_v9, 5  ;;  %v5986_v0 = vrot.slane %v5984_v36, 4  ;;  %v6405_v3 = vld [vmem:[#allocation2 + $0x7c] sm:$0xf]  ;;  %v6406_v62 = vld [vmem:[#allocation2 + $0x80] sm:$0x1] }
 0x1f7   : > { %v14330_v40 = vpop.f32.mrf.mxu0  ;;  %v5969_v45 = vsel %vm13235_vm11, %v5964_v31, %v5968_v55  ;;  %v5992_v51 = vrot.slane %v5990_v21, 5  ;;  %v6527_v54 = vrot.slane %v6402_v15, 5  ;;  %v6530_v9 = vrot.slane %v6403_v43, 5  ;;  %v15660_v21 = vld [vmem:[#allocation35_spill] sm:$0xff]  ;;  %v6407_v43 = vld [vmem:[#allocation2 + $0x84] sm:$0xe] }
 0x1f8   : > { %15657 = vst [vmem:[#allocation49_spill] sm:$0xff] %v14330_v40  ;;  %v14334_v25 = vpop.f32.mrf.mxu1  ;;  %v5982_v40 = vrot.slane %v5980_v20, 5  ;;  %v10734_v8 = vcombine.low %v5959_v26, %v5969_v45  ;;  %11888 = vmatprep.mubr.bf16.mxu1 %v10766_v37  ;;  %v5977_v59 = vor.u32 %v5976_v32, %v5973_v17  ;;  %v14348_v55 = vadd.f32 %v14262_v29, %v14081_v47  ;;  %v15659_v20 = vld [vmem:[#allocation34_spill] sm:$0xff] }
 0x1f9   : > { %15658 = vst [vmem:[#allocation50_spill] sm:$0xff] %v14334_v25  ;;  %v14338_v56 = vpop.f32.mrf.mxu0  ;;  %v10751_v25 = vrot.slane %v6401_v58, 9  ;;  %v14352_v31 = vadd.f32 %v14237_v7, %v15659_v20  ;;  %v6529_v15 = vrot.slane %v6527_v54, 4  ;;  %v14360_v26 = vadd.f32 %v14268_v39, %v15660_v21  ;;  %v6408_v37 = vld [vmem:[#allocation2 + $0x88] sm:$0xf]  ;;  %v15661_v7 = vld [vmem:[#allocation36_spill] sm:$0xff] }
 0x1fa   : > { %v14342_v13 = vpop.f32.mrf.mxu1  ;;  %v5987_v48 = vor.u32 %v5986_v0, %v5982_v40  ;;  %11856 = vmatprep.mubr.bf16.mxu0 %v10734_v8  ;;  %v5978_v36 = vrot.slane %v5977_v59, 4  ;;  %v6409_v47 = vld [vmem:[#allocation2 + $0x8c] sm:$0x1]  ;;  %v14366_v32 = vadd.f32 %v14241_v63, %v15661_v7  ;;  %v14370_v45 = vadd.f32 %v14252_v16, %v14290_v42  ;;  %v6410_v42 = vld [vmem:[#allocation2 + $0x90] sm:$0xe] }
 0x1fb   : > { %v14344_v33 = vpop.f32.mrf.mxu0  ;;  %v6528_v58 = vsel %vm13407_vm14, %v10751_v25, %v6527_v54  ;;  %v6531_v0 = vsel %vm13407_vm14, %v6529_v15, %v6530_v9  ;;  %v10752_v8 = vrot.slane %v6404_v5, 9  ;;  %v6534_v59 = vrot.slane %v6405_v3, 5  ;;  %v15663_v21 = vld [vmem:[#allocation38_spill] sm:$0xff]  ;;  %v6411_v7 = vld [vmem:[#allocation2 + $0x94] sm:$0xf] }
 0x1fc   : > { %v14354_v53 = vpop.f32.mrf.mxu1  ;;  %v5988_v17 = vrot.slane %v5987_v48, 4  ;;  %15662 = vst [vmem:[#allocation34_spill] sm:$0xff] %v14370_v45  ;;  %v5983_v39 = vsel %vm13235_vm11, %v5978_v36, %v5982_v40  ;;  %v10767_v48 = vcombine.low %v6528_v58, %v6531_v0  ;;  %v6537_v20 = vrot.slane %v6406_v62, 5  ;;  %v6412_v45 = vld [vmem:[#allocation2 + $0x98] sm:$0x1]  ;;  %v15664_v9 = vld [vmem:[#allocation39_spill] sm:$0xff] }
 0x1fd   : > { %v14362_v29 = vpop.f32.mrf.mxu0  ;;  %v14384_v16 = vadd.f32 %v14258_v35, %v15663_v21  ;;  %v6535_v5 = vsel %vm13407_vm14, %v10752_v8, %v6534_v59  ;;  %v6536_v3 = vrot.slane %v6534_v59, 4  ;;  %v14392_v52 = vadd.f32 %v14306_v19, %v15664_v9  ;;  %v6416_v21 = vld [vmem:[#allocation2 + $0xa8] sm:$0xe] }
 0x1fe   : > { %v14372_v25 = vpop.f32.mrf.mxu1  ;;  %v5993_v63 = vsel %vm13235_vm11, %v5988_v17, %v5992_v51  ;;  %v6413_v51 = vld [vmem:[#allocation2 + $0x9c] sm:$0xe]  ;;  %11889 = vmatmul.mubr.bf16.gmra.mxu1 %v10767_v48  ;;  %v10753_v35 = vrot.slane %v6407_v43, 9  ;;  %v6541_v58 = vrot.slane %v6408_v37, 5  ;;  %v6544_v15 = vrot.slane %v6409_v47, 5 }
 0x1ff   : > { %v14378_v54 = vpop.f32.mrf.mxu0  ;;  %v10735_v36 = vcombine.low %v5983_v39, %v5993_v63  ;;  %v14398_v17 = vadd.f32 %v14266_v34, %v14141_v14  ;;  %v6414_v39 = vld [vmem:[#allocation2 + $0xa0] sm:$0xf]  ;;  %v6538_v8 = vsel %vm13407_vm14, %v6536_v3, %v6537_v20  ;;  %v14406_v19 = vadd.f32 %v14312_v28, %v14145_v11  ;;  %v6415_v14 = vld [vmem:[#allocation2 + $0xa4] sm:$0x1]  ;;  %v6418_v3 = vld [vmem:[#allocation2 + $0xb0] sm:$0x1] }
 0x200   : > { %v14386_v40 = vpop.f32.mrf.mxu1  ;;  %v14410_v43 = vadd.f32 %v14278_v4, %v14154_v61  ;;  %v14414_v37 = vadd.f32 %v14320_v60, %v14160_v38  ;;  %v10768_v47 = vcombine.low %v6535_v5, %v6538_v8  ;;  %v6542_v59 = vsel %vm13407_vm14, %v10753_v35, %v6541_v58  ;;  %v6417_v5 = vld [vmem:[#allocation2 + $0xac] sm:$0xf] }
 0x201   : > { %v14394_v62 = vpop.f32.mrf.mxu0  ;;  %11857 = vmatmul.mubr.bf16.gmra.mxu0 %v10735_v36  ;;  %v6543_v63 = vrot.slane %v6541_v58, 4  ;;  %v10754_v20 = vrot.slane %v6410_v42, 9  ;;  %v6548_v11 = vrot.slane %v6411_v7, 5  ;;  %v6551_v28 = vrot.slane %v6412_v45, 5  ;;  %v6420_v58 = vld [vmem:[#allocation2 + $0xb8] sm:$0xf] }
 0x202   : > { %v14400_v0 = vpop.f32.mrf.mxu1  ;;  %11892 = vmatprep.mubr.bf16.mxu1 %v10768_v47  ;;  %v14424_v38 = vadd.f32 %v14310_v41, %v14179_v23  ;;  %v14428_v4 = vadd.f32 %v14338_v56, %v14187_v22  ;;  %v10755_v60 = vrot.slane %v6413_v51, 9  ;;  %v6555_v35 = vrot.slane %v6414_v39, 5  ;;  %v6419_v51 = vld [vmem:[#allocation2 + $0xb4] sm:$0xe] }
 0x203   : > { %v3508_v34 = vpop.f32.mrf.mxu0  ;;  %v6545_v61 = vsel %vm13407_vm14, %v6543_v63, %v6544_v15  ;;  %v6549_v7 = vsel %vm13407_vm14, %v10754_v20, %v6548_v11  ;;  %v6550_v9 = vrot.slane %v6548_v11, 4  ;;  %v6558_v23 = vrot.slane %v6415_v14, 5 }
 0x204   : > { %v14418_v48 = vpop.f32.mrf.mxu1  ;;  %v10769_v45 = vcombine.low %v6542_v59, %v6545_v61  ;;  %v14438_v41 = vadd.f32 %v14314_v12, %v14203_v57  ;;  %v14442_v22 = vadd.f32 %v14344_v33, %v14207_v49  ;;  %v14446_v56 = vadd.f32 %v14328_v24, %v14213_v27  ;;  %v6421_v49 = vld [vmem:[#allocation2 + $0xbc] sm:$0x1]  ;;  %v6423_v61 = vld [vmem:[#allocation2 + $0xc4] sm:$0xf] }
 0x205   : > { %v11647_v36 = vpop.f32.mrf.mxu0  ;;  %v6552_v39 = vsel %vm13407_vm14, %v6550_v9, %v6551_v28  ;;  %v6556_v14 = vsel %vm13407_vm14, %v10755_v60, %v6555_v35  ;;  %v6557_v47 = vrot.slane %v6555_v35, 4  ;;  %v14456_v57 = vadd.f32 %v14362_v29, %v14223_v46  ;;  %v6422_v28 = vld [vmem:[#allocation2 + $0xc0] sm:$0xe] }
 0x206   : > { %v14430_v42 = vpop.f32.mrf.mxu1  ;;  %11893 = vmatmul.mubr.bf16.gmra.mxu1 %v10769_v45  ;;  %v10770_v33 = vcombine.low %v6549_v7, %v6552_v39  ;;  %v10756_v27 = vrot.slane %v6416_v21, 9  ;;  %v6562_v63 = vrot.slane %v6417_v5, 5  ;;  %v6565_v20 = vrot.slane %v6418_v3, 5  ;;  %v6424_v45 = vld [vmem:[#allocation2 + $0xc8] sm:$0x1] }
 0x207   : > { %v14434_v15 = vpop.f32.mrf.mxu0  ;;  %v6559_v59 = vsel %vm13407_vm14, %v6557_v47, %v6558_v23  ;;  %v14462_v11 = vadd.f32 %v14342_v13, %v14244_v10  ;;  %v14466_v29 = vadd.f32 %v14394_v62, %v14250_v50  ;;  %v6569_v21 = vrot.slane %v6420_v58, 5  ;;  %v6426_v13 = vld [vmem:[#allocation2 + $0xd0] sm:$0xf]  ;;  %v6425_v62 = vld [vmem:[#allocation2 + $0xcc] sm:$0xe] }
 0x208   : > { %v14448_v8 = vpop.f32.mrf.mxu1  ;;  %11896 = vmatprep.mubr.bf16.mxu1 %v10770_v33  ;;  %v10771_v46 = vcombine.low %v6556_v14, %v6559_v59  ;;  %v6563_v5 = vsel %vm13407_vm14, %v10756_v27, %v6562_v63  ;;  %v6564_v3 = vrot.slane %v6562_v63, 4  ;;  %v10757_v9 = vrot.slane %v6419_v51, 9 }
 0x209   : > { %v11650_v12 = vpop.f32.mrf.mxu0  ;;  %v14472_v10 = vadd.f32 %v14354_v53, %v14272_v18  ;;  %v6571_v23 = vrot.slane %v6569_v21, 4  ;;  %v6572_v39 = vrot.slane %v6421_v49, 5  ;;  %v3643_v14 = vadd.f32 %v3508_v34, %v14276_v30  ;;  %v6427_v18 = vld [vmem:[#allocation2 + $0xd4] sm:$0x1]  ;;  %v15665_v34 = vld [vmem:[#allocation48_spill] sm:$0xff] }
 0x20a   : > { %v11686_v24 = vpop.f32.mrf.mxu1  ;;  %v14477_v50 = vadd.f32 %v14372_v25, %v14284_v44  ;;  %v6566_v47 = vsel %vm13407_vm14, %v6564_v3, %v6565_v20  ;;  %v14482_v51 = vadd.f32 %v11647_v36, %v14294_v2  ;;  %v10758_v27 = vrot.slane %v6422_v28, 9 }
 0x20b   : > { %v3524_v60 = vpop.f32.mrf.mxu0  ;;  %v10772_v33 = vcombine.low %v6563_v5, %v6566_v47  ;;  %v6576_v49 = vrot.slane %v6423_v61, 5  ;;  %v6570_v30 = vsel %vm13407_vm14, %v10757_v9, %v6569_v21  ;;  %v6579_v44 = vrot.slane %v6424_v45, 5 }
 0x20c   : > { %v4294_v7 = vpop.f32.mrf.mxu1  ;;  %v14492_v25 = vadd.f32 %v14400_v0, %v14318_v1  ;;  %v3649_v63 = vadd.f32 %v11650_v12, %v15665_v34  ;;  %v6573_v36 = vsel %vm13407_vm14, %v6571_v23, %v6572_v39  ;;  %v6583_v61 = vrot.slane %v6426_v13, 5 }
 0x20d   : > { %v11651_v35 = vpop.f32.mrf.mxu0  ;;  %v6577_v20 = vsel %vm13407_vm14, %v10758_v27, %v6576_v49  ;;  %v6578_v28 = vrot.slane %v6576_v49, 4  ;;  %v10759_v21 = vrot.slane %v6425_v62, 9  ;;  %v14501_v45 = vadd.f32 %v14418_v48, %v14348_v55 }
 0x20e   : > { %v11687_v58 = vpop.f32.mrf.mxu1  ;;  %11897 = vmatmul.mubr.bf16.gmra.mxu1 %v10771_v46  ;;  %v3647_v1 = vadd.f32 %v3524_v60, %v14352_v31  ;;  %v14506_v0 = vadd.f32 %v14430_v42, %v14360_v26  ;;  %v6585_v3 = vrot.slane %v6583_v61, 4  ;;  %v6586_v9 = vrot.slane %v6427_v18, 5 }
 0x20f   : > { %v14484_v53 = vpop.f32.mrf.mxu0  ;;  %11900 = vmatprep.mubr.bf16.mxu1 %v10772_v33  ;;  %v6580_v46 = vsel %vm13407_vm14, %v6578_v28, %v6579_v44  ;;  %v3650_v13 = vadd.f32 %v11651_v35, %v14366_v32  ;;  %v10773_v55 = vcombine.low %v6570_v30, %v6573_v36  ;;  %v14513_v48 = vadd.f32 %v11686_v24, %v14392_v52  ;;  %v12337_v33 = vld [vmem:[#allocation11 + $0x38] sm:$0xff]   ;;  %v15666_v28 = vld [vmem:[#allocation33_spill] sm:$0xff] }
 0x210   : > { %v14486_v59 = vpop.f32.mrf.mxu1  ;;  %v14517_v26 = vadd.f32 %v4294_v7, %v14406_v19  ;;  %v10774_v60 = vcombine.low %v6577_v20, %v6580_v46  ;;  %v14521_v18 = vadd.f32 %v11687_v58, %v14414_v37  ;;  %v6584_v37 = vsel %vm13407_vm14, %v10759_v21, %v6583_v61  ;;  %11908 = vmatprep.subr.bf16.mxu0 %v12337_v33  ;;  %v15667_v61 = vld [vmem:[#allocation44_spill] sm:$0xff] }
 0x211   : > { %v11654_v2 = vpop.f32.mrf.mxu0  ;;  %11909 = vmatpush3.bf16.msra.mxu0 %v12337_v33 }
 0x212   : > { %v11690_v5 = vpop.f32.mrf.mxu1  ;;  %v3653_v39 = vadd.f32 %v11654_v2, %v14384_v16 }
 0x213   : > { %v3540_v12 = vpop.f32.mrf.mxu0  ;;  %v14526_v16 = vadd.f32 %v11690_v5, %v14428_v4  ;;  %v6587_v4 = vsel %vm13407_vm14, %v6585_v3, %v6586_v9 }
 0x214   : > { %v4310_v23 = vpop.f32.mrf.mxu1  ;;  %v3651_v31 = vadd.f32 %v3540_v12, %v14398_v17 }
 0x215   : > { %v11655_v62 = vpop.f32.mrf.mxu0  ;;  %v14529_v52 = vadd.f32 %v4310_v23, %v14442_v22 }
 0x216   : > { %v11691_v42 = vpop.f32.mrf.mxu1  ;;  %v3654_v47 = vadd.f32 %v11655_v62, %v14410_v43  ;;  %11901 = vmatmul.mubr.bf16.gmra.mxu1 %v10773_v55 }
 0x217   : > { %v14523_v32 = vpop.f32.mrf.mxu0  ;;  %v14532_v17 = vadd.f32 %v11691_v42, %v14456_v57  ;;  %11904 = vmatprep.mubr.bf16.mxu1 %v10774_v60 }
 0x218   : > { %v14534_v19 = vpop.f32.mrf.mxu1 }
 0x219   : > { %v11658_v24 = vpop.f32.mrf.mxu0 }
 0x21a   : > { %v3657_v43 = vadd.f32 %v11658_v24, %v14424_v38  ;;  %v11694_v7 = vpop.f32.mrf.mxu1  ;;  %v10775_v38 = vcombine.low %v6584_v37, %v6587_v4 }
 0x21b   : > { %v3556_v35 = vpop.f32.mrf.mxu0  ;;  %v14542_v22 = vadd.f32 %v11694_v7, %v14466_v29  ;;  %v15669_v7 = vld [vmem:[#allocation45_spill] sm:$0xff] }
 0x21c   : > { %v3655_v57 = vadd.f32 %v3556_v35, %v14438_v41  ;;  %v4326_v58 = vpop.f32.mrf.mxu1 }
 0x21d   : > { %v11659_v27 = vpop.f32.mrf.mxu0  ;;  %v14545_v49 = vadd.f32 %v4326_v58, %v3643_v14 }
 0x21e   : > { %v3658_v30 = vadd.f32 %v11659_v27, %v14446_v56  ;;  %v11695_v44 = vpop.f32.mrf.mxu1  ;;  %11905 = vmatmul.mubr.bf16.gmra.mxu1 %v10775_v38  ;;  %v2613_v56 = vadd.f32 %v15667_v61, %v15666_v28  ;;  %v15672_v28 = vld [vmem:[#allocation50_spill] sm:$0xff] }
 0x21f   : > { %v3559_v34 = vpop.f32.mrf.mxu0  ;;  %v14549_v6 = vadd.f32 %v11695_v44, %v14482_v51 }
 0x220   : > { %v14551_v2 = vpop.f32.mrf.mxu1  ;;  %v3210_v46 = vadd.f32 %v14386_v40, %v2613_v56 }
 0x221   : > { %v11662_v29 = vpop.f32.mrf.mxu0 }
 0x222   : > { %v3661_v41 = vadd.f32 %v11662_v29, %v14462_v11  ;;  %v11698_v36 = vpop.f32.mrf.mxu1  ;;  %v15670_v29 = vld [vmem:[#allocation32_spill] sm:$0xff] }
 0x223   : > { %v3572_v20 = vpop.f32.mrf.mxu0  ;;  %v14554_v14 = vadd.f32 %v11698_v36, %v3649_v63  ;;  %v15671_v36 = vld [vmem:[#allocation42_spill] sm:$0xff] }
 0x224   : > { %v3659_v5 = vadd.f32 %v3572_v20, %v14472_v10  ;;  %v4342_v21 = vpop.f32.mrf.mxu1 }
 0x225   : > { %v11663_v12 = vpop.f32.mrf.mxu0  ;;  %v14559_v51 = vadd.f32 %v4342_v21, %v3647_v1  ;;  %v15668_v1 = vld [vmem:[#allocation37_spill] sm:$0xff] }
 0x226   : > { %v3662_v3 = vadd.f32 %v11663_v12, %v14477_v50  ;;  %v11699_v9 = vpop.f32.mrf.mxu1  ;;  %v2617_v40 = vadd.f32 %v15669_v7, %v15668_v1  ;;  %v15673_v1 = vld [vmem:[#allocation43_spill] sm:$0xff] }
 0x227   : > { %v3575_v23 = vpop.f32.mrf.mxu0  ;;  %v14563_v11 = vadd.f32 %v11699_v9, %v3650_v13  ;;  %v3640_v7 = vadd.f32 %v14378_v54, %v15673_v1 }
 0x228   : > { %v3660_v62 = vadd.f32 %v3575_v23, %v3210_v46  ;;  %v14565_v63 = vpop.f32.mrf.mxu1  ;;  %v3214_v35 = vadd.f32 %v14448_v8, %v2617_v40 }
 0x229   : > { %v11666_v55 = vpop.f32.mrf.mxu0 }
 0x22a   : > { %v14568_v42 = vadd.f32 %v11666_v55, %v14492_v25  ;;  %v11702_v10 = vpop.f32.mrf.mxu1 }
 0x22b   : > { %v3588_v60 = vpop.f32.mrf.mxu0  ;;  %v14570_v24 = vadd.f32 %v11702_v10, %v3653_v39 }
 0x22c   : > { %v14575_v50 = vadd.f32 %v3588_v60, %v14501_v45  ;;  %v4358_v37 = vpop.f32.mrf.mxu1  ;;  %v12338_v60 = vld [vmem:[#allocation11 + $0x30] sm:$0xff]  }
 0x22d   : > { %v11667_v13 = vpop.f32.mrf.mxu0  ;;  %v14577_v4 = vadd.f32 %v4358_v37, %v3651_v31  ;;  %v2609_v31 = vadd.f32 %v15671_v36, %v15670_v29  ;;  %11910 = vmatprep.subr.bf16.mxu0 %v12338_v60 }
 0x22e   : > { %v14581_v58 = vadd.f32 %v11667_v13, %v14506_v0  ;;  %v11703_v25 = vpop.f32.mrf.mxu1  ;;  %11911 = vmatpush3.bf16.msra.mxu0 %v12338_v60 }
 0x22f   : > { %v3591_v33 = vpop.f32.mrf.mxu0  ;;  %v14583_v27 = vadd.f32 %v11703_v25, %v3654_v47  ;;  %v3206_v61 = vadd.f32 %v15672_v28, %v2609_v31  ;;  %v12339_v28 = vld [vmem:[#allocation11 + $0x28] sm:$0xff]  }
 0x230   : > { %v14585_v39 = vadd.f32 %v3591_v33, %v3214_v35  ;;  %v14587_v38 = vpop.f32.mrf.mxu1  ;;  %11912 = vmatprep.subr.bf16.mxu0 %v12339_v28 }
 0x231   : > { %v14589_v44 = vpop.f32.mrf.mxu0  ;;  %v3656_v12 = vadd.f32 %v3559_v34, %v3206_v61  ;;  %v4458_v34 = vadd.f32 %v14534_v19, %v3640_v7  ;;  %v15674_v19 = vld [vmem:[#allocation46_spill] sm:$0xff]  ;;  %v12343_v7 = vld [vmem:[#allocation11 + $0xb0] sm:$0xff]  }
 0x232   : > { %v11706_v45 = vpop.f32.mrf.mxu1  ;;  %11913 = vmatpush3.bf16.msra.mxu0 %v12339_v28 }
 0x233   : > { %v14593_v20 = vpop.f32.mrf.mxu0  ;;  %v14595_v8 = vadd.f32 %v11706_v45, %v3657_v43 }
 0x234   : > { %v4374_v0 = vpop.f32.mrf.mxu1 }
 0x235   : > { %v14598_v56 = vpop.f32.mrf.mxu0  ;;  %v14600_v47 = vadd.f32 %v4374_v0, %v3655_v57 }
 0x236   : > { %v11707_v21 = vpop.f32.mrf.mxu1 }
 0x237   : > { %v14602_v46 = vpop.f32.mrf.mxu0  ;;  %v14604_v9 = vadd.f32 %v11707_v21, %v3658_v30 }
 0x238   : > { %v4377_v23 = vpop.f32.mrf.mxu1 }
 0x239   : > { %v14606_v55 = vpop.f32.mrf.mxu0  ;;  %v14608_v10 = vadd.f32 %v4377_v23, %v3656_v12  ;;  %v12341_v12 = vld [vmem:[#allocation11 + $0xb8] sm:$0xff]  }
 0x23a   : > { %11956 = vmatprep.subr.bf16.mxu1 %v12341_v12 }
 0x23b   : > { %v4904_v43 = vpop.f32.mrf.mxu0  ;;  %11957 = vmatpush3.bf16.msra.mxu1 %v12341_v12 }
 0x23c   : > { %v14613_v40 = vadd.f32 %v4904_v43, %v14529_v52  ;;  %11958 = vmatprep.subr.bf16.mxu1 %v12343_v7 }
 0x23d   : > { %v11739_v57 = vpop.f32.mrf.mxu0 }
 0x23e   : > { %v14617_v30 = vadd.f32 %v11739_v57, %v14532_v17  ;;  %v11710_v13 = vpop.f32.mrf.mxu1  ;;  %v3644_v17 = vadd.f32 %v14434_v15, %v15674_v19  ;;  %v12533_v57 = vld [vmem:[%s15578_s4] ss:$0 sm:$0xff]  ;;  %v15678_v19 = vld [vmem:[#allocation47_spill] sm:$0xff] }
 0x23f   : > { %v4907_v37 = vpop.f32.mrf.mxu0  ;;  %v14621_v25 = vadd.f32 %v11710_v13, %v3661_v41  ;;  %11959 = vmatpush3.bf16.msra.mxu1 %v12343_v7 }
 0x240   : > { %v14619_v35 = vadd.f32 %v4907_v37, %v4458_v34  ;;  %v4390_v45 = vpop.f32.mrf.mxu1  ;;  %v4462_v21 = vadd.f32 %v14551_v2, %v3644_v17  ;;  %v15676_v34 = vld [vmem:[#allocation31_spill] sm:$0xff] }
 0x241   : > { %v11742_v33 = vpop.f32.mrf.mxu0  ;;  %v14626_v52 = vadd.f32 %v4390_v45, %v3659_v5  ;;  %v1740_v37 = vadd.f32 %v12533_v57, %v15676_v34  ;;  %v15677_v45 = vld [vmem:[#allocation40_spill] sm:$0xff] }
 0x242   : > { %v14624_v54 = vadd.f32 %v11742_v33, %v14542_v22  ;;  %v11711_v36 = vpop.f32.mrf.mxu1 }
 0x243   : > { %v4920_v29 = vpop.f32.mrf.mxu0  ;;  %v14633_v0 = vadd.f32 %v11711_v36, %v3662_v3 }
 0x244   : > { %v14631_v31 = vadd.f32 %v4920_v29, %v14545_v49  ;;  %v4393_v61 = vpop.f32.mrf.mxu1  ;;  %v12340_v49 = vld [vmem:[#allocation11 + $0x20] sm:$0xff]  }
 0x245   : > { %v11743_v41 = vpop.f32.mrf.mxu0  ;;  %v14639_v5 = vadd.f32 %v4393_v61, %v3660_v62  ;;  %11914 = vmatprep.subr.bf16.mxu0 %v12340_v49 }
 0x246   : > { %v14637_v22 = vadd.f32 %v11743_v41, %v14549_v6  ;;  %11915 = vmatpush3.bf16.msra.mxu0 %v12340_v49  ;;  %v15675_v6 = vld [vmem:[#allocation34_spill] sm:$0xff]  ;;  %v12344_v41 = vld [vmem:[#allocation11 + $0xa8] sm:$0xff]  }
 0x247   : > { %v4923_v23 = vpop.f32.mrf.mxu0  ;;  %v3648_v62 = vadd.f32 %v14484_v53, %v15675_v6  ;;  %v2605_v53 = vadd.f32 %v15677_v45, %v1740_v37  ;;  %11960 = vmatprep.subr.bf16.mxu1 %v12344_v41  ;;  %v12349_v45 = vld [vmem:[#allocation11 + $0x98] sm:$0xff]  }
 0x248   : > { %v14641_v15 = vadd.f32 %v4923_v23, %v4462_v21  ;;  %11961 = vmatpush3.bf16.msra.mxu1 %v12344_v41 }
 0x249   : > { %v11746_v3 = vpop.f32.mrf.mxu0  ;;  %v4466_v13 = vadd.f32 %v14565_v63, %v3648_v62  ;;  %v3202_v17 = vadd.f32 %v15678_v19, %v2605_v53 }
 0x24a   : > { %v14644_v43 = vadd.f32 %v11746_v3, %v14554_v14 }
 0x24b   : > { %v4936_v2 = vpop.f32.mrf.mxu0 }
 0x24c   : > { %v14649_v60 = vadd.f32 %v4936_v2, %v14559_v51  ;;  %v12342_v51 = vld [vmem:[#allocation11 + $0x18] sm:$0xff]   ;;  %v12345_v2 = vld [vmem:[#allocation11 + $0x10] sm:$0xff]  }
 0x24d   : > { %v11747_v1 = vpop.f32.mrf.mxu0  ;;  %11916 = vmatprep.subr.bf16.mxu0 %v12342_v51 }
 0x24e   : > { %v14657_v14 = vadd.f32 %v11747_v1, %v14563_v11  ;;  %11917 = vmatpush3.bf16.msra.mxu0 %v12342_v51  ;;  %v3652_v11 = vadd.f32 %v14523_v32, %v3202_v17 }
 0x24f   : > { %v4939_v33 = vpop.f32.mrf.mxu0  ;;  %11918 = vmatprep.subr.bf16.mxu0 %v12345_v2 }
 0x250   : > { %v14660_v29 = vadd.f32 %v4939_v33, %v4466_v13  ;;  %v4470_v12 = vadd.f32 %v14587_v38, %v3652_v11  ;;  %v12348_v38 = vld [vmem:[#allocation11 + $0xa0] sm:$0xff]  }
 0x251   : > { %v11750_v36 = vpop.f32.mrf.mxu0  ;;  %11962 = vmatprep.subr.bf16.mxu1 %v12348_v38 }
 0x252   : > { %v14664_v28 = vadd.f32 %v11750_v36, %v14570_v24  ;;  %11919 = vmatpush3.bf16.msra.mxu0 %v12345_v2  ;;  %11963 = vmatpush3.bf16.msra.mxu1 %v12348_v38 }
 0x253   : > { %v4952_v63 = vpop.f32.mrf.mxu0  ;;  %11964 = vmatprep.subr.bf16.mxu1 %v12349_v45 }
 0x254   : > { %v14668_v61 = vadd.f32 %v4952_v63, %v14577_v4 }
 0x255   : > { %v11751_v21 = vpop.f32.mrf.mxu0 }
 0x256   : > { %v11714_v23 = vpop.f32.mrf.mxu1  ;;  %v14672_v49 = vadd.f32 %v11751_v21, %v14583_v27  ;;  %11965 = vmatpush3.bf16.msra.mxu1 %v12349_v45  ;;  %v12357_v45 = vld [vmem:[#allocation11 + $0x88] sm:$0xff]  }
 0x257   : > { %v4483_v24 = vadd.f32 %v11714_v23, %v14568_v42  ;;  %v4955_v3 = vpop.f32.mrf.mxu0 }
 0x258   : > { %v4406_v6 = vpop.f32.mrf.mxu1  ;;  %v14675_v62 = vadd.f32 %v4955_v3, %v4470_v12 }
 0x259   : > { %v4481_v32 = vadd.f32 %v4406_v6, %v14575_v50  ;;  %v11754_v4 = vpop.f32.mrf.mxu0  ;;  %v12354_v6 = vld [vmem:[#allocation11 + $0x8] sm:$0xff]  }
 0x25a   : > { %v11715_v1 = vpop.f32.mrf.mxu1  ;;  %v14679_v7 = vadd.f32 %v11754_v4, %v14595_v8  ;;  %11920 = vmatprep.subr.bf16.mxu0 %v12354_v6 }
 0x25b   : > { %v4484_v27 = vadd.f32 %v11715_v1, %v14581_v58  ;;  %v4968_v57 = vpop.f32.mrf.mxu0  ;;  %11921 = vmatpush3.bf16.msra.mxu0 %v12354_v6  ;;  %v12361_v6 = vld [vmem:[#allocation11 + $0x78] sm:$0xff]  }
 0x25c   : > { %v4409_v34 = vpop.f32.mrf.mxu1  ;;  %v14683_v42 = vadd.f32 %v4968_v57, %v14600_v47  ;;  %v12355_v57 = vld [vmem:[#allocation11 + $0x90] sm:$0xff]  }
 0x25d   : > { %v4482_v37 = vadd.f32 %v4409_v34, %v14585_v39  ;;  %v11755_v13 = vpop.f32.mrf.mxu0  ;;  %v12356_v34 = vld [vmem:[#allocation11] sm:$0xff]   ;;  %11966 = vmatprep.subr.bf16.mxu1 %v12355_v57 }
 0x25e   : > { %v14686_v50 = vpop.f32.mrf.mxu1  ;;  %v14689_v33 = vadd.f32 %v11755_v13, %v14604_v9  ;;  %11922 = vmatprep.subr.bf16.mxu0 %v12356_v34  ;;  %11967 = vmatpush3.bf16.msra.mxu1 %v12355_v57 }
 0x25f   : > { %v4971_v8 = vpop.f32.mrf.mxu0  ;;  %11923 = vmatpush3.bf16.msra.mxu0 %v12356_v34  ;;  %11968 = vmatprep.subr.bf16.mxu1 %v12357_v45 }
 0x260   : > { %v14691_v53 = vpop.f32.mrf.mxu1  ;;  %v14694_v58 = vadd.f32 %v4971_v8, %v14608_v10  ;;  %11932 = vmatprep.subr.bf16.mxu0 %v12361_v6 }
 0x261   : > { %v11758_v51 = vpop.f32.mrf.mxu0 }
 0x262   : > { %v14696_v47 = vpop.f32.mrf.mxu1  ;;  %v14699_v39 = vadd.f32 %v11758_v51, %v14621_v25  ;;  %11969 = vmatpush3.bf16.msra.mxu1 %v12357_v45 }
 0x263   : > { %v4984_v36 = vpop.f32.mrf.mxu0 }
 0x264   : > { %v14701_v19 = vpop.f32.mrf.mxu1  ;;  %v14704_v9 = vadd.f32 %v4984_v36, %v14626_v52 }
 0x265   : > { %v11759_v17 = vpop.f32.mrf.mxu0 }
 0x266   : > { %v14706_v41 = vpop.f32.mrf.mxu1  ;;  %v14709_v10 = vadd.f32 %v11759_v17, %v14633_v0 }
 0x267   : > { %v4987_v63 = vpop.f32.mrf.mxu0 }
 0x268   : > { %v5355_v11 = vpop.f32.mrf.mxu1  ;;  %v14712_v21 = vadd.f32 %v4987_v63, %v14639_v5  ;;  %v12360_v63 = vld [vmem:[#allocation11 + $0x80] sm:$0xff]  }
 0x269   : > { %v14715_v25 = vadd.f32 %v5355_v11, %v14613_v40  ;;  %v11762_v12 = vpop.f32.mrf.mxu0  ;;  %11970 = vmatprep.subr.bf16.mxu1 %v12360_v63 }
 0x26a   : > { %v11787_v23 = vpop.f32.mrf.mxu1  ;;  %v14717_v3 = vadd.f32 %v11762_v12, %v4483_v24  ;;  %11971 = vmatpush3.bf16.msra.mxu1 %v12360_v63 }
 0x26b   : > { %v14720_v52 = vadd.f32 %v11787_v23, %v14617_v30  ;;  %v5000_v2 = vpop.f32.mrf.mxu0 }
 0x26c   : > { %v5358_v4 = vpop.f32.mrf.mxu1  ;;  %v14722_v0 = vadd.f32 %v5000_v2, %v4481_v32 }
 0x26d   : > { %v14725_v1 = vadd.f32 %v5358_v4, %v14619_v35  ;;  %v11763_v5 = vpop.f32.mrf.mxu0 }
 0x26e   : > { %v11790_v38 = vpop.f32.mrf.mxu1  ;;  %v14727_v40 = vadd.f32 %v11763_v5, %v4484_v27 }
 0x26f   : > { %v14730_v24 = vadd.f32 %v11790_v38, %v14624_v54  ;;  %v5003_v30 = vpop.f32.mrf.mxu0 }
 0x270   : > { %v5371_v13 = vpop.f32.mrf.mxu1  ;;  %v14732_v8 = vadd.f32 %v5003_v30, %v4482_v37 }
 0x271   : > { %v14735_v32 = vadd.f32 %v5371_v13, %v14631_v31  ;;  %v14737_v35 = vpop.f32.mrf.mxu0 }
 0x272   : > { %v11791_v27 = vpop.f32.mrf.mxu1 }
 0x273   : > { %v14740_v51 = vadd.f32 %v11791_v27, %v14637_v22  ;;  %v14742_v54 = vpop.f32.mrf.mxu0 }
 0x274   : > { %v5374_v36 = vpop.f32.mrf.mxu1 }
 0x275   : > { %v14745_v37 = vadd.f32 %v5374_v36, %v14641_v15  ;;  %v14747_v17 = vpop.f32.mrf.mxu0 }
 0x276   : > { %v11794_v31 = vpop.f32.mrf.mxu1 }
 0x277   : > { %v14750_v11 = vadd.f32 %v11794_v31, %v14644_v43  ;;  %v14752_v12 = vpop.f32.mrf.mxu0 }
 0x278   : > { %v5387_v23 = vpop.f32.mrf.mxu1 }
 0x279   : > { %v14755_v22 = vadd.f32 %v5387_v23, %v14649_v60  ;;  %v14757_v2 = vpop.f32.mrf.mxu0 }
 0x27a   : > { %v11795_v15 = vpop.f32.mrf.mxu1 }
 0x27b   : > { %v14760_v4 = vadd.f32 %v11795_v15, %v14657_v14  ;;  %v14762_v5 = vpop.f32.mrf.mxu0 }
 0x27c   : > { %v5390_v38 = vpop.f32.mrf.mxu1 }
 0x27d   : > { %v14765_v43 = vadd.f32 %v5390_v38, %v14660_v29  ;;  %v14767_v57 = vpop.f32.mrf.mxu0 }
 0x27e   : > { %v11798_v30 = vpop.f32.mrf.mxu1 }
 0x27f   : > { %v14770_v60 = vadd.f32 %v11798_v30, %v14664_v28  ;;  %v14772_v34 = vpop.f32.mrf.mxu0 }
 0x280   : > { %v5403_v13 = vpop.f32.mrf.mxu1 }
 0x281   : > { %v14775_v27 = vadd.f32 %v5403_v13, %v14668_v61  ;;  %v14777_v14 = vpop.f32.mrf.mxu0 }
 0x282   : > { %v11799_v45 = vpop.f32.mrf.mxu1 }
 0x283   : > { %15679 = vst [vmem:[#allocation35_spill] sm:$0xff] %v14775_v27  ;;  %v14780_v36 = vadd.f32 %v11799_v45, %v14672_v49  ;;  %v14782_v29 = vpop.f32.mrf.mxu0  ;;  %v14825_v27 = vld [vmem:[#allocation3] sm:$0xff]  }
 0x284   : > { %v5406_v31 = vpop.f32.mrf.mxu1 }
 0x285   : > { %15680 = vst [vmem:[#allocation36_spill] sm:$0xff] %v14780_v36  ;;  %v14785_v63 = vadd.f32 %v5406_v31, %v14675_v62  ;;  %v14787_v28 = vpop.f32.mrf.mxu0 }
 0x286   : > { %v11802_v23 = vpop.f32.mrf.mxu1 }
 0x287   : > { %15681 = vst [vmem:[#allocation38_spill] sm:$0xff] %v14785_v63  ;;  %v14790_v15 = vadd.f32 %v11802_v23, %v14679_v7  ;;  %v14792_v6 = vpop.f32.mrf.mxu0 }
 0x288   : > { %v5419_v61 = vpop.f32.mrf.mxu1 }
 0x289   : > { %15682 = vst [vmem:[#allocation39_spill] sm:$0xff] %v14790_v15  ;;  %v14795_v38 = vadd.f32 %v5419_v61, %v14683_v42  ;;  %v12367_v42 = vld [vmem:[#allocation11 + $0x138] sm:$0xff]  }
 0x28a   : > { %v11803_v49 = vpop.f32.mrf.mxu1  ;;  %v14800_v45 = vpop.f32.mrf.mxu0  ;;  %12004 = vmatprep.subr.bf16.mxu1 %v12367_v42 }
 0x28b   : > { %15683 = vst [vmem:[#allocation48_spill] sm:$0xff] %v14795_v38  ;;  %v14798_v30 = vadd.f32 %v11803_v49, %v14689_v33 }
 0x28c   : > { %v5422_v13 = vpop.f32.mrf.mxu1  ;;  %v14805_v63 = vpop.f32.mrf.mxu0 }
 0x28d   : > { %15684 = vst [vmem:[#allocation33_spill] sm:$0xff] %v14798_v30  ;;  %v14803_v62 = vadd.f32 %v5422_v13, %v14694_v58  ;;  %v12351_v30 = vld [vmem:[#allocation3 + $0x8] ss:$0 sps:$4 sm:$0x11]  }
 0x28e   : > { %v11806_v31 = vpop.f32.mrf.mxu1  ;;  %v14810_v15 = vpop.f32.mrf.mxu0 }
 0x28f   : > { %15685 = vst [vmem:[#allocation44_spill] sm:$0xff] %v14803_v62  ;;  %v14808_v7 = vadd.f32 %v11806_v31, %v14699_v39  ;;  %v12350_v62 = vld [vmem:[#allocation3] sm:$0xff]   ;;  %v15689_v31 = vld [vmem:[#allocation41_spill] sm:$0xff] }
 0x290   : > { %v5435_v23 = vpop.f32.mrf.mxu1  ;;  %v14818_v13 = vpop.f32.mrf.mxu0 }
 0x291   : > { %15686 = vst [vmem:[#allocation37_spill] sm:$0xff] %v14808_v7  ;;  %v14813_v61 = vadd.f32 %v5435_v23, %v14704_v9  ;;  %v15690_v7 = vld [vmem:[#allocation49_spill] sm:$0xff] }
 0x292   : > { %v11807_v33 = vpop.f32.mrf.mxu1  ;;  %v3636_v38 = vadd.f32 %v15690_v7, %v15689_v31  ;;  %v12386_v23 = vld [vmem:[#allocation3 + $0x8] ss:$0 sps:$4 sm:$0x11]  }
 0x293   : > { %15687 = vst [vmem:[#allocation45_spill] sm:$0xff] %v14813_v61  ;;  %v14816_v49 = vadd.f32 %v11807_v33, %v14709_v10  ;;  %v8411_v61 = vrot.slane %v12351_v30, 1 }
 0x294   : > { %v5438_v58 = vpop.f32.mrf.mxu1  ;;  %v4454_v10 = vadd.f32 %v14486_v59, %v3636_v38  ;;  %v5053_v59 = vadd.f32 %v14606_v55, %v14526_v16 }
 0x295   : > { %15688 = vst [vmem:[#allocation32_spill] sm:$0xff] %v14816_v49  ;;  %v14821_v39 = vadd.f32 %v5438_v58, %v14712_v21  ;;  %v8410_v49 = vrot.slane %v12350_v62, 1  ;;  %v5049_v21 = vadd.f32 %v14589_v44, %v14513_v48  ;;  %v5047_v58 = vadd.f32 %v14593_v20, %v14517_v26 }
 0x296   : > { %v11810_v36 = vpop.f32.mrf.mxu1  ;;  %v11846_v33 = vpop.f32.mrf.mxu0  ;;  %v8058_v62 = vshll.u32 %v14825_v27, 16  ;;  %v8063_v20 = vshll.u32 %v12386_v23, 16  ;;  %v5504_v16 = vadd.f32 %v14706_v41, %v5053_v59  ;;  %v8056_v41 = vshrl.u32 %v14825_v27, 16 }
 0x297   : > { %v14828_v9 = vadd.f32 %v11810_v36, %v14717_v3  ;;  %v5050_v3 = vadd.f32 %v14598_v56, %v14521_v18  ;;  %v5048_v36 = vadd.f32 %v14602_v46, %v4454_v10  ;;  %v5500_v48 = vadd.f32 %v14686_v50, %v5049_v21 }
 0x298   : > { %v5451_v42 = vpop.f32.mrf.mxu1  ;;  %v6221_v30 = vpop.f32.mrf.mxu0  ;;  %v5498_v26 = vadd.f32 %v14691_v53, %v5047_v58  ;;  %v14852_v46 = vsel %vm8409_vm15, %v8410_v49, %v8411_v61  ;;  %v14868_v49 = vrot.slane %v8058_v62, 1  ;;  %v14881_v23 = vadd.f32 %v14772_v34, %v14725_v1 }
 0x299   : > { %v14836_v7 = vadd.f32 %v5451_v42, %v14722_v0  ;;  %v5501_v0 = vadd.f32 %v14696_v47, %v5050_v3  ;;  %v5499_v18 = vadd.f32 %v14701_v19, %v5048_v36  ;;  %v6318_v55 = vadd.f32 %v14737_v35, %v5500_v48  ;;  %v14865_v19 = vld [vmem:[%s15579_s5] ss:$0 sm:$0xff]  ;;  %v15692_v36 = vld [vmem:[#allocation36_spill] sm:$0xff] }
 0x29a   : > { %v11811_v38 = vpop.f32.mrf.mxu1  ;;  %v6316_v50 = vadd.f32 %v14742_v54, %v5498_v26  ;;  %v11847_v61 = vpop.f32.mrf.mxu0  ;;  %v6322_v35 = vadd.f32 %v14757_v2, %v5504_v16  ;;  %v14885_v10 = vadd.f32 %v14777_v14, %v14730_v24  ;;  %v14889_v2 = vadd.f32 %v14782_v29, %v14735_v32 }
 0x29b   : > { %v14847_v44 = vadd.f32 %v11811_v38, %v14727_v40  ;;  %v6319_v40 = vadd.f32 %v14747_v17, %v5501_v0  ;;  %v6317_v31 = vadd.f32 %v14752_v12, %v5499_v18  ;;  %v14873_v17 = vrot.slane %v8063_v20, 1  ;;  %v15694_v0 = vld [vmem:[#allocation39_spill] sm:$0xff] }
 0x29c   : > { %v5454_v56 = vpop.f32.mrf.mxu1  ;;  %v14877_v12 = vadd.f32 %v14767_v57, %v14720_v52  ;;  %v14898_v1 = vadd.f32 %v14792_v6, %v14745_v37  ;;  %v14902_v24 = vadd.f32 %v14800_v45, %v14750_v11  ;;  %v14906_v32 = vadd.f32 %v14805_v63, %v14755_v22  ;;  %v6224_v14 = vpop.f32.mrf.mxu0  ;;  %v15691_v63 = vld [vmem:[#allocation35_spill] sm:$0xff] }
 0x29d   : > { %v14858_v53 = vadd.f32 %v5454_v56, %v14732_v8  ;;  %v6320_v8 = vadd.f32 %v14762_v5, %v14715_v25  ;;  %v14893_v5 = vadd.f32 %v14787_v28, %v14740_v51  ;;  %v14910_v51 = vadd.f32 %v14810_v15, %v14760_v4 }
 0x29e   : > { %v11878_v47 = vpop.f32.mrf.mxu1  ;;  %v14915_v6 = vadd.f32 %v14818_v13, %v14765_v43  ;;  %v14918_v11 = vadd.f32 %v11846_v33, %v14770_v60  ;;  %v14921_v45 = vadd.f32 %v6221_v30, %v15691_v63  ;;  %v14925_v59 = vadd.f32 %v11847_v61, %v15692_v36  ;;  %v15693_v43 = vld [vmem:[#allocation38_spill] sm:$0xff] }
 0x29f   : > { %v6912_v54 = vadd.f32 %v11878_v47, %v6318_v55  ;;  %v14928_v13 = vadd.f32 %v6224_v14, %v15693_v43  ;;  %v7533_v55 = vld [vmem:[#allocation3 + $0x18] sm:$0xf]  ;;  %v7526_v14 = vld [vmem:[#allocation3 + $0xc] sm:$0xf] }
 0x2a0   : > { %v6751_v25 = vpop.f32.mrf.mxu1 }
 0x2a1   : > { %vm7008_vm0 = vcmp.ge.f32.partialorder %v6912_v54, 0.0  ;;  %v7047_v52 = vmul.f32 %v14865_v19, %v6912_v54  ;;  %v6910_v57 = vadd.f32 %v6751_v25, %v6316_v50 }
 0x2a2   : > { %v11879_v34 = vpop.f32.mrf.mxu1 }
 0x2a3   : > { %v7079_v29 = vsel %vm7008_vm0, %v6912_v54, %v7047_v52  ;;  %vm7006_vm1 = vcmp.ge.f32.partialorder %v6910_v57, 0.0  ;;  %v7045_v28 = vmul.f32 %v14865_v19, %v6910_v57  ;;  %v6913_v37 = vadd.f32 %v11879_v34, %v6319_v40  ;;  %v15695_v52 = vld [vmem:[#allocation48_spill] sm:$0xff] }
 0x2a4   : > { %v11085_v22 = vpack.c.bf16 %v7079_v29, %v7079_v29  ;;  %v6754_v4 = vpop.f32.mrf.mxu1  ;;  %v11850_v60 = vpop.f32.mrf.mxu0 }
 0x2a5   : > { %v7077_v15 = vsel %vm7006_vm1, %v6910_v57, %v7045_v28  ;;  %vm7009_vm2 = vcmp.ge.f32.partialorder %v6913_v37, 0.0  ;;  %v7048_v42 = vmul.f32 %v14865_v19, %v6913_v37  ;;  %v6911_v21 = vadd.f32 %v6754_v4, %v6317_v31 }
 0x2a6   : > { %v7223_v58 = vshrl.u32 %v11085_v22, 16  ;;  %v11083_v3 = vpack.c.bf16 %v7077_v15, %v7077_v15  ;;  %v11882_v33 = vpop.f32.mrf.mxu1  ;;  %v7226_v38 = vshll.u32 %v11085_v22, 16  ;;  %v14932_v18 = vadd.f32 %v11850_v60, %v15694_v0  ;;  %v6237_v56 = vpop.f32.mrf.mxu0 }
 0x2a7   : > { %v7080_v62 = vsel %vm7009_vm2, %v6913_v37, %v7048_v42  ;;  %vm7007_vm3 = vcmp.ge.f32.partialorder %v6911_v21, 0.0  ;;  %v7046_v30 = vmul.f32 %v14865_v19, %v6911_v21  ;;  %v6916_v31 = vadd.f32 %v11882_v33, %v6322_v35 }
 0x2a8   : > { %v7225_v48 = vrot.slane %v7223_v58, 7  ;;  %v7206_v26 = vshrl.u32 %v11083_v3, 16  ;;  %v11086_v20 = vpack.c.bf16 %v7080_v62, %v7080_v62  ;;  %v6767_v16 = vpop.f32.mrf.mxu1  ;;  %v7209_v50 = vshll.u32 %v11083_v3, 16 }
 0x2a9   : > { %v7078_v40 = vsel %vm7007_vm3, %v6911_v21, %v7046_v30  ;;  %v6914_v47 = vadd.f32 %v6767_v16, %v6320_v8  ;;  %v14935_v57 = vadd.f32 %v6237_v56, %v15695_v52  ;;  %vm7012_vm4 = vcmp.ge.f32.partialorder %v6916_v31, 0.0  ;;  %v11851_v8 = vpop.f32.mrf.mxu0  ;;  %v7537_v21 = vld [vmem:[#allocation3 + $0x20] sm:$0x1] }
 0x2aa   : > { %v7228_v61 = vor.u32 %v7226_v38, %v7225_v48  ;;  %v7208_v54 = vrot.slane %v7206_v26, 7  ;;  %v7231_v25 = vshrl.u32 %v11086_v20, 16  ;;  %v7229_v34 = vrot.slane %v7225_v48, 4  ;;  %v11883_v37 = vpop.f32.mrf.mxu1 }
 0x2ab   : > { %v11084_v29 = vpack.c.bf16 %v7078_v40, %v7078_v40  ;;  %v7051_v28 = vmul.f32 %v14865_v19, %v6916_v31  ;;  %v7234_v35 = vshll.u32 %v11086_v20, 16  ;;  %vm7010_vm9 = vcmp.ge.f32.partialorder %v6914_v47, 0.0  ;;  %v15699_v40 = vld [vmem:[#allocation33_spill] sm:$0xff] }
 0x2ac   : > { %v7534_v63 = vsel %vm12989_vm6, %v7228_v61, %v7533_v55  ;;  %v7211_v4 = vor.u32 %v7209_v50, %v7208_v54  ;;  %v7233_v15 = vrot.slane %v7231_v25, 7  ;;  %v7212_v42 = vrot.slane %v7208_v54, 4  ;;  %v6770_v26 = vpop.f32.mrf.mxu1  ;;  %v7530_v55 = vld [vmem:[#allocation3 + $0x14] sm:$0x1]  ;;  %v6240_v61 = vpop.f32.mrf.mxu0 }
 0x2ad   : > { %7535 = vst [vmem:[#allocation3 + $0x18] sm:$0xf] %v7534_v63  ;;  %v7214_v58 = vshrl.u32 %v11084_v29, 16  ;;  %v7083_v3 = vsel %vm7012_vm4, %v6916_v31, %v7051_v28  ;;  %v7217_v62 = vshll.u32 %v11084_v29, 16  ;;  %v7049_v30 = vmul.f32 %v14865_v19, %v6914_v47  ;;  %v7547_v63 = vld [vmem:[#allocation3 + $0x30] sm:$0xf] }
 0x2ae   : > { %v7527_v36 = vsel %vm12989_vm6, %v7211_v4, %v7526_v14  ;;  %v7236_v43 = vor.u32 %v7234_v35, %v7233_v15  ;;  %v7238_v60 = vrot.slane %v7233_v15, 4  ;;  %v11089_v33 = vpack.c.bf16 %v7083_v3, %v7083_v3  ;;  %v15700_v4 = vld [vmem:[#allocation44_spill] sm:$0xff] }
 0x2af   : > { %7528 = vst [vmem:[#allocation3 + $0xc] sm:$0xf] %v7527_v36  ;;  %v7216_v38 = vrot.slane %v7214_v58, 7  ;;  %v6917_v48 = vadd.f32 %v11883_v37, %v14877_v12  ;;  %v14949_v31 = vadd.f32 %v11851_v8, %v15699_v40  ;;  %v7081_v12 = vsel %vm7010_vm9, %v6914_v47, %v7049_v30 }
 0x2b0   : > { %v7237_v0 = vsel %vm12979_vm5, %v7229_v34, %v7236_v43  ;;  %v7538_v16 = vsel %vm13001_vm7, %v7238_v60, %v7537_v21  ;;  %v7257_v50 = vshrl.u32 %v11089_v33, 16  ;;  %v7260_v52 = vshll.u32 %v11089_v33, 16 }
 0x2b1   : > { %7536 = vst [vmem:[#allocation3 + $0x1c] sm:$0xf] %v7237_v0  ;;  %7539 = vst [vmem:[#allocation3 + $0x20] sm:$0x1] %v7538_v16  ;;  %v7219_v54 = vor.u32 %v7217_v62, %v7216_v38  ;;  %v7221_v25 = vrot.slane %v7216_v38, 4  ;;  %v11087_v29 = vpack.c.bf16 %v7081_v12, %v7081_v12  ;;  %vm7013_vm10 = vcmp.ge.f32.partialorder %v6917_v48, 0.0  ;;  %v11886_v8 = vpop.f32.mrf.mxu1 }
 0x2b2   : > { %v14952_v14 = vrot.slane %v7257_v50, 7  ;;  %v7052_v34 = vmul.f32 %v14865_v19, %v6917_v48  ;;  %v14960_v15 = vadd.f32 %v6240_v61, %v15700_v4  ;;  %v6915_v35 = vadd.f32 %v6770_v26, %v14881_v23  ;;  %v15701_v0 = vld [vmem:[#allocation37_spill] sm:$0xff] }
 0x2b3   : > { %v7220_v28 = vsel %vm12979_vm5, %v7212_v42, %v7219_v54  ;;  %v7531_v37 = vsel %vm13001_vm7, %v7221_v25, %v7530_v55  ;;  %v7240_v3 = vshrl.u32 %v11087_v29, 16  ;;  %v7243_v36 = vshll.u32 %v11087_v29, 16  ;;  %v11854_v42 = vpop.f32.mrf.mxu0  ;;  %v6783_v23 = vpop.f32.mrf.mxu1  ;;  %v15702_v54 = vld [vmem:[#allocation45_spill] sm:$0xff] }
 0x2b4   : > { %v7648_v47 = vld [vmem:[#allocation3 + $0x18] sm:$0x1]  ;;  %7529 = vst [vmem:[#allocation3 + $0x10] sm:$0xf] %v7220_v28  ;;  %7532 = vst [vmem:[#allocation3 + $0x14] sm:$0x1] %v7531_v37  ;;  %v7262_v21 = vor.u32 %v7260_v52, %v14952_v14  ;;  %v7084_v60 = vsel %vm7013_vm10, %v6917_v48, %v7052_v34  ;;  %v7050_v33 = vmul.f32 %v14865_v19, %v6915_v35 }
 0x2b5   : > { %v7263_v58 = vrot.slane %v14952_v14, 4  ;;  %v7649_v43 = vsel %vm13001_vm7, 0, %v7648_v47  ;;  %vm7011_vm11 = vcmp.ge.f32.partialorder %v6915_v35, 0.0  ;;  %v14971_v30 = vrot.slane %v7240_v3, 7  ;;  %v6253_v55 = vpop.f32.mrf.mxu0  ;;  %v7540_v48 = vld [vmem:[#allocation3 + $0x24] sm:$0xf]  ;;  %v11887_v37 = vpop.f32.mrf.mxu1 }
 0x2b6   : > { %7650 = vst [vmem:[#allocation3 + $0x18] sm:$0x1] %v7649_v43  ;;  %v7645_v38 = vld [vmem:[#allocation3 + $0xc] sm:$0x1]  ;;  %v7548_v62 = vsel %vm12989_vm6, %v7262_v21, %v7547_v63  ;;  %v11090_v26 = vpack.c.bf16 %v7084_v60, %v7084_v60  ;;  %v14974_v16 = vadd.f32 %v11854_v42, %v15701_v0  ;;  %v7082_v40 = vsel %vm7011_vm11, %v6915_v35, %v7050_v33  ;;  %v7551_v47 = vld [vmem:[#allocation3 + $0x38] sm:$0x1] }
 0x2b7   : > { %v7646_v50 = vsel %vm13001_vm7, 0, %v7645_v38  ;;  %7549 = vst [vmem:[#allocation3 + $0x30] sm:$0xf] %v7548_v62  ;;  %v6920_v61 = vadd.f32 %v11886_v8, %v14885_v10  ;;  %v14980_v25 = vadd.f32 %v6253_v55, %v15702_v54  ;;  %v7245_v12 = vor.u32 %v7243_v36, %v14971_v30  ;;  %v11855_v28 = vpop.f32.mrf.mxu0  ;;  %v15704_v36 = vld [vmem:[#allocation32_spill] sm:$0xff]  ;;  %v7544_v55 = vld [vmem:[#allocation3 + $0x2c] sm:$0x1]  ;;  %v6786_v54 = vpop.f32.mrf.mxu1 }
 0x2b8   : > { %7647 = vst [vmem:[#allocation3 + $0xc] sm:$0x1] %v7646_v50  ;;  %v7696_v52 = vld [vmem:[#allocation3 + $0x20] sm:$0x1]  ;;  %v7246_v14 = vrot.slane %v14971_v30, 4  ;;  %v7265_v29 = vshrl.u32 %v11090_v26, 16  ;;  %v11088_v35 = vpack.c.bf16 %v7082_v40, %v7082_v40  ;;  %v6918_v3 = vadd.f32 %v6783_v23, %v14889_v2 }
 0x2b9   : > { %v7268_v34 = vshll.u32 %v11090_v26, 16  ;;  %v7697_v4 = vsel %vm13035_vm8, 0, %v7696_v52  ;;  %vm7016_vm12 = vcmp.ge.f32.partialorder %v6920_v61, 0.0  ;;  %v7055_v10 = vmul.f32 %v14865_v19, %v6920_v61  ;;  %v6256_v40 = vpop.f32.mrf.mxu0  ;;  %v12412_v63 = vld [vmem:[#allocation11 + $0xe8] sm:$0xff]  }
 0x2ba   : > { %7698 = vst [vmem:[#allocation3 + $0x20] sm:$0x1] %v7697_v4  ;;  %v7541_v8 = vsel %vm12989_vm6, %v7245_v12, %v7540_v48  ;;  %v7267_v21 = vrot.slane %v7265_v29, 7  ;;  %v14991_v42 = vadd.f32 %v11855_v28, %v15704_v36  ;;  %v7248_v60 = vshrl.u32 %v11088_v35, 16  ;;  %v12346_v48 = vld [vmem:[#allocation3] sm:$0xff]  }
 0x2bb   : > { %v7693_v43 = vld [vmem:[#allocation3 + $0x14] sm:$0x1]  ;;  %7542 = vst [vmem:[#allocation3 + $0x24] sm:$0xf] %v7541_v8  ;;  %v7251_v33 = vshll.u32 %v11088_v35, 16  ;;  %v7087_v38 = vsel %vm7016_vm12, %v6920_v61, %v7055_v10  ;;  %v6921_v62 = vadd.f32 %v11887_v37, %v14893_v5  ;;  %vm7014_vm13 = vcmp.ge.f32.partialorder %v6918_v3, 0.0 }
 0x2bc   : > { %v7694_v30 = vsel %vm13035_vm8, 0, %v7693_v43  ;;  %v7270_v26 = vor.u32 %v7268_v34, %v7267_v21  ;;  %v7272_v0 = vrot.slane %v7267_v21, 4  ;;  %v11093_v50 = vpack.c.bf16 %v7087_v38, %v7087_v38  ;;  %v7561_v43 = vld [vmem:[#allocation3 + $0x48] sm:$0xf] }
 0x2bd   : > { %7695 = vst [vmem:[#allocation3 + $0x14] sm:$0x1] %v7694_v30  ;;  %v7250_v2 = vrot.slane %v7248_v60, 7  ;;  %v7053_v23 = vmul.f32 %v14865_v19, %v6918_v3  ;;  %vm7017_vm14 = vcmp.ge.f32.partialorder %v6921_v62, 0.0  ;;  %v12347_v52 = vld [vmem:[#allocation3 + $0x18] sm:$0xff]   ;;  %v15008_v21 = vadd.f32 %v6256_v40, %v14821_v39 }
 0x2be   : > { %v7654_v61 = vld [vmem:[#allocation3 + $0x30] sm:$0x1]  ;;  %v7271_v5 = vsel %vm12979_vm5, %v7263_v58, %v7270_v26  ;;  %v7552_v12 = vsel %vm13001_vm7, %v7272_v0, %v7551_v47  ;;  %v7291_v29 = vshrl.u32 %v11093_v50, 16  ;;  %v7294_v34 = vshll.u32 %v11093_v50, 16 }
 0x2bf   : > { %v7655_v28 = vsel %vm13001_vm7, 0, %v7654_v61  ;;  %7550 = vst [vmem:[#allocation3 + $0x34] sm:$0xf] %v7271_v5  ;;  %7553 = vst [vmem:[#allocation3 + $0x38] sm:$0x1] %v7552_v12  ;;  %v7253_v37 = vor.u32 %v7251_v33, %v7250_v2  ;;  %v7255_v4 = vrot.slane %v7250_v2, 4  ;;  %v7085_v35 = vsel %vm7014_vm13, %v6918_v3, %v7053_v23  ;;  %v11890_v33 = vpop.f32.mrf.mxu1 }
 0x2c0   : > { %7656 = vst [vmem:[#allocation3 + $0x30] sm:$0x1] %v7655_v28  ;;  %v15004_v10 = vrot.slane %v7291_v29, 7  ;;  %v11091_v8 = vpack.c.bf16 %v7085_v35, %v7085_v35  ;;  %v7056_v58 = vmul.f32 %v14865_v19, %v6921_v62  ;;  %v6919_v60 = vadd.f32 %v6786_v54, %v14898_v1  ;;  %v7554_v61 = vld [vmem:[#allocation3 + $0x3c] sm:$0xf] }
 0x2c1   : > { %v7254_v47 = vsel %vm12979_vm5, %v7246_v14, %v7253_v37  ;;  %v7545_v36 = vsel %vm13001_vm7, %v7255_v4, %v7544_v55  ;;  %v10825_v3 = vpack.c.b16 %v12347_v52, %v12346_v48  ;;  %v11858_v50 = vpop.f32.mrf.mxu0  ;;  %v6799_v2 = vpop.f32.mrf.mxu1 }
 0x2c2   : > { %v7651_v38 = vld [vmem:[#allocation3 + $0x24] sm:$0x1]  ;;  %7543 = vst [vmem:[#allocation3 + $0x28] sm:$0xf] %v7254_v47  ;;  %7546 = vst [vmem:[#allocation3 + $0x2c] sm:$0x1] %v7545_v36  ;;  %v7296_v30 = vor.u32 %v7294_v34, %v15004_v10  ;;  %v7088_v55 = vsel %vm7017_vm14, %v6921_v62, %v7056_v58  ;;  %v7054_v1 = vmul.f32 %v14865_v19, %v6919_v60 }
 0x2c3   : > { %v7297_v26 = vrot.slane %v15004_v10, 4  ;;  %v7274_v39 = vshrl.u32 %v11091_v8, 16  ;;  %v7277_v0 = vshll.u32 %v11091_v8, 16  ;;  %v7652_v14 = vsel %vm13001_vm7, 0, %v7651_v38  ;;  %11924 = vmatprep.mubr.bf16.mxu0 %v10825_v3  ;;  %v6269_v52 = vpop.f32.mrf.mxu0  ;;  %v11891_v34 = vpop.f32.mrf.mxu1  ;;  %v7565_v36 = vld [vmem:[#allocation3 + $0x50] sm:$0x1] }
 0x2c4   : > { %vm7015_vm0 = vcmp.ge.f32.partialorder %v6919_v60, 0.0  ;;  %7653 = vst [vmem:[#allocation3 + $0x24] sm:$0x1] %v7652_v14  ;;  %v7562_v48 = vsel %vm12989_vm6, %v7296_v30, %v7561_v43  ;;  %v11094_v40 = vpack.c.bf16 %v7088_v55, %v7088_v55  ;;  %v15026_v54 = vadd.f32 %v11858_v50, %v14828_v9 }
 0x2c5   : > { %v15023_v23 = vrot.slane %v7274_v39, 7  ;;  %7563 = vst [vmem:[#allocation3 + $0x48] sm:$0xf] %v7562_v48  ;;  %v7086_v5 = vsel %vm7015_vm0, %v6919_v60, %v7054_v1  ;;  %v6924_v62 = vadd.f32 %v11890_v33, %v14902_v24  ;;  %v15030_v12 = vadd.f32 %v6269_v52, %v14836_v7  ;;  %v11859_v10 = vpop.f32.mrf.mxu0  ;;  %v6802_v7 = vpop.f32.mrf.mxu1 }
 0x2c6   : > { %v6922_v29 = vadd.f32 %v6799_v2, %v14906_v32  ;;  %v7702_v28 = vld [vmem:[#allocation3 + $0x38] sm:$0x1]  ;;  %v7299_v35 = vshrl.u32 %v11094_v40, 16  ;;  %v7302_v9 = vshll.u32 %v11094_v40, 16  ;;  %v11092_v58 = vpack.c.bf16 %v7086_v5, %v7086_v5 }
 0x2c7   : > { %v7279_v37 = vor.u32 %v7277_v0, %v15023_v23  ;;  %v7280_v4 = vrot.slane %v15023_v23, 4  ;;  %v7703_v8 = vsel %vm13035_vm8, 0, %v7702_v28  ;;  %vm7020_vm1 = vcmp.ge.f32.partialorder %v6924_v62, 0.0  ;;  %v6272_v60 = vpop.f32.mrf.mxu0  ;;  %v11894_v0 = vpop.f32.mrf.mxu1 }
 0x2c8   : > { %v7059_v24 = vmul.f32 %v14865_v19, %v6924_v62  ;;  %7704 = vst [vmem:[#allocation3 + $0x38] sm:$0x1] %v7703_v8  ;;  %v7301_v47 = vrot.slane %v7299_v35, 7  ;;  %vm7018_vm2 = vcmp.ge.f32.partialorder %v6922_v29, 0.0  ;;  %v7057_v43 = vmul.f32 %v14865_v19, %v6922_v29 }
 0x2c9   : > { %v7555_v32 = vsel %vm12989_vm6, %v7279_v37, %v7554_v61  ;;  %v7699_v33 = vld [vmem:[#allocation3 + $0x2c] sm:$0x1]  ;;  %v7282_v3 = vshrl.u32 %v11092_v58, 16  ;;  %v7285_v38 = vshll.u32 %v11092_v58, 16  ;;  %v15042_v39 = vadd.f32 %v11859_v10, %v14847_v44  ;;  %v6815_v52 = vpop.f32.mrf.mxu1 }
 0x2ca   : > { %7556 = vst [vmem:[#allocation3 + $0x3c] sm:$0xf] %v7555_v32  ;;  %v7091_v30 = vsel %vm7020_vm1, %v6924_v62, %v7059_v24  ;;  %v7700_v50 = vsel %vm13035_vm8, 0, %v7699_v33  ;;  %v7304_v14 = vor.u32 %v7302_v9, %v7301_v47  ;;  %v7306_v55 = vrot.slane %v7301_v47, 4  ;;  %v7558_v62 = vld [vmem:[#allocation3 + $0x44] sm:$0x1] }
 0x2cb   : > { %v11097_v1 = vpack.c.bf16 %v7091_v30, %v7091_v30  ;;  %7701 = vst [vmem:[#allocation3 + $0x2c] sm:$0x1] %v7700_v50  ;;  %v7284_v2 = vrot.slane %v7282_v3, 7  ;;  %v7089_v48 = vsel %vm7018_vm2, %v6922_v29, %v7057_v43  ;;  %v6925_v23 = vadd.f32 %v11891_v34, %v14910_v51  ;;  %v11895_v9 = vpop.f32.mrf.mxu1  ;;  %v7568_v50 = vld [vmem:[#allocation3 + $0x54] sm:$0xf] }
 0x2cc   : > { %v15049_v40 = vadd.f32 %v6272_v60, %v14858_v53  ;;  %v7660_v61 = vld [vmem:[#allocation3 + $0x48] sm:$0x1]  ;;  %v7305_v44 = vsel %vm12979_vm5, %v7297_v26, %v7304_v14  ;;  %v7566_v5 = vsel %vm13001_vm7, %v7306_v55, %v7565_v36  ;;  %v7575_v53 = vld [vmem:[#allocation3 + $0x60] sm:$0xf]  ;;  %v11095_v34 = vpack.c.bf16 %v7089_v48, %v7089_v48 }
 0x2cd   : > { %v7325_v28 = vshrl.u32 %v11097_v1, 16  ;;  %v7328_v37 = vshll.u32 %v11097_v1, 16  ;;  %v7661_v35 = vsel %vm13001_vm7, 0, %v7660_v61  ;;  %7564 = vst [vmem:[#allocation3 + $0x4c] sm:$0xf] %v7305_v44  ;;  %v7287_v51 = vor.u32 %v7285_v38, %v7284_v2  ;;  %v6818_v36 = vpop.f32.mrf.mxu1 }
 0x2ce   : > { %7567 = vst [vmem:[#allocation3 + $0x50] sm:$0x1] %v7566_v5  ;;  %v7289_v29 = vrot.slane %v7284_v2, 4  ;;  %7662 = vst [vmem:[#allocation3 + $0x48] sm:$0x1] %v7661_v35  ;;  %vm7021_vm3 = vcmp.ge.f32.partialorder %v6925_v23, 0.0  ;;  %v7060_v26 = vmul.f32 %v14865_v19, %v6925_v23  ;;  %v6923_v8 = vadd.f32 %v6802_v7, %v14915_v6 }
 0x2cf   : > { %v7327_v10 = vrot.slane %v7325_v28, 7  ;;  %v7288_v58 = vsel %vm12979_vm5, %v7280_v4, %v7287_v51  ;;  %v7308_v32 = vshrl.u32 %v11095_v34, 16  ;;  %v7311_v47 = vshll.u32 %v11095_v34, 16  ;;  %v15073_v2 = vpop.f32.mrf.mxu1 }
 0x2d0   : > { %v7559_v24 = vsel %vm13001_vm7, %v7289_v29, %v7558_v62  ;;  %7557 = vst [vmem:[#allocation3 + $0x40] sm:$0xf] %v7288_v58  ;;  %v7092_v3 = vsel %vm7021_vm3, %v6925_v23, %v7060_v26  ;;  %vm7019_vm4 = vcmp.ge.f32.partialorder %v6923_v8, 0.0  ;;  %v7058_v4 = vmul.f32 %v14865_v19, %v6923_v8  ;;  %v7572_v58 = vld [vmem:[#allocation3 + $0x5c] sm:$0x1] }
 0x2d1   : > { %v7657_v43 = vld [vmem:[#allocation3 + $0x3c] sm:$0x1]  ;;  %7560 = vst [vmem:[#allocation3 + $0x44] sm:$0x1] %v7559_v24  ;;  %v7330_v60 = vor.u32 %v7328_v37, %v7327_v10  ;;  %v7331_v33 = vrot.slane %v7327_v10, 4  ;;  %v15065_v6 = vrot.slane %v7308_v32, 7  ;;  %v11098_v7 = vpack.c.bf16 %v7092_v3, %v7092_v3  ;;  %v6831_v29 = vpop.f32.mrf.mxu1 }
 0x2d2   : > { %v7658_v38 = vsel %vm13001_vm7, 0, %v7657_v43  ;;  %v6928_v14 = vadd.f32 %v11894_v0, %v14918_v11  ;;  %v6926_v55 = vadd.f32 %v6815_v52, %v14921_v45  ;;  %v6929_v1 = vadd.f32 %v11895_v9, %v14925_v59  ;;  %v7579_v0 = vld [vmem:[#allocation3 + $0x68] sm:$0x1] }
 0x2d3   : > { %7659 = vst [vmem:[#allocation3 + $0x3c] sm:$0x1] %v7658_v38  ;;  %v7576_v30 = vsel %vm12989_vm6, %v7330_v60, %v7575_v53  ;;  %v7313_v48 = vor.u32 %v7311_v47, %v15065_v6  ;;  %v7314_v23 = vrot.slane %v15065_v6, 4  ;;  %v7333_v61 = vshrl.u32 %v11098_v7, 16 }
 0x2d4   : > { %7577 = vst [vmem:[#allocation3 + $0x60] sm:$0xf] %v7576_v30  ;;  %v7336_v44 = vshll.u32 %v11098_v7, 16  ;;  %v7090_v62 = vsel %vm7019_vm4, %v6923_v8, %v7058_v4  ;;  %vm7024_vm9 = vcmp.ge.f32.partialorder %v6928_v14, 0.0  ;;  %v7063_v28 = vmul.f32 %v14865_v19, %v6928_v14 }
 0x2d5   : > { %v7708_v5 = vld [vmem:[#allocation3 + $0x50] sm:$0x1]  ;;  %vm7022_vm10 = vcmp.ge.f32.partialorder %v6926_v55, 0.0  ;;  %v7569_v45 = vsel %vm12989_vm6, %v7313_v48, %v7568_v50  ;;  %v7335_v59 = vrot.slane %v7333_v61, 7  ;;  %v11096_v52 = vpack.c.bf16 %v7090_v62, %v7090_v62  ;;  %v7589_v48 = vld [vmem:[#allocation3 + $0x78] sm:$0xf] }
 0x2d6   : > { %v7709_v11 = vsel %vm13035_vm8, 0, %v7708_v5  ;;  %7570 = vst [vmem:[#allocation3 + $0x54] sm:$0xf] %v7569_v45  ;;  %v7095_v37 = vsel %vm7024_vm9, %v6928_v14, %v7063_v28  ;;  %v7061_v35 = vmul.f32 %v14865_v19, %v6926_v55  ;;  %vm7025_vm11 = vcmp.ge.f32.partialorder %v6929_v1, 0.0  ;;  %v15093_v14 = vpop.f32.mrf.mxu1 }
 0x2d7   : > { %7710 = vst [vmem:[#allocation3 + $0x50] sm:$0x1] %v7709_v11  ;;  %v7064_v51 = vmul.f32 %v14865_v19, %v6929_v1  ;;  %v7338_v34 = vor.u32 %v7336_v44, %v7335_v59  ;;  %v7340_v9 = vrot.slane %v7335_v59, 4  ;;  %v7316_v10 = vshrl.u32 %v11096_v52, 16 }
 0x2d8   : > { %v7705_v53 = vld [vmem:[#allocation3 + $0x44] sm:$0x1]  ;;  %v7319_v26 = vshll.u32 %v11096_v52, 16  ;;  %v11101_v24 = vpack.c.bf16 %v7095_v37, %v7095_v37  ;;  %v7093_v32 = vsel %vm7022_vm10, %v6926_v55, %v7061_v35  ;;  %v6927_v50 = vadd.f32 %v6818_v36, %v14928_v13  ;;  %v7582_v37 = vld [vmem:[#allocation3 + $0x6c] sm:$0xf] }
 0x2d9   : > { %v7706_v8 = vsel %vm13035_vm8, 0, %v7705_v53  ;;  %v7096_v47 = vsel %vm7025_vm11, %v6929_v1, %v7064_v51  ;;  %v7339_v43 = vsel %vm12979_vm5, %v7331_v33, %v7338_v34  ;;  %v7580_v60 = vsel %vm13001_vm7, %v7340_v9, %v7579_v0  ;;  %v6834_v51 = vpop.f32.mrf.mxu1  ;;  %v7593_v34 = vld [vmem:[#allocation3 + $0x80] sm:$0x1] }
 0x2da   : > { %7707 = vst [vmem:[#allocation3 + $0x44] sm:$0x1] %v7706_v8  ;;  %v7318_v3 = vrot.slane %v7316_v10, 7  ;;  %v11099_v38 = vpack.c.bf16 %v7093_v32, %v7093_v32  ;;  %7578 = vst [vmem:[#allocation3 + $0x64] sm:$0xf] %v7339_v43  ;;  %v7359_v7 = vshrl.u32 %v11101_v24, 16  ;;  %v11102_v30 = vpack.c.bf16 %v7096_v47, %v7096_v47 }
 0x2db   : > { %v7666_v6 = vld [vmem:[#allocation3 + $0x60] sm:$0x1]  ;;  %7581 = vst [vmem:[#allocation3 + $0x68] sm:$0x1] %v7580_v60  ;;  %v7362_v4 = vshll.u32 %v11101_v24, 16  ;;  %vm7023_vm12 = vcmp.ge.f32.partialorder %v6927_v50, 0.0  ;;  %v7062_v9 = vmul.f32 %v14865_v19, %v6927_v50  ;;  %v6932_v10 = vadd.f32 %v15073_v2, %v14932_v18 }
 0x2dc   : > { %v7667_v55 = vsel %vm13001_vm7, 0, %v7666_v6  ;;  %v7321_v1 = vor.u32 %v7319_v26, %v7318_v3  ;;  %v7323_v33 = vrot.slane %v7318_v3, 4  ;;  %v7342_v61 = vshrl.u32 %v11099_v38, 16  ;;  %v12352_v26 = vld [vmem:[#allocation3 + $0x18] sm:$0xff]   ;;  %v11902_v6 = vpop.f32.mrf.mxu1 }
 0x2dd   : > { %7668 = vst [vmem:[#allocation3 + $0x60] sm:$0x1] %v7667_v55  ;;  %v7361_v44 = vrot.slane %v7359_v7, 7  ;;  %v7345_v5 = vshll.u32 %v11099_v38, 16  ;;  %v7367_v62 = vshrl.u32 %v11102_v30, 16  ;;  %v7370_v28 = vshll.u32 %v11102_v30, 16 }
 0x2de   : > { %v7663_v11 = vld [vmem:[#allocation3 + $0x54] sm:$0x1]  ;;  %v7322_v45 = vsel %vm12979_vm5, %v7314_v23, %v7321_v1  ;;  %v7573_v13 = vsel %vm13001_vm7, %v7323_v33, %v7572_v58  ;;  %v15101_v36 = vrot.slane %v7342_v61, 7  ;;  %v6930_v32 = vadd.f32 %v6831_v29, %v14935_v57  ;;  %v12353_v47 = vld [vmem:[#allocation3 + $0x20] ss:$0 sps:$4 sm:$0x11]  }
 0x2df   : > { %v7664_v59 = vsel %vm13001_vm7, 0, %v7663_v11  ;;  %7571 = vst [vmem:[#allocation3 + $0x58] sm:$0xf] %v7322_v45  ;;  %7574 = vst [vmem:[#allocation3 + $0x5c] sm:$0x1] %v7573_v13  ;;  %v7364_v0 = vor.u32 %v7362_v4, %v7361_v44  ;;  %v7365_v52 = vrot.slane %v7361_v44, 4  ;;  %v7094_v3 = vsel %vm7023_vm12, %v6927_v50, %v7062_v9 }
 0x2e0   : > { %v7369_v35 = vrot.slane %v7367_v62, 7  ;;  %7665 = vst [vmem:[#allocation3 + $0x54] sm:$0x1] %v7664_v59  ;;  %v7347_v53 = vor.u32 %v7345_v5, %v15101_v36  ;;  %v7348_v23 = vrot.slane %v15101_v36, 4  ;;  %vm7028_vm13 = vcmp.ge.f32.partialorder %v6932_v10, 0.0 }
 0x2e1   : > { %v7590_v8 = vsel %vm12989_vm6, %v7364_v0, %v7589_v48  ;;  %v7067_v38 = vmul.f32 %v14865_v19, %v6932_v10  ;;  %v11100_v29 = vpack.c.bf16 %v7094_v3, %v7094_v3  ;;  %vm7026_vm14 = vcmp.ge.f32.partialorder %v6930_v32, 0.0  ;;  %v7586_v61 = vld [vmem:[#allocation3 + $0x74] sm:$0x1]  ;;  %v6847_v0 = vpop.f32.mrf.mxu1 }
 0x2e2   : > { %v7372_v58 = vor.u32 %v7370_v28, %v7369_v35  ;;  %v7374_v24 = vrot.slane %v7369_v35, 4  ;;  %v7714_v43 = vld [vmem:[#allocation3 + $0x68] sm:$0x1]  ;;  %7591 = vst [vmem:[#allocation3 + $0x78] sm:$0xf] %v7590_v8  ;;  %v7583_v60 = vsel %vm12989_vm6, %v7347_v53, %v7582_v37  ;;  %v7065_v4 = vmul.f32 %v14865_v19, %v6930_v32 }
 0x2e3   : > { %v7715_v18 = vsel %vm13035_vm8, 0, %v7714_v43  ;;  %7584 = vst [vmem:[#allocation3 + $0x6c] sm:$0xf] %v7583_v60  ;;  %v7099_v7 = vsel %vm7028_vm13, %v6932_v10, %v7067_v38  ;;  %v8413_v30 = vrot.slane %v12352_v26, 1  ;;  %v7350_v50 = vshrl.u32 %v11100_v29, 16  ;;  %v11903_v60 = vpop.f32.mrf.mxu1 }
 0x2e4   : > { %v7373_v2 = vsel %vm12979_vm5, %v7365_v52, %v7372_v58  ;;  %v7594_v57 = vsel %vm13001_vm7, %v7374_v24, %v7593_v34  ;;  %7716 = vst [vmem:[#allocation3 + $0x68] sm:$0x1] %v7715_v18  ;;  %v7353_v55 = vshll.u32 %v11100_v29, 16  ;;  %v11105_v1 = vpack.c.bf16 %v7099_v7, %v7099_v7  ;;  %v7596_v43 = vld [vmem:[#allocation3 + $0x84] sm:$0xf] }
 0x2e5   : > { %7592 = vst [vmem:[#allocation3 + $0x7c] sm:$0xf] %v7373_v2  ;;  %7595 = vst [vmem:[#allocation3 + $0x80] sm:$0x1] %v7594_v57  ;;  %v8414_v33 = vrot.slane %v12353_v47, 1  ;;  %v7097_v44 = vsel %vm7026_vm14, %v6930_v32, %v7065_v4  ;;  %v6933_v5 = vadd.f32 %v15093_v14, %v14949_v31  ;;  %v6931_v62 = vadd.f32 %v6834_v51, %v14960_v15 }
 0x2e6   : > { %v7711_v48 = vld [vmem:[#allocation3 + $0x5c] sm:$0x1]  ;;  %v15128_v28 = vadd.f32 %v11902_v6, %v14974_v16  ;;  %v7352_v45 = vrot.slane %v7350_v50, 7  ;;  %v7393_v13 = vshrl.u32 %v11105_v1, 16  ;;  %v7396_v59 = vshll.u32 %v11105_v1, 16 }
 0x2e7   : > { %v7712_v11 = vsel %vm13035_vm8, 0, %v7711_v48  ;;  %v11103_v52 = vpack.c.bf16 %v7097_v44, %v7097_v44  ;;  %v8415_v37 = vsel %vm8409_vm15, %v8413_v30, %v8414_v33  ;;  %vm7029_vm0 = vcmp.ge.f32.partialorder %v6933_v5, 0.0  ;;  %v7603_v16 = vld [vmem:[#allocation3 + $0x90] sm:$0xf]  ;;  %v6850_v48 = vpop.f32.mrf.mxu1 }
 0x2e8   : > { %7713 = vst [vmem:[#allocation3 + $0x5c] sm:$0x1] %v7712_v11  ;;  %v7068_v35 = vmul.f32 %v14865_v19, %v6933_v5  ;;  %v7355_v14 = vor.u32 %v7353_v55, %v7352_v45  ;;  %v7357_v15 = vrot.slane %v7352_v45, 4  ;;  %v15134_v51 = vrot.slane %v7393_v13, 7  ;;  %v12358_v30 = vld [vmem:[#allocation3 + $0x30] sm:$0xff]   ;;  %v12366_v45 = vld [vmem:[#allocation11 + $0x70] sm:$0xff]  }
 0x2e9   : > { %v7672_v31 = vld [vmem:[#allocation3 + $0x78] sm:$0x1]  ;;  %v10881_v53 = vpack.c.b16 %v8415_v37, %v14852_v46  ;;  %v7376_v10 = vshrl.u32 %v11103_v52, 16  ;;  %v7379_v26 = vshll.u32 %v11103_v52, 16  ;;  %vm7027_vm1 = vcmp.ge.f32.partialorder %v6931_v62, 0.0 }
 0x2ea   : > { %v7673_v34 = vsel %vm13001_vm7, 0, %v7672_v31  ;;  %v7669_v9 = vld [vmem:[#allocation3 + $0x6c] sm:$0x1]  ;;  %v7100_v8 = vsel %vm7029_vm0, %v6933_v5, %v7068_v35  ;;  %v7356_v32 = vsel %vm12979_vm5, %v7348_v23, %v7355_v14  ;;  %v7587_v46 = vsel %vm13001_vm7, %v7357_v15, %v7586_v61  ;;  %v15162_v55 = vld [vmem:[%s15579_s5] ss:$0 sm:$0xff] }
 0x2eb   : > { %7674 = vst [vmem:[#allocation3 + $0x78] sm:$0x1] %v7673_v34  ;;  %v7670_v58 = vsel %vm13001_vm7, 0, %v7669_v9  ;;  %v7398_v47 = vor.u32 %v7396_v59, %v15134_v51  ;;  %11972 = vmatprep.mubr.bf16.mxu1 %v10881_v53  ;;  %7585 = vst [vmem:[#allocation3 + $0x70] sm:$0xf] %v7356_v32  ;;  %v7399_v38 = vrot.slane %v15134_v51, 4  ;;  %v11106_v18 = vpack.c.bf16 %v7100_v8, %v7100_v8 }
 0x2ec   : > { %v7720_v24 = vld [vmem:[#allocation3 + $0x80] sm:$0x1]  ;;  %7671 = vst [vmem:[#allocation3 + $0x6c] sm:$0x1] %v7670_v58  ;;  %7588 = vst [vmem:[#allocation3 + $0x74] sm:$0x1] %v7587_v46  ;;  %v7066_v57 = vmul.f32 %v14865_v19, %v6931_v62  ;;  %v7071_v1 = vmul.f32 %v15162_v55, %v15128_v28  ;;  %v6934_v19 = vadd.f32 %v6847_v0, %v14980_v25 }
 0x2ed   : > { %v7721_v3 = vsel %vm13035_vm8, 0, %v7720_v24  ;;  %v15151_v36 = vrot.slane %v7376_v10, 7  ;;  %v12359_v23 = vld [vmem:[#allocation3 + $0x48] sm:$0xff]   ;;  %v7604_v2 = vsel %vm12989_vm6, %v7398_v47, %v7603_v16  ;;  %vm7032_vm2 = vcmp.ge.f32.partialorder %v15128_v28, 0.0  ;;  %v7607_v5 = vld [vmem:[#allocation3 + $0x98] sm:$0x1]  ;;  %v11906_v16 = vpop.f32.mrf.mxu1 }
 0x2ee   : > { %7722 = vst [vmem:[#allocation3 + $0x80] sm:$0x1] %v7721_v3  ;;  %7605 = vst [vmem:[#allocation3 + $0x90] sm:$0xf] %v7604_v2  ;;  %v7401_v7 = vshrl.u32 %v11106_v18, 16  ;;  %v7404_v4 = vshll.u32 %v11106_v18, 16  ;;  %v7098_v50 = vsel %vm7027_vm1, %v6931_v62, %v7066_v57  ;;  %v6937_v33 = vadd.f32 %v11903_v60, %v14991_v42 }
 0x2ef   : > { %v7381_v29 = vor.u32 %v7379_v26, %v15151_v36  ;;  %v7382_v6 = vrot.slane %v15151_v36, 4  ;;  %v11104_v11 = vpack.c.bf16 %v7098_v50, %v7098_v50  ;;  %v10826_v62 = vpack.c.b16 %v12359_v23, %v12358_v30  ;;  %v7600_v35 = vld [vmem:[#allocation3 + $0x8c] sm:$0x1]  ;;  %v12368_v53 = vld [vmem:[#allocation11 + $0x68] sm:$0xff]   ;;  %v7617_v60 = vld [vmem:[#allocation3 + $0xa8] sm:$0xf] }
 0x2f0   : > { %v7403_v44 = vrot.slane %v7401_v7, 7  ;;  %v7103_v13 = vsel %vm7032_vm2, %v15128_v28, %v7071_v1  ;;  %vm7030_vm3 = vcmp.ge.f32.partialorder %v6934_v19, 0.0  ;;  %v7069_v59 = vmul.f32 %v15162_v55, %v6934_v19  ;;  %v12535_v28 = vld [vmem:[#allocation11 + $0x78] sm:$0xff]   ;;  %v12372_v18 = vld [vmem:[#allocation11 + $0x60] sm:$0xff]  }
 0x2f1   : > { %v7597_v61 = vsel %vm12989_vm6, %v7381_v29, %v7596_v43  ;;  %vm7033_vm4 = vcmp.ge.f32.partialorder %v6937_v33, 0.0  ;;  %v7384_v0 = vshrl.u32 %v11104_v11, 16  ;;  %v7387_v52 = vshll.u32 %v11104_v11, 16  ;;  %11925 = vmatmul.mubr.bf16.vlgmr.msra.gmra.mxu0 %v10826_v62  ;;  %v6863_v29 = vpop.f32.mrf.mxu1  ;;  %v7610_v50 = vld [vmem:[#allocation3 + $0x9c] sm:$0xf] }
 0x2f2   : > { %7598 = vst [vmem:[#allocation3 + $0x84] sm:$0xf] %v7597_v61  ;;  %v7406_v25 = vor.u32 %v7404_v4, %v7403_v44  ;;  %v7408_v42 = vrot.slane %v7403_v44, 4  ;;  %v11109_v31 = vpack.c.bf16 %v7103_v13, %v7103_v13  ;;  %v7101_v14 = vsel %vm7030_vm3, %v6934_v19, %v7069_v59  ;;  %11933 = vmatpush3.bf16.msra.mxu0 %v12535_v28  ;;  %v7621_v36 = vld [vmem:[#allocation3 + $0xb0] sm:$0x1] }
 0x2f3   : > { %v7717_v37 = vld [vmem:[#allocation3 + $0x74] sm:$0x1]  ;;  %v7072_v15 = vmul.f32 %v15162_v55, %v6937_v33  ;;  %v15176_v51 = vadd.f32 %v6850_v48, %v15008_v21  ;;  %v7386_v26 = vrot.slane %v7384_v0, 7  ;;  %11934 = vmatprep.subr.bf16.mxu0 %v12366_v45  ;;  %v11107_v24 = vpack.c.bf16 %v7101_v14, %v7101_v14  ;;  %v12365_v13 = vld [vmem:[#allocation3 + $0x50] ss:$0 sps:$4 sm:$0x11]  }
 0x2f4   : > { %v7718_v34 = vsel %vm13035_vm8, 0, %v7717_v37  ;;  %v7407_v9 = vsel %vm12979_vm5, %v7399_v38, %v7406_v25  ;;  %v7608_v10 = vsel %vm13001_vm7, %v7408_v42, %v7607_v5  ;;  %v7427_v21 = vshrl.u32 %v11109_v31, 16  ;;  %v15187_v38 = vld [vmem:[#allocation3 + $0x30] sm:$0xff]   ;;  %v12363_v5 = vld [vmem:[#allocation3 + $0x38] ss:$0 sps:$4 sm:$0x11]  }
 0x2f5   : > { %7719 = vst [vmem:[#allocation3 + $0x74] sm:$0x1] %v7718_v34  ;;  %v7678_v8 = vld [vmem:[#allocation3 + $0x90] sm:$0x1]  ;;  %7606 = vst [vmem:[#allocation3 + $0x94] sm:$0xf] %v7407_v9  ;;  %v7104_v32 = vsel %vm7033_vm4, %v6937_v33, %v7072_v15  ;;  %v7389_v47 = vor.u32 %v7387_v52, %v7386_v26  ;;  %v7070_v11 = vmul.f32 %v15162_v55, %v15176_v51 }
 0x2f6   : > { %7609 = vst [vmem:[#allocation3 + $0x98] sm:$0x1] %v7608_v10  ;;  %v7430_v58 = vshll.u32 %v11109_v31, 16  ;;  %v7679_v46 = vsel %vm13001_vm7, 0, %v7678_v8  ;;  %v7391_v43 = vrot.slane %v7386_v26, 4  ;;  %v11110_v3 = vpack.c.bf16 %v7104_v32, %v7104_v32  ;;  %11935 = vmatpush3.bf16.msra.mxu0 %v12366_v45  ;;  %v12364_v0 = vld [vmem:[#allocation3 + $0x48] sm:$0xff]  }
 0x2f7   : > { %7680 = vst [vmem:[#allocation3 + $0x90] sm:$0x1] %v7679_v46  ;;  %v7429_v23 = vrot.slane %v7427_v21, 7  ;;  %v7410_v2 = vshrl.u32 %v11107_v24, 16  ;;  %v7413_v57 = vshll.u32 %v11107_v24, 16  ;;  %vm7031_vm9 = vcmp.ge.f32.partialorder %v15176_v51, 0.0  ;;  %11936 = vmatprep.subr.bf16.mxu0 %v12368_v53  ;;  %v11907_v21 = vpop.f32.mrf.mxu1 }
 0x2f8   : > { %v7390_v4 = vsel %vm12979_vm5, %v7382_v6, %v7389_v47  ;;  %v7601_v30 = vsel %vm13001_vm7, %v7391_v43, %v7600_v35  ;;  %v7435_v1 = vshrl.u32 %v11110_v3, 16  ;;  %v7438_v19 = vshll.u32 %v11110_v3, 16  ;;  %v12374_v37 = vld [vmem:[#allocation11 + $0x58] sm:$0xff]   ;;  %v7614_v24 = vld [vmem:[#allocation3 + $0xa4] sm:$0x1] }
 0x2f9   : > { %v7675_v7 = vld [vmem:[#allocation3 + $0x84] sm:$0x1]  ;;  %7599 = vst [vmem:[#allocation3 + $0x88] sm:$0xf] %v7390_v4  ;;  %7602 = vst [vmem:[#allocation3 + $0x8c] sm:$0x1] %v7601_v30  ;;  %v7432_v48 = vor.u32 %v7430_v58, %v7429_v23  ;;  %v6940_v62 = vadd.f32 %v11906_v16, %v15026_v54  ;;  %v6938_v45 = vadd.f32 %v6863_v29, %v15030_v12 }
 0x2fa   : > { %v7676_v33 = vsel %vm13001_vm7, 0, %v7675_v7  ;;  %v7433_v61 = vrot.slane %v7429_v23, 4  ;;  %v15198_v44 = vrot.slane %v7410_v2, 7  ;;  %v7437_v6 = vrot.slane %v7435_v1, 7  ;;  %11937 = vmatpush3.bf16.msra.mxu0 %v12368_v53  ;;  %v15228_v4 = vld [vmem:[#allocation11 + $0x130] sm:$0xff]  }
 0x2fb   : > { %7677 = vst [vmem:[#allocation3 + $0x84] sm:$0x1] %v7676_v33  ;;  %v7618_v59 = vsel %vm12989_vm6, %v7432_v48, %v7617_v60  ;;  %v8416_v52 = vrot.slane %v15187_v38, 1  ;;  %v7102_v54 = vsel %vm7031_vm9, %v15176_v51, %v7070_v11  ;;  %vm7036_vm10 = vcmp.ge.f32.partialorder %v6940_v62, 0.0  ;;  %11938 = vmatprep.subr.bf16.mxu0 %v12372_v18  ;;  %v12380_v60 = vld [vmem:[#allocation11 + $0x50] sm:$0xff]  }
 0x2fc   : > { %v7415_v25 = vor.u32 %v7413_v57, %v15198_v44  ;;  %v7416_v42 = vrot.slane %v15198_v44, 4  ;;  %7619 = vst [vmem:[#allocation3 + $0xa8] sm:$0xf] %v7618_v59  ;;  %v7440_v31 = vor.u32 %v7438_v19, %v7437_v6  ;;  %v7442_v14 = vrot.slane %v7437_v6, 4  ;;  %v7631_v19 = vld [vmem:[#allocation3 + $0xc0] sm:$0xf] }
 0x2fd   : > { %v7726_v35 = vld [vmem:[#allocation3 + $0x98] sm:$0x1]  ;;  %v11108_v16 = vpack.c.bf16 %v7102_v54, %v7102_v54  ;;  %v7075_v28 = vmul.f32 %v15162_v55, %v6940_v62  ;;  %vm7034_vm11 = vcmp.ge.f32.partialorder %v6938_v45, 0.0  ;;  %v7073_v51 = vmul.f32 %v15162_v55, %v6938_v45  ;;  %v7624_v11 = vld [vmem:[#allocation3 + $0xb4] sm:$0xf] }
 0x2fe   : > { %v7727_v12 = vsel %vm13035_vm8, 0, %v7726_v35  ;;  %v7611_v15 = vsel %vm12989_vm6, %v7415_v25, %v7610_v50  ;;  %v7441_v53 = vsel %vm12979_vm5, %v7433_v61, %v7440_v31  ;;  %v7622_v34 = vsel %vm13001_vm7, %v7442_v14, %v7621_v36  ;;  %11939 = vmatpush3.bf16.msra.mxu0 %v12372_v18  ;;  %v6866_v61 = vpop.f32.mrf.mxu1  ;;  %v15230_v36 = vld [vmem:[#allocation11 + $0x48] sm:$0xff]   ;;  %v12370_v35 = vld [vmem:[#allocation3 + $0x78] sm:$0xff]  }
 0x2ff   : > { %7728 = vst [vmem:[#allocation3 + $0x98] sm:$0x1] %v7727_v12  ;;  %7612 = vst [vmem:[#allocation3 + $0x9c] sm:$0xf] %v7611_v15  ;;  %v7418_v9 = vshrl.u32 %v11108_v16, 16  ;;  %v7421_v10 = vshll.u32 %v11108_v16, 16  ;;  %v7107_v26 = vsel %vm7036_vm10, %v6940_v62, %v7075_v28  ;;  %v7105_v46 = vsel %vm7034_vm11, %v6938_v45, %v7073_v51  ;;  %11940 = vmatprep.subr.bf16.mxu0 %v12374_v37 }
 0x300   : > { %7620 = vst [vmem:[#allocation3 + $0xac] sm:$0xf] %v7441_v53  ;;  %7623 = vst [vmem:[#allocation3 + $0xb0] sm:$0x1] %v7622_v34  ;;  %v8417_v8 = vrot.slane %v12363_v5, 1  ;;  %v11113_v32 = vpack.c.bf16 %v7107_v26, %v7107_v26  ;;  %v8419_v47 = vrot.slane %v12364_v0, 1  ;;  %v11111_v23 = vpack.c.bf16 %v7105_v46, %v7105_v46 }
 0x301   : > { %v7723_v58 = vld [vmem:[#allocation3 + $0x8c] sm:$0x1]  ;;  %v8420_v43 = vrot.slane %v12365_v13, 1  ;;  %v7420_v38 = vrot.slane %v7418_v9, 7  ;;  %v6941_v7 = vadd.f32 %v11907_v21, %v15042_v39  ;;  %v15236_v39 = vld [vmem:[#allocation3 + $0x60] sm:$0xff]   ;;  %v15251_v14 = vld [vmem:[#allocation3 + $0x18] sm:$0xff]   ;;  %v6939_v12 = vadd.f32 %v6866_v61, %v15049_v40 }
 0x302   : > { %v7724_v3 = vsel %vm13035_vm8, 0, %v7723_v58  ;;  %v8418_v2 = vsel %vm8409_vm15, %v8416_v52, %v8417_v8  ;;  %v7461_v57 = vshrl.u32 %v11113_v32, 16  ;;  %v7464_v29 = vshll.u32 %v11113_v32, 16  ;;  %11941 = vmatpush3.bf16.msra.mxu0 %v12374_v37  ;;  %v15238_v45 = vld [vmem:[#allocation3 + $0x68] ss:$0 sps:$4 sm:$0x11]  }
 0x303   : > { %7725 = vst [vmem:[#allocation3 + $0x8c] sm:$0x1] %v7724_v3  ;;  %v8421_v18 = vsel %vm8409_vm15, %v8419_v47, %v8420_v43  ;;  %v7684_v30 = vld [vmem:[#allocation3 + $0xa8] sm:$0x1]  ;;  %v7423_v50 = vor.u32 %v7421_v10, %v7420_v38  ;;  %v7425_v1 = vrot.slane %v7420_v38, 4  ;;  %v7444_v33 = vshrl.u32 %v11111_v23, 16  ;;  %11942 = vmatprep.subr.bf16.mxu0 %v12380_v60 }
 0x304   : > { %v7447_v48 = vshll.u32 %v11111_v23, 16  ;;  %v7685_v5 = vsel %vm13001_vm7, 0, %v7684_v30  ;;  %v15234_v6 = vrot.slane %v7461_v57, 7  ;;  %v10882_v62 = vpack.c.b16 %v8421_v18, %v8418_v2  ;;  %v12369_v37 = vld [vmem:[#allocation3 + $0x60] sm:$0xff]   ;;  %v12377_v16 = vld [vmem:[#allocation3 + $0x78] sm:$0xff]   ;;  %v12536_v9 = vld [vmem:[#allocation11 + $0x138] sm:$0xff]  }
 0x305   : > { %vm7037_vm12 = vcmp.ge.f32.partialorder %v6941_v7, 0.0  ;;  %7686 = vst [vmem:[#allocation3 + $0xa8] sm:$0x1] %v7685_v5  ;;  %v7424_v59 = vsel %vm12979_vm5, %v7416_v42, %v7423_v50  ;;  %v7615_v25 = vsel %vm13001_vm7, %v7425_v1, %v7614_v24  ;;  %v15246_v0 = vrot.slane %v7444_v33, 7  ;;  %v15257_v15 = vld [vmem:[#allocation11 + $0x128] sm:$0xff]   ;;  %v15273_v46 = vld [vmem:[#allocation11 + $0x40] sm:$0xff]  }
 0x306   : > { %v7681_v13 = vld [vmem:[#allocation3 + $0x9c] sm:$0x1]  ;;  %v7076_v52 = vmul.f32 %v15162_v55, %v6941_v7  ;;  %v15249_v31 = vld [vmem:[#allocation3 + $0x80] ss:$0 sps:$4 sm:$0x11]   ;;  %v7466_v42 = vor.u32 %v7464_v29, %v15234_v6  ;;  %11973 = vmatmul.mubr.bf16.vlgmr.msra.gmra.mxu1 %v10882_v62  ;;  %v7467_v53 = vrot.slane %v15234_v6, 4  ;;  %11943 = vmatpush3.bf16.msra.mxu0 %v12380_v60  ;;  %v7074_v26 = vmul.f32 %v15162_v55, %v6939_v12 }
 0x307   : > { %vm8054_vm13 = vsmask.f32 7424  ;;  %v7682_v44 = vsel %vm13001_vm7, 0, %v7681_v13  ;;  %v7732_v54 = vld [vmem:[#allocation3 + $0xb0] sm:$0x1]  ;;  %v7449_v34 = vor.u32 %v7447_v48, %v15246_v0  ;;  %12005 = vmatpush3.bf16.msra.mxu1 %v12536_v9  ;;  %vm7035_vm14 = vcmp.ge.f32.partialorder %v6939_v12, 0.0  ;;  %11944 = vmatprep.subr.bf16.mxu0 %v15230_v36 }
 0x308   : > { %7613 = vst [vmem:[#allocation3 + $0xa0] sm:$0xf] %v7424_v59  ;;  %7616 = vst [vmem:[#allocation3 + $0xa4] sm:$0x1] %v7615_v25  ;;  %v7733_v28 = vsel %vm13035_vm8, 0, %v7732_v54  ;;  %v7108_v51 = vsel %vm7037_vm12, %v6941_v7, %v7076_v52  ;;  %v7632_v40 = vsel %vm12989_vm6, %v7466_v42, %v7631_v19  ;;  %12006 = vmatprep.subr.bf16.mxu1 %v15228_v4  ;;  %v7450_v21 = vrot.slane %v15246_v0, 4 }
 0x309   : > { %7683 = vst [vmem:[#allocation3 + $0x9c] sm:$0x1] %v7682_v44  ;;  %7734 = vst [vmem:[#allocation3 + $0xb0] sm:$0x1] %v7733_v28  ;;  %v11114_v10 = vpack.c.bf16 %v7108_v51, %v7108_v51  ;;  %v7625_v58 = vsel %vm12989_vm6, %v7449_v34, %v7624_v11  ;;  %v10827_v24 = vpack.c.b16 %v12370_v35, %v12369_v37  ;;  %v8423_v32 = vrot.slane %v15238_v45, 1  ;;  %v15278_v2 = vld [vmem:[#allocation11 + $0x120] sm:$0xff]  }
 0x30a   : > { %v12388_v8 = vld [vmem:[#allocation3 + $0x20] ss:$0 sps:$4 sm:$0x11]   ;;  %7633 = vst [vmem:[#allocation3 + $0xc0] sm:$0xf] %v7632_v40  ;;  %v7106_v55 = vsel %vm7035_vm14, %v6939_v12, %v7074_v26  ;;  %v8422_v60 = vrot.slane %v15236_v39, 1  ;;  %11945 = vmatpush3.bf16.msra.mxu0 %v15230_v36 }
 0x30b   : > { %7626 = vst [vmem:[#allocation3 + $0xb4] sm:$0xf] %v7625_v58  ;;  %v7469_v47 = vshrl.u32 %v11114_v10, 16  ;;  %v7472_v43 = vshll.u32 %v11114_v10, 16  ;;  %v7635_v3 = vld [vmem:[#allocation3 + $0xc8] sm:$0x1]  ;;  %v11112_v38 = vpack.c.bf16 %v7106_v55, %v7106_v55  ;;  %11928 = vmatprep.mubr.bf16.mxu0 %v10827_v24  ;;  %12007 = vmatpush3.bf16.msra.mxu1 %v15228_v4  ;;  %v8061_v4 = vor.u32 %v14868_v49, %v8056_v41 }
 0x30c   : > { %v8425_v23 = vrot.slane %v12377_v16, 1  ;;  %v8426_v22 = vrot.slane %v15249_v31, 1  ;;  %v12383_v57 = vld [vmem:[#allocation3 + $0x90] sm:$0xff]   ;;  %v8068_v29 = vshrl.u32 %v15251_v14, 16  ;;  %12008 = vmatprep.subr.bf16.mxu1 %v15257_v15  ;;  %v12384_v30 = vld [vmem:[#allocation3 + $0xa8] sm:$0xff]   ;;  %v8070_v50 = vshll.u32 %v15251_v14, 16  ;;  %11946 = vmatprep.subr.bf16.mxu0 %v15273_v46 }
 0x30d   : > { %v15281_v18 = vld [vmem:[#allocation3 + $0x90] sm:$0xff]   ;;  %v7471_v7 = vrot.slane %v7469_v47, 7  ;;  %v8075_v1 = vshll.u32 %v12388_v8, 16  ;;  %v15289_v19 = vld [vmem:[#allocation3 + $0x98] ss:$0 sps:$4 sm:$0x11]   ;;  %v8424_v5 = vsel %vm8409_vm15, %v8422_v60, %v8423_v32  ;;  %v10828_v52 = vpack.c.b16 %v12384_v30, %v12383_v57 }
 0x30e   : > { %v7452_v48 = vshrl.u32 %v11112_v38, 16  ;;  %v7455_v61 = vshll.u32 %v11112_v38, 16  ;;  %v8427_v11 = vsel %vm8409_vm15, %v8425_v23, %v8426_v22  ;;  %v15294_v62 = vld [vmem:[#allocation11 + $0xf8] sm:$0xff]   ;;  %v7628_v36 = vld [vmem:[#allocation3 + $0xbc] sm:$0x1]  ;;  %v12394_v13 = vld [vmem:[#allocation3 + $0xa8] sm:$0xff]   ;;  %v8066_v12 = vsel %vm8054_vm13, %v8061_v4, %v14873_v17  ;;  %11947 = vmatpush3.bf16.msra.mxu0 %v15273_v46 }
 0x30f   : > { %v7729_v33 = vld [vmem:[#allocation3 + $0xa4] sm:$0x1]  ;;  %v7474_v41 = vor.u32 %v7472_v43, %v7471_v7  ;;  %v7476_v49 = vrot.slane %v7471_v7, 4  ;;  %v10883_v39 = vpack.c.b16 %v8427_v11, %v8424_v5  ;;  %v15298_v45 = vld [vmem:[#allocation11 + $0x118] sm:$0xff]   ;;  %12009 = vmatpush3.bf16.msra.mxu1 %v15257_v15  ;;  %v8072_v37 = vrot.slane %v8070_v50, 1  ;;  %v15303_v14 = vld [vmem:[#allocation3 + $0x48] sm:$0xff]   ;;  %11929 = vmatmul.mubr.bf16.gmra.mxu0 %v10828_v52 }
 0x310   : > { %v7730_v27 = vsel %vm13035_vm8, 0, %v7729_v33  ;;  %v15300_v59 = vld [vmem:[#allocation3 + $0x30] sm:$0xff]   ;;  %v7454_v25 = vrot.slane %v7452_v48, 7  ;;  %v8077_v35 = vrot.slane %v8075_v1, 1  ;;  %12010 = vmatprep.subr.bf16.mxu1 %v15278_v2  ;;  %v8428_v16 = vrot.slane %v15281_v18, 1  ;;  %v15319_v26 = vld [vmem:[#allocation3 + $0x24] sm:$0xff]   ;;  %11980 = vmatprep.subr.bf16.mxu0 %v15294_v62 }
 0x311   : > { %7731 = vst [vmem:[#allocation3 + $0xa4] sm:$0x1] %v7730_v27  ;;  %v12398_v31 = vld [vmem:[#allocation3 + $0x38] ss:$0 sps:$4 sm:$0x11]   ;;  %v7475_v54 = vsel %vm12979_vm5, %v7467_v53, %v7474_v41  ;;  %v7636_v42 = vsel %vm13001_vm7, %v7476_v49, %v7635_v3  ;;  %11976 = vmatprep.mubr.bf16.mxu1 %v10883_v39  ;;  %v15315_v34 = vld [vmem:[#allocation3 + $0xc] sm:$0xff]   ;;  %v8073_v40 = vor.u32 %v8072_v37, %v8068_v29 }
 0x312   : > { %v7690_v44 = vld [vmem:[#allocation3 + $0xc0] sm:$0x1]  ;;  %v12395_v15 = vld [vmem:[#allocation3 + $0xb0] ss:$0 sps:$4 sm:$0x11]   ;;  %v7457_v53 = vor.u32 %v7455_v61, %v7454_v25  ;;  %v7459_v9 = vrot.slane %v7454_v25, 4 }
 0x313   : > { %v12400_v28 = vld [vmem:[#allocation3 + $0x50] ss:$0 sps:$4 sm:$0x11]   ;;  %v7691_v6 = vsel %vm13001_vm7, 0, %v7690_v44  ;;  %v7687_v51 = vld [vmem:[#allocation3 + $0xb4] sm:$0x1]  ;;  %12011 = vmatpush3.bf16.msra.mxu1 %v15278_v2  ;;  %v8078_v43 = vsel %vm8054_vm13, %v8073_v40, %v8077_v35 }
 0x314   : > { %7634 = vst [vmem:[#allocation3 + $0xc4] sm:$0xf] %v7475_v54  ;;  %7637 = vst [vmem:[#allocation3 + $0xc8] sm:$0x1] %v7636_v42  ;;  %v7688_v17 = vsel %vm13001_vm7, 0, %v7687_v51  ;;  %v8429_v8 = vrot.slane %v15289_v19, 1  ;;  %v7458_v32 = vsel %vm12979_vm5, %v7450_v21, %v7457_v53  ;;  %v7629_v47 = vsel %vm13001_vm7, %v7459_v9, %v7628_v36  ;;  %12012 = vmatprep.subr.bf16.mxu1 %v15298_v45 }
 0x315   : > { %v12402_v10 = vld [vmem:[#allocation3 + $0x14] ss:$0 sps:$4 sm:$0x11]   ;;  %7692 = vst [vmem:[#allocation3 + $0xc0] sm:$0x1] %v7691_v6  ;;  %v8431_v58 = vrot.slane %v12394_v13, 1  ;;  %v10853_v0 = vpack.c.b16 %v8078_v43, %v8066_v12 }
 0x316   : > { %v8432_v24 = vrot.slane %v12395_v15, 1  ;;  %7689 = vst [vmem:[#allocation3 + $0xb4] sm:$0x1] %v7688_v17  ;;  %v8080_v46 = vshrl.u32 %v15300_v59, 16  ;;  %7627 = vst [vmem:[#allocation3 + $0xb8] sm:$0xf] %v7458_v32  ;;  %v8430_v20 = vsel %vm8409_vm15, %v8428_v16, %v8429_v8 }
 0x317   : > { %v12404_v55 = vld [vmem:[#allocation3 + $0x2c] ss:$0 sps:$4 sm:$0x11]   ;;  %7630 = vst [vmem:[#allocation3 + $0xbc] sm:$0x1] %v7629_v47  ;;  %v8082_v21 = vshll.u32 %v15300_v59, 16  ;;  %11948 = vmatprep.mubr.bf16.mxu0 %v10853_v0  ;;  %12013 = vmatpush3.bf16.msra.mxu1 %v15298_v45 }
 0x318   : > { %v12389_v60 = vld [vmem:[#allocation11 + $0x110] sm:$0xff]   ;;  %v8433_v56 = vsel %vm8409_vm15, %v8431_v58, %v8432_v24  ;;  %v8087_v38 = vshll.u32 %v12398_v31, 16  ;;  %v8092_v23 = vshrl.u32 %v15303_v14, 16  ;;  %v8094_v22 = vshll.u32 %v15303_v14, 16  ;;  %v15341_v2 = vld [vmem:[#allocation3 + $0x60] sm:$0xff]   ;;  %v12407_v41 = vld [vmem:[#allocation3 + $0x78] sm:$0xff]  }
 0x319   : > { %v10884_v3 = vpack.c.b16 %v8433_v56, %v8430_v20  ;;  %v12406_v57 = vld [vmem:[#allocation3 + $0x68] ss:$0 sps:$4 sm:$0x11]   ;;  %v12391_v29 = vld [vmem:[#allocation11 + $0x108] sm:$0xff]   ;;  %v8084_v18 = vrot.slane %v8082_v21, 1  ;;  %v8099_v7 = vshll.u32 %v12400_v28, 16  ;;  %12014 = vmatprep.subr.bf16.mxu1 %v12389_v60 }
 0x31a   : > { %v8919_v30 = vshrl.u32 %v15315_v34, 16  ;;  %v8921_v4 = vshll.u32 %v15315_v34, 16  ;;  %v8089_v50 = vrot.slane %v8087_v38, 1  ;;  %v8096_v1 = vrot.slane %v8094_v22, 1  ;;  %v12413_v49 = vld [vmem:[#allocation3 + $0x3c] sm:$0xff]   ;;  %v12410_v44 = vld [vmem:[#allocation11 + $0xf0] sm:$0xff]  }
 0x31b   : > { %v8926_v19 = vshll.u32 %v12402_v10, 16  ;;  %v8931_v33 = vshrl.u32 %v15319_v26, 16  ;;  %v7738_v48 = vld [vmem:[#allocation3 + $0xc8] sm:$0x1]  ;;  %11977 = vmatmul.mubr.bf16.gmra.mxu1 %v10884_v3  ;;  %v8085_v61 = vor.u32 %v8084_v18, %v8080_v46  ;;  %v8101_v5 = vrot.slane %v8099_v7, 1  ;;  %v12409_v14 = vld [vmem:[#allocation11 + $0x100] sm:$0xff]  }
 0x31c   : > { %v8923_v11 = vrot.slane %v8921_v4, 1  ;;  %v8933_v27 = vshll.u32 %v15319_v26, 16  ;;  %v7739_v36 = vsel %vm13035_vm8, 0, %v7738_v48  ;;  %v8097_v39 = vor.u32 %v8096_v1, %v8092_v23  ;;  %v12408_v59 = vld [vmem:[#allocation3 + $0x80] ss:$0 sps:$4 sm:$0x11]   ;;  %12015 = vmatpush3.bf16.msra.mxu1 %v12389_v60 }
 0x31d   : > { %v8928_v45 = vrot.slane %v8926_v19, 1  ;;  %v8938_v13 = vshll.u32 %v12404_v55, 16  ;;  %v12414_v25 = vld [vmem:[#allocation3 + $0x44] ss:$0 sps:$4 sm:$0x11]   ;;  %v8090_v52 = vsel %vm8054_vm13, %v8085_v61, %v8089_v50  ;;  %v8104_v31 = vshrl.u32 %v15341_v2, 16  ;;  %12016 = vmatprep.subr.bf16.mxu1 %v12391_v29 }
 0x31e   : > { %7740 = vst [vmem:[#allocation3 + $0xc8] sm:$0x1] %v7739_v36  ;;  %v8924_v37 = vor.u32 %v8923_v11, %v8919_v30  ;;  %v8935_v35 = vrot.slane %v8933_v27, 1  ;;  %v7735_v54 = vld [vmem:[#allocation3 + $0xbc] sm:$0x1]  ;;  %v8102_v42 = vsel %vm8054_vm13, %v8097_v39, %v8101_v5  ;;  %v8106_v15 = vshll.u32 %v15341_v2, 16 }
 0x31f   : > { %v8940_v12 = vrot.slane %v8938_v13, 1  ;;  %v8111_v16 = vshll.u32 %v12406_v57, 16  ;;  %v12415_v28 = vld [vmem:[#allocation3 + $0x54] sm:$0xff]   ;;  %v12416_v34 = vld [vmem:[#allocation3 + $0x5c] ss:$0 sps:$4 sm:$0x11]   ;;  %v10854_v51 = vpack.c.b16 %v8102_v42, %v8090_v52 }
 0x320   : > { %v7736_v6 = vsel %vm13035_vm8, 0, %v7735_v54  ;;  %v8929_v53 = vsel %vm8054_vm13, %v8924_v37, %v8928_v45  ;;  %v8936_v9 = vor.u32 %v8935_v35, %v8931_v33  ;;  %v12417_v40 = vld [vmem:[#allocation3 + $0x90] sm:$0xff]   ;;  %v8108_v10 = vrot.slane %v8106_v15, 1  ;;  %v12418_v58 = vld [vmem:[#allocation3 + $0x98] ss:$0 sps:$4 sm:$0x11]   ;;  %12017 = vmatpush3.bf16.msra.mxu1 %v12391_v29 }
 0x321   : > { %7737 = vst [vmem:[#allocation3 + $0xbc] sm:$0x1] %v7736_v6  ;;  %v8113_v26 = vrot.slane %v8111_v16, 1  ;;  %v8116_v17 = vshrl.u32 %v12407_v41, 16  ;;  %v8118_v8 = vshll.u32 %v12407_v41, 16  ;;  %11949 = vmatmul.mubr.bf16.vlgmr.msra.gmra.mxu0 %v10854_v51  ;;  %v8123_v32 = vshll.u32 %v12408_v59, 16  ;;  %12018 = vmatprep.subr.bf16.mxu1 %v12409_v14 }
 0x322   : > { %v8941_v24 = vsel %vm8054_vm13, %v8936_v9, %v8940_v12  ;;  %v15358_v47 = vld [vmem:[#allocation11 + $0x1b8] sm:$0xff]   ;;  %v8943_v43 = vshrl.u32 %v12413_v49, 16  ;;  %v8945_v46 = vshll.u32 %v12413_v49, 16  ;;  %v15360_v55 = vld [vmem:[#allocation3 + $0xa8] sm:$0xff]   ;;  %11981 = vmatpush3.bf16.msra.mxu0 %v15294_v62  ;;  %v8109_v60 = vor.u32 %v8108_v10, %v8104_v31  ;;  %v12428_v36 = vld [vmem:[#allocation11 + $0xe0] sm:$0xff]  }
 0x323   : > { %v10929_v0 = vpack.c.b16 %v8941_v24, %v8929_v53  ;;  %v8120_v20 = vrot.slane %v8118_v8, 1  ;;  %v8950_v56 = vshll.u32 %v12414_v25, 16  ;;  %v12420_v21 = vld [vmem:[#allocation3 + $0xb0] ss:$0 sps:$4 sm:$0x11]   ;;  %v8125_v3 = vrot.slane %v8123_v32, 1  ;;  %11982 = vmatprep.subr.bf16.mxu0 %v12410_v44 }
 0x324   : > { %v8947_v38 = vrot.slane %v8945_v46, 1  ;;  %v8955_v23 = vshrl.u32 %v12415_v28, 16  ;;  %v8957_v22 = vshll.u32 %v12415_v28, 16  ;;  %v12422_v2 = vld [vmem:[#allocation3 + $0x74] ss:$0 sps:$4 sm:$0x11]   ;;  %v8114_v29 = vsel %vm8054_vm13, %v8109_v60, %v8113_v26  ;;  %12019 = vmatpush3.bf16.msra.mxu1 %v12409_v14 }
 0x325   : > { %12020 = vmatprep.mubr.bf16.mxu1 %v10929_v0  ;;  %v8121_v57 = vor.u32 %v8120_v20, %v8116_v17  ;;  %v8952_v18 = vrot.slane %v8950_v56, 1  ;;  %v8962_v7 = vshll.u32 %v12416_v34, 16  ;;  %v8130_v4 = vshll.u32 %v12417_v40, 16  ;;  %v12421_v50 = vld [vmem:[#allocation3 + $0x6c] sm:$0xff]   ;;  %12052 = vmatprep.subr.bf16.mxu1 %v15358_v47  ;;  %v12423_v49 = vld [vmem:[#allocation3 + $0x84] sm:$0xff]   ;;  %v12431_v52 = vld [vmem:[#allocation3 + $0x9c] sm:$0xff]  }
 0x326   : > { %v8948_v30 = vor.u32 %v8947_v38, %v8943_v43  ;;  %v8959_v62 = vrot.slane %v8957_v22, 1  ;;  %11983 = vmatpush3.bf16.msra.mxu0 %v12410_v44  ;;  %v8128_v33 = vshrl.u32 %v12417_v40, 16  ;;  %v8135_v48 = vshll.u32 %v12418_v58, 16  ;;  %v12424_v61 = vld [vmem:[#allocation3 + $0x8c] ss:$0 sps:$4 sm:$0x11]  }
 0x327   : > { %v8126_v1 = vsel %vm8054_vm13, %v8121_v57, %v8125_v3  ;;  %v8964_v19 = vrot.slane %v8962_v7, 1  ;;  %11984 = vmatprep.subr.bf16.mxu0 %v12412_v63  ;;  %v8132_v27 = vrot.slane %v8130_v4, 1  ;;  %v8140_v41 = vshrl.u32 %v15360_v55, 16  ;;  %v12427_v25 = vld [vmem:[#allocation11 + $0x1b0] sm:$0xff]   ;;  %v12433_v54 = vld [vmem:[#allocation3 + $0xb4] sm:$0xff]   ;;  %v12429_v32 = vld [vmem:[#allocation11 + $0x1a8] sm:$0xff]  }
 0x328   : > { %v10855_v5 = vpack.c.b16 %v8126_v1, %v8114_v29  ;;  %v8960_v11 = vor.u32 %v8959_v62, %v8955_v23  ;;  %v8953_v39 = vsel %vm8054_vm13, %v8948_v30, %v8952_v18  ;;  %v8137_v45 = vrot.slane %v8135_v48, 1  ;;  %v12432_v44 = vld [vmem:[#allocation3 + $0xa4] ss:$0 sps:$4 sm:$0x11]   ;;  %v12430_v9 = vld [vmem:[#allocation11 + $0xd8] sm:$0xff]   ;;  %v12438_v56 = vld [vmem:[#allocation11 + $0xd0] sm:$0xff]  }
 0x329   : > { %v8142_v13 = vshll.u32 %v15360_v55, 16  ;;  %v8147_v59 = vshll.u32 %v12420_v21, 16  ;;  %v8133_v35 = vor.u32 %v8132_v27, %v8128_v33  ;;  %v8969_v31 = vshll.u32 %v12421_v50, 16  ;;  %v12434_v28 = vld [vmem:[#allocation3 + $0xbc] ss:$0 sps:$4 sm:$0x11]  }
 0x32a   : > { %11952 = vmatprep.mubr.bf16.mxu0 %v10855_v5  ;;  %v8965_v37 = vsel %vm8054_vm13, %v8960_v11, %v8964_v19  ;;  %v8974_v14 = vshll.u32 %v12422_v2, 16  ;;  %11985 = vmatpush3.bf16.msra.mxu0 %v12412_v63  ;;  %v8967_v16 = vshrl.u32 %v12421_v50, 16  ;;  %v8979_v51 = vshrl.u32 %v12423_v49, 16  ;;  %v12426_v17 = vld [vmem:[#allocation3 + $0x24] sm:$0xff]   ;;  %v12425_v0 = vld [vmem:[#allocation3 + $0xc] sm:$0xff]   ;;  %v12437_v50 = vld [vmem:[#allocation11 + $0x1a0] sm:$0xff]  }
 0x32b   : > { %v10930_v42 = vpack.c.b16 %v8965_v37, %v8953_v39  ;;  %v8144_v12 = vrot.slane %v8142_v13, 1  ;;  %v8149_v15 = vrot.slane %v8147_v59, 1  ;;  %v8138_v34 = vsel %vm8054_vm13, %v8133_v35, %v8137_v45  ;;  %11986 = vmatprep.subr.bf16.mxu0 %v12428_v36  ;;  %v12436_v4 = vld [vmem:[#allocation3 + $0x30] sm:$0xff]   ;;  %v12440_v1 = vld [vmem:[#allocation11 + $0xc8] sm:$0xff]   ;;  %v12435_v48 = vld [vmem:[#allocation3 + $0x18] sm:$0xff]  }
 0x32c   : > { %v8971_v6 = vrot.slane %v8969_v31, 1  ;;  %v8981_v53 = vshll.u32 %v12423_v49, 16  ;;  %v8976_v10 = vrot.slane %v8974_v14, 1  ;;  %v8986_v26 = vshll.u32 %v12424_v61, 16  ;;  %v12439_v11 = vld [vmem:[#allocation11 + $0x198] sm:$0xff]   ;;  %v12442_v27 = vld [vmem:[#allocation11 + $0xc0] sm:$0xff]  }
 0x32d   : > { %12021 = vmatmul.mubr.bf16.vlgmr.msra.gmra.mxu1 %v10930_v42  ;;  %v8145_v40 = vor.u32 %v8144_v12, %v8140_v41  ;;  %v8993_v8 = vshll.u32 %v12431_v52, 16  ;;  %v8991_v63 = vshrl.u32 %v12431_v52, 16  ;;  %v8998_v43 = vshll.u32 %v12432_v44, 16  ;;  %v12441_v41 = vld [vmem:[#allocation11 + $0x190] sm:$0xff]   ;;  %v12445_v49 = vld [vmem:[#allocation3 + $0x54] sm:$0xff]   ;;  %v12443_v39 = vld [vmem:[#allocation11 + $0x188] sm:$0xff]  }
 0x32e   : > { %12053 = vmatpush3.bf16.msra.mxu1 %v15358_v47  ;;  %v8972_v58 = vor.u32 %v8971_v6, %v8967_v16  ;;  %v8983_v24 = vrot.slane %v8981_v53, 1  ;;  %v8988_v55 = vrot.slane %v8986_v26, 1  ;;  %11987 = vmatpush3.bf16.msra.mxu0 %v12428_v36  ;;  %v9005_v20 = vshll.u32 %v12433_v54, 16  ;;  %v12446_v36 = vld [vmem:[#allocation11 + $0x178] sm:$0xff]   ;;  %v12444_v45 = vld [vmem:[#allocation3 + $0x3c] sm:$0xff]   ;;  %v12448_v13 = vld [vmem:[#allocation3 + $0x84] sm:$0xff]  }
 0x32f   : > { %v8150_v46 = vsel %vm8054_vm13, %v8145_v40, %v8149_v15  ;;  %12054 = vmatprep.subr.bf16.mxu1 %v12427_v25  ;;  %v8995_v60 = vrot.slane %v8993_v8, 1  ;;  %11988 = vmatprep.subr.bf16.mxu0 %v12430_v9  ;;  %v9000_v38 = vrot.slane %v8998_v43, 1  ;;  %v9003_v23 = vshrl.u32 %v12433_v54, 16  ;;  %v12450_v59 = vld [vmem:[#allocation11 + $0x170] sm:$0xff]   ;;  %v12449_v44 = vld [vmem:[#allocation11 + $0x180] sm:$0xff]   ;;  %v12456_v54 = vld [vmem:[#allocation11 + $0x168] sm:$0xff]  }
 0x330   : > { %v10856_v21 = vpack.c.b16 %v8150_v46, %v8138_v34  ;;  %v8984_v3 = vor.u32 %v8983_v24, %v8979_v51  ;;  %v10901_v47 = vpack.c.b16 %v12426_v17, %v12425_v0  ;;  %v9007_v22 = vrot.slane %v9005_v20, 1  ;;  %v12462_v52 = vld [vmem:[#allocation3 + $0x2c] ss:$0 sps:$4 sm:$0x11]   ;;  %v12461_v31 = vld [vmem:[#allocation3 + $0x24] sm:$0xff]   ;;  %v12455_v15 = vld [vmem:[#allocation3 + $0xb4] sm:$0xff]  }
 0x331   : > { %v9010_v2 = vshll.u32 %v12434_v28, 16  ;;  %v8977_v57 = vsel %vm8054_vm13, %v8972_v58, %v8976_v10  ;;  %v8996_v29 = vor.u32 %v8995_v60, %v8991_v63  ;;  %v10977_v5 = vpack.c.b16 %v12436_v4, %v12435_v48  ;;  %v12447_v37 = vld [vmem:[#allocation3 + $0x6c] sm:$0xff]   ;;  %v12452_v51 = vld [vmem:[#allocation3 + $0x60] sm:$0xff]   ;;  %v12472_v26 = vld [vmem:[#allocation3 + $0x38] ss:$0 sps:$4 sm:$0x11]  }
 0x332   : > { %11953 = vmatmul.mubr.bf16.gmra.mxu0 %v10856_v21  ;;  %v8989_v18 = vsel %vm8054_vm13, %v8984_v3, %v8988_v55  ;;  %12055 = vmatpush3.bf16.msra.mxu1 %v12427_v25  ;;  %v9008_v30 = vor.u32 %v9007_v22, %v9003_v23  ;;  %v12460_v25 = vld [vmem:[#allocation3 + $0x14] ss:$0 sps:$4 sm:$0x11]   ;;  %v10902_v35 = vpack.c.b16 %v12445_v49, %v12444_v45  ;;  %v12459_v42 = vld [vmem:[#allocation3 + $0xc] sm:$0xff]   ;;  %v9276_v12 = vrot.slane %v12462_v52, 1  ;;  %v12454_v53 = vld [vmem:[#allocation3 + $0x9c] sm:$0xff]  }
 0x333   : > { %v10931_v7 = vpack.c.b16 %v8989_v18, %v8977_v57  ;;  %11996 = vmatprep.mubr.bf16.mxu0 %v10901_v47  ;;  %12056 = vmatprep.subr.bf16.mxu1 %v12429_v32  ;;  %v9012_v62 = vrot.slane %v9010_v2, 1  ;;  %v9001_v19 = vsel %vm8054_vm13, %v8996_v29, %v9000_v38  ;;  %v10903_v14 = vpack.c.b16 %v12448_v13, %v12447_v37  ;;  %v12453_v34 = vld [vmem:[#allocation11 + $0x238] sm:$0xff]   ;;  %v12451_v6 = vld [vmem:[#allocation3 + $0x48] sm:$0xff]   ;;  %v12464_v58 = vld [vmem:[#allocation11 + $0x160] sm:$0xff]  }
 0x334   : > { %11989 = vmatpush3.bf16.msra.mxu0 %v12430_v9  ;;  %v9273_v16 = vrot.slane %v12460_v25, 1  ;;  %v9275_v28 = vrot.slane %v12461_v31, 1  ;;  %v9272_v9 = vrot.slane %v12459_v42, 1  ;;  %v12458_v10 = vld [vmem:[#allocation3 + $0x90] sm:$0xff]   ;;  %v10904_v17 = vpack.c.b16 %v12455_v15, %v12454_v53  ;;  %v12457_v24 = vld [vmem:[#allocation3 + $0x78] sm:$0xff]   ;;  %v12463_v43 = vld [vmem:[#allocation11 + $0x230] sm:$0xff]  }
 0x335   : > { %12024 = vmatprep.mubr.bf16.mxu1 %v10931_v7  ;;  %v9013_v33 = vsel %vm8054_vm13, %v9008_v30, %v9012_v62  ;;  %11990 = vmatprep.subr.bf16.mxu0 %v12438_v56  ;;  %v10978_v63 = vpack.c.b16 %v12452_v51, %v12451_v6  ;;  %v12470_v46 = vld [vmem:[#allocation3 + $0x20] ss:$0 sps:$4 sm:$0x11]   ;;  %v12471_v55 = vld [vmem:[#allocation3 + $0x30] sm:$0xff]   ;;  %v10979_v0 = vpack.c.b16 %v12458_v10, %v12457_v24  ;;  %v10139_v21 = vrot.slane %v12472_v26, 1  ;;  %v12465_v47 = vld [vmem:[#allocation3 + $0xa8] sm:$0xff]  }
 0x336   : > { %v10932_v61 = vpack.c.b16 %v9013_v33, %v9001_v19  ;;  %12057 = vmatpush3.bf16.msra.mxu1 %v12429_v32  ;;  %v9277_v40 = vsel %vm8409_vm15, %v9275_v28, %v9276_v12  ;;  %v9274_v8 = vsel %vm8409_vm15, %v9272_v9, %v9273_v16  ;;  %v12467_v60 = vld [vmem:[#allocation11 + $0x228] sm:$0xff]   ;;  %v12468_v20 = vld [vmem:[#allocation11 + $0x158] sm:$0xff]   ;;  %v10136_v38 = vrot.slane %v12470_v46, 1  ;;  %v12474_v57 = vld [vmem:[#allocation11 + $0x150] sm:$0xff]  }
 0x337   : > { %12058 = vmatprep.subr.bf16.mxu1 %v12437_v50  ;;  %v10957_v32 = vpack.c.b16 %v9277_v40, %v9274_v8  ;;  %v12466_v3 = vld [vmem:[#allocation3 + $0xc0] sm:$0xff]   ;;  %v10138_v23 = vrot.slane %v12471_v55, 1  ;;  %v12473_v29 = vld [vmem:[#allocation11 + $0x220] sm:$0xff]   ;;  %v12475_v62 = vld [vmem:[#allocation11 + $0x218] sm:$0xff]  }
 0x338   : > { %12025 = vmatmul.mubr.bf16.gmra.mxu1 %v10932_v61  ;;  %11991 = vmatpush3.bf16.msra.mxu0 %v12438_v56  ;;  %v12469_v56 = vld [vmem:[#allocation3 + $0x18] sm:$0xff]   ;;  %v10980_v18 = vpack.c.b16 %v12466_v3, %v12465_v47  ;;  %v12476_v4 = vld [vmem:[#allocation11 + $0x148] sm:$0xff]   ;;  %v12488_v33 = vld [vmem:[#allocation3 + $0x8c] ss:$0 sps:$4 sm:$0x11]  }
 0x339   : > { %12068 = vmatprep.mubr.bf16.mxu1 %v10977_v5  ;;  %11992 = vmatprep.subr.bf16.mxu0 %v12440_v1  ;;  %v10135_v22 = vrot.slane %v12469_v56, 1  ;;  %v10140_v2 = vsel %vm8409_vm15, %v10138_v23, %v10139_v21  ;;  %v12483_v19 = vld [vmem:[#allocation3 + $0x5c] ss:$0 sps:$4 sm:$0x11]   ;;  %v15381_v49 = vld [vmem:[#allocation3 + $0x30] sm:$0xff]   ;;  %v9288_v45 = vrot.slane %v12488_v33, 1 }
 0x33a   : > { %12059 = vmatpush3.bf16.msra.mxu1 %v12437_v50  ;;  %v12482_v50 = vld [vmem:[#allocation3 + $0x54] sm:$0xff]   ;;  %v12480_v5 = vld [vmem:[#allocation3 + $0x3c] sm:$0xff]   ;;  %v12494_v28 = vld [vmem:[#allocation3 + $0x68] ss:$0 sps:$4 sm:$0x11]   ;;  %v9794_v56 = vshrl.u32 %v15381_v49, 16 }
 0x33b   : > { %12060 = vmatprep.subr.bf16.mxu1 %v12439_v11  ;;  %v10137_v7 = vsel %vm8409_vm15, %v10135_v22, %v10136_v38  ;;  %v12478_v48 = vld [vmem:[#allocation11 + $0x140] sm:$0xff]   ;;  %v12486_v61 = vld [vmem:[#allocation3 + $0x74] ss:$0 sps:$4 sm:$0x11]   ;;  %v9278_v42 = vrot.slane %v12480_v5, 1  ;;  %v12491_v3 = vld [vmem:[#allocation3 + $0x48] sm:$0xff]  }
 0x33c   : > { %11993 = vmatpush3.bf16.msra.mxu0 %v12440_v1  ;;  %v11033_v30 = vpack.c.b16 %v10140_v2, %v10137_v7  ;;  %v12481_v1 = vld [vmem:[#allocation3 + $0x44] ss:$0 sps:$4 sm:$0x11]   ;;  %v15383_v13 = vld [vmem:[#allocation3 + $0x18] sm:$0xff]   ;;  %v10145_v38 = vrot.slane %v12494_v28, 1 }
 0x33d   : > { %11994 = vmatprep.subr.bf16.mxu0 %v12442_v27  ;;  %v12505_v25 = vld [vmem:[#allocation3 + $0x20] ss:$0 sps:$4 sm:$0x11]   ;;  %v12507_v52 = vld [vmem:[#allocation3 + $0x38] ss:$0 sps:$4 sm:$0x11]  }
 0x33e   : > { %12061 = vmatpush3.bf16.msra.mxu1 %v12439_v11  ;;  %v12487_v11 = vld [vmem:[#allocation3 + $0x84] sm:$0xff]   ;;  %v9279_v37 = vrot.slane %v12481_v1, 1  ;;  %v12498_v31 = vld [vmem:[#allocation3 + $0xbc] ss:$0 sps:$4 sm:$0x11]   ;;  %v9801_v6 = vshll.u32 %v12507_v52, 16 }
 0x33f   : > { %12062 = vmatprep.subr.bf16.mxu1 %v12441_v41  ;;  %v12492_v53 = vld [vmem:[#allocation3 + $0x50] ss:$0 sps:$4 sm:$0x11]   ;;  %v12496_v9 = vld [vmem:[#allocation3 + $0xa4] ss:$0 sps:$4 sm:$0x11]  }
 0x340   : > { %11995 = vmatpush3.bf16.msra.mxu0 %v12442_v27  ;;  %v12477_v27 = vld [vmem:[#allocation11 + $0x210] sm:$0xff]   ;;  %v9280_v51 = vsel %vm8409_vm15, %v9278_v42, %v9279_v37  ;;  %v12497_v40 = vld [vmem:[#allocation3 + $0xb4] sm:$0xff]   ;;  %v9294_v46 = vrot.slane %v12498_v31, 1  ;;  %v12501_v55 = vld [vmem:[#allocation3 + $0x80] ss:$0 sps:$4 sm:$0x11]  }
 0x341   : > { %12028 = vmatprep.subr.bf16.mxu0 %v12446_v36  ;;  %v12503_v8 = vld [vmem:[#allocation3 + $0x98] ss:$0 sps:$4 sm:$0x11]   ;;  %v9803_v21 = vrot.slane %v9801_v6, 1  ;;  %v9291_v23 = vrot.slane %v12496_v9, 1  ;;  %v9293_v47 = vrot.slane %v12497_v40, 1 }
 0x342   : > { %12063 = vmatpush3.bf16.msra.mxu1 %v12441_v41  ;;  %v12485_v41 = vld [vmem:[#allocation3 + $0x6c] sm:$0xff]   ;;  %v12499_v22 = vld [vmem:[#allocation11 + $0x1e8] sm:$0xff]   ;;  %v12500_v2 = vld [vmem:[#allocation3 + $0x78] sm:$0xff]   ;;  %v10148_v1 = vrot.slane %v12501_v55, 1 }
 0x343   : > { %12064 = vmatprep.subr.bf16.mxu1 %v12443_v39  ;;  %11997 = vmatmul.mubr.bf16.vlgmr.msra.gmra.mxu0 %v10902_v35  ;;  %v9287_v35 = vrot.slane %v12487_v11, 1  ;;  %v9284_v15 = vrot.slane %v12485_v41, 1  ;;  %v12511_v52 = vld [vmem:[#allocation3 + $0xc0] sm:$0xff]   ;;  %v12523_v6 = vld [vmem:[#allocation3 + $0x90] sm:$0xff]  }
 0x344   : > { %12000 = vmatprep.mubr.bf16.mxu0 %v10903_v14  ;;  %12029 = vmatpush3.bf16.msra.mxu0 %v12446_v36  ;;  %v9281_v36 = vrot.slane %v12482_v50, 1  ;;  %v9285_v14 = vrot.slane %v12486_v61, 1  ;;  %v9295_v50 = vsel %vm8409_vm15, %v9293_v47, %v9294_v46  ;;  %v10141_v61 = vrot.slane %v12491_v3, 1  ;;  %v12519_v28 = vld [vmem:[#allocation3 + $0x60] sm:$0xff]  }
 0x345   : > { %12030 = vmatprep.subr.bf16.mxu0 %v12450_v59  ;;  %v9289_v16 = vsel %vm8409_vm15, %v9287_v35, %v9288_v45  ;;  %v12508_v45 = vld [vmem:[#allocation11 + $0x1e0] sm:$0xff]   ;;  %v12520_v9 = vld [vmem:[#allocation3 + $0x68] ss:$0 sps:$4 sm:$0x11]  }
 0x346   : > { %12065 = vmatpush3.bf16.msra.mxu1 %v12443_v39  ;;  %v9282_v39 = vrot.slane %v12483_v19, 1  ;;  %v9286_v26 = vsel %vm8409_vm15, %v9284_v15, %v9285_v14  ;;  %v12509_v14 = vld [vmem:[#allocation3 + $0xa8] sm:$0xff]  }
 0x347   : > { %12066 = vmatprep.subr.bf16.mxu1 %v12449_v44  ;;  %v10153_v15 = vrot.slane %v12509_v14, 1 }
 0x348   : > { %12031 = vmatpush3.bf16.msra.mxu0 %v12450_v59  ;;  %v12484_v59 = vld [vmem:[#allocation11 + $0x1f8] sm:$0xff]   ;;  %v9283_v12 = vsel %vm8409_vm15, %v9281_v36, %v9282_v39 }
 0x349   : > { %12032 = vmatprep.subr.bf16.mxu0 %v12456_v54  ;;  %v10958_v10 = vpack.c.b16 %v9283_v12, %v9280_v51  ;;  %v10156_v12 = vrot.slane %v12511_v52, 1 }
 0x34a   : > { %12067 = vmatpush3.bf16.msra.mxu1 %v12449_v44  ;;  %v9796_v44 = vshll.u32 %v15381_v49, 16  ;;  %v10147_v49 = vrot.slane %v12500_v2, 1  ;;  %v12528_v2 = vld [vmem:[#allocation3 + $0xc8] ss:$0 sps:$4 sm:$0x11]  }
 0x34b   : > { %12100 = vmatprep.subr.bf16.mxu1 %v12453_v34  ;;  %12001 = vmatmul.mubr.bf16.gmra.mxu0 %v10904_v17  ;;  %v12490_v17 = vld [vmem:[#allocation11 + $0x1f0] sm:$0xff]  }
 0x34c   : > { %12033 = vmatpush3.bf16.msra.mxu0 %v12456_v54  ;;  %12044 = vmatprep.mubr.bf16.mxu0 %v10957_v32  ;;  %v12479_v54 = vld [vmem:[#allocation11 + $0x208] sm:$0xff]   ;;  %v9798_v24 = vrot.slane %v9796_v44, 1  ;;  %v10959_v32 = vpack.c.b16 %v9289_v16, %v9286_v26  ;;  %v10149_v35 = vsel %vm8409_vm15, %v10147_v49, %v10148_v1  ;;  %v12524_v26 = vld [vmem:[#allocation3 + $0x98] ss:$0 sps:$4 sm:$0x11]  }
 0x34d   : > { %12069 = vmatmul.mubr.bf16.vlgmr.msra.gmra.mxu1 %v10978_v63  ;;  %12034 = vmatprep.subr.bf16.mxu0 %v12464_v58  ;;  %v12493_v63 = vld [vmem:[#allocation3 + $0x60] sm:$0xff]   ;;  %v9849_v55 = vshll.u32 %v12524_v26, 16 }
 0x34e   : > { %12072 = vmatprep.mubr.bf16.mxu1 %v10979_v0  ;;  %12101 = vmatpush3.bf16.msra.mxu1 %v12453_v34  ;;  %v9784_v34 = vshll.u32 %v15383_v13, 16  ;;  %v12489_v0 = vld [vmem:[#allocation11 + $0x200] sm:$0xff]  }
 0x34f   : > { %12102 = vmatprep.subr.bf16.mxu1 %v12463_v43 }
 0x350   : > { %12035 = vmatpush3.bf16.msra.mxu0 %v12464_v58  ;;  %v9789_v58 = vshll.u32 %v12505_v25, 16  ;;  %v12510_v25 = vld [vmem:[#allocation3 + $0xb0] ss:$0 sps:$4 sm:$0x11]  }
 0x351   : > { %12036 = vmatprep.subr.bf16.mxu0 %v12468_v20  ;;  %v10154_v42 = vrot.slane %v12510_v25, 1 }
 0x352   : > { %12103 = vmatpush3.bf16.msra.mxu1 %v12463_v43  ;;  %v12495_v43 = vld [vmem:[#allocation3 + $0x9c] sm:$0xff]   ;;  %v9791_v7 = vrot.slane %v9789_v58, 1 }
 0x353   : > { %12104 = vmatprep.subr.bf16.mxu1 %v12467_v60  ;;  %v10155_v51 = vsel %vm8409_vm15, %v10153_v15, %v10154_v42  ;;  %v12515_v58 = vld [vmem:[#allocation11 + $0x1c8] sm:$0xff]  }
 0x354   : > { %12037 = vmatpush3.bf16.msra.mxu0 %v12468_v20  ;;  %v9786_v20 = vrot.slane %v9784_v34, 1  ;;  %v12514_v34 = vld [vmem:[#allocation11 + $0x1d0] sm:$0xff]  }
 0x355   : > { %12073 = vmatmul.mubr.bf16.gmra.mxu1 %v10980_v18  ;;  %12038 = vmatprep.subr.bf16.mxu0 %v12474_v57  ;;  %v9782_v18 = vshrl.u32 %v15383_v13, 16 }
 0x356   : > { %12105 = vmatpush3.bf16.msra.mxu1 %v12467_v60  ;;  %12116 = vmatprep.mubr.bf16.mxu1 %v11033_v30  ;;  %v12502_v60 = vld [vmem:[#allocation3 + $0x90] sm:$0xff]   ;;  %v10142_v30 = vrot.slane %v12492_v53, 1  ;;  %v12517_v53 = vld [vmem:[#allocation3 + $0x48] sm:$0xff]  }
 0x357   : > { %12106 = vmatprep.subr.bf16.mxu1 %v12473_v29  ;;  %v10150_v19 = vrot.slane %v12502_v60, 1  ;;  %v9787_v33 = vor.u32 %v9786_v20, %v9782_v18  ;;  %v12527_v20 = vld [vmem:[#allocation3 + $0xc0] sm:$0xff]   ;;  %v9842_v18 = vshrl.u32 %v12523_v6, 16 }
 0x358   : > { %12039 = vmatpush3.bf16.msra.mxu0 %v12474_v57  ;;  %v10151_v57 = vrot.slane %v12503_v8, 1  ;;  %v10143_v13 = vsel %vm8409_vm15, %v10141_v61, %v10142_v30  ;;  %v9820_v8 = vshll.u32 %v12519_v28, 16  ;;  %v9866_v52 = vshrl.u32 %v12527_v20, 16 }
 0x359   : > { %12040 = vmatprep.subr.bf16.mxu0 %v12476_v4  ;;  %v9792_v39 = vsel %vm8054_vm13, %v9787_v33, %v9791_v7  ;;  %v9851_v7 = vrot.slane %v9849_v55, 1 }
 0x35a   : > { %12107 = vmatpush3.bf16.msra.mxu1 %v12473_v29  ;;  %v9799_v29 = vor.u32 %v9798_v24, %v9794_v56  ;;  %v10152_v36 = vsel %vm8409_vm15, %v10150_v19, %v10151_v57  ;;  %v12522_v24 = vld [vmem:[#allocation3 + $0x80] ss:$0 sps:$4 sm:$0x11]   ;;  %v9822_v60 = vrot.slane %v9820_v8, 1  ;;  %v12516_v56 = vld [vmem:[#allocation11 + $0x1c0] sm:$0xff]  }
 0x35b   : > { %12108 = vmatprep.subr.bf16.mxu1 %v12475_v62  ;;  %v11035_v31 = vpack.c.b16 %v10152_v36, %v10149_v35  ;;  %v9837_v3 = vshll.u32 %v12522_v24, 16 }
 0x35c   : > { %12041 = vmatpush3.bf16.msra.mxu0 %v12476_v4  ;;  %v9290_v4 = vrot.slane %v12495_v43, 1  ;;  %v9825_v43 = vshll.u32 %v12520_v9, 16 }
 0x35d   : > { %12042 = vmatprep.subr.bf16.mxu0 %v12478_v48  ;;  %v9839_v19 = vrot.slane %v9837_v3, 1 }
 0x35e   : > { %12109 = vmatpush3.bf16.msra.mxu1 %v12475_v62  ;;  %v10144_v62 = vrot.slane %v12493_v63, 1  ;;  %v9292_v11 = vsel %vm8409_vm15, %v9290_v4, %v9291_v23  ;;  %v9808_v63 = vshll.u32 %v12517_v53, 16  ;;  %v9827_v47 = vrot.slane %v9825_v43, 1  ;;  %v12526_v4 = vld [vmem:[#allocation3 + $0xb0] ss:$0 sps:$4 sm:$0x11]  }
 0x35f   : > { %12110 = vmatprep.subr.bf16.mxu1 %v12477_v27  ;;  %v10960_v41 = vpack.c.b16 %v9295_v50, %v9292_v11  ;;  %v9868_v50 = vshll.u32 %v12527_v20, 16  ;;  %v9873_v11 = vshll.u32 %v12528_v2, 16  ;;  %v9861_v36 = vshll.u32 %v12526_v4, 16 }
 0x360   : > { %12043 = vmatpush3.bf16.msra.mxu0 %v12478_v48  ;;  %v9804_v48 = vsel %vm8054_vm13, %v9799_v29, %v9803_v21  ;;  %v10146_v5 = vsel %vm8409_vm15, %v10144_v62, %v10145_v38  ;;  %v9818_v21 = vshrl.u32 %v12519_v28, 16  ;;  %v9810_v23 = vrot.slane %v9808_v63, 1 }
 0x361   : > { %12076 = vmatprep.subr.bf16.mxu0 %v12484_v59  ;;  %v11034_v37 = vpack.c.b16 %v10146_v5, %v10143_v13  ;;  %v9806_v29 = vshrl.u32 %v12517_v53, 16 }
 0x362   : > { %12111 = vmatpush3.bf16.msra.mxu1 %v12477_v27  ;;  %v12512_v27 = vld [vmem:[#allocation3 + $0xc8] ss:$0 sps:$4 sm:$0x11]   ;;  %v9823_v62 = vor.u32 %v9822_v60, %v9818_v21 }
 0x363   : > { %12112 = vmatprep.subr.bf16.mxu1 %v12479_v54  ;;  %12045 = vmatmul.mubr.bf16.vlgmr.msra.gmra.mxu0 %v10958_v10  ;;  %v10157_v44 = vrot.slane %v12512_v27, 1  ;;  %v12521_v10 = vld [vmem:[#allocation3 + $0x78] sm:$0xff]  }
 0x364   : > { %12048 = vmatprep.mubr.bf16.mxu0 %v10959_v32  ;;  %12077 = vmatpush3.bf16.msra.mxu0 %v12484_v59  ;;  %v11005_v59 = vpack.c.b16 %v9804_v48, %v9792_v39  ;;  %v9844_v32 = vshll.u32 %v12523_v6, 16  ;;  %v9832_v46 = vshll.u32 %v12521_v10, 16  ;;  %v9830_v1 = vshrl.u32 %v12521_v10, 16 }
 0x365   : > { %12078 = vmatprep.subr.bf16.mxu0 %v12490_v17  ;;  %v10158_v16 = vsel %vm8409_vm15, %v10156_v12, %v10157_v44  ;;  %v9811_v48 = vor.u32 %v9810_v23, %v9806_v29  ;;  %v9828_v61 = vsel %vm8054_vm13, %v9823_v62, %v9827_v47  ;;  %v9870_v39 = vrot.slane %v9868_v50, 1 }
 0x366   : > { %12113 = vmatpush3.bf16.msra.mxu1 %v12479_v54  ;;  %v12513_v54 = vld [vmem:[#allocation11 + $0x1d8] sm:$0xff]   ;;  %v11036_v40 = vpack.c.b16 %v10158_v16, %v10155_v51  ;;  %v9846_v38 = vrot.slane %v9844_v32, 1  ;;  %v9834_v57 = vrot.slane %v9832_v46, 1 }
 0x367   : > { %12114 = vmatprep.subr.bf16.mxu1 %v12489_v0  ;;  %v9871_v14 = vor.u32 %v9870_v39, %v9866_v52  ;;  %v15712_v39 = vld [vmem:[#allocation23_spill] sm:$0xff] }
 0x368   : > { %12079 = vmatpush3.bf16.msra.mxu0 %v12490_v17  ;;  %v12518_v17 = vld [vmem:[#allocation3 + $0x50] ss:$0 sps:$4 sm:$0x11]   ;;  %v9847_v33 = vor.u32 %v9846_v38, %v9842_v18  ;;  %v9835_v27 = vor.u32 %v9834_v57, %v9830_v1 }
 0x369   : > { %12080 = vmatprep.subr.bf16.mxu0 %v12499_v22 }
 0x36a   : > { %12115 = vmatpush3.bf16.msra.mxu1 %v12489_v0  ;;  %v9813_v0 = vshll.u32 %v12518_v17, 16  ;;  %v9840_v13 = vsel %vm8054_vm13, %v9835_v27, %v9839_v19 }
 0x36b   : > { %12049 = vmatmul.mubr.bf16.gmra.mxu0 %v10960_v41  ;;  %v9852_v41 = vsel %vm8054_vm13, %v9847_v33, %v9851_v7 }
 0x36c   : > { %12081 = vmatpush3.bf16.msra.mxu0 %v12499_v22  ;;  %12092 = vmatprep.mubr.bf16.mxu0 %v11005_v59  ;;  %v12525_v22 = vld [vmem:[#allocation3 + $0xa8] sm:$0xff]   ;;  %v9815_v30 = vrot.slane %v9813_v0, 1  ;;  %v11007_v59 = vpack.c.b16 %v9852_v41, %v9840_v13  ;;  %v15713_v13 = vld [vmem:[#allocation24_spill] sm:$0xff] }
 0x36d   : > { %12117 = vmatmul.mubr.bf16.vlgmr.msra.gmra.mxu1 %v11034_v37  ;;  %12082 = vmatprep.subr.bf16.mxu0 %v12508_v45  ;;  %v9856_v5 = vshll.u32 %v12525_v22, 16  ;;  %v9875_v37 = vrot.slane %v9873_v11, 1  ;;  %v9854_v35 = vshrl.u32 %v12525_v22, 16  ;;  %v10510_v41 = vld [vmem:[%s15581_s7] ss:$0 sm:$0xff] }
 0x36e   : > { %12120 = vmatprep.mubr.bf16.mxu1 %v11035_v31  ;;  %v9816_v49 = vsel %vm8054_vm13, %v9811_v48, %v9815_v30  ;;  %v9863_v31 = vrot.slane %v9861_v36, 1 }
 0x36f   : > { %v9858_v25 = vrot.slane %v9856_v5, 1 }
 0x370   : > { %12083 = vmatpush3.bf16.msra.mxu0 %v12508_v45  ;;  %v11006_v45 = vpack.c.b16 %v9828_v61, %v9816_v49 }
 0x371   : > { %12084 = vmatprep.subr.bf16.mxu0 %v12513_v54  ;;  %v9859_v44 = vor.u32 %v9858_v25, %v9854_v35  ;;  %v15715_v35 = vld [vmem:[#allocation25_spill] sm:$0xff] }
 0x373   : > { %v9864_v42 = vsel %vm8054_vm13, %v9859_v44, %v9863_v31  ;;  %v1412_v31 = vadd.f32 %v15715_v35, %v10510_v41 }
 0x374   : > { %12085 = vmatpush3.bf16.msra.mxu0 %v12513_v54  ;;  %v9876_v54 = vsel %vm8054_vm13, %v9871_v14, %v9875_v37 }
 0x375   : > { %12121 = vmatmul.mubr.bf16.gmra.mxu1 %v11036_v40  ;;  %12086 = vmatprep.subr.bf16.mxu0 %v12514_v34  ;;  %v11008_v12 = vpack.c.b16 %v9876_v54, %v9864_v42  ;;  %v15716_v54 = vld [vmem:[#allocation26_spill] sm:$0xff] }
 0x376   : > { %v1404_v42 = vadd.f32 %v10510_v41, %v15716_v54 }
 0x378   : > { %12087 = vmatpush3.bf16.msra.mxu0 %v12514_v34 }
 0x379   : > { %12088 = vmatprep.subr.bf16.mxu0 %v12515_v58 }
 0x37c   : > { %12089 = vmatpush3.bf16.msra.mxu0 %v12515_v58 }
 0x37d   : > { %12090 = vmatprep.subr.bf16.mxu0 %v12516_v56 }
 0x380   : > { %12091 = vmatpush3.bf16.msra.mxu0 %v12516_v56 }
 0x383   : > { %12093 = vmatmul.mubr.bf16.vlgmr.msra.gmra.mxu0 %v11006_v45  ;;  %v1409_v45 = vadd.f32 %v15712_v39, %v10510_v41 }
 0x384   : > { %12096 = vmatprep.mubr.bf16.mxu0 %v11007_v59  ;;  %v1401_v59 = vadd.f32 %v10510_v41, %v15713_v13 }
 0x38b   : > { %12097 = vmatmul.mubr.bf16.gmra.mxu0 %v11008_v12 }
 0x3b1   : > { %v11926_v15 = vpop.f32.mrf.mxu0 }
 0x3b2   : > { %v7952_v25 = vadd.f32 %v11926_v15, %v1409_v45  ;;  %v15718_v15 = vld [vmem:[#allocation28_spill] sm:$0xff] }
 0x3b3   : > { %v7919_v16 = vpop.f32.mrf.mxu0  ;;  %v1417_v45 = vadd.f32 %v10510_v41, %v15718_v15 }
 0x3b4   : > { %v7950_v14 = vadd.f32 %v7919_v16, %v1401_v59  ;;  %v15719_v59 = vld [vmem:[#allocation29_spill] sm:$0xff] }
 0x3b5   : > { %v11927_v28 = vpop.f32.mrf.mxu0 }
 0x3b6   : > { %v7953_v12 = vadd.f32 %v11927_v28, %v1412_v31  ;;  %v1428_v28 = vadd.f32 %v15719_v59, %v10510_v41 }
 0x3b7   : > { %v7922_v34 = vpop.f32.mrf.mxu0 }
 0x3b8   : > { %v7951_v39 = vadd.f32 %v7922_v34, %v1404_v42 }
 0x3c6   : > { %v11974_v51 = vpop.f32.mrf.mxu1 }
 0x3c8   : > { %v15413_v9 = vpop.f32.mrf.mxu1 }
 0x3ca   : > { %v15417_v10 = vpop.f32.mrf.mxu1 }
 0x3cc   : > { %v15421_v17 = vpop.f32.mrf.mxu1 }
 0x3cf   : > { %v15409_v6 = vpop.f32.mrf.mxu0 }
 0x3d1   : > { %v15411_v53 = vpop.f32.mrf.mxu0 }
 0x3d3   : > { %v15415_v40 = vpop.f32.mrf.mxu0 }
 0x3d5   : > { %v15419_v26 = vpop.f32.mrf.mxu0 }
 0x3db   : > { %v15423_v58 = vpop.f32.mrf.mxu1 }
 0x3dd   : > { %v15425_v32 = vpop.f32.mrf.mxu1 }
 0x3df   : > { %v15427_v43 = vpop.f32.mrf.mxu1 }
 0x3e1   : > { %v11950_v8 = vpop.f32.mrf.mxu0  ;;  %v15429_v55 = vpop.f32.mrf.mxu1 }
 0x3e2   : > { %v8307_v44 = vadd.f32 %v11950_v8, %v7952_v25 }
 0x3e3   : > { %v8274_v24 = vpop.f32.mrf.mxu0 }
 0x3e4   : > { %v8590_v13 = vadd.f32 %v11974_v51, %v8307_v44 }
 0x3e5   : > { %v11951_v63 = vpop.f32.mrf.mxu0 }
 0x3e7   : > { %v8277_v46 = vpop.f32.mrf.mxu0 }
 0x3e8   : > { %v8306_v35 = vadd.f32 %v8277_v46, %v7951_v39 }
 0x3ea   : > { %v8589_v46 = vadd.f32 %v15421_v17, %v8306_v35 }
 0x3ed   : > { %v15431_v60 = vpop.f32.mrf.mxu1 }
 0x3ef   : > { %v15433_v56 = vpop.f32.mrf.mxu1 }
 0x3f1   : > { %v15437_v3 = vpop.f32.mrf.mxu1 }
 0x3f2   : > { %v11954_v0 = vpop.f32.mrf.mxu0 }
 0x3f3   : > { %v15441_v23 = vpop.f32.mrf.mxu1 }
 0x3f4   : > { %v8290_v20 = vpop.f32.mrf.mxu0 }
 0x3f6   : > { %v15435_v21 = vpop.f32.mrf.mxu0 }
 0x3f8   : > { %v15439_v38 = vpop.f32.mrf.mxu0  ;;  %v15443_v22 = vpop.f32.mrf.mxu1 }
 0x3fa   : > { %v15445_v57 = vpop.f32.mrf.mxu1 }
 0x3fb   : > { %15705 = vst [vmem:[#allocation42_spill] sm:$0xff] %v15445_v57 }
 0x3fc   : > { %v15447_v7 = vpop.f32.mrf.mxu1 }
 0x3fd   : > { %15706 = vst [vmem:[#allocation50_spill] sm:$0xff] %v15447_v7 }
 0x3fe   : > { %v15449_v30 = vpop.f32.mrf.mxu1 }
 0x3ff   : > { %15707 = vst [vmem:[#allocation43_spill] sm:$0xff] %v15449_v30 }
 0x403   : > { %v11998_v47 = vpop.f32.mrf.mxu0 }
 0x404   : > { %v8816_v16 = vadd.f32 %v11998_v47, %v8590_v13  ;;  %v15723_v15 = vld [vmem:[#allocation50_spill] sm:$0xff] }
 0x405   : > { %v8783_v2 = vpop.f32.mrf.mxu0 }
 0x407   : > { %v11999_v18 = vpop.f32.mrf.mxu0 }
 0x409   : > { %v8786_v29 = vpop.f32.mrf.mxu0 }
 0x40b   : > { %v12002_v62 = vpop.f32.mrf.mxu0 }
 0x40d   : > { %v15451_v4 = vpop.f32.mrf.mxu1  ;;  %v8799_v50 = vpop.f32.mrf.mxu0 }
 0x40f   : > { %v15453_v1 = vpop.f32.mrf.mxu1  ;;  %v15455_v19 = vpop.f32.mrf.mxu0 }
 0x411   : > { %v15457_v33 = vpop.f32.mrf.mxu1  ;;  %v15459_v48 = vpop.f32.mrf.mxu0 }
 0x412   : > { %15708 = vst [vmem:[#allocation46_spill] sm:$0xff] %v15457_v33  ;;  %v8308_v33 = vadd.f32 %v11951_v63, %v7953_v12  ;;  %v15720_v63 = vld [vmem:[#allocation30_spill] sm:$0xff] }
 0x413   : > { %v15461_v61 = vpop.f32.mrf.mxu1  ;;  %v1420_v51 = vadd.f32 %v10510_v41, %v15720_v63 }
 0x414   : > { %15709 = vst [vmem:[#allocation34_spill] sm:$0xff] %v15461_v61  ;;  %v15717_v61 = vld [vmem:[#allocation27_spill] sm:$0xff]  ;;  %v8591_v34 = vadd.f32 %v15417_v10, %v8308_v33 }
 0x415   : > { %v15463_v11 = vpop.f32.mrf.mxu1  ;;  %v1425_v7 = vadd.f32 %v15717_v61, %v10510_v41  ;;  %v7957_v61 = vadd.f32 %v15415_v40, %v1428_v28  ;;  %v7955_v47 = vadd.f32 %v15419_v26, %v1420_v51 }
 0x416   : > { %15710 = vst [vmem:[#allocation31_spill] sm:$0xff] %v15463_v11  ;;  %v8305_v11 = vadd.f32 %v8274_v24, %v7950_v14  ;;  %v7954_v24 = vadd.f32 %v15411_v53, %v1417_v45 }
 0x417   : > { %v15468_v49 = vpop.f32.mrf.mxu1  ;;  %v7956_v57 = vadd.f32 %v15409_v6, %v1425_v7  ;;  %v8817_v6 = vadd.f32 %v11999_v18, %v8591_v34  ;;  %v8312_v53 = vadd.f32 %v15435_v21, %v7957_v61  ;;  %v8310_v40 = vadd.f32 %v15439_v38, %v7955_v47 }
 0x418   : > { %15711 = vst [vmem:[#allocation40_spill] sm:$0xff] %v15468_v49  ;;  %v8588_v8 = vadd.f32 %v15413_v9, %v8305_v11  ;;  %v8309_v44 = vadd.f32 %v8290_v20, %v7954_v24  ;;  %v9170_v9 = vadd.f32 %v15431_v60, %v8816_v16 }
 0x419   : > { %v15472_v52 = vpop.f32.mrf.mxu1  ;;  %v8311_v31 = vadd.f32 %v11954_v0, %v7956_v57  ;;  %v8815_v0 = vadd.f32 %v8786_v29, %v8589_v46  ;;  %v9171_v60 = vadd.f32 %v15437_v3, %v8817_v6  ;;  %v8595_v21 = vadd.f32 %v15427_v43, %v8312_v53  ;;  %v15722_v13 = vld [vmem:[#allocation46_spill] sm:$0xff] }
 0x41a   : > { %15714 = vst [vmem:[#allocation47_spill] sm:$0xff] %v15472_v52  ;;  %v8814_v14 = vadd.f32 %v8783_v2, %v8588_v8  ;;  %v8592_v20 = vadd.f32 %v15425_v32, %v8309_v44  ;;  %v8593_v38 = vadd.f32 %v15429_v55, %v8310_v40 }
 0x41b   : > { %v15476_v30 = vpop.f32.mrf.mxu1  ;;  %v8594_v10 = vadd.f32 %v15423_v58, %v8311_v31  ;;  %v9169_v29 = vadd.f32 %v15441_v23, %v8815_v0 }
 0x41c   : > { %v9168_v57 = vadd.f32 %v15433_v56, %v8814_v14  ;;  %v8818_v26 = vadd.f32 %v8799_v50, %v8592_v20  ;;  %v8821_v56 = vadd.f32 %v15455_v19, %v8595_v21  ;;  %v8819_v43 = vadd.f32 %v15459_v48, %v8593_v38  ;;  %v15724_v48 = vld [vmem:[#allocation34_spill] sm:$0xff] }
 0x41d   : > { %v8820_v17 = vadd.f32 %v12002_v62, %v8594_v10 }
 0x41e   : > { %v9175_v55 = vadd.f32 %v15723_v15, %v8821_v56 }
 0x41f   : > { %v15727_v44 = vld [vmem:[#allocation40_spill] sm:$0xff] }
 0x421   : > { %v15728_v47 = vld [vmem:[#allocation47_spill] sm:$0xff] }
 0x423   : > { %v12046_v5 = vpop.f32.mrf.mxu0 }
 0x424   : > { %v9452_v2 = vadd.f32 %v12046_v5, %v9170_v9 }
 0x425   : > { %v9419_v27 = vpop.f32.mrf.mxu0 }
 0x426   : > { %v9450_v33 = vadd.f32 %v9419_v27, %v9168_v57  ;;  %v9679_v58 = vadd.f32 %v15451_v4, %v9452_v2  ;;  %v9174_v27 = vadd.f32 %v15443_v22, %v8820_v17 }
 0x427   : > { %v12047_v36 = vpop.f32.mrf.mxu0 }
 0x428   : > { %v9453_v41 = vadd.f32 %v12047_v36, %v9171_v60  ;;  %v9677_v50 = vadd.f32 %v15453_v1, %v9450_v33  ;;  %v15721_v36 = vld [vmem:[#allocation42_spill] sm:$0xff] }
 0x429   : > { %v9422_v37 = vpop.f32.mrf.mxu0  ;;  %v9172_v42 = vadd.f32 %v15721_v36, %v8818_v26 }
 0x42a   : > { %v9451_v62 = vadd.f32 %v9422_v37, %v9169_v29  ;;  %v9680_v19 = vadd.f32 %v15722_v13, %v9453_v41 }
 0x42b   : > { %v12050_v49 = vpop.f32.mrf.mxu0 }
 0x42c   : > { %v9456_v12 = vadd.f32 %v12050_v49, %v9174_v27  ;;  %v9678_v16 = vadd.f32 %v15724_v48, %v9451_v62  ;;  %v15725_v49 = vld [vmem:[#allocation43_spill] sm:$0xff] }
 0x42d   : > { %v12118_v52 = vpop.f32.mrf.mxu1  ;;  %v9435_v25 = vpop.f32.mrf.mxu0 }
 0x42e   : > { %v9454_v37 = vadd.f32 %v9435_v25, %v9172_v42  ;;  %v15726_v25 = vld [vmem:[#allocation31_spill] sm:$0xff] }
 0x42f   : > { %v10282_v54 = vpop.f32.mrf.mxu1  ;;  %v12051_v7 = vpop.f32.mrf.mxu0  ;;  %v9683_v31 = vadd.f32 %v15726_v25, %v9456_v12 }
 0x430   : > { %v9457_v59 = vadd.f32 %v12051_v7, %v9175_v55 }
 0x431   : > { %v12119_v18 = vpop.f32.mrf.mxu1  ;;  %v9438_v11 = vpop.f32.mrf.mxu0 }
 0x432   : > { %v9684_v53 = vadd.f32 %v15728_v47, %v9457_v59 }
 0x433   : > { %v10285_v32 = vpop.f32.mrf.mxu1 }
 0x435   : > { %v12122_v45 = vpop.f32.mrf.mxu1 }
 0x437   : > { %v10298_v14 = vpop.f32.mrf.mxu1 }
 0x439   : > { %v12123_v7 = vpop.f32.mrf.mxu1 }
 0x43b   : > { %v10301_v17 = vpop.f32.mrf.mxu1 }
 0x443   : > { %v12094_v5 = vpop.f32.mrf.mxu0 }
 0x444   : > { %v10033_v3 = vadd.f32 %v12094_v5, %v9679_v58 }
 0x445   : > { %v10000_v23 = vpop.f32.mrf.mxu0 }
 0x446   : > { %v10315_v39 = vadd.f32 %v12118_v52, %v10033_v3  ;;  %v10031_v4 = vadd.f32 %v10000_v23, %v9677_v50  ;;  %v9173_v52 = vadd.f32 %v15725_v49, %v8819_v43 }
 0x447   : > { %v12095_v35 = vpop.f32.mrf.mxu0 }
 0x448   : > { %10339 = vst [vmem:[%s15508_s3 + $0x10] sm:$0xff] %v10315_v39  ;;  %v10313_v22 = vadd.f32 %v10282_v54, %v10031_v4  ;;  %v10034_v1 = vadd.f32 %v12095_v35, %v9680_v19  ;;  %v9455_v63 = vadd.f32 %v9438_v11, %v9173_v52  ;;  %v9681_v54 = vadd.f32 %v15727_v44, %v9454_v37 }
 0x449   : > { %v10003_v8 = vpop.f32.mrf.mxu0 }
 0x44a   : > { %10337 = vst [vmem:[%s15508_s3] sm:$0xff] %v10313_v22  ;;  %v10316_v28 = vadd.f32 %v12119_v18, %v10034_v1  ;;  %v10032_v24 = vadd.f32 %v10003_v8, %v9678_v16  ;;  %v9682_v57 = vadd.f32 %v15476_v30, %v9455_v63 }
 0x44b   : > { %v12098_v34 = vpop.f32.mrf.mxu0 }
 0x44c   : > { %10340 = vst [vmem:[%s15508_s3 + $0x18] sm:$0xff] %v10316_v28  ;;  %v10314_v51 = vadd.f32 %v10285_v32, %v10032_v24  ;;  %v10037_v61 = vadd.f32 %v12098_v34, %v9683_v31 }
 0x44d   : > { %v10016_v6 = vpop.f32.mrf.mxu0 }
 0x44e   : > { %10338 = vst [vmem:[%s15508_s3 + $0x8] sm:$0xff] %v10314_v51  ;;  %v10319_v46 = vadd.f32 %v12122_v45, %v10037_v61  ;;  %v10035_v9 = vadd.f32 %v10016_v6, %v9681_v54 }
 0x44f   : > { %v12099_v0 = vpop.f32.mrf.mxu0 }
 0x450   : > { %10343 = vst [vmem:[%s15508_s3 + $0x30] sm:$0xff] %v10319_v46  ;;  %v10317_v10 = vadd.f32 %v10298_v14, %v10035_v9  ;;  %v10038_v2 = vadd.f32 %v12099_v0, %v9684_v53 }
 0x451   : > { %v10019_v40 = vpop.f32.mrf.mxu0 }
 0x452   : > { %10341 = vst [vmem:[%s15508_s3 + $0x20] sm:$0xff] %v10317_v10  ;;  %v10320_v20 = vadd.f32 %v12123_v7, %v10038_v2  ;;  %v10036_v18 = vadd.f32 %v10019_v40, %v9682_v57 }
 0x454   : > { %10344 = vst [vmem:[%s15508_s3 + $0x38] sm:$0xff] %v10320_v20  ;;  %v10318_v33 = vadd.f32 %v10301_v17, %v10036_v18 }
 0x456   : > { %10342 = vst [vmem:[%s15508_s3 + $0x28] sm:$0xff] %v10318_v33 }
 0x457   : > { %12656 = shalt.err (!%p12653_p9)
}
 0x458   : > { %s12657_s20 = scalar_lea.hbm %s15529_s15, 1024  ;;  %s12661_s21 = scalar_lea.hbm %s15583_s9, 2048 }
 0x459   : > { %p12658_p1 = scmp.ne.s32.totalorder %s15529_s15, %s12657_s20  ;;  %p12662_p11 = scmp.lt.s32.totalorder %s15529_s15, %s15583_s9 }
 0x45a   : > { %p12663_p13 = scmp.lt.s32.totalorder %s12661_s21, %s12657_s20 }
 0x45b   : > { %p12659_p8 = pnand %p12658_p1, %p15729_p6 }
 0x45c   : > { %p12664_p2 = por %p12663_p13, %p12662_p11 }
 0x45d   : > { %p12660_p10 = pneg %p12659_p8 }
 0x45f   : > { %p12665_p4 = pnand %p12664_p2, %p12660_p10 }
 0x461   : > { %12668 = shalt.err (!%p12665_p4)
}
 0x462   : > { %s12728_s24 = smov 128   ;;  %s12729_s27 = smov 8  }
 0x463   : > { %12138 = dma.vmem_to_hbm [thread:$0]  (%p15729_p6), %s15523_s26, 1024, %s15529_s15, %s10346_s17, %s12728_s24, %s12728_s24, %s12729_s27  }
 0x464 PF: > { %s10374_s13 = sand.u32 1, %s12703_s30   ;;  %p15730_p12 = scmp.ne.s32.totalorder %s15600_s16, 0 }
 0x465   : > { %p15731_p0 = scmp.ge.s32.totalorder %s12715_s12, 2  ;;  %s10375_s19 = scalar_lea.sflag [#allocation8], %s10374_s13 }
 0x467   : > { %p12155_p5 = pnand %p15731_p0, %p15730_p12 }
 0x469   : > { %p12156_p3 = pneg %p12155_p5 }
 0x46b   : > { %12698 = dma.done.wait (%p12156_p3), %s10375_s19, 1024  }
 0x46c   : > { %12700 = vsyncadd (%p12156_p3), %s10375_s19, 4294966272  ;;  %p24_p7 = scmp.ge.s32.totalorder %s12860_s22, 4   ;;  %s15732_s30 = smov %s12707_s10 }
 0x46d   : > { %s15733_s10 = smov %s12711_s11  ;;  %s15734_s11 = smov %s12870_s29 }
 0x46e   : > { %s15735_s12 = smov %s12860_s22  ;;  %26 = sbr.rel (!%p24_p7) target bundleno = 11 (0xb), region = 135 }
 0x473   :  { %10380 = vsyncpa [#allocation7], 1 }
 0x474   :  { %10382 = vsyncpa [#allocation7 + $0x1], 1 }
 0x475   :  { %10383 = vsyncpa [#allocation10], 1 }
 0x476   :  { %10384 = vsyncpa [#allocation13], 1 }
 0x477   :  { %10385 = vsyncpa [#allocation8], 1 }
 0x478   :  { %10387 = vsyncpa [#allocation8 + $0x1], 1 }

</bundles_post_ra>
